<compile_context>
chip_gen: v5e
topology: v5e:2x2
jax: 0.10.0
libtpu: 0.0.40
codegen_flags: <defaults>
</compile_context>

<pallas_src>
import functools

import jax
import jax.numpy as jnp
from jax.experimental import pallas as pl
from jax.experimental.pallas import tpu as pltpu


def _decoder_kernel(x_ref, pos_ref, vecs_ref, lnf_ref, wqkv_ref, wproj_ref,
                    wfc1_ref, bfc1_ref, wfc2_ref, o_ref, attn_scr,
                    *, depth, num_heads, head_dim, ret):
    """Full TransformerDecoder forward for one batch element (seq N, dim C)."""
    f32 = jnp.float32
    bf16 = jnp.bfloat16
    C = num_heads * head_dim
    seq = x_ref.shape[1]
    scale = float(head_dim) ** -0.5

    x = x_ref[0]                       # (N, C) f32
    pos = pos_ref[0]                   # (N, C) f32
    vecs = vecs_ref[...]               # (depth, 6, C) f32 packed LN/bias vectors
    lnf = lnf_ref[...]                 # (2, C) f32 final LayerNorm

    def layer_norm(h, w, b):
        mu = jnp.mean(h, axis=-1, keepdims=True)
        c = h - mu
        var = jnp.mean(c * c, axis=-1, keepdims=True)
        return c * jax.lax.rsqrt(var + 1e-5) * w + b

    def erf(z):
        # Abramowitz & Stegun 7.1.26, |err| < 1.5e-7 — exact-GELU semantics
        # without relying on a lax.erf lowering inside the kernel (exp -> EUP).
        a1, a2, a3, a4, a5 = (0.254829592, -0.284496736, 1.421413741,
                              -1.453152027, 1.061405429)
        p = 0.3275911
        az = jnp.abs(z)
        t = 1.0 / (1.0 + p * az)
        poly = ((((a5 * t + a4) * t + a3) * t + a2) * t + a1) * t
        y = 1.0 - poly * jnp.exp(-az * az)
        return jnp.where(z >= 0.0, y, -y)

    def gelu(z):
        return 0.5 * z * (1.0 + erf(z * 0.7071067811865476))

    for d in range(depth):             # static unroll (depth is small)
        ln1_w = vecs[d, 0:1, :]
        ln1_b = vecs[d, 1:2, :]
        ln2_w = vecs[d, 2:3, :]
        ln2_b = vecs[d, 3:4, :]
        b_proj = vecs[d, 4:5, :]
        b_fc2 = vecs[d, 5:6, :]

        # ---------------- attention ----------------
        y = x + pos                                            # pos re-added per block
        hn = layer_norm(y, ln1_w, ln1_b)
        qkv = jnp.dot(hn.astype(bf16), wqkv_ref[d],
                      preferred_element_type=f32)              # (N, 3C) f32

        for h in range(num_heads):
            lo = h * head_dim
            hi = lo + head_dim
            q = qkv[:, lo:hi].astype(bf16)
            k = qkv[:, C + lo:C + hi].astype(bf16)
            v = qkv[:, 2 * C + lo:2 * C + hi].astype(bf16)
            s = jax.lax.dot_general(q, k, (((1,), (1,)), ((), ())),
                                    preferred_element_type=f32) * scale   # (N, N)
            s = s - jnp.max(s, axis=-1, keepdims=True)
            e = jnp.exp(s)
            p_attn = e / jnp.sum(e, axis=-1, keepdims=True)
            # assemble the "concatenated heads" tensor directly in VMEM scratch
            attn_scr[:, lo:hi] = jnp.dot(p_attn.astype(bf16), v,
                                         preferred_element_type=f32)     # (N, hd)

        # single output projection, full contraction C on the MXU
        attn_out = jnp.dot(attn_scr[...].astype(bf16), wproj_ref[d],
                           preferred_element_type=f32)         # (N, C)
        y = y + attn_out + b_proj

        # ---------------- MLP ----------------
        hn2 = layer_norm(y, ln2_w, ln2_b)
        m = jnp.dot(hn2.astype(bf16), wfc1_ref[d],
                    preferred_element_type=f32) + bfc1_ref[d]  # (N, hid)
        m = gelu(m)
        m = jnp.dot(m.astype(bf16), wfc2_ref[d],
                    preferred_element_type=f32) + b_fc2        # (N, C)
        x = y + m

    # final LayerNorm on the last `ret` tokens
    xr = x[seq - ret:, :]
    o_ref[0] = layer_norm(xr, lnf[0:1, :], lnf[1:2, :])


@functools.partial(jax.jit, static_argnums=(3, 4))
def decoder_forward(x, pos, params, num_heads, return_token_num):
    B, N, C = x.shape
    blocks = params["blocks"]
    depth = len(blocks)
    hid = blocks[0]["w_fc1"].shape[1]
    assert C % num_heads == 0

    f32 = jnp.float32
    bf16 = jnp.bfloat16

    # pack small per-block vectors into a single input stream
    vecs = jnp.stack([
        jnp.stack([b["ln1_w"], b["ln1_b"], b["ln2_w"], b["ln2_b"],
                   b["b_proj"], b["b_fc2"]], axis=0)
        for b in blocks], axis=0).astype(f32)                          # (depth, 6, C)
    lnf = jnp.stack([params["lnf_w"], params["lnf_b"]], axis=0).astype(f32)  # (2, C)
    wqkv = jnp.stack([b["w_qkv"] for b in blocks]).astype(bf16)        # (depth, C, 3C)
    wproj = jnp.stack([b["w_proj"] for b in blocks]).astype(bf16)      # (depth, C, C)
    wfc1 = jnp.stack([b["w_fc1"] for b in blocks]).astype(bf16)        # (depth, C, hid)
    bfc1 = jnp.stack([b["b_fc1"][None, :] for b in blocks]).astype(f32)  # (depth, 1, hid)
    wfc2 = jnp.stack([b["w_fc2"] for b in blocks]).astype(bf16)        # (depth, hid, C)

    kernel = functools.partial(_decoder_kernel, depth=depth, num_heads=num_heads,
                               head_dim=C // num_heads, ret=return_token_num)

    out = pl.pallas_call(
        kernel,
        out_shape=jax.ShapeDtypeStruct((B, return_token_num, C), f32),
        grid=(B,),
        in_specs=[
            pl.BlockSpec((1, N, C), lambda i: (i, 0, 0)),              # x
            pl.BlockSpec((1, N, C), lambda i: (i, 0, 0)),              # pos
            pl.BlockSpec((depth, 6, C), lambda i: (0, 0, 0)),          # packed LN/bias
            pl.BlockSpec((2, C), lambda i: (0, 0)),                    # final LN
            pl.BlockSpec((depth, C, 3 * C), lambda i: (0, 0, 0)),      # qkv weight (bf16)
            pl.BlockSpec((depth, C, C), lambda i: (0, 0, 0)),          # proj weight (bf16)
            pl.BlockSpec((depth, C, hid), lambda i: (0, 0, 0)),        # fc1 weight (bf16)
            pl.BlockSpec((depth, 1, hid), lambda i: (0, 0, 0)),        # fc1 bias (f32)
            pl.BlockSpec((depth, hid, C), lambda i: (0, 0, 0)),        # fc2 weight (bf16)
        ],
        out_specs=pl.BlockSpec((1, return_token_num, C), lambda i: (i, 0, 0)),
        scratch_shapes=[pltpu.VMEM((N, C), f32)],                      # concat-heads buffer
        compiler_params=pltpu.CompilerParams(
            dimension_semantics=("parallel",)),
    )(x.astype(f32), pos.astype(f32), vecs, lnf, wqkv, wproj, wfc1, bfc1, wfc2)
    return out


def decoder_reference(x, pos, params, num_heads, return_token_num, matmul_dtype=None):
    """Pure-JAX reference matching the PyTorch forward (eval mode).

    matmul_dtype=None      -> f32 operands, Precision.HIGHEST (faithful f32 baseline)
    matmul_dtype=bfloat16  -> bf16 operands with f32 accumulation (mirrors the kernel)
    """
    f32 = jnp.float32
    x = x.astype(f32)
    pos = pos.astype(f32)
    B, N, C = x.shape
    hd = C // num_heads
    scale = float(hd) ** -0.5
    prec = (jax.lax.Precision.HIGHEST if matmul_dtype is None
            else jax.lax.Precision.DEFAULT)

    def cast(v):
        return v if matmul_dtype is None else v.astype(matmul_dtype)

    def ln(h, w, b):
        mu = jnp.mean(h, axis=-1, keepdims=True)
        c = h - mu
        var = jnp.mean(c * c, axis=-1, keepdims=True)
        return c * jax.lax.rsqrt(var + 1e-5) * w + b

    for blk in params["blocks"]:
        y = x + pos
        h = ln(y, blk["ln1_w"], blk["ln1_b"])
        qkv = jnp.einsum("bnc,cd->bnd", cast(h), cast(blk["w_qkv"]),
                         precision=prec, preferred_element_type=f32)
        qkv = qkv.reshape(B, N, 3, num_heads, hd).transpose(2, 0, 3, 1, 4)
        q, k, v = qkv[0], qkv[1], qkv[2]                               # (B, H, N, hd)
        s = jnp.einsum("bhqd,bhkd->bhqk", cast(q), cast(k),
                       precision=prec, preferred_element_type=f32) * scale
        a = jax.nn.softmax(s, axis=-1)
        o = jnp.einsum("bhqk,bhkd->bhqd", cast(a), cast(v),
                       precision=prec, preferred_element_type=f32)
        o = o.transpose(0, 2, 1, 3).reshape(B, N, C)
        o = jnp.einsum("bnc,cd->bnd", cast(o), cast(blk["w_proj"]),
                       precision=prec, preferred_element_type=f32) + blk["b_proj"]
        y = y + o
        h2 = ln(y, blk["ln2_w"], blk["ln2_b"])
        m = jnp.einsum("bnc,ch->bnh", cast(h2), cast(blk["w_fc1"]),
                       precision=prec, preferred_element_type=f32) + blk["b_fc1"]
        m = 0.5 * m * (1.0 + jax.lax.erf(m * 0.7071067811865476))       # exact GELU
        m = jnp.einsum("bnh,hc->bnc", cast(m), cast(blk["w_fc2"]),
                       precision=prec, preferred_element_type=f32) + blk["b_fc2"]
        x = y + m

    xr = x[:, N - return_token_num:, :]
    return ln(xr, params["lnf_w"], params["lnf_b"])


def init_params(key, depth, dim, mlp_ratio):
    hid = int(dim * mlp_ratio)
    n_per_block = 11
    keys = jax.random.split(key, depth * n_per_block + 2)

    def xavier(k, fan_in, fan_out):
        bound = (6.0 / (fan_in + fan_out)) ** 0.5
        return jax.random.uniform(k, (fan_in, fan_out), jnp.float32, -bound, bound)

    blocks = []
    idx = 0
    for _ in range(depth):
        k = keys[idx:idx + n_per_block]
        idx += n_per_block
        blocks.append(dict(
            ln1_w=1.0 + 0.1 * jax.random.normal(k[0], (dim,), jnp.float32),
            ln1_b=0.05 * jax.random.normal(k[1], (dim,), jnp.float32),
            w_qkv=xavier(k[2], dim, 3 * dim),        # qkv_bias=False in the module
            w_proj=xavier(k[3], dim, dim),
            b_proj=0.05 * jax.random.normal(k[4], (dim,), jnp.float32),
            ln2_w=1.0 + 0.1 * jax.random.normal(k[5], (dim,), jnp.float32),
            ln2_b=0.05 * jax.random.normal(k[6], (dim,), jnp.float32),
            w_fc1=xavier(k[7], dim, hid),
            b_fc1=0.05 * jax.random.normal(k[8], (hid,), jnp.float32),
            w_fc2=xavier(k[9], hid, dim),
            b_fc2=0.05 * jax.random.normal(k[10], (dim,), jnp.float32),
        ))
    return dict(
        blocks=blocks,
        lnf_w=1.0 + 0.1 * jax.random.normal(keys[-2], (dim,), jnp.float32),
        lnf_b=0.05 * jax.random.normal(keys[-1], (dim,), jnp.float32))


if __name__ == "__main__":
    # Small analog of TransformerDecoder(embed_dim=384, depth=4, num_heads=6):
    B, N, DIM, HEADS, DEPTH, RET = 2, 32, 128, 4, 2, 16
    MLP_RATIO = 4.0

    key = jax.random.PRNGKey(0)
    kx, kp, kw = jax.random.split(key, 3)
    x = 0.5 * jax.random.normal(kx, (B, N, DIM), jnp.float32)
    pos = 0.5 * jax.random.normal(kp, (B, N, DIM), jnp.float32)
    params = init_params(kw, DEPTH, DIM, MLP_RATIO)

    out = decoder_forward(x, pos, params, HEADS, RET)
    out = jax.block_until_ready(out)

    assert out.shape == (B, RET, DIM), out.shape
    assert bool(jnp.all(jnp.isfinite(out)))

    # Strict check vs a reference that mirrors the kernel's bf16-operand matmuls.
    ref_bf16 = decoder_reference(x, pos, params, HEADS, RET, matmul_dtype=jnp.bfloat16)
    err_bf16 = float(jnp.max(jnp.abs(out - ref_bf16)))
    assert err_bf16 < 3e-3, f"bf16-matched reference mismatch: {err_bf16}"

    # Sanity check vs the full-f32 (HIGHEST) reference: bf16 quantization headroom.
    ref_f32 = decoder_reference(x, pos, params, HEADS, RET, matmul_dtype=None)
    err_f32 = float(jnp.max(jnp.abs(out - ref_f32)))
    assert err_f32 < 1e-1, f"f32 reference gap too large: {err_f32}"

    print("KERNEL_OK")
</pallas_src>

<mosaic_0001>
module attributes {stable_mosaic.version = 11 : i64} {
  func.func @_decoder_kernel(%arg0: i32, %arg1: memref<1x32x128xf32, #tpu.memory_space<vmem>>, %arg2: memref<1x32x128xf32, #tpu.memory_space<vmem>>, %arg3: memref<2x6x128xf32, #tpu.memory_space<vmem>>, %arg4: memref<2x128xf32, #tpu.memory_space<vmem>>, %arg5: memref<2x128x384xbf16, #tpu.memory_space<vmem>>, %arg6: memref<2x128x128xbf16, #tpu.memory_space<vmem>>, %arg7: memref<2x128x512xbf16, #tpu.memory_space<vmem>>, %arg8: memref<2x1x512xf32, #tpu.memory_space<vmem>>, %arg9: memref<2x512x128xbf16, #tpu.memory_space<vmem>>, %arg10: memref<1x16x128xf32, #tpu.memory_space<vmem>>, %arg11: memref<32x128xf32, #tpu.memory_space<vmem>>) attributes {dimension_semantics = [#tpu.dimension_semantics<parallel>], iteration_bounds = array<i64: 2>, scalar_prefetch = 0 : i64, scratch_operands = 1 : i64, tpu.core_type = #tpu.core_type<tc>, window_params = [{transform_indices = @transform_0, window_bounds = array<i64: 1, 32, 128>}, {transform_indices = @transform_1, window_bounds = array<i64: 1, 32, 128>}, {pipeline_mode = #tpu.pipeline_mode<synchronous>, transform_indices = @transform_2, window_bounds = array<i64: 2, 6, 128>}, {pipeline_mode = #tpu.pipeline_mode<synchronous>, transform_indices = @transform_3, window_bounds = array<i64: 2, 128>}, {pipeline_mode = #tpu.pipeline_mode<synchronous>, transform_indices = @transform_4, window_bounds = array<i64: 2, 128, 384>}, {pipeline_mode = #tpu.pipeline_mode<synchronous>, transform_indices = @transform_5, window_bounds = array<i64: 2, 128, 128>}, {pipeline_mode = #tpu.pipeline_mode<synchronous>, transform_indices = @transform_6, window_bounds = array<i64: 2, 128, 512>}, {pipeline_mode = #tpu.pipeline_mode<synchronous>, transform_indices = @transform_7, window_bounds = array<i64: 2, 1, 512>}, {pipeline_mode = #tpu.pipeline_mode<synchronous>, transform_indices = @transform_8, window_bounds = array<i64: 2, 512, 128>}, {transform_indices = @transform_9, window_bounds = array<i64: 1, 16, 128>}]} {
    %c0 = arith.constant 0 : index
    %c0_0 = arith.constant 0 : index
    %c0_1 = arith.constant 0 : index
    %0 = vector.load %arg1[%c0, %c0_0, %c0_1] : memref<1x32x128xf32, #tpu.memory_space<vmem>>, vector<1x32x128xf32>
    %1 = vector.shape_cast %0 : vector<1x32x128xf32> to vector<32x128xf32>
    %c0_2 = arith.constant 0 : index
    %c0_3 = arith.constant 0 : index
    %c0_4 = arith.constant 0 : index
    %2 = vector.load %arg2[%c0_2, %c0_3, %c0_4] : memref<1x32x128xf32, #tpu.memory_space<vmem>>, vector<1x32x128xf32>
    %3 = vector.shape_cast %2 : vector<1x32x128xf32> to vector<32x128xf32>
    %c0_5 = arith.constant 0 : index
    %c0_6 = arith.constant 0 : index
    %c0_7 = arith.constant 0 : index
    %4 = vector.load %arg3[%c0_5, %c0_6, %c0_7] : memref<2x6x128xf32, #tpu.memory_space<vmem>>, vector<2x6x128xf32>
    %c0_8 = arith.constant 0 : index
    %c0_9 = arith.constant 0 : index
    %5 = vector.load %arg4[%c0_8, %c0_9] : memref<2x128xf32, #tpu.memory_space<vmem>>, vector<2x128xf32>
    %6 = vector.extract_strided_slice %4 {offsets = [0, 0, 0], sizes = [1, 1, 128], strides = [1, 1, 1]} : vector<2x6x128xf32> to vector<1x1x128xf32>
    %7 = vector.shape_cast %6 : vector<1x1x128xf32> to vector<1x128xf32>
    %8 = vector.extract_strided_slice %4 {offsets = [0, 1, 0], sizes = [1, 1, 128], strides = [1, 1, 1]} : vector<2x6x128xf32> to vector<1x1x128xf32>
    %9 = vector.shape_cast %8 : vector<1x1x128xf32> to vector<1x128xf32>
    %10 = vector.extract_strided_slice %4 {offsets = [0, 2, 0], sizes = [1, 1, 128], strides = [1, 1, 1]} : vector<2x6x128xf32> to vector<1x1x128xf32>
    %11 = vector.shape_cast %10 : vector<1x1x128xf32> to vector<1x128xf32>
    %12 = vector.extract_strided_slice %4 {offsets = [0, 3, 0], sizes = [1, 1, 128], strides = [1, 1, 1]} : vector<2x6x128xf32> to vector<1x1x128xf32>
    %13 = vector.shape_cast %12 : vector<1x1x128xf32> to vector<1x128xf32>
    %14 = vector.extract_strided_slice %4 {offsets = [0, 4, 0], sizes = [1, 1, 128], strides = [1, 1, 1]} : vector<2x6x128xf32> to vector<1x1x128xf32>
    %15 = vector.shape_cast %14 : vector<1x1x128xf32> to vector<1x128xf32>
    %16 = vector.extract_strided_slice %4 {offsets = [0, 5, 0], sizes = [1, 1, 128], strides = [1, 1, 1]} : vector<2x6x128xf32> to vector<1x1x128xf32>
    %17 = vector.shape_cast %16 : vector<1x1x128xf32> to vector<1x128xf32>
    %18 = arith.addf %1, %3 : vector<32x128xf32>
    %cst = arith.constant dense<0.000000e+00> : vector<32xf32>
    %19 = vector.multi_reduction <add>, %18, %cst [1] : vector<32x128xf32> to vector<32xf32>
    %20 = vector.shape_cast %19 : vector<32xf32> to vector<32x1xf32>
    %cst_10 = arith.constant 1.280000e+02 : f32
    %21 = vector.broadcast %cst_10 : f32 to vector<32x1xf32>
    %22 = arith.divf %20, %21 : vector<32x1xf32>
    %23 = vector.broadcast %22 : vector<32x1xf32> to vector<32x128xf32>
    %24 = arith.subf %18, %23 : vector<32x128xf32>
    %25 = arith.mulf %24, %24 : vector<32x128xf32>
    %cst_11 = arith.constant dense<0.000000e+00> : vector<32xf32>
    %26 = vector.multi_reduction <add>, %25, %cst_11 [1] : vector<32x128xf32> to vector<32xf32>
    %27 = vector.shape_cast %26 : vector<32xf32> to vector<32x1xf32>
    %cst_12 = arith.constant 1.280000e+02 : f32
    %28 = vector.broadcast %cst_12 : f32 to vector<32x1xf32>
    %29 = arith.divf %27, %28 : vector<32x1xf32>
    %cst_13 = arith.constant 9.99999974E-6 : f32
    %30 = vector.broadcast %cst_13 : f32 to vector<32x1xf32>
    %31 = arith.addf %29, %30 : vector<32x1xf32>
    %32 = math.rsqrt %31 : vector<32x1xf32>
    %33 = vector.broadcast %32 : vector<32x1xf32> to vector<32x128xf32>
    %34 = arith.mulf %24, %33 : vector<32x128xf32>
    %35 = vector.broadcast %7 : vector<1x128xf32> to vector<32x128xf32>
    %36 = arith.mulf %34, %35 : vector<32x128xf32>
    %37 = vector.broadcast %9 : vector<1x128xf32> to vector<32x128xf32>
    %38 = arith.addf %36, %37 : vector<32x128xf32>
    %39 = arith.truncf %38 : vector<32x128xf32> to vector<32x128xbf16>
    %c0_14 = arith.constant 0 : index
    %c0_15 = arith.constant 0 : index
    %c0_16 = arith.constant 0 : index
    %40 = vector.load %arg5[%c0_14, %c0_15, %c0_16] : memref<2x128x384xbf16, #tpu.memory_space<vmem>>, vector<1x128x384xbf16>
    %41 = vector.shape_cast %40 : vector<1x128x384xbf16> to vector<128x384xbf16>
    %cst_17 = arith.constant dense<0.000000e+00> : vector<32x384xf32>
    %42 = tpu.matmul %39, %41, %cst_17 {dimension_numbers = #tpu.dot_dimension_numbers<[1], [0], [0], [1], [0, 0, 1, 1], [], []>} : vector<32x128xbf16>, vector<128x384xbf16>, vector<32x384xf32> -> vector<32x384xf32>
    %43 = vector.extract_strided_slice %42 {offsets = [0, 0], sizes = [32, 32], strides = [1, 1]} : vector<32x384xf32> to vector<32x32xf32>
    %44 = arith.truncf %43 : vector<32x32xf32> to vector<32x32xbf16>
    %45 = vector.extract_strided_slice %42 {offsets = [0, 128], sizes = [32, 32], strides = [1, 1]} : vector<32x384xf32> to vector<32x32xf32>
    %46 = arith.truncf %45 : vector<32x32xf32> to vector<32x32xbf16>
    %47 = vector.extract_strided_slice %42 {offsets = [0, 256], sizes = [32, 32], strides = [1, 1]} : vector<32x384xf32> to vector<32x32xf32>
    %48 = arith.truncf %47 : vector<32x32xf32> to vector<32x32xbf16>
    %cst_18 = arith.constant dense<0.000000e+00> : vector<32x32xf32>
    %49 = tpu.matmul %44, %46, %cst_18 {dimension_numbers = #tpu.dot_dimension_numbers<[1], [1], [0], [0], [0, 0, 1, 0], [], []>} : vector<32x32xbf16>, vector<32x32xbf16>, vector<32x32xf32> -> vector<32x32xf32>
    %cst_19 = arith.constant 0.176776692 : f32
    %50 = vector.broadcast %cst_19 : f32 to vector<32x32xf32>
    %51 = arith.mulf %49, %50 : vector<32x32xf32>
    %cst_20 = arith.constant dense<0xFF800000> : vector<32xf32>
    %52 = vector.multi_reduction <maximumf>, %51, %cst_20 [1] : vector<32x32xf32> to vector<32xf32>
    %53 = vector.shape_cast %52 : vector<32xf32> to vector<32x1xf32>
    %54 = vector.broadcast %53 : vector<32x1xf32> to vector<32x32xf32>
    %55 = arith.subf %51, %54 : vector<32x32xf32>
    %56 = math.exp %55 : vector<32x32xf32>
    %cst_21 = arith.constant dense<0.000000e+00> : vector<32xf32>
    %57 = vector.multi_reduction <add>, %56, %cst_21 [1] : vector<32x32xf32> to vector<32xf32>
    %58 = vector.shape_cast %57 : vector<32xf32> to vector<32x1xf32>
    %59 = vector.broadcast %58 : vector<32x1xf32> to vector<32x32xf32>
    %60 = arith.divf %56, %59 : vector<32x32xf32>
    %61 = arith.truncf %60 : vector<32x32xf32> to vector<32x32xbf16>
    %cst_22 = arith.constant dense<0.000000e+00> : vector<32x32xf32>
    %62 = tpu.matmul %61, %48, %cst_22 {dimension_numbers = #tpu.dot_dimension_numbers<[1], [0], [0], [1], [0, 0, 1, 1], [], []>} : vector<32x32xbf16>, vector<32x32xbf16>, vector<32x32xf32> -> vector<32x32xf32>
    %c0_23 = arith.constant 0 : index
    %c0_24 = arith.constant 0 : index
    %63 = vector.load %arg11[%c0_23, %c0_24] : memref<32x128xf32, #tpu.memory_space<vmem>>, vector<32x32xf32>
    tpu.vector_store %arg11[%c0_23, %c0_24], %62 {strides = array<i32>} : memref<32x128xf32, #tpu.memory_space<vmem>>, vector<32x32xf32>,
    %64 = vector.extract_strided_slice %42 {offsets = [0, 32], sizes = [32, 32], strides = [1, 1]} : vector<32x384xf32> to vector<32x32xf32>
    %65 = arith.truncf %64 : vector<32x32xf32> to vector<32x32xbf16>
    %66 = vector.extract_strided_slice %42 {offsets = [0, 160], sizes = [32, 32], strides = [1, 1]} : vector<32x384xf32> to vector<32x32xf32>
    %67 = arith.truncf %66 : vector<32x32xf32> to vector<32x32xbf16>
    %68 = vector.extract_strided_slice %42 {offsets = [0, 288], sizes = [32, 32], strides = [1, 1]} : vector<32x384xf32> to vector<32x32xf32>
    %69 = arith.truncf %68 : vector<32x32xf32> to vector<32x32xbf16>
    %cst_25 = arith.constant dense<0.000000e+00> : vector<32x32xf32>
    %70 = tpu.matmul %65, %67, %cst_25 {dimension_numbers = #tpu.dot_dimension_numbers<[1], [1], [0], [0], [0, 0, 1, 0], [], []>} : vector<32x32xbf16>, vector<32x32xbf16>, vector<32x32xf32> -> vector<32x32xf32>
    %cst_26 = arith.constant 0.176776692 : f32
    %71 = vector.broadcast %cst_26 : f32 to vector<32x32xf32>
    %72 = arith.mulf %70, %71 : vector<32x32xf32>
    %cst_27 = arith.constant dense<0xFF800000> : vector<32xf32>
    %73 = vector.multi_reduction <maximumf>, %72, %cst_27 [1] : vector<32x32xf32> to vector<32xf32>
    %74 = vector.shape_cast %73 : vector<32xf32> to vector<32x1xf32>
    %75 = vector.broadcast %74 : vector<32x1xf32> to vector<32x32xf32>
    %76 = arith.subf %72, %75 : vector<32x32xf32>
    %77 = math.exp %76 : vector<32x32xf32>
    %cst_28 = arith.constant dense<0.000000e+00> : vector<32xf32>
    %78 = vector.multi_reduction <add>, %77, %cst_28 [1] : vector<32x32xf32> to vector<32xf32>
    %79 = vector.shape_cast %78 : vector<32xf32> to vector<32x1xf32>
    %80 = vector.broadcast %79 : vector<32x1xf32> to vector<32x32xf32>
    %81 = arith.divf %77, %80 : vector<32x32xf32>
    %82 = arith.truncf %81 : vector<32x32xf32> to vector<32x32xbf16>
    %cst_29 = arith.constant dense<0.000000e+00> : vector<32x32xf32>
    %83 = tpu.matmul %82, %69, %cst_29 {dimension_numbers = #tpu.dot_dimension_numbers<[1], [0], [0], [1], [0, 0, 1, 1], [], []>} : vector<32x32xbf16>, vector<32x32xbf16>, vector<32x32xf32> -> vector<32x32xf32>
    %c0_30 = arith.constant 0 : index
    %c32 = arith.constant 32 : index
    %84 = vector.load %arg11[%c0_30, %c32] : memref<32x128xf32, #tpu.memory_space<vmem>>, vector<32x32xf32>
    tpu.vector_store %arg11[%c0_30, %c32], %83 {strides = array<i32>} : memref<32x128xf32, #tpu.memory_space<vmem>>, vector<32x32xf32>,
    %85 = vector.extract_strided_slice %42 {offsets = [0, 64], sizes = [32, 32], strides = [1, 1]} : vector<32x384xf32> to vector<32x32xf32>
    %86 = arith.truncf %85 : vector<32x32xf32> to vector<32x32xbf16>
    %87 = vector.extract_strided_slice %42 {offsets = [0, 192], sizes = [32, 32], strides = [1, 1]} : vector<32x384xf32> to vector<32x32xf32>
    %88 = arith.truncf %87 : vector<32x32xf32> to vector<32x32xbf16>
    %89 = vector.extract_strided_slice %42 {offsets = [0, 320], sizes = [32, 32], strides = [1, 1]} : vector<32x384xf32> to vector<32x32xf32>
    %90 = arith.truncf %89 : vector<32x32xf32> to vector<32x32xbf16>
    %cst_31 = arith.constant dense<0.000000e+00> : vector<32x32xf32>
    %91 = tpu.matmul %86, %88, %cst_31 {dimension_numbers = #tpu.dot_dimension_numbers<[1], [1], [0], [0], [0, 0, 1, 0], [], []>} : vector<32x32xbf16>, vector<32x32xbf16>, vector<32x32xf32> -> vector<32x32xf32>
    %cst_32 = arith.constant 0.176776692 : f32
    %92 = vector.broadcast %cst_32 : f32 to vector<32x32xf32>
    %93 = arith.mulf %91, %92 : vector<32x32xf32>
    %cst_33 = arith.constant dense<0xFF800000> : vector<32xf32>
    %94 = vector.multi_reduction <maximumf>, %93, %cst_33 [1] : vector<32x32xf32> to vector<32xf32>
    %95 = vector.shape_cast %94 : vector<32xf32> to vector<32x1xf32>
    %96 = vector.broadcast %95 : vector<32x1xf32> to vector<32x32xf32>
    %97 = arith.subf %93, %96 : vector<32x32xf32>
    %98 = math.exp %97 : vector<32x32xf32>
    %cst_34 = arith.constant dense<0.000000e+00> : vector<32xf32>
    %99 = vector.multi_reduction <add>, %98, %cst_34 [1] : vector<32x32xf32> to vector<32xf32>
    %100 = vector.shape_cast %99 : vector<32xf32> to vector<32x1xf32>
    %101 = vector.broadcast %100 : vector<32x1xf32> to vector<32x32xf32>
    %102 = arith.divf %98, %101 : vector<32x32xf32>
    %103 = arith.truncf %102 : vector<32x32xf32> to vector<32x32xbf16>
    %cst_35 = arith.constant dense<0.000000e+00> : vector<32x32xf32>
    %104 = tpu.matmul %103, %90, %cst_35 {dimension_numbers = #tpu.dot_dimension_numbers<[1], [0], [0], [1], [0, 0, 1, 1], [], []>} : vector<32x32xbf16>, vector<32x32xbf16>, vector<32x32xf32> -> vector<32x32xf32>
    %c0_36 = arith.constant 0 : index
    %c64 = arith.constant 64 : index
    %105 = vector.load %arg11[%c0_36, %c64] : memref<32x128xf32, #tpu.memory_space<vmem>>, vector<32x32xf32>
    tpu.vector_store %arg11[%c0_36, %c64], %104 {strides = array<i32>} : memref<32x128xf32, #tpu.memory_space<vmem>>, vector<32x32xf32>,
    %106 = vector.extract_strided_slice %42 {offsets = [0, 96], sizes = [32, 32], strides = [1, 1]} : vector<32x384xf32> to vector<32x32xf32>
    %107 = arith.truncf %106 : vector<32x32xf32> to vector<32x32xbf16>
    %108 = vector.extract_strided_slice %42 {offsets = [0, 224], sizes = [32, 32], strides = [1, 1]} : vector<32x384xf32> to vector<32x32xf32>
    %109 = arith.truncf %108 : vector<32x32xf32> to vector<32x32xbf16>
    %110 = vector.extract_strided_slice %42 {offsets = [0, 352], sizes = [32, 32], strides = [1, 1]} : vector<32x384xf32> to vector<32x32xf32>
    %111 = arith.truncf %110 : vector<32x32xf32> to vector<32x32xbf16>
    %cst_37 = arith.constant dense<0.000000e+00> : vector<32x32xf32>
    %112 = tpu.matmul %107, %109, %cst_37 {dimension_numbers = #tpu.dot_dimension_numbers<[1], [1], [0], [0], [0, 0, 1, 0], [], []>} : vector<32x32xbf16>, vector<32x32xbf16>, vector<32x32xf32> -> vector<32x32xf32>
    %cst_38 = arith.constant 0.176776692 : f32
    %113 = vector.broadcast %cst_38 : f32 to vector<32x32xf32>
    %114 = arith.mulf %112, %113 : vector<32x32xf32>
    %cst_39 = arith.constant dense<0xFF800000> : vector<32xf32>
    %115 = vector.multi_reduction <maximumf>, %114, %cst_39 [1] : vector<32x32xf32> to vector<32xf32>
    %116 = vector.shape_cast %115 : vector<32xf32> to vector<32x1xf32>
    %117 = vector.broadcast %116 : vector<32x1xf32> to vector<32x32xf32>
    %118 = arith.subf %114, %117 : vector<32x32xf32>
    %119 = math.exp %118 : vector<32x32xf32>
    %cst_40 = arith.constant dense<0.000000e+00> : vector<32xf32>
    %120 = vector.multi_reduction <add>, %119, %cst_40 [1] : vector<32x32xf32> to vector<32xf32>
    %121 = vector.shape_cast %120 : vector<32xf32> to vector<32x1xf32>
    %122 = vector.broadcast %121 : vector<32x1xf32> to vector<32x32xf32>
    %123 = arith.divf %119, %122 : vector<32x32xf32>
    %124 = arith.truncf %123 : vector<32x32xf32> to vector<32x32xbf16>
    %cst_41 = arith.constant dense<0.000000e+00> : vector<32x32xf32>
    %125 = tpu.matmul %124, %111, %cst_41 {dimension_numbers = #tpu.dot_dimension_numbers<[1], [0], [0], [1], [0, 0, 1, 1], [], []>} : vector<32x32xbf16>, vector<32x32xbf16>, vector<32x32xf32> -> vector<32x32xf32>
    %c0_42 = arith.constant 0 : index
    %c96 = arith.constant 96 : index
    %126 = vector.load %arg11[%c0_42, %c96] : memref<32x128xf32, #tpu.memory_space<vmem>>, vector<32x32xf32>
    tpu.vector_store %arg11[%c0_42, %c96], %125 {strides = array<i32>} : memref<32x128xf32, #tpu.memory_space<vmem>>, vector<32x32xf32>,
    %c0_43 = arith.constant 0 : index
    %c0_44 = arith.constant 0 : index
    %127 = vector.load %arg11[%c0_43, %c0_44] : memref<32x128xf32, #tpu.memory_space<vmem>>, vector<32x128xf32>
    %128 = arith.truncf %127 : vector<32x128xf32> to vector<32x128xbf16>
    %c0_45 = arith.constant 0 : index
    %c0_46 = arith.constant 0 : index
    %c0_47 = arith.constant 0 : index
    %129 = vector.load %arg6[%c0_45, %c0_46, %c0_47] : memref<2x128x128xbf16, #tpu.memory_space<vmem>>, vector<1x128x128xbf16>
    %130 = vector.shape_cast %129 : vector<1x128x128xbf16> to vector<128x128xbf16>
    %cst_48 = arith.constant dense<0.000000e+00> : vector<32x128xf32>
    %131 = tpu.matmul %128, %130, %cst_48 {dimension_numbers = #tpu.dot_dimension_numbers<[1], [0], [0], [1], [0, 0, 1, 1], [], []>} : vector<32x128xbf16>, vector<128x128xbf16>, vector<32x128xf32> -> vector<32x128xf32>
    %132 = arith.addf %18, %131 : vector<32x128xf32>
    %133 = vector.broadcast %15 : vector<1x128xf32> to vector<32x128xf32>
    %134 = arith.addf %132, %133 : vector<32x128xf32>
    %cst_49 = arith.constant dense<0.000000e+00> : vector<32xf32>
    %135 = vector.multi_reduction <add>, %134, %cst_49 [1] : vector<32x128xf32> to vector<32xf32>
    %136 = vector.shape_cast %135 : vector<32xf32> to vector<32x1xf32>
    %cst_50 = arith.constant 1.280000e+02 : f32
    %137 = vector.broadcast %cst_50 : f32 to vector<32x1xf32>
    %138 = arith.divf %136, %137 : vector<32x1xf32>
    %139 = vector.broadcast %138 : vector<32x1xf32> to vector<32x128xf32>
    %140 = arith.subf %134, %139 : vector<32x128xf32>
    %141 = arith.mulf %140, %140 : vector<32x128xf32>
    %cst_51 = arith.constant dense<0.000000e+00> : vector<32xf32>
    %142 = vector.multi_reduction <add>, %141, %cst_51 [1] : vector<32x128xf32> to vector<32xf32>
    %143 = vector.shape_cast %142 : vector<32xf32> to vector<32x1xf32>
    %cst_52 = arith.constant 1.280000e+02 : f32
    %144 = vector.broadcast %cst_52 : f32 to vector<32x1xf32>
    %145 = arith.divf %143, %144 : vector<32x1xf32>
    %cst_53 = arith.constant 9.99999974E-6 : f32
    %146 = vector.broadcast %cst_53 : f32 to vector<32x1xf32>
    %147 = arith.addf %145, %146 : vector<32x1xf32>
    %148 = math.rsqrt %147 : vector<32x1xf32>
    %149 = vector.broadcast %148 : vector<32x1xf32> to vector<32x128xf32>
    %150 = arith.mulf %140, %149 : vector<32x128xf32>
    %151 = vector.broadcast %11 : vector<1x128xf32> to vector<32x128xf32>
    %152 = arith.mulf %150, %151 : vector<32x128xf32>
    %153 = vector.broadcast %13 : vector<1x128xf32> to vector<32x128xf32>
    %154 = arith.addf %152, %153 : vector<32x128xf32>
    %155 = arith.truncf %154 : vector<32x128xf32> to vector<32x128xbf16>
    %c0_54 = arith.constant 0 : index
    %c0_55 = arith.constant 0 : index
    %c0_56 = arith.constant 0 : index
    %156 = vector.load %arg7[%c0_54, %c0_55, %c0_56] : memref<2x128x512xbf16, #tpu.memory_space<vmem>>, vector<1x128x512xbf16>
    %157 = vector.shape_cast %156 : vector<1x128x512xbf16> to vector<128x512xbf16>
    %cst_57 = arith.constant dense<0.000000e+00> : vector<32x512xf32>
    %158 = tpu.matmul %155, %157, %cst_57 {dimension_numbers = #tpu.dot_dimension_numbers<[1], [0], [0], [1], [0, 0, 1, 1], [], []>} : vector<32x128xbf16>, vector<128x512xbf16>, vector<32x512xf32> -> vector<32x512xf32>
    %c0_58 = arith.constant 0 : index
    %c0_59 = arith.constant 0 : index
    %c0_60 = arith.constant 0 : index
    %159 = vector.load %arg8[%c0_58, %c0_59, %c0_60] : memref<2x1x512xf32, #tpu.memory_space<vmem>>, vector<1x1x512xf32>
    %160 = vector.shape_cast %159 : vector<1x1x512xf32> to vector<1x512xf32>
    %161 = vector.broadcast %160 : vector<1x512xf32> to vector<32x512xf32>
    %162 = arith.addf %158, %161 : vector<32x512xf32>
    %cst_61 = arith.constant 5.000000e-01 : f32
    %163 = vector.broadcast %cst_61 : f32 to vector<32x512xf32>
    %164 = arith.mulf %163, %162 : vector<32x512xf32>
    %cst_62 = arith.constant 0.707106769 : f32
    %165 = vector.broadcast %cst_62 : f32 to vector<32x512xf32>
    %166 = arith.mulf %162, %165 : vector<32x512xf32>
    %167 = math.absf %166 : vector<32x512xf32>
    %cst_63 = arith.constant 0.327591091 : f32
    %168 = vector.broadcast %cst_63 : f32 to vector<32x512xf32>
    %169 = arith.mulf %168, %167 : vector<32x512xf32>
    %cst_64 = arith.constant 1.000000e+00 : f32
    %170 = vector.broadcast %cst_64 : f32 to vector<32x512xf32>
    %171 = arith.addf %170, %169 : vector<32x512xf32>
    %cst_65 = arith.constant 1.000000e+00 : f32
    %172 = vector.broadcast %cst_65 : f32 to vector<32x512xf32>
    %173 = arith.divf %172, %171 : vector<32x512xf32>
    %cst_66 = arith.constant 1.06140542 : f32
    %174 = vector.broadcast %cst_66 : f32 to vector<32x512xf32>
    %175 = arith.mulf %174, %173 : vector<32x512xf32>
    %cst_67 = arith.constant -1.45315206 : f32
    %176 = vector.broadcast %cst_67 : f32 to vector<32x512xf32>
    %177 = arith.addf %175, %176 : vector<32x512xf32>
    %178 = arith.mulf %177, %173 : vector<32x512xf32>
    %cst_68 = arith.constant 1.42141378 : f32
    %179 = vector.broadcast %cst_68 : f32 to vector<32x512xf32>
    %180 = arith.addf %178, %179 : vector<32x512xf32>
    %181 = arith.mulf %180, %173 : vector<32x512xf32>
    %cst_69 = arith.constant -0.284496725 : f32
    %182 = vector.broadcast %cst_69 : f32 to vector<32x512xf32>
    %183 = arith.addf %181, %182 : vector<32x512xf32>
    %184 = arith.mulf %183, %173 : vector<32x512xf32>
    %cst_70 = arith.constant 0.254829586 : f32
    %185 = vector.broadcast %cst_70 : f32 to vector<32x512xf32>
    %186 = arith.addf %184, %185 : vector<32x512xf32>
    %187 = arith.mulf %186, %173 : vector<32x512xf32>
    %cst_71 = arith.constant 0.000000e+00 : f32
    %188 = vector.broadcast %cst_71 : f32 to vector<32x512xf32>
    %189 = arith.subf %188, %167 : vector<32x512xf32>
    %190 = arith.mulf %189, %167 : vector<32x512xf32>
    %191 = math.exp %190 : vector<32x512xf32>
    %192 = arith.mulf %187, %191 : vector<32x512xf32>
    %cst_72 = arith.constant 1.000000e+00 : f32
    %193 = vector.broadcast %cst_72 : f32 to vector<32x512xf32>
    %194 = arith.subf %193, %192 : vector<32x512xf32>
    %cst_73 = arith.constant 0.000000e+00 : f32
    %195 = vector.broadcast %cst_73 : f32 to vector<32x512xf32>
    %196 = arith.cmpf oge, %166, %195 : vector<32x512xf32>
    %cst_74 = arith.constant 0.000000e+00 : f32
    %197 = vector.broadcast %cst_74 : f32 to vector<32x512xf32>
    %198 = arith.subf %197, %194 : vector<32x512xf32>
    %199 = arith.select %196, %194, %198 : vector<32x512xi1>, vector<32x512xf32>
    %cst_75 = arith.constant 1.000000e+00 : f32
    %200 = vector.broadcast %cst_75 : f32 to vector<32x512xf32>
    %201 = arith.addf %200, %199 : vector<32x512xf32>
    %202 = arith.mulf %164, %201 : vector<32x512xf32>
    %203 = arith.truncf %202 : vector<32x512xf32> to vector<32x512xbf16>
    %c0_76 = arith.constant 0 : index
    %c0_77 = arith.constant 0 : index
    %c0_78 = arith.constant 0 : index
    %204 = vector.load %arg9[%c0_76, %c0_77, %c0_78] : memref<2x512x128xbf16, #tpu.memory_space<vmem>>, vector<1x512x128xbf16>
    %205 = vector.shape_cast %204 : vector<1x512x128xbf16> to vector<512x128xbf16>
    %cst_79 = arith.constant dense<0.000000e+00> : vector<32x128xf32>
    %206 = tpu.matmul %203, %205, %cst_79 {dimension_numbers = #tpu.dot_dimension_numbers<[1], [0], [0], [1], [0, 0, 1, 1], [], []>} : vector<32x512xbf16>, vector<512x128xbf16>, vector<32x128xf32> -> vector<32x128xf32>
    %207 = vector.broadcast %17 : vector<1x128xf32> to vector<32x128xf32>
    %208 = arith.addf %206, %207 : vector<32x128xf32>
    %209 = arith.addf %134, %208 : vector<32x128xf32>
    %210 = vector.extract_strided_slice %4 {offsets = [1, 0, 0], sizes = [1, 1, 128], strides = [1, 1, 1]} : vector<2x6x128xf32> to vector<1x1x128xf32>
    %211 = vector.shape_cast %210 : vector<1x1x128xf32> to vector<1x128xf32>
    %212 = vector.extract_strided_slice %4 {offsets = [1, 1, 0], sizes = [1, 1, 128], strides = [1, 1, 1]} : vector<2x6x128xf32> to vector<1x1x128xf32>
    %213 = vector.shape_cast %212 : vector<1x1x128xf32> to vector<1x128xf32>
    %214 = vector.extract_strided_slice %4 {offsets = [1, 2, 0], sizes = [1, 1, 128], strides = [1, 1, 1]} : vector<2x6x128xf32> to vector<1x1x128xf32>
    %215 = vector.shape_cast %214 : vector<1x1x128xf32> to vector<1x128xf32>
    %216 = vector.extract_strided_slice %4 {offsets = [1, 3, 0], sizes = [1, 1, 128], strides = [1, 1, 1]} : vector<2x6x128xf32> to vector<1x1x128xf32>
    %217 = vector.shape_cast %216 : vector<1x1x128xf32> to vector<1x128xf32>
    %218 = vector.extract_strided_slice %4 {offsets = [1, 4, 0], sizes = [1, 1, 128], strides = [1, 1, 1]} : vector<2x6x128xf32> to vector<1x1x128xf32>
    %219 = vector.shape_cast %218 : vector<1x1x128xf32> to vector<1x128xf32>
    %220 = vector.extract_strided_slice %4 {offsets = [1, 5, 0], sizes = [1, 1, 128], strides = [1, 1, 1]} : vector<2x6x128xf32> to vector<1x1x128xf32>
    %221 = vector.shape_cast %220 : vector<1x1x128xf32> to vector<1x128xf32>
    %222 = arith.addf %209, %3 : vector<32x128xf32>
    %cst_80 = arith.constant dense<0.000000e+00> : vector<32xf32>
    %223 = vector.multi_reduction <add>, %222, %cst_80 [1] : vector<32x128xf32> to vector<32xf32>
    %224 = vector.shape_cast %223 : vector<32xf32> to vector<32x1xf32>
    %cst_81 = arith.constant 1.280000e+02 : f32
    %225 = vector.broadcast %cst_81 : f32 to vector<32x1xf32>
    %226 = arith.divf %224, %225 : vector<32x1xf32>
    %227 = vector.broadcast %226 : vector<32x1xf32> to vector<32x128xf32>
    %228 = arith.subf %222, %227 : vector<32x128xf32>
    %229 = arith.mulf %228, %228 : vector<32x128xf32>
    %cst_82 = arith.constant dense<0.000000e+00> : vector<32xf32>
    %230 = vector.multi_reduction <add>, %229, %cst_82 [1] : vector<32x128xf32> to vector<32xf32>
    %231 = vector.shape_cast %230 : vector<32xf32> to vector<32x1xf32>
    %cst_83 = arith.constant 1.280000e+02 : f32
    %232 = vector.broadcast %cst_83 : f32 to vector<32x1xf32>
    %233 = arith.divf %231, %232 : vector<32x1xf32>
    %cst_84 = arith.constant 9.99999974E-6 : f32
    %234 = vector.broadcast %cst_84 : f32 to vector<32x1xf32>
    %235 = arith.addf %233, %234 : vector<32x1xf32>
    %236 = math.rsqrt %235 : vector<32x1xf32>
    %237 = vector.broadcast %236 : vector<32x1xf32> to vector<32x128xf32>
    %238 = arith.mulf %228, %237 : vector<32x128xf32>
    %239 = vector.broadcast %211 : vector<1x128xf32> to vector<32x128xf32>
    %240 = arith.mulf %238, %239 : vector<32x128xf32>
    %241 = vector.broadcast %213 : vector<1x128xf32> to vector<32x128xf32>
    %242 = arith.addf %240, %241 : vector<32x128xf32>
    %243 = arith.truncf %242 : vector<32x128xf32> to vector<32x128xbf16>
    %c1 = arith.constant 1 : index
    %c0_85 = arith.constant 0 : index
    %c0_86 = arith.constant 0 : index
    %244 = vector.load %arg5[%c1, %c0_85, %c0_86] : memref<2x128x384xbf16, #tpu.memory_space<vmem>>, vector<1x128x384xbf16>
    %245 = vector.shape_cast %244 : vector<1x128x384xbf16> to vector<128x384xbf16>
    %cst_87 = arith.constant dense<0.000000e+00> : vector<32x384xf32>
    %246 = tpu.matmul %243, %245, %cst_87 {dimension_numbers = #tpu.dot_dimension_numbers<[1], [0], [0], [1], [0, 0, 1, 1], [], []>} : vector<32x128xbf16>, vector<128x384xbf16>, vector<32x384xf32> -> vector<32x384xf32>
    %247 = vector.extract_strided_slice %246 {offsets = [0, 0], sizes = [32, 32], strides = [1, 1]} : vector<32x384xf32> to vector<32x32xf32>
    %248 = arith.truncf %247 : vector<32x32xf32> to vector<32x32xbf16>
    %249 = vector.extract_strided_slice %246 {offsets = [0, 128], sizes = [32, 32], strides = [1, 1]} : vector<32x384xf32> to vector<32x32xf32>
    %250 = arith.truncf %249 : vector<32x32xf32> to vector<32x32xbf16>
    %251 = vector.extract_strided_slice %246 {offsets = [0, 256], sizes = [32, 32], strides = [1, 1]} : vector<32x384xf32> to vector<32x32xf32>
    %252 = arith.truncf %251 : vector<32x32xf32> to vector<32x32xbf16>
    %cst_88 = arith.constant dense<0.000000e+00> : vector<32x32xf32>
    %253 = tpu.matmul %248, %250, %cst_88 {dimension_numbers = #tpu.dot_dimension_numbers<[1], [1], [0], [0], [0, 0, 1, 0], [], []>} : vector<32x32xbf16>, vector<32x32xbf16>, vector<32x32xf32> -> vector<32x32xf32>
    %cst_89 = arith.constant 0.176776692 : f32
    %254 = vector.broadcast %cst_89 : f32 to vector<32x32xf32>
    %255 = arith.mulf %253, %254 : vector<32x32xf32>
    %cst_90 = arith.constant dense<0xFF800000> : vector<32xf32>
    %256 = vector.multi_reduction <maximumf>, %255, %cst_90 [1] : vector<32x32xf32> to vector<32xf32>
    %257 = vector.shape_cast %256 : vector<32xf32> to vector<32x1xf32>
    %258 = vector.broadcast %257 : vector<32x1xf32> to vector<32x32xf32>
    %259 = arith.subf %255, %258 : vector<32x32xf32>
    %260 = math.exp %259 : vector<32x32xf32>
    %cst_91 = arith.constant dense<0.000000e+00> : vector<32xf32>
    %261 = vector.multi_reduction <add>, %260, %cst_91 [1] : vector<32x32xf32> to vector<32xf32>
    %262 = vector.shape_cast %261 : vector<32xf32> to vector<32x1xf32>
    %263 = vector.broadcast %262 : vector<32x1xf32> to vector<32x32xf32>
    %264 = arith.divf %260, %263 : vector<32x32xf32>
    %265 = arith.truncf %264 : vector<32x32xf32> to vector<32x32xbf16>
    %cst_92 = arith.constant dense<0.000000e+00> : vector<32x32xf32>
    %266 = tpu.matmul %265, %252, %cst_92 {dimension_numbers = #tpu.dot_dimension_numbers<[1], [0], [0], [1], [0, 0, 1, 1], [], []>} : vector<32x32xbf16>, vector<32x32xbf16>, vector<32x32xf32> -> vector<32x32xf32>
    %c0_93 = arith.constant 0 : index
    %c0_94 = arith.constant 0 : index
    %267 = vector.load %arg11[%c0_93, %c0_94] : memref<32x128xf32, #tpu.memory_space<vmem>>, vector<32x32xf32>
    tpu.vector_store %arg11[%c0_93, %c0_94], %266 {strides = array<i32>} : memref<32x128xf32, #tpu.memory_space<vmem>>, vector<32x32xf32>,
    %268 = vector.extract_strided_slice %246 {offsets = [0, 32], sizes = [32, 32], strides = [1, 1]} : vector<32x384xf32> to vector<32x32xf32>
    %269 = arith.truncf %268 : vector<32x32xf32> to vector<32x32xbf16>
    %270 = vector.extract_strided_slice %246 {offsets = [0, 160], sizes = [32, 32], strides = [1, 1]} : vector<32x384xf32> to vector<32x32xf32>
    %271 = arith.truncf %270 : vector<32x32xf32> to vector<32x32xbf16>
    %272 = vector.extract_strided_slice %246 {offsets = [0, 288], sizes = [32, 32], strides = [1, 1]} : vector<32x384xf32> to vector<32x32xf32>
    %273 = arith.truncf %272 : vector<32x32xf32> to vector<32x32xbf16>
    %cst_95 = arith.constant dense<0.000000e+00> : vector<32x32xf32>
    %274 = tpu.matmul %269, %271, %cst_95 {dimension_numbers = #tpu.dot_dimension_numbers<[1], [1], [0], [0], [0, 0, 1, 0], [], []>} : vector<32x32xbf16>, vector<32x32xbf16>, vector<32x32xf32> -> vector<32x32xf32>
    %cst_96 = arith.constant 0.176776692 : f32
    %275 = vector.broadcast %cst_96 : f32 to vector<32x32xf32>
    %276 = arith.mulf %274, %275 : vector<32x32xf32>
    %cst_97 = arith.constant dense<0xFF800000> : vector<32xf32>
    %277 = vector.multi_reduction <maximumf>, %276, %cst_97 [1] : vector<32x32xf32> to vector<32xf32>
    %278 = vector.shape_cast %277 : vector<32xf32> to vector<32x1xf32>
    %279 = vector.broadcast %278 : vector<32x1xf32> to vector<32x32xf32>
    %280 = arith.subf %276, %279 : vector<32x32xf32>
    %281 = math.exp %280 : vector<32x32xf32>
    %cst_98 = arith.constant dense<0.000000e+00> : vector<32xf32>
    %282 = vector.multi_reduction <add>, %281, %cst_98 [1] : vector<32x32xf32> to vector<32xf32>
    %283 = vector.shape_cast %282 : vector<32xf32> to vector<32x1xf32>
    %284 = vector.broadcast %283 : vector<32x1xf32> to vector<32x32xf32>
    %285 = arith.divf %281, %284 : vector<32x32xf32>
    %286 = arith.truncf %285 : vector<32x32xf32> to vector<32x32xbf16>
    %cst_99 = arith.constant dense<0.000000e+00> : vector<32x32xf32>
    %287 = tpu.matmul %286, %273, %cst_99 {dimension_numbers = #tpu.dot_dimension_numbers<[1], [0], [0], [1], [0, 0, 1, 1], [], []>} : vector<32x32xbf16>, vector<32x32xbf16>, vector<32x32xf32> -> vector<32x32xf32>
    %c0_100 = arith.constant 0 : index
    %c32_101 = arith.constant 32 : index
    %288 = vector.load %arg11[%c0_100, %c32_101] : memref<32x128xf32, #tpu.memory_space<vmem>>, vector<32x32xf32>
    tpu.vector_store %arg11[%c0_100, %c32_101], %287 {strides = array<i32>} : memref<32x128xf32, #tpu.memory_space<vmem>>, vector<32x32xf32>,
    %289 = vector.extract_strided_slice %246 {offsets = [0, 64], sizes = [32, 32], strides = [1, 1]} : vector<32x384xf32> to vector<32x32xf32>
    %290 = arith.truncf %289 : vector<32x32xf32> to vector<32x32xbf16>
    %291 = vector.extract_strided_slice %246 {offsets = [0, 192], sizes = [32, 32], strides = [1, 1]} : vector<32x384xf32> to vector<32x32xf32>
    %292 = arith.truncf %291 : vector<32x32xf32> to vector<32x32xbf16>
    %293 = vector.extract_strided_slice %246 {offsets = [0, 320], sizes = [32, 32], strides = [1, 1]} : vector<32x384xf32> to vector<32x32xf32>
    %294 = arith.truncf %293 : vector<32x32xf32> to vector<32x32xbf16>
    %cst_102 = arith.constant dense<0.000000e+00> : vector<32x32xf32>
    %295 = tpu.matmul %290, %292, %cst_102 {dimension_numbers = #tpu.dot_dimension_numbers<[1], [1], [0], [0], [0, 0, 1, 0], [], []>} : vector<32x32xbf16>, vector<32x32xbf16>, vector<32x32xf32> -> vector<32x32xf32>
    %cst_103 = arith.constant 0.176776692 : f32
    %296 = vector.broadcast %cst_103 : f32 to vector<32x32xf32>
    %297 = arith.mulf %295, %296 : vector<32x32xf32>
    %cst_104 = arith.constant dense<0xFF800000> : vector<32xf32>
    %298 = vector.multi_reduction <maximumf>, %297, %cst_104 [1] : vector<32x32xf32> to vector<32xf32>
    %299 = vector.shape_cast %298 : vector<32xf32> to vector<32x1xf32>
    %300 = vector.broadcast %299 : vector<32x1xf32> to vector<32x32xf32>
    %301 = arith.subf %297, %300 : vector<32x32xf32>
    %302 = math.exp %301 : vector<32x32xf32>
    %cst_105 = arith.constant dense<0.000000e+00> : vector<32xf32>
    %303 = vector.multi_reduction <add>, %302, %cst_105 [1] : vector<32x32xf32> to vector<32xf32>
    %304 = vector.shape_cast %303 : vector<32xf32> to vector<32x1xf32>
    %305 = vector.broadcast %304 : vector<32x1xf32> to vector<32x32xf32>
    %306 = arith.divf %302, %305 : vector<32x32xf32>
    %307 = arith.truncf %306 : vector<32x32xf32> to vector<32x32xbf16>
    %cst_106 = arith.constant dense<0.000000e+00> : vector<32x32xf32>
    %308 = tpu.matmul %307, %294, %cst_106 {dimension_numbers = #tpu.dot_dimension_numbers<[1], [0], [0], [1], [0, 0, 1, 1], [], []>} : vector<32x32xbf16>, vector<32x32xbf16>, vector<32x32xf32> -> vector<32x32xf32>
    %c0_107 = arith.constant 0 : index
    %c64_108 = arith.constant 64 : index
    %309 = vector.load %arg11[%c0_107, %c64_108] : memref<32x128xf32, #tpu.memory_space<vmem>>, vector<32x32xf32>
    tpu.vector_store %arg11[%c0_107, %c64_108], %308 {strides = array<i32>} : memref<32x128xf32, #tpu.memory_space<vmem>>, vector<32x32xf32>,
    %310 = vector.extract_strided_slice %246 {offsets = [0, 96], sizes = [32, 32], strides = [1, 1]} : vector<32x384xf32> to vector<32x32xf32>
    %311 = arith.truncf %310 : vector<32x32xf32> to vector<32x32xbf16>
    %312 = vector.extract_strided_slice %246 {offsets = [0, 224], sizes = [32, 32], strides = [1, 1]} : vector<32x384xf32> to vector<32x32xf32>
    %313 = arith.truncf %312 : vector<32x32xf32> to vector<32x32xbf16>
    %314 = vector.extract_strided_slice %246 {offsets = [0, 352], sizes = [32, 32], strides = [1, 1]} : vector<32x384xf32> to vector<32x32xf32>
    %315 = arith.truncf %314 : vector<32x32xf32> to vector<32x32xbf16>
    %cst_109 = arith.constant dense<0.000000e+00> : vector<32x32xf32>
    %316 = tpu.matmul %311, %313, %cst_109 {dimension_numbers = #tpu.dot_dimension_numbers<[1], [1], [0], [0], [0, 0, 1, 0], [], []>} : vector<32x32xbf16>, vector<32x32xbf16>, vector<32x32xf32> -> vector<32x32xf32>
    %cst_110 = arith.constant 0.176776692 : f32
    %317 = vector.broadcast %cst_110 : f32 to vector<32x32xf32>
    %318 = arith.mulf %316, %317 : vector<32x32xf32>
    %cst_111 = arith.constant dense<0xFF800000> : vector<32xf32>
    %319 = vector.multi_reduction <maximumf>, %318, %cst_111 [1] : vector<32x32xf32> to vector<32xf32>
    %320 = vector.shape_cast %319 : vector<32xf32> to vector<32x1xf32>
    %321 = vector.broadcast %320 : vector<32x1xf32> to vector<32x32xf32>
    %322 = arith.subf %318, %321 : vector<32x32xf32>
    %323 = math.exp %322 : vector<32x32xf32>
    %cst_112 = arith.constant dense<0.000000e+00> : vector<32xf32>
    %324 = vector.multi_reduction <add>, %323, %cst_112 [1] : vector<32x32xf32> to vector<32xf32>
    %325 = vector.shape_cast %324 : vector<32xf32> to vector<32x1xf32>
    %326 = vector.broadcast %325 : vector<32x1xf32> to vector<32x32xf32>
    %327 = arith.divf %323, %326 : vector<32x32xf32>
    %328 = arith.truncf %327 : vector<32x32xf32> to vector<32x32xbf16>
    %cst_113 = arith.constant dense<0.000000e+00> : vector<32x32xf32>
    %329 = tpu.matmul %328, %315, %cst_113 {dimension_numbers = #tpu.dot_dimension_numbers<[1], [0], [0], [1], [0, 0, 1, 1], [], []>} : vector<32x32xbf16>, vector<32x32xbf16>, vector<32x32xf32> -> vector<32x32xf32>
    %c0_114 = arith.constant 0 : index
    %c96_115 = arith.constant 96 : index
    %330 = vector.load %arg11[%c0_114, %c96_115] : memref<32x128xf32, #tpu.memory_space<vmem>>, vector<32x32xf32>
    tpu.vector_store %arg11[%c0_114, %c96_115], %329 {strides = array<i32>} : memref<32x128xf32, #tpu.memory_space<vmem>>, vector<32x32xf32>,
    %c0_116 = arith.constant 0 : index
    %c0_117 = arith.constant 0 : index
    %331 = vector.load %arg11[%c0_116, %c0_117] : memref<32x128xf32, #tpu.memory_space<vmem>>, vector<32x128xf32>
    %332 = arith.truncf %331 : vector<32x128xf32> to vector<32x128xbf16>
    %c1_118 = arith.constant 1 : index
    %c0_119 = arith.constant 0 : index
    %c0_120 = arith.constant 0 : index
    %333 = vector.load %arg6[%c1_118, %c0_119, %c0_120] : memref<2x128x128xbf16, #tpu.memory_space<vmem>>, vector<1x128x128xbf16>
    %334 = vector.shape_cast %333 : vector<1x128x128xbf16> to vector<128x128xbf16>
    %cst_121 = arith.constant dense<0.000000e+00> : vector<32x128xf32>
    %335 = tpu.matmul %332, %334, %cst_121 {dimension_numbers = #tpu.dot_dimension_numbers<[1], [0], [0], [1], [0, 0, 1, 1], [], []>} : vector<32x128xbf16>, vector<128x128xbf16>, vector<32x128xf32> -> vector<32x128xf32>
    %336 = arith.addf %222, %335 : vector<32x128xf32>
    %337 = vector.broadcast %219 : vector<1x128xf32> to vector<32x128xf32>
    %338 = arith.addf %336, %337 : vector<32x128xf32>
    %cst_122 = arith.constant dense<0.000000e+00> : vector<32xf32>
    %339 = vector.multi_reduction <add>, %338, %cst_122 [1] : vector<32x128xf32> to vector<32xf32>
    %340 = vector.shape_cast %339 : vector<32xf32> to vector<32x1xf32>
    %cst_123 = arith.constant 1.280000e+02 : f32
    %341 = vector.broadcast %cst_123 : f32 to vector<32x1xf32>
    %342 = arith.divf %340, %341 : vector<32x1xf32>
    %343 = vector.broadcast %342 : vector<32x1xf32> to vector<32x128xf32>
    %344 = arith.subf %338, %343 : vector<32x128xf32>
    %345 = arith.mulf %344, %344 : vector<32x128xf32>
    %cst_124 = arith.constant dense<0.000000e+00> : vector<32xf32>
    %346 = vector.multi_reduction <add>, %345, %cst_124 [1] : vector<32x128xf32> to vector<32xf32>
    %347 = vector.shape_cast %346 : vector<32xf32> to vector<32x1xf32>
    %cst_125 = arith.constant 1.280000e+02 : f32
    %348 = vector.broadcast %cst_125 : f32 to vector<32x1xf32>
    %349 = arith.divf %347, %348 : vector<32x1xf32>
    %cst_126 = arith.constant 9.99999974E-6 : f32
    %350 = vector.broadcast %cst_126 : f32 to vector<32x1xf32>
    %351 = arith.addf %349, %350 : vector<32x1xf32>
    %352 = math.rsqrt %351 : vector<32x1xf32>
    %353 = vector.broadcast %352 : vector<32x1xf32> to vector<32x128xf32>
    %354 = arith.mulf %344, %353 : vector<32x128xf32>
    %355 = vector.broadcast %215 : vector<1x128xf32> to vector<32x128xf32>
    %356 = arith.mulf %354, %355 : vector<32x128xf32>
    %357 = vector.broadcast %217 : vector<1x128xf32> to vector<32x128xf32>
    %358 = arith.addf %356, %357 : vector<32x128xf32>
    %359 = arith.truncf %358 : vector<32x128xf32> to vector<32x128xbf16>
    %c1_127 = arith.constant 1 : index
    %c0_128 = arith.constant 0 : index
    %c0_129 = arith.constant 0 : index
    %360 = vector.load %arg7[%c1_127, %c0_128, %c0_129] : memref<2x128x512xbf16, #tpu.memory_space<vmem>>, vector<1x128x512xbf16>
    %361 = vector.shape_cast %360 : vector<1x128x512xbf16> to vector<128x512xbf16>
    %cst_130 = arith.constant dense<0.000000e+00> : vector<32x512xf32>
    %362 = tpu.matmul %359, %361, %cst_130 {dimension_numbers = #tpu.dot_dimension_numbers<[1], [0], [0], [1], [0, 0, 1, 1], [], []>} : vector<32x128xbf16>, vector<128x512xbf16>, vector<32x512xf32> -> vector<32x512xf32>
    %c1_131 = arith.constant 1 : index
    %c0_132 = arith.constant 0 : index
    %c0_133 = arith.constant 0 : index
    %363 = vector.load %arg8[%c1_131, %c0_132, %c0_133] : memref<2x1x512xf32, #tpu.memory_space<vmem>>, vector<1x1x512xf32>
    %364 = vector.shape_cast %363 : vector<1x1x512xf32> to vector<1x512xf32>
    %365 = vector.broadcast %364 : vector<1x512xf32> to vector<32x512xf32>
    %366 = arith.addf %362, %365 : vector<32x512xf32>
    %cst_134 = arith.constant 5.000000e-01 : f32
    %367 = vector.broadcast %cst_134 : f32 to vector<32x512xf32>
    %368 = arith.mulf %367, %366 : vector<32x512xf32>
    %cst_135 = arith.constant 0.707106769 : f32
    %369 = vector.broadcast %cst_135 : f32 to vector<32x512xf32>
    %370 = arith.mulf %366, %369 : vector<32x512xf32>
    %371 = math.absf %370 : vector<32x512xf32>
    %cst_136 = arith.constant 0.327591091 : f32
    %372 = vector.broadcast %cst_136 : f32 to vector<32x512xf32>
    %373 = arith.mulf %372, %371 : vector<32x512xf32>
    %cst_137 = arith.constant 1.000000e+00 : f32
    %374 = vector.broadcast %cst_137 : f32 to vector<32x512xf32>
    %375 = arith.addf %374, %373 : vector<32x512xf32>
    %cst_138 = arith.constant 1.000000e+00 : f32
    %376 = vector.broadcast %cst_138 : f32 to vector<32x512xf32>
    %377 = arith.divf %376, %375 : vector<32x512xf32>
    %cst_139 = arith.constant 1.06140542 : f32
    %378 = vector.broadcast %cst_139 : f32 to vector<32x512xf32>
    %379 = arith.mulf %378, %377 : vector<32x512xf32>
    %cst_140 = arith.constant -1.45315206 : f32
    %380 = vector.broadcast %cst_140 : f32 to vector<32x512xf32>
    %381 = arith.addf %379, %380 : vector<32x512xf32>
    %382 = arith.mulf %381, %377 : vector<32x512xf32>
    %cst_141 = arith.constant 1.42141378 : f32
    %383 = vector.broadcast %cst_141 : f32 to vector<32x512xf32>
    %384 = arith.addf %382, %383 : vector<32x512xf32>
    %385 = arith.mulf %384, %377 : vector<32x512xf32>
    %cst_142 = arith.constant -0.284496725 : f32
    %386 = vector.broadcast %cst_142 : f32 to vector<32x512xf32>
    %387 = arith.addf %385, %386 : vector<32x512xf32>
    %388 = arith.mulf %387, %377 : vector<32x512xf32>
    %cst_143 = arith.constant 0.254829586 : f32
    %389 = vector.broadcast %cst_143 : f32 to vector<32x512xf32>
    %390 = arith.addf %388, %389 : vector<32x512xf32>
    %391 = arith.mulf %390, %377 : vector<32x512xf32>
    %cst_144 = arith.constant 0.000000e+00 : f32
    %392 = vector.broadcast %cst_144 : f32 to vector<32x512xf32>
    %393 = arith.subf %392, %371 : vector<32x512xf32>
    %394 = arith.mulf %393, %371 : vector<32x512xf32>
    %395 = math.exp %394 : vector<32x512xf32>
    %396 = arith.mulf %391, %395 : vector<32x512xf32>
    %cst_145 = arith.constant 1.000000e+00 : f32
    %397 = vector.broadcast %cst_145 : f32 to vector<32x512xf32>
    %398 = arith.subf %397, %396 : vector<32x512xf32>
    %cst_146 = arith.constant 0.000000e+00 : f32
    %399 = vector.broadcast %cst_146 : f32 to vector<32x512xf32>
    %400 = arith.cmpf oge, %370, %399 : vector<32x512xf32>
    %cst_147 = arith.constant 0.000000e+00 : f32
    %401 = vector.broadcast %cst_147 : f32 to vector<32x512xf32>
    %402 = arith.subf %401, %398 : vector<32x512xf32>
    %403 = arith.select %400, %398, %402 : vector<32x512xi1>, vector<32x512xf32>
    %cst_148 = arith.constant 1.000000e+00 : f32
    %404 = vector.broadcast %cst_148 : f32 to vector<32x512xf32>
    %405 = arith.addf %404, %403 : vector<32x512xf32>
    %406 = arith.mulf %368, %405 : vector<32x512xf32>
    %407 = arith.truncf %406 : vector<32x512xf32> to vector<32x512xbf16>
    %c1_149 = arith.constant 1 : index
    %c0_150 = arith.constant 0 : index
    %c0_151 = arith.constant 0 : index
    %408 = vector.load %arg9[%c1_149, %c0_150, %c0_151] : memref<2x512x128xbf16, #tpu.memory_space<vmem>>, vector<1x512x128xbf16>
    %409 = vector.shape_cast %408 : vector<1x512x128xbf16> to vector<512x128xbf16>
    %cst_152 = arith.constant dense<0.000000e+00> : vector<32x128xf32>
    %410 = tpu.matmul %407, %409, %cst_152 {dimension_numbers = #tpu.dot_dimension_numbers<[1], [0], [0], [1], [0, 0, 1, 1], [], []>} : vector<32x512xbf16>, vector<512x128xbf16>, vector<32x128xf32> -> vector<32x128xf32>
    %411 = vector.broadcast %221 : vector<1x128xf32> to vector<32x128xf32>
    %412 = arith.addf %410, %411 : vector<32x128xf32>
    %413 = arith.addf %338, %412 : vector<32x128xf32>
    %414 = vector.extract_strided_slice %413 {offsets = [16, 0], sizes = [16, 128], strides = [1, 1]} : vector<32x128xf32> to vector<16x128xf32>
    %415 = vector.extract_strided_slice %5 {offsets = [0, 0], sizes = [1, 128], strides = [1, 1]} : vector<2x128xf32> to vector<1x128xf32>
    %416 = vector.extract_strided_slice %5 {offsets = [1, 0], sizes = [1, 128], strides = [1, 1]} : vector<2x128xf32> to vector<1x128xf32>
    %cst_153 = arith.constant dense<0.000000e+00> : vector<16xf32>
    %417 = vector.multi_reduction <add>, %414, %cst_153 [1] : vector<16x128xf32> to vector<16xf32>
    %418 = vector.shape_cast %417 : vector<16xf32> to vector<16x1xf32>
    %cst_154 = arith.constant 1.280000e+02 : f32
    %419 = vector.broadcast %cst_154 : f32 to vector<16x1xf32>
    %420 = arith.divf %418, %419 : vector<16x1xf32>
    %421 = vector.broadcast %420 : vector<16x1xf32> to vector<16x128xf32>
    %422 = arith.subf %414, %421 : vector<16x128xf32>
    %423 = arith.mulf %422, %422 : vector<16x128xf32>
    %cst_155 = arith.constant dense<0.000000e+00> : vector<16xf32>
    %424 = vector.multi_reduction <add>, %423, %cst_155 [1] : vector<16x128xf32> to vector<16xf32>
    %425 = vector.shape_cast %424 : vector<16xf32> to vector<16x1xf32>
    %cst_156 = arith.constant 1.280000e+02 : f32
    %426 = vector.broadcast %cst_156 : f32 to vector<16x1xf32>
    %427 = arith.divf %425, %426 : vector<16x1xf32>
    %cst_157 = arith.constant 9.99999974E-6 : f32
    %428 = vector.broadcast %cst_157 : f32 to vector<16x1xf32>
    %429 = arith.addf %427, %428 : vector<16x1xf32>
    %430 = math.rsqrt %429 : vector<16x1xf32>
    %431 = vector.broadcast %430 : vector<16x1xf32> to vector<16x128xf32>
    %432 = arith.mulf %422, %431 : vector<16x128xf32>
    %433 = vector.broadcast %415 : vector<1x128xf32> to vector<16x128xf32>
    %434 = arith.mulf %432, %433 : vector<16x128xf32>
    %435 = vector.broadcast %416 : vector<1x128xf32> to vector<16x128xf32>
    %436 = arith.addf %434, %435 : vector<16x128xf32>
    %c0_158 = arith.constant 0 : index
    %c0_159 = arith.constant 0 : index
    %c0_160 = arith.constant 0 : index
    %437 = vector.load %arg10[%c0_158, %c0_159, %c0_160] : memref<1x16x128xf32, #tpu.memory_space<vmem>>, vector<1x16x128xf32>
    %438 = vector.shape_cast %437 : vector<1x16x128xf32> to vector<16x128xf32>
    %439 = vector.shape_cast %436 : vector<16x128xf32> to vector<1x16x128xf32>
    tpu.vector_store %arg10[%c0_158, %c0_159, %c0_160], %439 {strides = array<i32>} : memref<1x16x128xf32, #tpu.memory_space<vmem>>, vector<1x16x128xf32>,
    return
  }
  func.func @transform_0(%arg0: i32) -> (i32, i32, i32) {
    %c0_i32 = arith.constant 0 : i32
    %c0_i32_0 = arith.constant 0 : i32
    %c0_i32_1 = arith.constant 0 : i32
    return %arg0, %c0_i32, %c0_i32_0 : i32, i32, i32
  }
  func.func @transform_1(%arg0: i32) -> (i32, i32, i32) {
    %c0_i32 = arith.constant 0 : i32
    %c0_i32_0 = arith.constant 0 : i32
    %c0_i32_1 = arith.constant 0 : i32
    return %arg0, %c0_i32, %c0_i32_0 : i32, i32, i32
  }
  func.func @transform_2(%arg0: i32) -> (i32, i32, i32) {
    %c0_i32 = arith.constant 0 : i32
    %c0_i32_0 = arith.constant 0 : i32
    %c0_i32_1 = arith.constant 0 : i32
    %c0_i32_2 = arith.constant 0 : i32
    return %c0_i32, %c0_i32_0, %c0_i32_1 : i32, i32, i32
  }
  func.func @transform_3(%arg0: i32) -> (i32, i32) {
    %c0_i32 = arith.constant 0 : i32
    %c0_i32_0 = arith.constant 0 : i32
    %c0_i32_1 = arith.constant 0 : i32
    return %c0_i32, %c0_i32_0 : i32, i32
  }
  func.func @transform_4(%arg0: i32) -> (i32, i32, i32) {
    %c0_i32 = arith.constant 0 : i32
    %c0_i32_0 = arith.constant 0 : i32
    %c0_i32_1 = arith.constant 0 : i32
    %c0_i32_2 = arith.constant 0 : i32
    return %c0_i32, %c0_i32_0, %c0_i32_1 : i32, i32, i32
  }
  func.func @transform_5(%arg0: i32) -> (i32, i32, i32) {
    %c0_i32 = arith.constant 0 : i32
    %c0_i32_0 = arith.constant 0 : i32
    %c0_i32_1 = arith.constant 0 : i32
    %c0_i32_2 = arith.constant 0 : i32
    return %c0_i32, %c0_i32_0, %c0_i32_1 : i32, i32, i32
  }
  func.func @transform_6(%arg0: i32) -> (i32, i32, i32) {
    %c0_i32 = arith.constant 0 : i32
    %c0_i32_0 = arith.constant 0 : i32
    %c0_i32_1 = arith.constant 0 : i32
    %c0_i32_2 = arith.constant 0 : i32
    return %c0_i32, %c0_i32_0, %c0_i32_1 : i32, i32, i32
  }
  func.func @transform_7(%arg0: i32) -> (i32, i32, i32) {
    %c0_i32 = arith.constant 0 : i32
    %c0_i32_0 = arith.constant 0 : i32
    %c0_i32_1 = arith.constant 0 : i32
    %c0_i32_2 = arith.constant 0 : i32
    return %c0_i32, %c0_i32_0, %c0_i32_1 : i32, i32, i32
  }
  func.func @transform_8(%arg0: i32) -> (i32, i32, i32) {
    %c0_i32 = arith.constant 0 : i32
    %c0_i32_0 = arith.constant 0 : i32
    %c0_i32_1 = arith.constant 0 : i32
    %c0_i32_2 = arith.constant 0 : i32
    return %c0_i32, %c0_i32_0, %c0_i32_1 : i32, i32, i32
  }
  func.func @transform_9(%arg0: i32) -> (i32, i32, i32) {
    %c0_i32 = arith.constant 0 : i32
    %c0_i32_0 = arith.constant 0 : i32
    %c0_i32_1 = arith.constant 0 : i32
    return %arg0, %c0_i32, %c0_i32_0 : i32, i32, i32
  }
}

</mosaic_0001>

<bundles_post_ra>
// kernel: decoder_forward.1
= control target key start
LH: loop header
LB: loop body
LE: loop exit
PB: predicated region body
PF: predicated region fallthrough
CT: control target
= control target key end

     0   :  { %14 = vsyncpa [#allocation4], 0  ;;  %s10342_s0 = inlined_call_operand.vmem [shape: f32[2,32,128], index: 0, kind: input, shape index: {}]   ;;  %s10343_s1 = inlined_call_operand.vmem [shape: f32[2,32,128], index: 1, kind: input, shape index: {}]   ;;  %s10344_s2 = inlined_call_operand.vmem [shape: f32[2,6,128], index: 2, kind: input, shape index: {}]   ;;  %s10345_s3 = inlined_call_operand.vmem [shape: f32[2,128], index: 3, kind: input, shape index: {}]   ;;  %s10346_s4 = inlined_call_operand.vmem [shape: bf16[2,128,384], index: 4, kind: input, shape index: {}]   ;;  %s10347_s5 = inlined_call_operand.vmem [shape: bf16[2,128,128], index: 5, kind: input, shape index: {}]   ;;  %s10348_s6 = inlined_call_operand.vmem [shape: bf16[2,128,512], index: 6, kind: input, shape index: {}]   ;;  %s10349_s7 = inlined_call_operand.vmem [shape: f32[2,1,512], index: 7, kind: input, shape index: {}]   ;;  %s10350_s8 = inlined_call_operand.vmem [shape: bf16[2,512,128], index: 8, kind: input, shape index: {}]   ;;  %s10351_s9 = inlined_call_operand.hbm [shape: f32[2,16,128], index: 9, kind: output, shape index: {}]  }
   0x1   :  { %16 = vsyncpa [#allocation4 + $0x1], 0  ;;  %s7160_s30 = smov 0   ;;  %s7162_s10 = smov 0  }
   0x2   :  { %s7164_s11 = smov 0   ;;  %s7166_s12 = smov 0  }
   0x3 LB: > { %s7181_s13 = sadd.s32 4294967295, %s7102_s12   ;;  %s5539_s14 = sadd.s32 4294967294, %s7102_s12   ;;  %s7102_s12 = sphi %s7166_s12, %s10409_s12   ;;  %s7098_s11 = sphi %s7164_s11, %s10408_s11   ;;  %s7094_s10 = sphi %s7162_s10, %s10407_s10   ;;  %s7090_s30 = sphi %s7160_s30, %s10406_s30  }
   0x4   : > { %s7185_s15 = sadd.s32 1, %s7102_s12   ;;  %s228_s16 = sadd.s32 1, %s7098_s11 }
   0x5   : > { %s225_s17 = ssub.s32 %s7102_s12, %s7185_s15  ;;  %p238_p0 = scmp.ne.s32.totalorder %s7098_s11, %s7094_s10 }
   0x6   : > { %p226_p1 = scmp.eq.s32.totalorder %s225_s17, 0  ;;  %p239_p2 = scmp.eq.s32.totalorder %s7181_s13, 1 }
   0x7   : > { %p244_p3 = scmp.ne.s32.totalorder %s7094_s10, %s7090_s30  ;;  %p245_p4 = scmp.eq.s32.totalorder %s5539_s14, 1 }
   0x8   : > { %s7196_s18 = scalar_select %p226_p1, %s7098_s11, %s228_s16  }
   0x9   : > { %p7198_p5 = por %p239_p2, %p238_p0  ;;  %p7202_p6 = por %p245_p4, %p244_p3 }
   0xa   : > { %p5542_p7 = scmp.ge.s32.totalorder %s7102_s12, 1  ;;  %p300_p8 = scmp.lt.s32.totalorder %s7102_s12, 3 }
   0xc   : > { %p301_p9 = pnand %p5542_p7, %p300_p8 }
   0xd   : > { %p341_p10 = scmp.lt.s32.totalorder (!%p301_p9), %s7181_s13, 1  ;;  %s10356_s27 = smov (!%p301_p9), 96  }
   0xe   : > { %304 = sbr.rel (%p301_p9) target bundleno = 4536 (0x11b8), region = 56  ;;  %s10354_s29 = smov (!%p301_p9), 64  }
   0xf   : > { %s10352_s14 = smov (!%p301_p9), 32   ;;  %s10389_s17 = smov (!%p301_p9), 96  }
  0x10   : > { %s338_s23 = sand.u32 (!%p301_p9), 1, %s7094_s10  }
  0x11   : > { %s5543_s24 = sshll.u32 (!%p301_p9), %s338_s23, 4 }
  0x12   : > { %s340_s26 = scalar_lea.vmem (!%p301_p9), [#allocation3], %s5543_s24 }
  0x13   : > { %s342_s21 = scalar_select %p341_p10, %s7181_s13, 1  ;;  %v7104_v12 = vmov 128.0   ;;  %v5634_v35 = vld [vmem:[%s10346_s4 + $0xa8] sm:$0xf]  ;;  %v6522_v36 = vld [vmem:[%s10346_s4 + $0xb0] sm:$0xf0] }
  0x14   : > { %6738 = vrcp.f32 %v7104_v12  ;;  %v6521_v37 = vld [vmem:[%s10346_s4 + $0xac] sm:$0xf]  ;;  %v5635_v38 = vor.u32 %v6522_v36, %v5634_v35  ;;  %v5636_v39 = vld [vmem:[%s10346_s4 + $0xb4] sm:$0xf0]  ;;  %v5642_v40 = vld [vmem:[%s10346_s4 + $0xb0] sm:$0xf] }
  0x15   : > { %s6498_s22 = sshll.u32 %s342_s21, 5  ;;  %v6523_v41 = vld [vmem:[%s10346_s4 + $0xb8] sm:$0xf0]  ;;  %v5639_v42 = vor.u32 %v6521_v37, %v5636_v39  ;;  %v5622_v44 = vld [vmem:[%s10346_s4 + $0x90] sm:$0xf]  ;;  %vm689_vm13 = vcmask 261120  }
  0x16   : > { %s345_s25 = scalar_lea.vmem %s10342_s0, %s6498_s22  ;;  %s7216_s28 = scalar_lea.vmem %s10343_s1, %s6498_s22  ;;  %v5643_v43 = vor.u32 %v6523_v41, %v5642_v40  ;;  %626 = vmatpush.bf16.msra.mxu0 %v5635_v38  ;;  %v6519_v45 = vld [vmem:[%s10346_s4 + $0x98] sm:$0xf0]  ;;  %v6518_v46 = vld [vmem:[%s10346_s4 + $0x94] sm:$0xf]  ;;  %v5624_v48 = vld [vmem:[%s10346_s4 + $0x9c] sm:$0xf0] }
  0x17   : > { %v354_v0 = vld [vmem:[%s345_s25 + $0x10] sm:$0xff]  ;;  %v352_v2 = vld [vmem:[%s345_s25] sm:$0xff]  ;;  %v355_v6 = vld [vmem:[%s345_s25 + $0x18] sm:$0xff]  ;;  %645 = vmatpush.bf16.msra.mxu1 %v5639_v42  ;;  %v5623_v47 = vor.u32 %v6519_v45, %v5622_v44  ;;  %v5627_v51 = vor.u32 %v6518_v46, %v5624_v48  ;;  %s10390_s21 = smov 64   ;;  %s10391_s22 = smov 32  }
  0x18   : > { %v358_v1 = vld [vmem:[%s7216_s28 + $0x10] sm:$0xff]  ;;  %v356_v4 = vld [vmem:[%s7216_s28] sm:$0xff]  ;;  %v359_v7 = vld [vmem:[%s7216_s28 + $0x18] sm:$0xff]  ;;  %664 = vmatpush.bf16.msra.mxu2 %v5643_v43 }
  0x19   : > { %v7219_v3 = vadd.f32 %v358_v1, %v354_v0  ;;  %v7222_v5 = vadd.f32 %v356_v4, %v352_v2  ;;  %v353_v8 = vld [vmem:[%s345_s25 + $0x8] sm:$0xff]  ;;  %v7228_v10 = vadd.f32 %v359_v7, %v355_v6  ;;  %v5630_v49 = vld [vmem:[%s10346_s4 + $0x98] sm:$0xf]  ;;  %v6520_v50 = vld [vmem:[%s10346_s4 + $0xa0] sm:$0xf0]  ;;  %s6692_s25 = sshll.u32 %s7181_s13, 4 }
  0x1a   : > { %v357_v9 = vld [vmem:[%s7216_s28 + $0x8] sm:$0xff]  ;;  %v6739_v13 = vpop.eup %6738  ;;  %v5631_v52 = vor.u32 %v6520_v50, %v5630_v49  ;;  %627 = vmatpush.bf16.msra.mxu0 %v5623_v47  ;;  %v5610_v53 = vld [vmem:[%s10346_s4 + $0x78] sm:$0xf]  ;;  %v6516_v54 = vld [vmem:[%s10346_s4 + $0x80] sm:$0xf0]  ;;  %s5450_s13 = scalar_lea.sflag [#allocation4], %s338_s23 }
  0x1b   : > { %371 = vadd.xlane.f32.xlu1 %v7219_v3  ;;  %367 = vadd.xlane.f32.xlu0 %v7222_v5  ;;  %v7230_v11 = vadd.f32 %v357_v9, %v353_v8  ;;  %v376_v14 = vmul.f32 128.0, %v6739_v13  ;;  %vm380_vm0 = vweird.f32 %v6739_v13  ;;  %v6515_v55 = vld [vmem:[%s10346_s4 + $0x7c] sm:$0xf]  ;;  %v5611_v56 = vor.u32 %v6516_v54, %v5610_v53  ;;  %v5612_v57 = vld [vmem:[%s10346_s4 + $0x84] sm:$0xf0] }
  0x1c   : > { %646 = vmatpush.bf16.msra.mxu1 %v5627_v51  ;;  %665 = vmatpush.bf16.msra.mxu2 %v5631_v52  ;;  %v5618_v58 = vld [vmem:[%s10346_s4 + $0x80] sm:$0xf]  ;;  %v6517_v59 = vld [vmem:[%s10346_s4 + $0x88] sm:$0xf0]  ;;  %v5615_v60 = vor.u32 %v6515_v55, %v5612_v57  ;;  %v6512_v0 = vld [vmem:[%s10346_s4 + $0x64] sm:$0xf] }
  0x1d   : > { %v377_v15 = vsub.f32 1.0, %v376_v14  ;;  %v5619_v61 = vor.u32 %v6517_v59, %v5618_v58  ;;  %v5598_v62 = vld [vmem:[%s10346_s4 + $0x60] sm:$0xf]  ;;  %v6513_v63 = vld [vmem:[%s10346_s4 + $0x68] sm:$0xf0] }
  0x1e   : > { %628 = vmatpush.bf16.msra.mxu0 %v5611_v56  ;;  %v5599_v1 = vor.u32 %v6513_v63, %v5598_v62  ;;  %v5600_v2 = vld [vmem:[%s10346_s4 + $0x6c] sm:$0xf0]  ;;  %v5606_v4 = vld [vmem:[%s10346_s4 + $0x68] sm:$0xf]  ;;  %v6514_v6 = vld [vmem:[%s10346_s4 + $0x70] sm:$0xf0] }
  0x1f   : > { %v378_v16 = vmul.f32 %v6739_v13, %v377_v15  ;;  %v5603_v7 = vor.u32 %v6512_v0, %v5600_v2  ;;  %v5607_v8 = vor.u32 %v6514_v6, %v5606_v4  ;;  %v5586_v9 = vld [vmem:[%s10346_s4 + $0x48] sm:$0xf]  ;;  %v6510_v12 = vld [vmem:[%s10346_s4 + $0x50] sm:$0xf0]  ;;  %v5588_v15 = vld [vmem:[%s10346_s4 + $0x54] sm:$0xf0] }
  0x20   : > { %647 = vmatpush.bf16.msra.mxu1 %v5615_v60  ;;  %666 = vmatpush.bf16.msra.mxu2 %v5619_v61  ;;  %v5587_v14 = vor.u32 %v6510_v12, %v5586_v9  ;;  %v6504_v35 = vld [vmem:[%s10346_s4 + $0x20] sm:$0xf0]  ;;  %v6503_v36 = vld [vmem:[%s10346_s4 + $0x1c] sm:$0xf]  ;;  %v5564_v38 = vld [vmem:[%s10346_s4 + $0x24] sm:$0xf0] }
  0x21   : > { %v379_v17 = vadd.f32 %v6739_v13, %v378_v16  ;;  %v5594_v16 = vld [vmem:[%s10346_s4 + $0x50] sm:$0xf]  ;;  %v5570_v39 = vld [vmem:[%s10346_s4 + $0x20] sm:$0xf]  ;;  %v6505_v40 = vld [vmem:[%s10346_s4 + $0x28] sm:$0xf0]  ;;  %v5567_v41 = vor.u32 %v6503_v36, %v5564_v38 }
  0x22   : > { %629 = vmatpush.bf16.msra.mxu0 %v5599_v1  ;;  %v5571_v42 = vor.u32 %v6505_v40, %v5570_v39  ;;  %v5550_v43 = vld [vmem:[%s10346_s4] sm:$0xf]  ;;  %v6501_v44 = vld [vmem:[%s10346_s4 + $0x8] sm:$0xf0]  ;;  %v6500_v45 = vld [vmem:[%s10346_s4 + $0x4] sm:$0xf] }
  0x23   : > { %373 = vadd.xlane.f32.xlu1 %v7228_v10  ;;  %369 = vadd.xlane.f32.xlu0 %v7230_v11  ;;  %v7234_v18 = vsel %vm380_vm0, %v6739_v13, %v379_v17  ;;  %v6509_v13 = vld [vmem:[%s10346_s4 + $0x4c] sm:$0xf]  ;;  %v6511_v17 = vld [vmem:[%s10346_s4 + $0x58] sm:$0xf0]  ;;  %v5551_v48 = vor.u32 %v6501_v44, %v5550_v43  ;;  %v5552_v49 = vld [vmem:[%s10346_s4 + $0xc] sm:$0xf0] }
  0x24   : > { %648 = vmatpush.bf16.msra.mxu1 %v5603_v7  ;;  %667 = vmatpush.bf16.msra.mxu2 %v5607_v8  ;;  %v5558_v50 = vld [vmem:[%s10346_s4 + $0x8] sm:$0xf]  ;;  %v6502_v51 = vld [vmem:[%s10346_s4 + $0x10] sm:$0xf0]  ;;  %v5555_v53 = vor.u32 %v6500_v45, %v5552_v49 }
  0x25   : > { %v5559_v54 = vor.u32 %v6502_v51, %v5558_v50 }
  0x26   : > { %630 = vmatpush.bf16.msra.mxu0 %v5587_v14 }
  0x8e   : > { %v372_v19 = vpop.xlane.xlu1 %371  ;;  %v368_v21 = vpop.xlane.xlu0 %367 }
  0x8f   : > { %v384_v20 = vmul.f32 %v7234_v18, %v372_v19  ;;  %v382_v22 = vmul.f32 %v7234_v18, %v368_v21  ;;  %v5591_v19 = vor.u32 %v6509_v13, %v5588_v15  ;;  %v5574_v21 = vld [vmem:[%s10346_s4 + $0x30] sm:$0xf] }
  0x91   : > { %v7239_v23 = vsub.f32 %v7219_v3, %v384_v20  ;;  %v7242_v24 = vsub.f32 %v7222_v5, %v382_v22  ;;  %v5595_v20 = vor.u32 %v6511_v17, %v5594_v16  ;;  %649 = vmatpush.bf16.msra.mxu1 %v5591_v19  ;;  %v6507_v22 = vld [vmem:[%s10346_s4 + $0x38] sm:$0xf0] }
  0x93   : > { %v392_v25 = vmul.f32 %v7239_v23, %v7239_v23  ;;  %v390_v26 = vmul.f32 %v7242_v24, %v7242_v24  ;;  %668 = vmatpush.bf16.msra.mxu2 %v5595_v20 }
  0x95   : > { %398 = vadd.xlane.f32.xlu0 %v392_v25  ;;  %394 = vadd.xlane.f32.xlu2 %v390_v26  ;;  %v6506_v25 = vld [vmem:[%s10346_s4 + $0x34] sm:$0xf]  ;;  %v5575_v26 = vor.u32 %v6507_v22, %v5574_v21  ;;  %v360_v22 = vld [vmem:[%s10344_s2] sm:$0x3f] }
  0x96   : > { %v374_v27 = vpop.xlane.xlu1 %373  ;;  %v370_v29 = vpop.xlane.xlu0 %369 }
  0x97   : > { %v385_v28 = vmul.f32 %v7234_v18, %v374_v27  ;;  %v383_v30 = vmul.f32 %v7234_v18, %v370_v29  ;;  %v5576_v27 = vld [vmem:[%s10346_s4 + $0x3c] sm:$0xf0]  ;;  %v6508_v29 = vld [vmem:[%s10346_s4 + $0x40] sm:$0xf0]  ;;  %631 = vmatpush.bf16.msra.mxu0 %v5575_v26 }
  0x99   : > { %v7251_v31 = vsub.f32 %v7228_v10, %v385_v28  ;;  %v7254_v32 = vsub.f32 %v7230_v11, %v383_v30  ;;  %v5582_v28 = vld [vmem:[%s10346_s4 + $0x38] sm:$0xf]  ;;  %v5579_v30 = vor.u32 %v6506_v25, %v5576_v27 }
  0x9b   : > { %v393_v33 = vmul.f32 %v7251_v31, %v7251_v31  ;;  %v391_v34 = vmul.f32 %v7254_v32, %v7254_v32  ;;  %650 = vmatpush.bf16.msra.mxu1 %v5579_v30 }
  0x9d   : > { %400 = vadd.xlane.f32.xlu1 %v393_v33  ;;  %396 = vadd.xlane.f32.xlu2 %v391_v34  ;;  %v5583_v33 = vor.u32 %v6508_v29, %v5582_v28  ;;  %v5562_v34 = vld [vmem:[%s10346_s4 + $0x18] sm:$0xf]  ;;  %v454_v28 = vperm.slane %v360_v22, 0 }
  0x9e   : > { %v5563_v37 = vor.u32 %v6504_v35, %v5562_v34 }
  0x9f   : > { %669 = vmatpush.bf16.msra.mxu2 %v5583_v33  ;;  %651 = vmatpush.bf16.msra.mxu1 %v5567_v41 }
  0xa0   : > { %632 = vmatpush.bf16.msra.mxu0 %v5563_v37  ;;  %v459_v37 = vperm.slane %v360_v22, 1 }
  0xa3   : > { %670 = vmatpush.bf16.msra.mxu2 %v5571_v42  ;;  %652 = vmatpush.bf16.msra.mxu1 %v5555_v53 }
  0xa4   : > { %633 = vmatpush.bf16.msra.mxu0 %v5551_v48 }
  0xa7   : > { %671 = vmatpush.bf16.msra.mxu2 %v5559_v54 }
 0x108   : > { %v395_v46 = vpop.xlane.xlu2 %394  ;;  %v399_v47 = vpop.xlane.xlu0 %398 }
 0x109   : > { %v402_v52 = vmul.f32 %v395_v46, %v7234_v18  ;;  %v404_v56 = vmul.f32 %v399_v47, %v7234_v18 }
 0x10b   : > { %v406_v55 = vadd.f32 1e-05, %v402_v52  ;;  %v408_v57 = vadd.f32 1e-05, %v404_v56 }
 0x10d   : > { %6740 = vrsqrt.f32 %v406_v55  ;;  %vm416_vm2 = vweird.f32 %v406_v55  ;;  %vm436_vm9 = vweird.f32 %v408_v57 }
 0x10e   : > { %6742 = vrsqrt.f32 %v408_v57 }
 0x110   : > { %v401_v58 = vpop.xlane.xlu1 %400  ;;  %v397_v60 = vpop.xlane.xlu2 %396 }
 0x111   : > { %v405_v59 = vmul.f32 %v401_v58, %v7234_v18  ;;  %v403_v61 = vmul.f32 %v397_v60, %v7234_v18 }
 0x113   : > { %v409_v62 = vadd.f32 1e-05, %v405_v59  ;;  %v6741_v63 = vpop.eup %6740  ;;  %v407_v0 = vadd.f32 1e-05, %v403_v61 }
 0x114   : > { %v411_v1 = vmul.f32 %v6741_v63, %v406_v55  ;;  %v6743_v6 = vpop.eup %6742  ;;  %vm417_vm1 = vweird.f32 %v6741_v63 }
 0x115   : > { %6744 = vrsqrt.f32 %v409_v62  ;;  %v431_v14 = vmul.f32 %v6743_v6, %v408_v57  ;;  %vm418_vm3 = vmor %vm416_vm2, %vm417_vm1  ;;  %vm426_vm5 = vweird.f32 %v407_v0  ;;  %vm446_vm7 = vweird.f32 %v409_v62 }
 0x116   : > { %6746 = vrsqrt.f32 %v407_v0  ;;  %v412_v2 = vmul.f32 %v6741_v63, %v411_v1  ;;  %vm437_vm10 = vweird.f32 %v6743_v6 }
 0x117   : > { %v432_v20 = vmul.f32 %v6743_v6, %v431_v14  ;;  %vm438_vm12 = vmor %vm436_vm9, %vm437_vm10 }
 0x118   : > { %v413_v4 = vmul.f32 0.5, %v412_v2 }
 0x119   : > { %v433_v29 = vmul.f32 0.5, %v432_v20 }
 0x11a   : > { %v414_v8 = vsub.f32 1.5, %v413_v4 }
 0x11b   : > { %v6745_v7 = vpop.eup %6744  ;;  %v434_v38 = vsub.f32 1.5, %v433_v29 }
 0x11c   : > { %v6747_v9 = vpop.eup %6746  ;;  %v441_v12 = vmul.f32 %v6745_v7, %v409_v62  ;;  %v415_v13 = vmul.f32 %v6741_v63, %v414_v8  ;;  %vm447_vm8 = vweird.f32 %v6745_v7 }
 0x11d   : > { %v421_v15 = vmul.f32 %v6747_v9, %v407_v0  ;;  %vm427_vm4 = vweird.f32 %v6747_v9  ;;  %vm448_vm11 = vmor %vm446_vm7, %vm447_vm8  ;;  %v435_v42 = vmul.f32 %v6743_v6, %v434_v38 }
 0x11e   : > { %v442_v16 = vmul.f32 %v6745_v7, %v441_v12  ;;  %v419_v19 = vsel %vm418_vm3, %v6741_v63, %v415_v13  ;;  %vm428_vm6 = vmor %vm426_vm5, %vm427_vm4 }
 0x11f   : > { %v422_v17 = vmul.f32 %v6747_v9, %v421_v15  ;;  %v450_v27 = vmul.f32 %v419_v19, %v7242_v24  ;;  %v439_v45 = vsel %vm438_vm12, %v6743_v6, %v435_v42 }
 0x120   : > { %v443_v25 = vmul.f32 0.5, %v442_v16  ;;  %v452_v46 = vmul.f32 %v439_v45, %v7239_v23 }
 0x121   : > { %v423_v21 = vmul.f32 0.5, %v422_v17  ;;  %v455_v36 = vmul.f32 %v454_v28, %v450_v27 }
 0x122   : > { %v444_v33 = vsub.f32 1.5, %v443_v25  ;;  %v457_v48 = vmul.f32 %v454_v28, %v452_v46 }
 0x123   : > { %v424_v26 = vsub.f32 1.5, %v423_v21  ;;  %v460_v24 = vadd.f32 %v459_v37, %v455_v36 }
 0x124   : > { %v445_v40 = vmul.f32 %v6745_v7, %v444_v33  ;;  %v462_v50 = vadd.f32 %v459_v37, %v457_v48 }
 0x125   : > { %v425_v30 = vmul.f32 %v6747_v9, %v424_v26 }
 0x126   : > { %v449_v44 = vsel %vm448_vm11, %v6745_v7, %v445_v40 }
 0x127   : > { %v429_v34 = vsel %vm428_vm6, %v6747_v9, %v425_v30 }
 0x128   : > { %v451_v35 = vmul.f32 %v429_v34, %v7254_v32  ;;  %v453_v32 = vmul.f32 %v449_v44, %v7251_v31 }
 0x12a   : > { %v456_v39 = vmul.f32 %v454_v28, %v451_v35  ;;  %v458_v47 = vmul.f32 %v454_v28, %v453_v32 }
 0x12c   : > { %v461_v41 = vadd.f32 %v459_v37, %v456_v39  ;;  %v463_v49 = vadd.f32 %v459_v37, %v458_v47 }
 0x12e   : > { %v464_v43 = vpack.c.bf16 %v461_v41, %v460_v24  ;;  %v465_v51 = vpack.c.bf16 %v463_v49, %v462_v50 }
 0x130   : > { %634 = vmatmul.bf16.vlgmr.msra.gmra.mxu0 %v464_v43  ;;  %653 = vmatmul.bf16.vlgmr.msra.gmra.mxu1 %v464_v43 }
 0x131   : > { %672 = vmatmul.bf16.vlgmr.msra.gmra.mxu2 %v464_v43 }
 0x140   : > { %639 = vmatmul.bf16.gmra.mxu0 %v465_v51  ;;  %658 = vmatmul.bf16.gmra.mxu1 %v465_v51 }
 0x141   : > { %677 = vmatmul.bf16.gmra.mxu2 %v465_v51 }
 0x1ad   : > { %v635_v52 = vpop.f32.mrf.mxu0  ;;  %v654_v53 = vpop.f32.mrf.mxu1 }
 0x1b4   : > { %v673_v54 = vpop.f32.mrf.mxu2 }
 0x1b5   : > { %v637_v55 = vpop.f32.mrf.mxu0  ;;  %v656_v56 = vpop.f32.mrf.mxu1 }
 0x1b6   : > { %v683_v57 = vpack.c.bf16 %v637_v55, %v635_v52  ;;  %v685_v58 = vpack.c.bf16 %v656_v56, %v654_v53 }
 0x1b8   : > { %860 = vrot.lane.b32.xlu0 %v685_v58, %s10356_s27  ;;  %854 = vrot.lane.b32.xlu1 %v683_v57, %s10356_s27  ;;  %v697_v6 = vsel %vm689_vm13, %v685_v58, 0 }
 0x1bc   : > { %v675_v23 = vpop.f32.mrf.mxu2 }
 0x1bd   : > { %v659_v31 = vpop.f32.mrf.mxu1  ;;  %v640_v59 = vpop.f32.mrf.mxu0  ;;  %v7429_v7 = vpack.c.bf16 %v675_v23, %v673_v54 }
 0x1c0   : > { %1055 = vrot.lane.b32.xlu0 %v685_v58, %s10354_s29 }
 0x1c4   : > { %v678_v60 = vpop.f32.mrf.mxu2 }
 0x1c5   : > { %v661_v61 = vpop.f32.mrf.mxu1  ;;  %v642_v0 = vpop.f32.mrf.mxu0 }
 0x1c6   : > { %v686_v62 = vpack.c.bf16 %v661_v61, %v659_v31  ;;  %v684_v2 = vpack.c.bf16 %v642_v0, %v640_v59 }
 0x1c8   : > { %1051 = vrot.lane.b32.xlu0 %v683_v57, %s10354_s29  ;;  %1250 = vrot.lane.b32.xlu1 %v686_v62, %s10352_s14  ;;  %v700_v63 = vsel %vm689_vm13, %v686_v62, 0 }
 0x1c9   : > { %862 = vrot.lane.b32.xlu2 %v686_v62, %s10356_s27  ;;  %708 = vmatpush.bf16.xpose.msra.mxu3 %v700_v63 }
 0x1cc   : > { %v680_v1 = vpop.f32.mrf.mxu2 }
 0x1cd   : > { %v7422_v4 = vpack.c.bf16 %v680_v1, %v678_v60 }
 0x1d0   : > { %1244 = vrot.lane.b32.xlu1 %v683_v57, %s10352_s14  ;;  %1053 = vrot.lane.b32.xlu0 %v684_v2, %s10354_s29 }
 0x1d1   : > { %1057 = vrot.lane.b32.xlu2 %v686_v62, %s10354_s29  ;;  %709 = vmatpush.bf16.xpose.msra.mxu3 %v697_v6 }
 0x1d8   : > { %5644 = vmatmul.msk.bf16.vlgmr.msra.gmra.mxu3 %vm689_vm13, %v683_v57  ;;  %1001 = vrot.lane.b32.xlu0 %v7422_v4, %s10356_s27 }
 0x1d9   : > { %835 = vmatpush.bf16.msrb.mxu3 %v7422_v4  ;;  %856 = vrot.lane.b32.xlu2 %v684_v2, %s10356_s27 }
 0x1dd   : > { %836 = vmatpush.bf16.msrb.mxu3 %v7429_v7 }
 0x1e1   : > { %1248 = vrot.lane.b32.xlu2 %v685_v58, %s10352_s14 }
 0x1e8   : > { %5645 = vmatmul.msk.bf16.gmra.mxu3 %vm689_vm13, %v684_v2 }
 0x1e9   : > { %1246 = vrot.lane.b32.xlu2 %v684_v2, %s10352_s14 }
 0x1f1   : > { %999 = vrot.lane.b32.xlu2 %v7429_v7, %s10356_s27 }
 0x223   : > { %v863_v8 = vpop.permute.xlu2 %862 }
 0x224   : > { %v874_v9 = vsel %vm689_vm13, %v863_v8, 0 }
 0x225   : > { %882 = vmatpush.bf16.xpose.msrb.mxu0 %v874_v9 }
 0x22a   : > { %v861_v12 = vpop.permute.xlu0 %860  ;;  %v855_v16 = vpop.permute.xlu1 %854 }
 0x22b   : > { %v1058_v13 = vpop.permute.xlu2 %1057  ;;  %v871_v14 = vsel %vm689_vm13, %v861_v12, 0 }
 0x22c   : > { %v1069_v15 = vsel %vm689_vm13, %v1058_v13, 0 }
 0x22d   : > { %883 = vmatpush.bf16.xpose.msrb.mxu0 %v871_v14  ;;  %1077 = vmatpush.bf16.xpose.msrb.mxu2 %v1069_v15 }
 0x232   : > { %v1056_v17 = vpop.permute.xlu0 %1055 }
 0x233   : > { %v857_v19 = vpop.permute.xlu2 %856  ;;  %v1066_v20 = vsel %vm689_vm13, %v1056_v17, 0 }
 0x234   : > { %5648 = vmatmul.msk.bf16.vlgmr.msrb.gmra.mxu0 %vm689_vm13, %v855_v16 }
 0x235   : > { %1078 = vmatpush.bf16.xpose.msrb.mxu2 %v1066_v20 }
 0x23a   : > { %v1251_v21 = vpop.permute.xlu1 %1250  ;;  %v1052_v22 = vpop.permute.xlu0 %1051 }
 0x23b   : > { %v1262_v25 = vsel %vm689_vm13, %v1251_v21, 0  ;;  %v1249_v26 = vpop.permute.xlu2 %1248 }
 0x23c   : > { %5652 = vmatmul.msk.bf16.vlgmr.msrb.gmra.mxu2 %vm689_vm13, %v1052_v22  ;;  %1270 = vmatpush.bf16.xpose.msra.mxu0 %v1262_v25  ;;  %v1259_v29 = vsel %vm689_vm13, %v1249_v26, 0 }
 0x242   : > { %v1054_v27 = vpop.permute.xlu0 %1053  ;;  %v1245_v34 = vpop.permute.xlu1 %1244 }
 0x243   : > { %v1247_v28 = vpop.permute.xlu2 %1246 }
 0x244   : > { %5649 = vmatmul.msk.bf16.gmra.mxu0 %vm689_vm13, %v857_v19 }
 0x245   : > { %1271 = vmatpush.bf16.xpose.msra.mxu0 %v1259_v29 }
 0x24a   : > { %v1002_v30 = vpop.permute.xlu0 %1001 }
 0x24b   : > { %1017 = vmatpush.bf16.msrb.mxu1 %v1002_v30  ;;  %v1000_v33 = vpop.permute.xlu2 %999 }
 0x24c   : > { %5653 = vmatmul.msk.bf16.gmra.mxu2 %vm689_vm13, %v1054_v27 }
 0x24f   : > { %1018 = vmatpush.bf16.msrb.mxu1 %v1000_v33 }
 0x254   : > { %5656 = vmatmul.msk.bf16.vlgmr.msra.gmra.mxu0 %vm689_vm13, %v1245_v34 }
 0x25b   : > { %v711_v35 = vpop.f32.mrf.mxu3 }
 0x25c   : > { %v721_v36 = vmul.f32 0.17677669, %v711_v35 }
 0x25e   : > { %v725_v37 = vsel %vm689_vm13, %v721_v36, -inf }
 0x25f   : > { %726 = vmax.xlane.f32.xlu1 %v725_v37 }
 0x263   : > { %v713_v38 = vpop.f32.mrf.mxu3 }
 0x264   : > { %v722_v39 = vmul.f32 0.17677669, %v713_v38  ;;  %5657 = vmatmul.msk.bf16.gmra.mxu0 %vm689_vm13, %v1247_v28 }
 0x266   : > { %v728_v40 = vsel %vm689_vm13, %v722_v39, -inf }
 0x267   : > { %729 = vmax.xlane.f32.xlu0 %v728_v40 }
 0x26b   : > { %v716_v24 = vpop.f32.mrf.mxu3 }
 0x26c   : > { %v723_v41 = vmul.f32 0.17677669, %v716_v24 }
 0x26e   : > { %v731_v42 = vsel %vm689_vm13, %v723_v41, -inf }
 0x26f   : > { %732 = vmax.xlane.f32.xlu0 %v731_v42 }
 0x273   : > { %v718_v43 = vpop.f32.mrf.mxu3 }
 0x274   : > { %v7456_v44 = vmul.f32 0.17677669, %v718_v43 }
 0x276   : > { %v734_v45 = vsel %vm689_vm13, %v7456_v44, -inf }
 0x277   : > { %735 = vmax.xlane.f32.xlu2 %v734_v45 }
 0x2b1   : > { %v885_v32 = vpop.f32.mrf.mxu0 }
 0x2b2   : > { %v7460_v46 = vmul.f32 0.17677669, %v885_v32 }
 0x2b4   : > { %v899_v47 = vsel %vm689_vm13, %v7460_v46, -inf }
 0x2b5   : > { %900 = vmax.xlane.f32.xlu2 %v899_v47 }
 0x2b9   : > { %v887_v48 = vpop.f32.mrf.mxu0 }
 0x2ba   : > { %v7464_v49 = vmul.f32 0.17677669, %v887_v48 }
 0x2bc   : > { %v902_v50 = vsel %vm689_vm13, %v7464_v49, -inf }
 0x2bd   : > { %903 = vmax.xlane.f32.xlu1 %v902_v50 }
 0x2bf   : > { %v1080_v51 = vpop.f32.mrf.mxu2 }
 0x2c0   : > { %v7468_v52 = vmul.f32 0.17677669, %v1080_v51 }
 0x2c1   : > { %v890_v53 = vpop.f32.mrf.mxu0 }
 0x2c2   : > { %v1094_v54 = vsel %vm689_vm13, %v7468_v52, -inf  ;;  %v7480_v59 = vmul.f32 0.17677669, %v890_v53 }
 0x2c3   : > { %1095 = vmax.xlane.f32.xlu2 %v1094_v54 }
 0x2c4   : > { %v905_v63 = vsel %vm689_vm13, %v7480_v59, -inf }
 0x2c7   : > { %v1082_v55 = vpop.f32.mrf.mxu2 }
 0x2c8   : > { %v7472_v56 = vmul.f32 0.17677669, %v1082_v55 }
 0x2c9   : > { %v892_v57 = vpop.f32.mrf.mxu0 }
 0x2ca   : > { %v7474_v58 = vmul.f32 0.17677669, %v892_v57  ;;  %v1097_v23 = vsel %vm689_vm13, %v7472_v56, -inf }
 0x2cb   : > { %1098 = vmax.xlane.f32.xlu1 %v1097_v23 }
 0x2cc   : > { %v908_v31 = vsel %vm689_vm13, %v7474_v58, -inf }
 0x2cd   : > { %909 = vmax.xlane.f32.xlu0 %v908_v31 }
 0x2cf   : > { %v1085_v60 = vpop.f32.mrf.mxu2 }
 0x2d0   : > { %v7484_v2 = vmul.f32 0.17677669, %v1085_v60 }
 0x2d1   : > { %v1273_v61 = vpop.f32.mrf.mxu0 }
 0x2d2   : > { %v727_v62 = vpop.xlane.xlu1 %726  ;;  %v1100_v12 = vsel %vm689_vm13, %v7484_v2, -inf  ;;  %v7494_v19 = vmul.f32 0.17677669, %v1273_v61 }
 0x2d3   : > { %v737_v0 = vsub.f32 %v721_v36, %v727_v62  ;;  %906 = vmax.xlane.f32.xlu1 %v905_v63 }
 0x2d4   : > { %v1287_v21 = vsel %vm689_vm13, %v7494_v19, -inf }
 0x2d5   : > { %v741_v1 = vmul.f32 1.442695, %v737_v0 }
 0x2d7   : > { %6748 = vpow2.f32 %v741_v1  ;;  %v1087_v6 = vpop.f32.mrf.mxu2 }
 0x2d8   : > { %v7486_v8 = vmul.f32 0.17677669, %v1087_v6 }
 0x2d9   : > { %v1275_v9 = vpop.f32.mrf.mxu0 }
 0x2da   : > { %v1103_v13 = vsel %vm689_vm13, %v7486_v8, -inf  ;;  %v730_v14 = vpop.xlane.xlu0 %729 }
 0x2db   : > { %1101 = vmax.xlane.f32.xlu1 %v1100_v12  ;;  %1104 = vmax.xlane.f32.xlu0 %v1103_v13  ;;  %v738_v15 = vsub.f32 %v722_v39, %v730_v14  ;;  %v7513_v39 = vmul.f32 0.17677669, %v1275_v9 }
 0x2dd   : > { %v7492_v16 = vpop.eup %6748  ;;  %v743_v17 = vmul.f32 1.442695, %v738_v15 }
 0x2de   : > { %v749_v20 = vsel %vm689_vm13, %v7492_v16, 0.0 }
 0x2df   : > { %6750 = vpow2.f32 %v743_v17  ;;  %750 = vadd.xlane.f32.xlu2 %v749_v20 }
 0x2e1   : > { %v1278_v25 = vpop.f32.mrf.mxu0 }
 0x2e2   : > { %v733_v22 = vpop.xlane.xlu0 %732  ;;  %v7502_v29 = vmul.f32 0.17677669, %v1278_v25 }
 0x2e3   : > { %1288 = vmax.xlane.f32.xlu0 %v1287_v21  ;;  %v739_v26 = vsub.f32 %v723_v41, %v733_v22  ;;  %v1290_v41 = vsel %vm689_vm13, %v7513_v39, -inf }
 0x2e4   : > { %v1293_v34 = vsel %vm689_vm13, %v7502_v29, -inf }
 0x2e5   : > { %v7500_v27 = vpop.eup %6750  ;;  %v745_v28 = vmul.f32 1.442695, %v739_v26 }
 0x2e6   : > { %v752_v30 = vsel %vm689_vm13, %v7500_v27, 0.0 }
 0x2e7   : > { %6752 = vpow2.f32 %v745_v28  ;;  %753 = vadd.xlane.f32.xlu1 %v752_v30 }
 0x2e9   : > { %v1280_v45 = vpop.f32.mrf.mxu0 }
 0x2ea   : > { %v736_v33 = vpop.xlane.xlu2 %735  ;;  %v7527_v50 = vmul.f32 0.17677669, %v1280_v45 }
 0x2eb   : > { %v740_v35 = vsub.f32 %v7456_v44, %v736_v33  ;;  %1294 = vmax.xlane.f32.xlu0 %v1293_v34 }
 0x2ed   : > { %v7509_v36 = vpop.eup %6752  ;;  %v747_v37 = vmul.f32 1.442695, %v740_v35 }
 0x2ee   : > { %v755_v38 = vsel %vm689_vm13, %v7509_v36, 0.0 }
 0x2ef   : > { %6754 = vpow2.f32 %v747_v37  ;;  %756 = vadd.xlane.f32.xlu2 %v755_v38 }
 0x2f5   : > { %v7515_v40 = vpop.eup %6754 }
 0x2f6   : > { %v758_v24 = vsel %vm689_vm13, %v7515_v40, 0.0 }
 0x2f7   : > { %759 = vadd.xlane.f32.xlu1 %v758_v24  ;;  %1291 = vmax.xlane.f32.xlu2 %v1290_v41 }
 0x30f   : > { %1194 = vrot.lane.b32.xlu2 %v7422_v4, %s10354_s29 }
 0x328   : > { %v901_v42 = vpop.xlane.xlu2 %900 }
 0x329   : > { %v911_v43 = vsub.f32 %v7460_v46, %v901_v42  ;;  %v1296_v46 = vsel %vm689_vm13, %v7527_v50, -inf }
 0x32b   : > { %v915_v44 = vmul.f32 1.442695, %v911_v43 }
 0x32d   : > { %6756 = vpow2.f32 %v915_v44 }
 0x330   : > { %v904_v32 = vpop.xlane.xlu1 %903 }
 0x331   : > { %v912_v47 = vsub.f32 %v7464_v49, %v904_v32 }
 0x333   : > { %v7525_v48 = vpop.eup %6756  ;;  %v917_v51 = vmul.f32 1.442695, %v912_v47 }
 0x334   : > { %v923_v53 = vsel %vm689_vm13, %v7525_v48, 0.0 }
 0x335   : > { %6758 = vpow2.f32 %v917_v51  ;;  %924 = vadd.xlane.f32.xlu1 %v923_v53 }
 0x336   : > { %v1096_v54 = vpop.xlane.xlu2 %1095 }
 0x337   : > { %v1106_v55 = vsub.f32 %v7468_v52, %v1096_v54 }
 0x338   : > { %1297 = vmax.xlane.f32.xlu2 %v1296_v46 }
 0x339   : > { %v1110_v57 = vmul.f32 1.442695, %v1106_v55 }
 0x33b   : > { %v7534_v23 = vpop.eup %6758  ;;  %6760 = vpow2.f32 %v1110_v57 }
 0x33c   : > { %v926_v49 = vsel %vm689_vm13, %v7534_v23, 0.0 }
 0x33d   : > { %927 = vadd.xlane.f32.xlu0 %v926_v49 }
 0x33e   : > { %v1099_v31 = vpop.xlane.xlu1 %1098 }
 0x33f   : > { %v1107_v60 = vsub.f32 %v7472_v56, %v1099_v31 }
 0x340   : > { %v910_v63 = vpop.xlane.xlu0 %909 }
 0x341   : > { %v7539_v61 = vpop.eup %6760  ;;  %v1112_v62 = vmul.f32 1.442695, %v1107_v60  ;;  %v914_v20 = vsub.f32 %v7474_v58, %v910_v63 }
 0x342   : > { %v1118_v52 = vsel %vm689_vm13, %v7539_v61, 0.0 }
 0x343   : > { %6762 = vpow2.f32 %v1112_v62  ;;  %1119 = vadd.xlane.f32.xlu1 %v1118_v52  ;;  %v921_v26 = vmul.f32 1.442695, %v914_v20 }
 0x346   : > { %v907_v0 = vpop.xlane.xlu1 %906 }
 0x347   : > { %v913_v1 = vsub.f32 %v7480_v59, %v907_v0 }
 0x349   : > { %v7544_v6 = vpop.eup %6762  ;;  %v919_v9 = vmul.f32 1.442695, %v913_v1 }
 0x34a   : > { %v1121_v12 = vsel %vm689_vm13, %v7544_v6, 0.0 }
 0x34b   : > { %6764 = vpow2.f32 %v919_v9  ;;  %1122 = vadd.xlane.f32.xlu0 %v1121_v12 }
 0x34e   : > { %v1102_v56 = vpop.xlane.xlu1 %1101  ;;  %v1105_v13 = vpop.xlane.xlu0 %1104 }
 0x34f   : > { %v1108_v14 = vsub.f32 %v7484_v2, %v1102_v56  ;;  %v1109_v15 = vsub.f32 %v7486_v8, %v1105_v13 }
 0x351   : > { %v7550_v17 = vpop.eup %6764  ;;  %v1114_v21 = vmul.f32 1.442695, %v1108_v14  ;;  %v1116_v59 = vmul.f32 1.442695, %v1109_v15 }
 0x352   : > { %v751_v22 = vpop.xlane.xlu2 %750  ;;  %v929_v25 = vsel %vm689_vm13, %v7550_v17, 0.0 }
 0x353   : > { %6766 = vpow2.f32 %v1114_v21  ;;  %930 = vadd.xlane.f32.xlu2 %v929_v25  ;;  %v772_v47 = vand.u32 2147483648, %v751_v22  ;;  %vm766_vm15 = vweird.f32 %v751_v22  ;;  %v770_v53 = vand.u32 2147483647, %v751_v22 }
 0x354   : > { %6768 = vpow2.f32 %v1116_v59 }
 0x355   : > { %6770 = vrcp.f32 %v751_v22  ;;  %v773_v31 = vor.u32 1.1754944e-38, %v772_v47  ;;  %vm771_vm3 = vcmp.eq.f32.partialorder %v770_v53, 8.507059e+37 }
 0x356   : > { %v1289_v28 = vpop.xlane.xlu0 %1288  ;;  %6772 = vpow2.f32 %v921_v26 }
 0x357   : > { %v1299_v2 = vsub.f32 %v7494_v19, %v1289_v28 }
 0x359   : > { %v7555_v30 = vpop.eup %6766  ;;  %v1303_v38 = vmul.f32 1.442695, %v1299_v2 }
 0x35a   : > { %v7558_v8 = vpop.eup %6768  ;;  %v1124_v58 = vsel %vm689_vm13, %v7555_v30, 0.0  ;;  %v754_v33 = vpop.xlane.xlu1 %753 }
 0x35b   : > { %v6771_v34 = vpop.eup %6770  ;;  %1125 = vadd.xlane.f32.xlu1 %v1124_v58  ;;  %6774 = vrcp.f32 %v754_v33  ;;  %v1127_v37 = vsel %vm689_vm13, %v7558_v8, 0.0  ;;  %v787_v54 = vand.u32 2147483648, %v754_v33  ;;  %v785_v49 = vand.u32 2147483647, %v754_v33 }
 0x35c   : > { %v762_v35 = vmul.f32 %v6771_v34, %v751_v22  ;;  %1128 = vadd.xlane.f32.xlu2 %v1127_v37  ;;  %v7564_v41 = vpop.eup %6772  ;;  %6776 = vpow2.f32 %v1303_v38  ;;  %vm767_vm14 = vweird.f32 %v6771_v34  ;;  %vm781_vm2 = vweird.f32 %v754_v33 }
 0x35d   : > { %v932_v44 = vsel %vm689_vm13, %v7564_v41, 0.0  ;;  %vm7575_vm0 = vmor %vm766_vm15, %vm767_vm14  ;;  %v788_v52 = vor.u32 1.1754944e-38, %v787_v54  ;;  %vm786_vm5 = vcmp.eq.f32.partialorder %v785_v49, 8.507059e+37 }
 0x35e   : > { %v763_v24 = vsub.f32 1.0, %v762_v35  ;;  %v1295_v55 = vpop.xlane.xlu0 %1294 }
 0x35f   : > { %1387 = vrot.lane.b32.xlu0 %v7422_v4, %s10352_s14 }
 0x360   : > { %v764_v19 = vmul.f32 %v6771_v34, %v763_v24 }
 0x361   : > { %v6775_v42 = vpop.eup %6774 }
 0x362   : > { %v7568_v43 = vpop.xlane.xlu2 %756  ;;  %v777_v45 = vmul.f32 %v6775_v42, %v754_v33  ;;  %v765_v32 = vadd.f32 %v6771_v34, %v764_v19  ;;  %v7573_v4 = vpop.eup %6776  ;;  %vm782_vm1 = vweird.f32 %v6775_v42 }
 0x363   : > { %933 = vadd.xlane.f32.xlu1 %v932_v44  ;;  %6778 = vrcp.f32 %v7568_v43  ;;  %vm783_vm4 = vmor %vm781_vm2, %vm782_vm1  ;;  %v1311_v1 = vsel %vm689_vm13, %v7573_v4, 0.0  ;;  %v802_v33 = vand.u32 2147483648, %v7568_v43  ;;  %vm796_vm7 = vweird.f32 %v7568_v43 }
 0x364   : > { %v778_v51 = vsub.f32 1.0, %v777_v45  ;;  %v769_v57 = vsel %vm7575_vm0, %v6771_v34, %v765_v32 }
 0x365   : > { %v774_v56 = vsel %vm771_vm3, %v773_v31, %v769_v57  ;;  %v803_v19 = vor.u32 1.1754944e-38, %v802_v33 }
 0x366   : > { %v779_v46 = vmul.f32 %v6775_v42, %v778_v51  ;;  %v775_v21 = vmul.f32 %v7492_v16, %v774_v56 }
 0x368   : > { %v780_v60 = vadd.f32 %v6775_v42, %v779_v46  ;;  %v1301_v46 = vsub.f32 %v7502_v29, %v1295_v55 }
 0x369   : > { %v6779_v62 = vpop.eup %6778 }
 0x36a   : > { %v760_v63 = vpop.xlane.xlu1 %759  ;;  %v1292_v0 = vpop.xlane.xlu2 %1291  ;;  %v784_v9 = vsel %vm783_vm4, %v6775_v42, %v780_v60  ;;  %v792_v12 = vmul.f32 %v6779_v62, %v7568_v43  ;;  %vm797_vm6 = vweird.f32 %v6779_v62  ;;  %v1307_v49 = vmul.f32 1.442695, %v1301_v46 }
 0x36b   : > { %6780 = vrcp.f32 %v760_v63  ;;  %1312 = vadd.xlane.f32.xlu1 %v1311_v1  ;;  %v1300_v13 = vsub.f32 %v7513_v39, %v1292_v0  ;;  %v789_v15 = vsel %vm786_vm5, %v788_v52, %v784_v9  ;;  %v800_v39 = vand.u32 2147483647, %v7568_v43  ;;  %vm7591_vm8 = vmor %vm796_vm7, %vm797_vm6 }
 0x36c   : > { %v793_v14 = vsub.f32 1.0, %v792_v12  ;;  %v790_v59 = vmul.f32 %v7500_v27, %v789_v15  ;;  %v817_v34 = vand.u32 2147483648, %v760_v63  ;;  %v815_v38 = vand.u32 2147483647, %v760_v63 }
 0x36d   : > { %v1305_v20 = vmul.f32 1.442695, %v1300_v13  ;;  %vm801_vm10 = vcmp.eq.f32.partialorder %v800_v39, 8.507059e+37  ;;  %vm811_vm11 = vweird.f32 %v760_v63 }
 0x36e   : > { %v794_v22 = vmul.f32 %v6779_v62, %v793_v14  ;;  %v821_v25 = vpack.c.bf16 %v790_v59, %v775_v21  ;;  %v818_v44 = vor.u32 1.1754944e-38, %v817_v34  ;;  %vm816_vm14 = vcmp.eq.f32.partialorder %v815_v38, 8.507059e+37 }
 0x36f   : > { %6782 = vpow2.f32 %v1305_v20 }
 0x370   : > { %v795_v28 = vadd.f32 %v6779_v62, %v794_v22  ;;  %5646 = vmatmul.msk.bf16.vlgmr.msrb.gmra.mxu3 %vm689_vm13, %v821_v25 }
 0x371   : > { %v6781_v26 = vpop.eup %6780 }
 0x372   : > { %v807_v2 = vmul.f32 %v6781_v26, %v760_v63  ;;  %v1195_v58 = vpop.permute.xlu2 %1194  ;;  %vm812_vm9 = vweird.f32 %v6781_v26  ;;  %v799_v24 = vsel %vm7591_vm8, %v6779_v62, %v795_v28 }
 0x373   : > { %1210 = vmatpush.bf16.msra.mxu3 %v1195_v58  ;;  %vm813_vm12 = vmor %vm811_vm11, %vm812_vm9  ;;  %v804_v45 = vsel %vm801_vm10, %v803_v19, %v799_v24 }
 0x374   : > { %v808_v16 = vsub.f32 1.0, %v807_v2  ;;  %1385 = vrot.lane.b32.xlu2 %v7429_v7, %s10352_s14  ;;  %v805_v51 = vmul.f32 %v7509_v36, %v804_v45 }
 0x375   : > { %v7597_v35 = vpop.eup %6782 }
 0x376   : > { %v809_v37 = vmul.f32 %v6781_v26, %v808_v16  ;;  %v1314_v42 = vsel %vm689_vm13, %v7597_v35, 0.0 }
 0x377   : > { %1315 = vadd.xlane.f32.xlu1 %v1314_v42 }
 0x378   : > { %v810_v43 = vadd.f32 %v6781_v26, %v809_v37 }
 0x37a   : > { %v814_v32 = vsel %vm813_vm12, %v6781_v26, %v810_v43 }
 0x37b   : > { %v819_v47 = vsel %vm816_vm14, %v818_v44, %v814_v32 }
 0x37c   : > { %v820_v53 = vmul.f32 %v7515_v40, %v819_v47 }
 0x37e   : > { %v822_v54 = vpack.c.bf16 %v820_v53, %v805_v51 }
 0x380   : > { %5647 = vmatmul.msk.bf16.gmra.mxu3 %vm689_vm13, %v822_v54 }
 0x390   : > { %1192 = vrot.lane.b32.xlu1 %v7429_v7, %s10354_s29 }
 0x3a8   : > { %v925_v57 = vpop.xlane.xlu1 %924 }
 0x3a9   : > { %6784 = vrcp.f32 %v925_v57  ;;  %v946_v56 = vand.u32 2147483648, %v925_v57  ;;  %vm940_vm0 = vweird.f32 %v925_v57  ;;  %v944_v13 = vand.u32 2147483647, %v925_v57 }
 0x3aa   : > { %6786 = vpow2.f32 %v1307_v49 }
 0x3ab   : > { %v1298_v31 = vpop.xlane.xlu2 %1297  ;;  %v947_v25 = vor.u32 1.1754944e-38, %v946_v56  ;;  %vm945_vm3 = vcmp.eq.f32.partialorder %v944_v13, 8.507059e+37 }
 0x3ac   : > { %v1302_v60 = vsub.f32 %v7527_v50, %v1298_v31 }
 0x3ae   : > { %v1309_v62 = vmul.f32 1.442695, %v1302_v60 }
 0x3af   : > { %v6785_v52 = vpop.eup %6784 }
 0x3b0   : > { %v936_v36 = vmul.f32 %v6785_v52, %v925_v57  ;;  %6788 = vpow2.f32 %v1309_v62  ;;  %v928_v40 = vpop.xlane.xlu0 %927  ;;  %v7610_v1 = vpop.eup %6786  ;;  %vm941_vm15 = vweird.f32 %v6785_v52 }
 0x3b1   : > { %6790 = vrcp.f32 %v928_v40  ;;  %v1317_v15 = vsel %vm689_vm13, %v7610_v1, 0.0  ;;  %vm942_vm1 = vmor %vm940_vm0, %vm941_vm15  ;;  %v961_v20 = vand.u32 2147483648, %v928_v40  ;;  %v959_v22 = vand.u32 2147483647, %v928_v40 }
 0x3b2   : > { %v937_v63 = vsub.f32 1.0, %v936_v36  ;;  %vm955_vm4 = vweird.f32 %v928_v40 }
 0x3b3   : > { %v962_v28 = vor.u32 1.1754944e-38, %v961_v20  ;;  %vm960_vm6 = vcmp.eq.f32.partialorder %v959_v22, 8.507059e+37 }
 0x3b4   : > { %v938_v0 = vmul.f32 %v6785_v52, %v937_v63 }
 0x3b6   : > { %v7612_v7 = vpop.eup %6788  ;;  %v939_v9 = vadd.f32 %v6785_v52, %v938_v0  ;;  %v7620_v34 = vpop.xlane.xlu1 %1119 }
 0x3b7   : > { %v6791_v29 = vpop.eup %6790  ;;  %v1320_v50 = vsel %vm689_vm13, %v7612_v7, 0.0 }
 0x3b8   : > { %v951_v12 = vmul.f32 %v6791_v29, %v928_v40  ;;  %1321 = vadd.xlane.f32.xlu0 %v1320_v50  ;;  %v943_v21 = vsel %vm942_vm1, %v6785_v52, %v939_v9  ;;  %vm956_vm2 = vweird.f32 %v6791_v29  ;;  %vm1135_vm1 = vweird.f32 %v7620_v34 }
 0x3b9   : > { %vm957_vm5 = vmor %vm955_vm4, %vm956_vm2  ;;  %v948_v2 = vsel %vm945_vm3, %v947_v25, %v943_v21 }
 0x3ba   : > { %v952_v14 = vsub.f32 1.0, %v951_v12  ;;  %1318 = vadd.xlane.f32.xlu1 %v1317_v15  ;;  %v949_v39 = vmul.f32 %v7525_v48, %v948_v2 }
 0x3bc   : > { %v953_v59 = vmul.f32 %v6791_v29, %v952_v14 }
 0x3be   : > { %v954_v26 = vadd.f32 %v6791_v29, %v953_v59  ;;  %v7623_v38 = vpop.xlane.xlu0 %1122 }
 0x3c0   : > { %v958_v58 = vsel %vm957_vm5, %v6791_v29, %v954_v26 }
 0x3c1   : > { %v963_v33 = vsel %vm960_vm6, %v962_v28, %v958_v58 }
 0x3c2   : > { %v964_v16 = vmul.f32 %v7534_v23, %v963_v33  ;;  %v1139_v33 = vand.u32 2147483647, %v7620_v34 }
 0x3c4   : > { %v995_v27 = vpack.c.bf16 %v964_v16, %v949_v39 }
 0x3c6   : > { %v931_v37 = vpop.xlane.xlu2 %930  ;;  %5650 = vmatmul.msk.bf16.vlgmr.msrb.gmra.mxu1 %vm689_vm13, %v995_v27 }
 0x3c7   : > { %6792 = vrcp.f32 %v931_v37  ;;  %v976_v55 = vand.u32 2147483648, %v931_v37  ;;  %vm970_vm8 = vweird.f32 %v931_v37  ;;  %v974_v46 = vand.u32 2147483647, %v931_v37 }
 0x3c9   : > { %v977_v52 = vor.u32 1.1754944e-38, %v976_v55  ;;  %vm975_vm11 = vcmp.eq.f32.partialorder %v974_v46, 8.507059e+37 }
 0x3cd   : > { %v6793_v19 = vpop.eup %6792 }
 0x3ce   : > { %v7625_v24 = vpop.xlane.xlu1 %1125  ;;  %v966_v44 = vmul.f32 %v6793_v19, %v931_v37  ;;  %vm971_vm7 = vweird.f32 %v6793_v19 }
 0x3cf   : > { %v7627_v42 = vpop.xlane.xlu2 %1128  ;;  %vm972_vm9 = vmor %vm970_vm8, %vm971_vm7  ;;  %vm1150_vm7 = vweird.f32 %v7623_v38 }
 0x3d0   : > { %v967_v48 = vsub.f32 1.0, %v966_v44 }
 0x3d1   : > { %v1388_v43 = vpop.permute.xlu0 %1387 }
 0x3d2   : > { %1403 = vmatpush.bf16.msra.mxu1 %v1388_v43  ;;  %v968_v32 = vmul.f32 %v6793_v19, %v967_v48 }
 0x3d4   : > { %v969_v51 = vadd.f32 %v6793_v19, %v968_v32 }
 0x3d6   : > { %v934_v45 = vpop.xlane.xlu1 %933  ;;  %v973_v62 = vsel %vm972_vm9, %v6793_v19, %v969_v51 }
 0x3d7   : > { %6794 = vrcp.f32 %v934_v45  ;;  %v1386_v23 = vpop.permute.xlu2 %1385  ;;  %v991_v49 = vand.u32 2147483648, %v934_v45  ;;  %v989_v60 = vand.u32 2147483647, %v934_v45  ;;  %vm985_vm12 = vweird.f32 %v934_v45 }
 0x3d8   : > { %1404 = vmatpush.bf16.msra.mxu1 %v1386_v23  ;;  %v978_v0 = vsel %vm975_vm11, %v977_v52, %v973_v62 }
 0x3d9   : > { %v992_v63 = vor.u32 1.1754944e-38, %v991_v49  ;;  %vm990_vm15 = vcmp.eq.f32.partialorder %v989_v60, 8.507059e+37  ;;  %v979_v56 = vmul.f32 %v7550_v17, %v978_v0 }
 0x3dd   : > { %v6795_v47 = vpop.eup %6794 }
 0x3de   : > { %v981_v53 = vmul.f32 %v6795_v47, %v934_v45  ;;  %v7629_v54 = vpop.xlane.xlu1 %1312  ;;  %vm986_vm10 = vweird.f32 %v6795_v47 }
 0x3df   : > { %6796 = vrcp.f32 %v7629_v54  ;;  %vm987_vm14 = vmor %vm985_vm12, %vm986_vm10  ;;  %v1334_v39 = vand.u32 2147483648, %v7629_v54  ;;  %vm1328_vm2 = vweird.f32 %v7629_v54  ;;  %v1332_v27 = vand.u32 2147483647, %v7629_v54 }
 0x3e0   : > { %v982_v57 = vsub.f32 1.0, %v981_v53  ;;  %6798 = vrcp.f32 %v7623_v38  ;;  %v1154_v53 = vand.u32 2147483647, %v7623_v38 }
 0x3e1   : > { %6800 = vrcp.f32 %v7620_v34  ;;  %v1335_v55 = vor.u32 1.1754944e-38, %v1334_v39  ;;  %vm1333_vm9 = vcmp.eq.f32.partialorder %v1332_v27, 8.507059e+37 }
 0x3e2   : > { %v983_v31 = vmul.f32 %v6795_v47, %v982_v57 }
 0x3e4   : > { %v984_v36 = vadd.f32 %v6795_v47, %v983_v31  ;;  %v1141_v31 = vand.u32 2147483648, %v7620_v34 }
 0x3e5   : > { %v6797_v40 = vpop.eup %6796 }
 0x3e6   : > { %v988_v29 = vsel %vm987_vm14, %v6795_v47, %v984_v36  ;;  %v7634_v9 = vpop.eup %6798  ;;  %v1324_v12 = vmul.f32 %v6797_v40, %v7629_v54  ;;  %vm1329_vm0 = vweird.f32 %v6797_v40  ;;  %v1156_v54 = vand.u32 2147483648, %v7623_v38 }
 0x3e7   : > { %v993_v50 = vsel %vm990_vm15, %v992_v63, %v988_v29  ;;  %v7639_v14 = vpop.eup %6800  ;;  %v1146_v15 = vmul.f32 %v7634_v9, %v7623_v38  ;;  %vm1151_vm4 = vweird.f32 %v7634_v9  ;;  %vm7658_vm5 = vmor %vm1328_vm2, %vm1329_vm0  ;;  %vm1155_vm15 = vcmp.eq.f32.partialorder %v1154_v53, 8.507059e+37 }
 0x3e8   : > { %v994_v13 = vmul.f32 %v7564_v41, %v993_v50  ;;  %v1325_v21 = vsub.f32 1.0, %v1324_v12  ;;  %v1131_v22 = vmul.f32 %v7639_v14, %v7620_v34  ;;  %vm1136_vm3 = vweird.f32 %v7639_v14  ;;  %vm7675_vm8 = vmor %vm1150_vm7, %vm1151_vm4 }
 0x3e9   : > { %v1147_v25 = vsub.f32 1.0, %v1146_v15  ;;  %vm7692_vm14 = vmor %vm1135_vm1, %vm1136_vm3  ;;  %v1157_v0 = vor.u32 1.1754944e-38, %v1156_v54  ;;  %vm1140_vm0 = vcmp.eq.f32.partialorder %v1139_v33, 8.507059e+37  ;;  %vm1165_vm3 = vweird.f32 %v7625_v24 }
 0x3ea   : > { %v996_v20 = vpack.c.bf16 %v994_v13, %v979_v56  ;;  %v1316_v59 = vpop.xlane.xlu1 %1315  ;;  %v1326_v26 = vmul.f32 %v6797_v40, %v1325_v21  ;;  %v1132_v28 = vsub.f32 1.0, %v1131_v22  ;;  %v1142_v13 = vor.u32 1.1754944e-38, %v1141_v31 }
 0x3eb   : > { %6802 = vrcp.f32 %v1316_v59  ;;  %v1148_v41 = vmul.f32 %v7634_v9, %v1147_v25  ;;  %v1349_v48 = vand.u32 2147483648, %v1316_v59  ;;  %v1347_v47 = vand.u32 2147483647, %v1316_v59 }
 0x3ec   : > { %5651 = vmatmul.msk.bf16.gmra.mxu1 %vm689_vm13, %v996_v20  ;;  %6804 = vrcp.f32 %v7625_v24  ;;  %v1327_v2 = vadd.f32 %v6797_v40, %v1326_v26  ;;  %v1133_v16 = vmul.f32 %v7639_v14, %v1132_v28  ;;  %vm1343_vm10 = vweird.f32 %v1316_v59 }
 0x3ed   : > { %6806 = vrcp.f32 %v7627_v42  ;;  %v1149_v43 = vadd.f32 %v7634_v9, %v1148_v41  ;;  %v1350_v38 = vor.u32 1.1754944e-38, %v1349_v48  ;;  %vm1348_vm12 = vcmp.eq.f32.partialorder %v1347_v47, 8.507059e+37 }
 0x3ee   : > { %v1331_v23 = vsel %vm7658_vm5, %v6797_v40, %v1327_v2  ;;  %v1134_v46 = vadd.f32 %v7639_v14, %v1133_v16  ;;  %v1186_v41 = vand.u32 2147483648, %v7627_v42  ;;  %v1169_v2 = vand.u32 2147483647, %v7625_v24 }
 0x3ef   : > { %v1153_v60 = vsel %vm7675_vm8, %v7634_v9, %v1149_v43  ;;  %v1336_v62 = vsel %vm1333_vm9, %v1335_v55, %v1331_v23  ;;  %vm1180_vm5 = vweird.f32 %v7627_v42 }
 0x3f0   : > { %v1138_v9 = vsel %vm7692_vm14, %v7639_v14, %v1134_v46  ;;  %v1337_v12 = vmul.f32 %v7573_v4, %v1336_v62  ;;  %v1158_v15 = vsel %vm1155_vm15, %v1157_v0, %v1153_v60  ;;  %v1187_v27 = vor.u32 1.1754944e-38, %v1186_v41  ;;  %v6526_v41 = vld [vmem:[%s10347_s5 + $0x10] sm:$0xff] }
 0x3f1   : > { %v6803_v17 = vpop.eup %6802  ;;  %v1159_v22 = vmul.f32 %v7544_v6, %v1158_v15  ;;  %vm1170_vm7 = vcmp.eq.f32.partialorder %v1169_v2, 8.507059e+37  ;;  %v6525_v2 = vld [vmem:[%s10347_s5 + $0x8] sm:$0xff] }
 0x3f2   : > { %v1339_v58 = vmul.f32 %v6803_v17, %v1316_v59  ;;  %v7663_v45 = vpop.eup %6804  ;;  %vm1344_vm6 = vweird.f32 %v6803_v17  ;;  %v1143_v59 = vsel %vm1140_vm0, %v1142_v13, %v1138_v9 }
 0x3f3   : > { %v838_v19 = vpop.f32.mrf.mxu3  ;;  %v7667_v51 = vpop.eup %6806  ;;  %vm1345_vm11 = vmor %vm1343_vm10, %vm1344_vm6  ;;  %v1161_v52 = vmul.f32 %v7663_v45, %v7625_v24  ;;  %v1144_v14 = vmul.f32 %v7539_v61, %v1143_v59  ;;  %vm1166_vm1 = vweird.f32 %v7663_v45  ;;  %v1171_v61 = vand.u32 2147483648, %v7625_v24 }
 0x3f4   : > { %v1340_v37 = vsub.f32 1.0, %v1339_v58  ;;  %848 = vst.msk [vmem:[#allocation2] sm:$0xff] %vm689_vm13, %v838_v19  ;;  %v1176_v36 = vmul.f32 %v7667_v51, %v7627_v42  ;;  %vm1181_vm2 = vweird.f32 %v7667_v51  ;;  %vm1167_vm4 = vmor %vm1165_vm3, %vm1166_vm1  ;;  %v1184_v58 = vand.u32 2147483647, %v7627_v42 }
 0x3f5   : > { %v1162_v34 = vsub.f32 1.0, %v1161_v52  ;;  %v1190_v28 = vpack.c.bf16 %v1159_v22, %v1144_v14  ;;  %vm1182_vm6 = vmor %vm1180_vm5, %vm1181_vm2  ;;  %v1172_v16 = vor.u32 1.1754944e-38, %v1171_v61  ;;  %vm1046_vm2 = vcmask 523520  }
 0x3f6   : > { %v1341_v32 = vmul.f32 %v6803_v17, %v1340_v37  ;;  %v1177_v20 = vsub.f32 1.0, %v1176_v36  ;;  %vm1185_vm8 = vcmp.eq.f32.partialorder %v1184_v58, 8.507059e+37  ;;  %vm1239_vm3 = vcmask 785920  }
 0x3f7   : > { %v1163_v4 = vmul.f32 %v7663_v45, %v1162_v34 }
 0x3f8   : > { %v1342_v49 = vadd.f32 %v6803_v17, %v1341_v32 }
 0x3fa   : > { %v1346_v40 = vsel %vm1345_vm11, %v6803_v17, %v1342_v49  ;;  %v1164_v17 = vadd.f32 %v7663_v45, %v1163_v4 }
 0x3fb   : > { %v1351_v29 = vsel %vm1348_vm12, %v1350_v38, %v1346_v40  ;;  %v840_v56 = vpop.f32.mrf.mxu3 }
 0x3fc   : > { %v1352_v50 = vmul.f32 %v7597_v35, %v1351_v29  ;;  %849 = vst.msk [vmem:[#allocation2 + $0x8] sm:$0xff] %vm689_vm13, %v840_v56  ;;  %v1178_v35 = vmul.f32 %v7667_v51, %v1177_v20  ;;  %v1168_v33 = vsel %vm1167_vm4, %v7663_v45, %v1164_v17  ;;  %v6528_v17 = vld [vmem:[%s10347_s5 + $0x20] sm:$0xff]  ;;  %vm1432_vm4 = vcmask 1048320  }
 0x3fd   : > { %v1173_v19 = vsel %vm1170_vm7, %v1172_v16, %v1168_v33  ;;  %v6524_v33 = vld [vmem:[%s10347_s5] sm:$0xff] }
 0x3fe   : > { %v1383_v21 = vpack.c.bf16 %v1352_v50, %v1337_v12  ;;  %v1179_v6 = vadd.f32 %v7667_v51, %v1178_v35  ;;  %v1174_v24 = vmul.f32 %v7555_v30, %v1173_v19  ;;  %v6531_v35 = vld [vmem:[%s10347_s5 + $0x38] sm:$0xff] }
 0x3ff   : > { %1507 = vmatpush.bf16.msra.mxu2 %v6531_v35  ;;  %v6561_v35 = vld [vmem:[%s10348_s6 + $0xec] sm:$0xf] }
 0x400   : > { %5658 = vmatmul.msk.bf16.vlgmr.msra.gmra.mxu1 %vm689_vm13, %v1383_v21  ;;  %v1183_v39 = vsel %vm1182_vm6, %v7667_v51, %v1179_v6  ;;  %v6527_v6 = vld [vmem:[%s10347_s5 + $0x18] sm:$0xff] }
 0x401   : > { %v1188_v43 = vsel %vm1185_vm8, %v1187_v27, %v1183_v39 }
 0x402   : > { %v1193_v25 = vpop.permute.xlu1 %1192  ;;  %v1189_v44 = vmul.f32 %v7558_v8, %v1188_v43 }
 0x403   : > { %1211 = vmatpush.bf16.msra.mxu3 %v1193_v25  ;;  %v843_v26 = vpop.f32.mrf.mxu3  ;;  %v6530_v25 = vld [vmem:[%s10347_s5 + $0x30] sm:$0xff] }
 0x404   : > { %850 = vst.msk [vmem:[#allocation2 + $0x10] sm:$0xff] %vm689_vm13, %v843_v26  ;;  %v1191_v48 = vpack.c.bf16 %v1189_v44, %v1174_v24  ;;  %1508 = vmatpush.bf16.msra.mxu2 %v6530_v25  ;;  %v6529_v26 = vld [vmem:[%s10347_s5 + $0x28] sm:$0xff]  ;;  %v5816_v25 = vld [vmem:[%s10348_s6 + $0xf8] sm:$0xf0] }
 0x406   : > { %5654 = vmatmul.msk.bf16.vlgmr.msra.gmra.mxu3 %vm689_vm13, %v1190_v28 }
 0x408   : > { %1509 = vmatpush.bf16.msra.mxu2 %v6529_v26  ;;  %v5819_v26 = vor.u32 %v6561_v35, %v5816_v25  ;;  %v5728_v25 = vld [vmem:[%s10348_s6 + $0x50] sm:$0xf0] }
 0x40b   : > { %v845_v37 = vpop.f32.mrf.mxu3 }
 0x40c   : > { %851 = vst.msk [vmem:[#allocation2 + $0x18] sm:$0xff] %vm689_vm13, %v845_v37  ;;  %1510 = vmatpush.bf16.msra.mxu2 %v6528_v17  ;;  %v6558_v17 = vld [vmem:[%s10348_s6 + $0xcc] sm:$0xf0] }
 0x410   : > { %1511 = vmatpush.bf16.msra.mxu2 %v6527_v6  ;;  %v6556_v6 = vld [vmem:[%s10348_s6 + $0xc4] sm:$0xf] }
 0x414   : > { %1512 = vmatpush.bf16.msra.mxu2 %v6526_v41  ;;  %v5792_v41 = vld [vmem:[%s10348_s6 + $0xd0] sm:$0xf0] }
 0x416   : > { %5655 = vmatmul.msk.bf16.gmra.mxu3 %vm689_vm13, %v1191_v48 }
 0x418   : > { %1513 = vmatpush.bf16.msra.mxu2 %v6525_v2  ;;  %v5798_v2 = vld [vmem:[%s10348_s6 + $0xc8] sm:$0xf] }
 0x41c   : > { %1514 = vmatpush.bf16.msra.mxu2 %v6524_v33  ;;  %v5795_v33 = vor.u32 %v6556_v6, %v5792_v41  ;;  %v5736_v41 = vld [vmem:[%s10348_s6 + $0x58] sm:$0xf0] }
 0x420   : > { %1886 = vmatpush.bf16.msrb.mxu2 %v5819_v26  ;;  %v5734_v26 = vld [vmem:[%s10348_s6 + $0x48] sm:$0xf] }
 0x42b   : > { %v1322_v42 = vpop.xlane.xlu0 %1321 }
 0x42c   : > { %6808 = vrcp.f32 %v1322_v42  ;;  %v1379_v54 = vand.u32 2147483648, %v1322_v42  ;;  %v1377_v46 = vand.u32 2147483647, %v1322_v42  ;;  %vm1373_vm10 = vweird.f32 %v1322_v42 }
 0x42d   : > { %v1319_v45 = vpop.xlane.xlu1 %1318 }
 0x42e   : > { %6810 = vrcp.f32 %v1319_v45  ;;  %v1364_v30 = vand.u32 2147483648, %v1319_v45  ;;  %v1362_v31 = vand.u32 2147483647, %v1319_v45  ;;  %v1380_v60 = vor.u32 1.1754944e-38, %v1379_v54 }
 0x42f   : > { %vm1378_vm14 = vcmp.eq.f32.partialorder %v1377_v46, 8.507059e+37  ;;  %vm1358_vm15 = vweird.f32 %v1319_v45 }
 0x430   : > { %v1365_v52 = vor.u32 1.1754944e-38, %v1364_v30  ;;  %vm1363_vm1 = vcmp.eq.f32.partialorder %v1362_v31, 8.507059e+37 }
 0x432   : > { %v6809_v23 = vpop.eup %6808 }
 0x433   : > { %v1369_v32 = vmul.f32 %v6809_v23, %v1322_v42  ;;  %vm1374_vm9 = vweird.f32 %v6809_v23 }
 0x434   : > { %v6811_v47 = vpop.eup %6810  ;;  %vm1375_vm12 = vmor %vm1373_vm10, %vm1374_vm9 }
 0x435   : > { %v1370_v51 = vsub.f32 1.0, %v1369_v32  ;;  %v1354_v53 = vmul.f32 %v6811_v47, %v1319_v45  ;;  %vm1359_vm11 = vweird.f32 %v6811_v47 }
 0x436   : > { %vm1360_vm0 = vmor %vm1358_vm15, %vm1359_vm11 }
 0x437   : > { %v1371_v55 = vmul.f32 %v6809_v23, %v1370_v51  ;;  %v1355_v57 = vsub.f32 1.0, %v1354_v53 }
 0x439   : > { %v1372_v8 = vadd.f32 %v6809_v23, %v1371_v55  ;;  %v1356_v49 = vmul.f32 %v6811_v47, %v1355_v57 }
 0x43b   : > { %v1357_v62 = vadd.f32 %v6811_v47, %v1356_v49  ;;  %v1376_v38 = vsel %vm1375_vm12, %v6809_v23, %v1372_v8 }
 0x43c   : > { %v1381_v36 = vsel %vm1378_vm14, %v1380_v60, %v1376_v38 }
 0x43d   : > { %v1361_v40 = vsel %vm1360_vm0, %v6811_v47, %v1357_v62  ;;  %v1382_v29 = vmul.f32 %v7612_v7, %v1381_v36  ;;  %v7779_v47 = vld [vmem:[%s10344_s2] sm:$0x3f] }
 0x43e   : > { %v1366_v63 = vsel %vm1363_vm1, %v1365_v52, %v1361_v40  ;;  %v1530_v51 = vperm.slane %v7779_v47, 4 }
 0x43f   : > { %v1367_v0 = vmul.f32 %v7610_v1, %v1366_v63 }
 0x441   : > { %v1384_v9 = vpack.c.bf16 %v1382_v29, %v1367_v0 }
 0x443   : > { %v1020_v12 = vpop.f32.mrf.mxu1  ;;  %5659 = vmatmul.msk.bf16.gmra.mxu1 %vm689_vm13, %v1384_v9 }
 0x444   : > { %1034 = vrot.lane.b32.xlu2 %v1020_v12, %s10352_s14 }
 0x44b   : > { %v1022_v50 = vpop.f32.mrf.mxu1 }
 0x44c   : > { %1036 = vrot.lane.b32.xlu1 %v1022_v50, %s10352_s14 }
 0x469   : > { %v1025_v56 = vpop.f32.mrf.mxu1 }
 0x46a   : > { %1038 = vrot.lane.b32.xlu1 %v1025_v56, %s10352_s14 }
 0x471   : > { %v1027_v13 = vpop.f32.mrf.mxu1 }
 0x47d   : > { %v1406_v34 = vpop.f32.mrf.mxu1 }
 0x485   : > { %v1408_v7 = vpop.f32.mrf.mxu1 }
 0x489   : > { %v1213_v15 = vpop.f32.mrf.mxu3 }
 0x48a   : > { %1227 = vrot.lane.b32.xlu2 %v1213_v15, %s10354_s29 }
 0x491   : > { %v1215_v1 = vpop.f32.mrf.mxu3 }
 0x492   : > { %1229 = vrot.lane.b32.xlu0 %v1215_v1, %s10354_s29  ;;  %1420 = vrot.lane.b32.xlu2 %v1406_v34, %s10356_s27  ;;  %v5806_v34 = vld [vmem:[%s10348_s6 + $0xe0] sm:$0xf]  ;;  %v6562_v1 = vld [vmem:[%s10348_s6 + $0xec] sm:$0xf0] }
 0x499   : > { %v1218_v20 = vpop.f32.mrf.mxu3 }
 0x49a   : > { %1231 = vrot.lane.b32.xlu0 %v1218_v20, %s10354_s29  ;;  %1422 = vrot.lane.b32.xlu2 %v1408_v7, %s10356_s27  ;;  %v6560_v7 = vld [vmem:[%s10348_s6 + $0xe4] sm:$0xf]  ;;  %v5807_v20 = vor.u32 %v6562_v1, %v5806_v34  ;;  %v6547_v34 = vld [vmem:[%s10348_s6 + $0x74] sm:$0xf0] }
 0x49c   : > { %1829 = vmatpush.bf16.msrb.mxu3 %v5807_v20  ;;  %v6545_v20 = vld [vmem:[%s10348_s6 + $0x6c] sm:$0xf] }
 0x49e   : > { %v1035_v21 = vpop.permute.xlu2 %1034 }
 0x49f   : > { %1047 = vst.msk [vmem:[#allocation2] sm:$0xff] %vm1046_vm2, %v1035_v21  ;;  %v5808_v21 = vld [vmem:[%s10348_s6 + $0xf0] sm:$0xf0] }
 0x4a1   : > { %v1220_v59 = vpop.f32.mrf.mxu3 }
 0x4a2   : > { %1233 = vrot.lane.b32.xlu1 %v1220_v59, %s10354_s29  ;;  %1040 = vrot.lane.b32.xlu2 %v1027_v13, %s10352_s14  ;;  %v5814_v59 = vld [vmem:[%s10348_s6 + $0xe8] sm:$0xf] }
 0x4be   : > { %v1037_v22 = vpop.permute.xlu1 %1036 }
 0x4bf   : > { %1048 = vst.msk [vmem:[#allocation2 + $0x8] sm:$0xff] %vm1046_vm2, %v1037_v22  ;;  %v6563_v22 = vld [vmem:[%s10348_s6 + $0xf4] sm:$0xf0] }
 0x4c0   : > { %v1411_v14 = vpop.f32.mrf.mxu1 }
 0x4c1   : > { %1424 = vrot.lane.b32.xlu2 %v1411_v14, %s10356_s27  ;;  %v5811_v14 = vor.u32 %v6560_v7, %v5808_v21  ;;  %v5752_v21 = vld [vmem:[%s10348_s6 + $0x78] sm:$0xf0] }
 0x4c3   : > { %1848 = vmatpush.bf16.msrb.mxu0 %v5811_v14  ;;  %v6542_v14 = vld [vmem:[%s10348_s6 + $0x4c] sm:$0xf0] }
 0x4c7   : > { %1849 = vmatpush.bf16.msrb.mxu0 %v5795_v33  ;;  %v6538_v33 = vld [vmem:[%s10348_s6 + $0x2c] sm:$0xf0] }
 0x4c8   : > { %v1413_v4 = vpop.f32.mrf.mxu1 }
 0x4c9   : > { %1426 = vrot.lane.b32.xlu0 %v1413_v4, %s10356_s27  ;;  %v5815_v4 = vor.u32 %v6563_v22, %v5814_v59  ;;  %v5755_v59 = vor.u32 %v6545_v20, %v5752_v21  ;;  %v5726_v22 = vld [vmem:[%s10348_s6 + $0x40] sm:$0xf]  ;;  %s5461_s27 = scalar_lea.hbm %s10351_s9, %s6692_s25  ;;  %s7060_s25 = scalar_lea.hbm %s10351_s9, 32 }
 0x4ca   : > { %v5727_v35 = vor.u32 %v6542_v14, %v5726_v22  ;;  %v1615_v14 = vperm.slane %v7779_v47, 2  ;;  %s5464_s16 = sshll.u32 %s5461_s27, 4  ;;  %s5465_s16 = int_to_ptr.hbm [resolvable:$true] %s5464_s16 }
 0x4cb   : > { %1867 = vmatpush.bf16.msrb.mxu1 %v5815_v4  ;;  %v6540_v4 = vld [vmem:[%s10348_s6 + $0x44] sm:$0xf] }
 0x4dc   : > { %v1039_v28 = vpop.permute.xlu1 %1038 }
 0x4dd   : > { %1049 = vst.msk [vmem:[#allocation2 + $0x10] sm:$0xff] %vm1046_vm2, %v1039_v28  ;;  %v5790_v28 = vld [vmem:[%s10348_s6 + $0xc0] sm:$0xf] }
 0x4e4   : > { %v1228_v61 = vpop.permute.xlu2 %1227 }
 0x4e5   : > { %1240 = vst.msk [vmem:[#allocation2] sm:$0xff] %vm1239_vm3, %v1228_v61  ;;  %v5791_v61 = vor.u32 %v6558_v17, %v5790_v28  ;;  %v6543_v28 = vld [vmem:[%s10348_s6 + $0x54] sm:$0xf0]  ;;  %v5731_v17 = vor.u32 %v6540_v4, %v5728_v25 }
 0x4e6   : > { %v5735_v6 = vor.u32 %v6543_v28, %v5734_v26  ;;  %v1620_v28 = vperm.slane %v7779_v47, 3 }
 0x4e7   : > { %1830 = vmatpush.bf16.msrb.mxu3 %v5791_v61  ;;  %v6541_v61 = vld [vmem:[%s10348_s6 + $0x4c] sm:$0xf] }
 0x4ec   : > { %v1421_v58 = vpop.permute.xlu2 %1420 }
 0x4ed   : > { %1433 = vst.msk [vmem:[#allocation2] sm:$0xff] %vm1432_vm4, %v1421_v58  ;;  %v6559_v58 = vld [vmem:[%s10348_s6 + $0xd4] sm:$0xf0] }
 0x4f4   : > { %v1423_v39 = vpop.permute.xlu2 %1422  ;;  %v1437_v19 = vld [vmem:[#allocation2] sm:$0xff] }
 0x4fc   : > { %v1041_v16 = vpop.permute.xlu2 %1040 }
 0x4fd   : > { %1050 = vst.msk [vmem:[#allocation2 + $0x18] sm:$0xff] %vm1046_vm2, %v1041_v16  ;;  %v6557_v16 = vld [vmem:[%s10348_s6 + $0xcc] sm:$0xf] }
 0x504   : > { %v1230_v27 = vpop.permute.xlu0 %1229 }
 0x505   : > { %1241 = vst.msk [vmem:[#allocation2 + $0x8] sm:$0xff] %vm1239_vm3, %v1230_v27  ;;  %v5800_v27 = vld [vmem:[%s10348_s6 + $0xd8] sm:$0xf0] }
 0x506   : > { %1434 = vst.msk [vmem:[#allocation2 + $0x8] sm:$0xff] %vm1432_vm4, %v1423_v39  ;;  %v5799_v39 = vor.u32 %v6559_v58, %v5798_v2  ;;  %v5739_v2 = vor.u32 %v6541_v61, %v5736_v41  ;;  %v5710_v58 = vld [vmem:[%s10348_s6 + $0x20] sm:$0xf] }
 0x508   : > { %1868 = vmatpush.bf16.msrb.mxu1 %v5799_v39  ;;  %v6536_v39 = vld [vmem:[%s10348_s6 + $0x24] sm:$0xf] }
 0x50c   : > { %v1232_v37 = vpop.permute.xlu0 %1231 }
 0x50d   : > { %1242 = vst.msk [vmem:[#allocation2 + $0x10] sm:$0xff] %vm1239_vm3, %v1232_v37  ;;  %v1438_v43 = vld [vmem:[#allocation2 + $0x8] sm:$0xff]  ;;  %v5803_v37 = vor.u32 %v6557_v16, %v5800_v27  ;;  %v5711_v27 = vor.u32 %v6538_v33, %v5710_v58 }
 0x50e   : > { %v1441_v24 = vpack.c.bf16 %v1438_v43, %v1437_v19  ;;  %v5774_v19 = vld [vmem:[%s10348_s6 + $0xa0] sm:$0xf]  ;;  %v6554_v43 = vld [vmem:[%s10348_s6 + $0xac] sm:$0xf0] }
 0x50f   : > { %1887 = vmatpush.bf16.msrb.mxu2 %v5803_v37  ;;  %v5712_v37 = vld [vmem:[%s10348_s6 + $0x30] sm:$0xf0] }
 0x510   : > { %1515 = vmatmul.bf16.vlgmr.msra.gmra.mxu2 %v1441_v24  ;;  %v6552_v24 = vld [vmem:[%s10348_s6 + $0xa4] sm:$0xf] }
 0x514   : > { %v1234_v44 = vpop.permute.xlu1 %1233 }
 0x515   : > { %1243 = vst.msk [vmem:[#allocation2 + $0x18] sm:$0xff] %vm1239_vm3, %v1234_v44  ;;  %v5775_v44 = vor.u32 %v6554_v43, %v5774_v19  ;;  %v5718_v19 = vld [vmem:[%s10348_s6 + $0x28] sm:$0xf]  ;;  %v6539_v43 = vld [vmem:[%s10348_s6 + $0x34] sm:$0xf0] }
 0x517   : > { %1831 = vmatpush.bf16.msrb.mxu3 %v5775_v44  ;;  %v5715_v44 = vor.u32 %v6536_v39, %v5712_v37 }
 0x51b   : > { %v1425_v48 = vpop.permute.xlu2 %1424 }
 0x51c   : > { %1435 = vst.msk [vmem:[#allocation2 + $0x10] sm:$0xff] %vm1432_vm4, %v1425_v48  ;;  %v5776_v48 = vld [vmem:[%s10348_s6 + $0xb0] sm:$0xf0] }
 0x523   : > { %v1439_v45 = vld [vmem:[#allocation2 + $0x10] sm:$0xff] }
 0x53b   : > { %v1427_v42 = vpop.permute.xlu0 %1426 }
 0x53c   : > { %1436 = vst.msk [vmem:[#allocation2 + $0x18] sm:$0xff] %vm1432_vm4, %v1427_v42  ;;  %v5782_v42 = vld [vmem:[%s10348_s6 + $0xa8] sm:$0xf] }
 0x543   : > { %v1440_v23 = vld [vmem:[#allocation2 + $0x18] sm:$0xff] }
 0x544   : > { %v1442_v32 = vpack.c.bf16 %v1440_v23, %v1439_v45  ;;  %v6555_v45 = vld [vmem:[%s10348_s6 + $0xb4] sm:$0xf0]  ;;  %v5779_v23 = vor.u32 %v6552_v24, %v5776_v48  ;;  %v5719_v48 = vor.u32 %v6539_v43, %v5718_v19 }
 0x546   : > { %1520 = vmatmul.bf16.gmra.mxu2 %v1442_v32  ;;  %v5783_v32 = vor.u32 %v6555_v45, %v5782_v42  ;;  %1850 = vmatpush.bf16.msrb.mxu0 %v5779_v23  ;;  %v6537_v42 = vld [vmem:[%s10348_s6 + $0x2c] sm:$0xf]  ;;  %v5720_v45 = vld [vmem:[%s10348_s6 + $0x38] sm:$0xf0]  ;;  %v5694_v23 = vld [vmem:[%s10348_s6] sm:$0xf] }
 0x548   : > { %1869 = vmatpush.bf16.msrb.mxu1 %v5783_v32  ;;  %v5723_v32 = vor.u32 %v6537_v42, %v5720_v45 }
 0x593   : > { %v1516_v53 = vpop.f32.mrf.mxu2 }
 0x594   : > { %v1526_v54 = vadd.f32 %v1516_v53, %v7222_v5  ;;  %v5784_v53 = vld [vmem:[%s10348_s6 + $0xb8] sm:$0xf0] }
 0x596   : > { %v7783_v55 = vadd.f32 %v1530_v51, %v1526_v54 }
 0x598   : > { %1535 = vadd.xlane.f32.xlu1 %v7783_v55 }
 0x59b   : > { %v1518_v46 = vpop.f32.mrf.mxu2 }
 0x59c   : > { %v1527_v57 = vadd.f32 %v1518_v46, %v7230_v11  ;;  %v5758_v46 = vld [vmem:[%s10348_s6 + $0x80] sm:$0xf] }
 0x59e   : > { %v7787_v30 = vadd.f32 %v1530_v51, %v1527_v57  ;;  %v6550_v57 = vld [vmem:[%s10348_s6 + $0x8c] sm:$0xf0] }
 0x5a0   : > { %1537 = vadd.xlane.f32.xlu2 %v7787_v30 }
 0x5c9   : > { %v1521_v8 = vpop.f32.mrf.mxu2 }
 0x5ca   : > { %v1528_v49 = vadd.f32 %v1521_v8, %v7219_v3  ;;  %v6548_v8 = vld [vmem:[%s10348_s6 + $0x84] sm:$0xf] }
 0x5cc   : > { %v7791_v31 = vadd.f32 %v1530_v51, %v1528_v49  ;;  %v5759_v49 = vor.u32 %v6550_v57, %v5758_v46 }
 0x5ce   : > { %1539 = vadd.xlane.f32.xlu0 %v7791_v31  ;;  %1832 = vmatpush.bf16.msrb.mxu3 %v5759_v49  ;;  %v6535_v49 = vld [vmem:[%s10348_s6 + $0x14] sm:$0xf0] }
 0x5d1   : > { %v1523_v60 = vpop.f32.mrf.mxu2 }
 0x5d2   : > { %v1529_v5 = vadd.f32 %v1523_v60, %v7228_v10  ;;  %v5760_v60 = vld [vmem:[%s10348_s6 + $0x90] sm:$0xf0] }
 0x5d4   : > { %v7795_v62 = vadd.f32 %v1530_v51, %v1529_v5  ;;  %v6553_v51 = vld [vmem:[%s10348_s6 + $0xac] sm:$0xf]  ;;  %v5766_v5 = vld [vmem:[%s10348_s6 + $0x88] sm:$0xf] }
 0x5d5   : > { %v5787_v54 = vor.u32 %v6553_v51, %v5784_v53  ;;  %v6534_v51 = vld [vmem:[%s10348_s6 + $0xc] sm:$0xf0]  ;;  %v6532_v53 = vld [vmem:[%s10348_s6 + $0x4] sm:$0xf] }
 0x5d6   : > { %1541 = vadd.xlane.f32.xlu1 %v7795_v62  ;;  %v5695_v57 = vor.u32 %v6534_v51, %v5694_v23 }
 0x5d7   : > { %1888 = vmatpush.bf16.msrb.mxu2 %v5787_v54  ;;  %v5696_v54 = vld [vmem:[%s10348_s6 + $0x10] sm:$0xf0] }
 0x60b   : > { %v1536_v38 = vpop.xlane.xlu1 %1535 }
 0x60c   : > { %v1543_v11 = vmul.f32 %v1536_v38, %v7234_v18  ;;  %v6551_v38 = vld [vmem:[%s10348_s6 + $0x94] sm:$0xf0] }
 0x60e   : > { %v7800_v52 = vsub.f32 %v7783_v55, %v1543_v11  ;;  %v5763_v11 = vor.u32 %v6548_v8, %v5760_v60  ;;  %v5702_v8 = vld [vmem:[%s10348_s6 + $0x8] sm:$0xf]  ;;  %v5699_v60 = vor.u32 %v6532_v53, %v5696_v54 }
 0x610   : > { %v1551_v3 = vmul.f32 %v7800_v52, %v7800_v52  ;;  %1851 = vmatpush.bf16.msrb.mxu0 %v5763_v11  ;;  %v5704_v11 = vld [vmem:[%s10348_s6 + $0x18] sm:$0xf0] }
 0x612   : > { %1555 = vadd.xlane.f32.xlu2 %v1551_v3  ;;  %v5767_v3 = vor.u32 %v6551_v38, %v5766_v5  ;;  %v5703_v5 = vor.u32 %v6535_v49, %v5702_v8  ;;  %v6533_v38 = vld [vmem:[%s10348_s6 + $0xc] sm:$0xf] }
 0x613   : > { %v1538_v36 = vpop.xlane.xlu2 %1537 }
 0x614   : > { %v1544_v40 = vmul.f32 %v1538_v36, %v7234_v18  ;;  %v6549_v36 = vld [vmem:[%s10348_s6 + $0x8c] sm:$0xf]  ;;  %1870 = vmatpush.bf16.msrb.mxu1 %v5767_v3  ;;  %v5707_v3 = vor.u32 %v6533_v38, %v5704_v11 }
 0x616   : > { %v7806_v63 = vsub.f32 %v7787_v30, %v1544_v40  ;;  %v5768_v40 = vld [vmem:[%s10348_s6 + $0x98] sm:$0xf0] }
 0x618   : > { %v1552_v10 = vmul.f32 %v7806_v63, %v7806_v63 }
 0x61a   : > { %1557 = vadd.xlane.f32.xlu0 %v1552_v10  ;;  %v5771_v10 = vor.u32 %v6549_v36, %v5768_v40 }
 0x61c   : > { %1889 = vmatpush.bf16.msrb.mxu2 %v5771_v10 }
 0x620   : > { %1890 = vmatpush.bf16.msrb.mxu2 %v5755_v59 }
 0x624   : > { %1891 = vmatpush.bf16.msrb.mxu2 %v5739_v2 }
 0x628   : > { %1892 = vmatpush.bf16.msrb.mxu2 %v5723_v32 }
 0x62c   : > { %1893 = vmatpush.bf16.msrb.mxu2 %v5707_v3 }
 0x641   : > { %v1540_v0 = vpop.xlane.xlu0 %1539 }
 0x642   : > { %v1545_v29 = vmul.f32 %v1540_v0, %v7234_v18  ;;  %v5742_v0 = vld [vmem:[%s10348_s6 + $0x60] sm:$0xf] }
 0x644   : > { %v7812_v9 = vsub.f32 %v7791_v31, %v1545_v29  ;;  %v6546_v29 = vld [vmem:[%s10348_s6 + $0x6c] sm:$0xf0] }
 0x646   : > { %v1553_v12 = vmul.f32 %v7812_v9, %v7812_v9 }
 0x648   : > { %1559 = vadd.xlane.f32.xlu1 %v1553_v12  ;;  %v6544_v12 = vld [vmem:[%s10348_s6 + $0x64] sm:$0xf] }
 0x649   : > { %v1542_v50 = vpop.xlane.xlu1 %1541 }
 0x64a   : > { %v1546_v56 = vmul.f32 %v1542_v50, %v7234_v18  ;;  %v5743_v50 = vor.u32 %v6546_v29, %v5742_v0 }
 0x64c   : > { %v7818_v13 = vsub.f32 %v7795_v62, %v1546_v56  ;;  %v5744_v56 = vld [vmem:[%s10348_s6 + $0x70] sm:$0xf0]  ;;  %1833 = vmatpush.bf16.msrb.mxu3 %v5743_v50 }
 0x64d   : > { %v5747_v1 = vor.u32 %v6544_v12, %v5744_v56 }
 0x64e   : > { %v1554_v15 = vmul.f32 %v7818_v13, %v7818_v13 }
 0x64f   : > { %1852 = vmatpush.bf16.msrb.mxu0 %v5747_v1 }
 0x650   : > { %1561 = vadd.xlane.f32.xlu2 %v1554_v15  ;;  %v5750_v15 = vld [vmem:[%s10348_s6 + $0x68] sm:$0xf]  ;;  %1834 = vmatpush.bf16.msrb.mxu3 %v5727_v35 }
 0x651   : > { %v5751_v7 = vor.u32 %v6547_v34, %v5750_v15 }
 0x653   : > { %1871 = vmatpush.bf16.msrb.mxu1 %v5751_v7  ;;  %1853 = vmatpush.bf16.msrb.mxu0 %v5731_v17 }
 0x654   : > { %1835 = vmatpush.bf16.msrb.mxu3 %v5711_v27 }
 0x657   : > { %1872 = vmatpush.bf16.msrb.mxu1 %v5735_v6  ;;  %1854 = vmatpush.bf16.msrb.mxu0 %v5715_v44 }
 0x658   : > { %1836 = vmatpush.bf16.msrb.mxu3 %v5695_v57 }
 0x65b   : > { %1873 = vmatpush.bf16.msrb.mxu1 %v5719_v48  ;;  %1855 = vmatpush.bf16.msrb.mxu0 %v5699_v60 }
 0x65f   : > { %1874 = vmatpush.bf16.msrb.mxu1 %v5703_v5  ;;  %v1659_v5 = vld [vmem:[%s10349_s7] sm:$0xf] }
 0x660   : > { %v8029_v38 = vperm.slane %v1659_v5, 2 }
 0x685   : > { %v1556_v16 = vpop.xlane.xlu2 %1555 }
 0x686   : > { %v1563_v24 = vmul.f32 %v1556_v16, %v7234_v18 }
 0x688   : > { %v1567_v46 = vadd.f32 1e-05, %v1563_v24 }
 0x68a   : > { %6812 = vrsqrt.f32 %v1567_v46  ;;  %vm1577_vm6 = vweird.f32 %v1567_v46 }
 0x68d   : > { %v1558_v36 = vpop.xlane.xlu0 %1557 }
 0x68e   : > { %v1564_v40 = vmul.f32 %v1558_v36, %v7234_v18 }
 0x690   : > { %v6813_v10 = vpop.eup %6812  ;;  %v1568_v0 = vadd.f32 1e-05, %v1564_v40 }
 0x691   : > { %v1572_v29 = vmul.f32 %v6813_v10, %v1567_v46  ;;  %vm1578_vm5 = vweird.f32 %v6813_v10 }
 0x692   : > { %6814 = vrsqrt.f32 %v1568_v0  ;;  %vm1579_vm7 = vmor %vm1577_vm6, %vm1578_vm5  ;;  %vm1587_vm9 = vweird.f32 %v1568_v0 }
 0x693   : > { %v1573_v12 = vmul.f32 %v6813_v10, %v1572_v29  ;;  %v8045_v29 = vperm.slane %v1659_v5, 3 }
 0x695   : > { %v1574_v50 = vmul.f32 0.5, %v1573_v12 }
 0x697   : > { %v1575_v56 = vsub.f32 1.5, %v1574_v50 }
 0x698   : > { %v6815_v15 = vpop.eup %6814 }
 0x699   : > { %v1576_v34 = vmul.f32 %v6813_v10, %v1575_v56  ;;  %v1582_v1 = vmul.f32 %v6815_v15, %v1568_v0  ;;  %vm1588_vm8 = vweird.f32 %v6815_v15 }
 0x69a   : > { %vm1589_vm10 = vmor %vm1587_vm9, %vm1588_vm8 }
 0x69b   : > { %v1583_v7 = vmul.f32 %v6815_v15, %v1582_v1  ;;  %v1580_v20 = vsel %vm1579_vm7, %v6813_v10, %v1576_v34  ;;  %v8040_v10 = vperm.slane %v1659_v5, 0 }
 0x69c   : > { %v1611_v22 = vmul.f32 %v1580_v20, %v7800_v52 }
 0x69d   : > { %v1584_v21 = vmul.f32 0.5, %v1583_v7 }
 0x69e   : > { %v1616_v26 = vmul.f32 %v1615_v14, %v1611_v22 }
 0x69f   : > { %v1585_v59 = vsub.f32 1.5, %v1584_v21 }
 0x6a0   : > { %v1621_v6 = vadd.f32 %v1620_v28, %v1616_v26 }
 0x6a1   : > { %v1586_v4 = vmul.f32 %v6815_v15, %v1585_v59 }
 0x6a3   : > { %v1590_v35 = vsel %vm1589_vm10, %v6815_v15, %v1586_v4 }
 0x6a4   : > { %v1612_v25 = vmul.f32 %v1590_v35, %v7806_v63 }
 0x6a6   : > { %v1617_v17 = vmul.f32 %v1615_v14, %v1612_v25 }
 0x6a8   : > { %v1622_v61 = vadd.f32 %v1620_v28, %v1617_v17 }
 0x6aa   : > { %v1625_v41 = vpack.c.bf16 %v1622_v61, %v1621_v6 }
 0x6ac   : > { %1837 = vmatmul.bf16.vlgmr.msrb.gmra.mxu3 %v1625_v41  ;;  %1856 = vmatmul.bf16.vlgmr.msrb.gmra.mxu0 %v1625_v41 }
 0x6ad   : > { %1875 = vmatmul.bf16.vlgmr.msrb.gmra.mxu1 %v1625_v41  ;;  %1894 = vmatmul.bf16.vlgmr.msrb.gmra.mxu2 %v1625_v41 }
 0x6bb   : > { %v1560_v52 = vpop.xlane.xlu1 %1559 }
 0x6bc   : > { %v1565_v2 = vmul.f32 %v1560_v52, %v7234_v18 }
 0x6be   : > { %v1569_v58 = vadd.f32 1e-05, %v1565_v2 }
 0x6c0   : > { %6816 = vrsqrt.f32 %v1569_v58  ;;  %vm1597_vm12 = vweird.f32 %v1569_v58 }
 0x6c3   : > { %v1562_v33 = vpop.xlane.xlu2 %1561 }
 0x6c4   : > { %v1566_v39 = vmul.f32 %v1562_v33, %v7234_v18 }
 0x6c6   : > { %v6817_v63 = vpop.eup %6816  ;;  %v1570_v16 = vadd.f32 1e-05, %v1566_v39 }
 0x6c7   : > { %v1592_v27 = vmul.f32 %v6817_v63, %v1569_v58  ;;  %vm1598_vm11 = vweird.f32 %v6817_v63 }
 0x6c8   : > { %6818 = vrsqrt.f32 %v1570_v16  ;;  %vm1599_vm14 = vmor %vm1597_vm12, %vm1598_vm11  ;;  %vm1607_vm0 = vweird.f32 %v1570_v16 }
 0x6c9   : > { %v1593_v47 = vmul.f32 %v6817_v63, %v1592_v27 }
 0x6cb   : > { %v1594_v37 = vmul.f32 0.5, %v1593_v47 }
 0x6cd   : > { %v1595_v19 = vsub.f32 1.5, %v1594_v37 }
 0x6ce   : > { %v6819_v43 = vpop.eup %6818 }
 0x6cf   : > { %v1596_v24 = vmul.f32 %v6817_v63, %v1595_v19  ;;  %v1602_v44 = vmul.f32 %v6819_v43, %v1570_v16  ;;  %vm1608_vm15 = vweird.f32 %v6819_v43 }
 0x6d0   : > { %vm1609_vm1 = vmor %vm1607_vm0, %vm1608_vm15 }
 0x6d1   : > { %v1603_v48 = vmul.f32 %v6819_v43, %v1602_v44  ;;  %v1600_v42 = vsel %vm1599_vm14, %v6817_v63, %v1596_v24 }
 0x6d2   : > { %v1613_v32 = vmul.f32 %v1600_v42, %v7812_v9  ;;  %v8027_v9 = vperm.slane %v1659_v5, 1 }
 0x6d3   : > { %v1604_v45 = vmul.f32 0.5, %v1603_v48 }
 0x6d4   : > { %v1618_v46 = vmul.f32 %v1615_v14, %v1613_v32 }
 0x6d5   : > { %v1605_v23 = vsub.f32 1.5, %v1604_v45 }
 0x6d6   : > { %v1623_v8 = vadd.f32 %v1620_v28, %v1618_v46 }
 0x6d7   : > { %v1606_v51 = vmul.f32 %v6819_v43, %v1605_v23 }
 0x6d9   : > { %v1610_v53 = vsel %vm1609_vm1, %v6819_v43, %v1606_v51 }
 0x6da   : > { %v1614_v54 = vmul.f32 %v1610_v53, %v7818_v13 }
 0x6dc   : > { %v1619_v57 = vmul.f32 %v1615_v14, %v1614_v54 }
 0x6de   : > { %v1624_v49 = vadd.f32 %v1620_v28, %v1619_v57 }
 0x6e0   : > { %v1626_v60 = vpack.c.bf16 %v1624_v49, %v1623_v8 }
 0x6e2   : > { %1842 = vmatmul.bf16.gmra.mxu3 %v1626_v60  ;;  %1861 = vmatmul.bf16.gmra.mxu0 %v1626_v60 }
 0x6e3   : > { %1880 = vmatmul.bf16.gmra.mxu1 %v1626_v60  ;;  %1899 = vmatmul.bf16.gmra.mxu2 %v1626_v60 }
 0x729   : > { %v1857_v11 = vpop.f32.mrf.mxu0 }
 0x72a   : > { %v8032_v13 = vadd.f32 %v1857_v11, %v8027_v9  ;;  %v1876_v3 = vpop.f32.mrf.mxu1 }
 0x72b   : > { %v8035_v36 = vadd.f32 %v1876_v3, %v8029_v38 }
 0x72c   : > { %v8038_v40 = vmul.f32 0.70710677, %v8032_v13 }
 0x72d   : > { %v8043_v0 = vmul.f32 0.70710677, %v8035_v36 }
 0x72e   : > { %v1938_v12 = vand.u32 2147483647, %v8038_v40 }
 0x72f   : > { %v1939_v50 = vand.u32 2147483647, %v8043_v0  ;;  %v1838_v56 = vpop.f32.mrf.mxu3 }
 0x730   : > { %v1954_v15 = vmul.f32 0.3275911, %v1938_v12  ;;  %v8050_v34 = vadd.f32 %v1838_v56, %v8040_v10  ;;  %v1895_v1 = vpop.f32.mrf.mxu2  ;;  %v2370_v4 = vsub.f32 0.0, %v1938_v12 }
 0x731   : > { %v1955_v7 = vmul.f32 0.3275911, %v1939_v50  ;;  %v8053_v20 = vadd.f32 %v1895_v1, %v8045_v29  ;;  %v2371_v17 = vsub.f32 0.0, %v1939_v50  ;;  %v1859_v58 = vpop.f32.mrf.mxu0 }
 0x732   : > { %v1970_v21 = vadd.f32 1.0, %v1954_v15  ;;  %v8056_v22 = vmul.f32 0.70710677, %v8050_v34  ;;  %v8069_v52 = vmul.f32 %v2370_v4, %v1938_v12  ;;  %v1878_v27 = vpop.f32.mrf.mxu1  ;;  %v8080_v44 = vadd.f32 %v1859_v58, %v8027_v9 }
 0x733   : > { %v1971_v59 = vadd.f32 1.0, %v1955_v7  ;;  %v8059_v14 = vmul.f32 0.70710677, %v8053_v20  ;;  %v8076_v24 = vmul.f32 %v2371_v17, %v1939_v50  ;;  %v8083_v42 = vadd.f32 %v1878_v27, %v8029_v38 }
 0x734   : > { %6820 = vrcp.f32 %v1970_v21  ;;  %v8062_v35 = vand.u32 2147483647, %v8056_v22  ;;  %v2009_v33 = vand.u32 2147483647, %v1970_v21  ;;  %v2011_v39 = vand.u32 2147483648, %v1970_v21 }
 0x735   : > { %6822 = vrcp.f32 %v1971_v59  ;;  %v8065_v25 = vand.u32 2147483647, %v8059_v14  ;;  %v2024_v37 = vand.u32 2147483647, %v1971_v59  ;;  %v2026_v19 = vand.u32 2147483648, %v1971_v59 }
 0x736   : > { %v1953_v26 = vmul.f32 0.3275911, %v8062_v35  ;;  %vm2005_vm5 = vweird.f32 %v1970_v21  ;;  %vm8085_vm7 = vcmp.eq.f32.partialorder %v2009_v33, 8.507059e+37  ;;  %vm2020_vm8 = vweird.f32 %v1971_v59 }
 0x737   : > { %v1956_v6 = vmul.f32 0.3275911, %v8065_v25  ;;  %v2012_v51 = vor.u32 1.1754944e-38, %v2011_v39  ;;  %vm8089_vm10 = vcmp.eq.f32.partialorder %v2024_v37, 8.507059e+37  ;;  %v2027_v54 = vor.u32 1.1754944e-38, %v2026_v19 }
 0x738   : > { %v8071_v2 = vadd.f32 1.0, %v1953_v26  ;;  %v2369_v8 = vsub.f32 0.0, %v8062_v35  ;;  %v8096_v49 = vmul.f32 0.70710677, %v8080_v44  ;;  %v2372_v11 = vsub.f32 0.0, %v8065_v25 }
 0x739   : > { %v8073_v16 = vadd.f32 1.0, %v1956_v6  ;;  %v8101_v3 = vmul.f32 0.70710677, %v8083_v42  ;;  %v2405_v17 = vmul.f32 1.442695, %v8076_v24 }
 0x73a   : > { %v6821_v28 = vpop.eup %6820  ;;  %6824 = vrcp.f32 %v8071_v2  ;;  %v1994_v57 = vand.u32 2147483647, %v8071_v2  ;;  %vm1990_vm14 = vweird.f32 %v8071_v2  ;;  %v1996_v1 = vand.u32 2147483648, %v8071_v2 }
 0x73b   : > { %v6823_v61 = vpop.eup %6822  ;;  %v2001_v41 = vmul.f32 %v6821_v28, %v1970_v21  ;;  %6826 = vrcp.f32 %v8073_v16  ;;  %vm2006_vm6 = vweird.f32 %v6821_v28  ;;  %v2039_v4 = vand.u32 2147483647, %v8073_v16 }
 0x73c   : > { %v2016_v63 = vmul.f32 %v6823_v61, %v1971_v59  ;;  %vm2021_vm9 = vweird.f32 %v6823_v61  ;;  %vm2007_vm11 = vmor %vm2005_vm5, %vm2006_vm6  ;;  %vm8117_vm15 = vcmp.eq.f32.partialorder %v1994_v57, 8.507059e+37  ;;  %v8122_v6 = vand.u32 2147483647, %v8096_v49 }
 0x73d   : > { %v2002_v47 = vsub.f32 1.0, %v2001_v41  ;;  %vm2022_vm12 = vmor %vm2020_vm8, %vm2021_vm9  ;;  %v2041_v58 = vand.u32 2147483648, %v8073_v16  ;;  %v8126_v33 = vand.u32 2147483647, %v8101_v3  ;;  %vm2035_vm5 = vweird.f32 %v8073_v16 }
 0x73e   : > { %v2017_v43 = vsub.f32 1.0, %v2016_v63  ;;  %v1958_v27 = vmul.f32 0.3275911, %v8122_v6  ;;  %vm2040_vm8 = vcmp.eq.f32.partialorder %v2039_v4, 8.507059e+37  ;;  %v2388_v4 = vmul.f32 %v2372_v11, %v8065_v25 }
 0x73f   : > { %v2003_v48 = vmul.f32 %v6821_v28, %v2002_v47  ;;  %v1959_v19 = vmul.f32 0.3275911, %v8126_v33  ;;  %v2042_v57 = vor.u32 1.1754944e-38, %v2041_v58 }
 0x740   : > { %v2018_v23 = vmul.f32 %v6823_v61, %v2017_v43  ;;  %v6825_v60 = vpop.eup %6824  ;;  %v8133_v45 = vadd.f32 1.0, %v1958_v27  ;;  %v8165_v11 = vmul.f32 1.442695, %v2388_v4 }
 0x741   : > { %v2004_v32 = vadd.f32 %v6821_v28, %v2003_v48  ;;  %v6827_v12 = vpop.eup %6826  ;;  %v1986_v15 = vmul.f32 %v6825_v60, %v8071_v2  ;;  %vm1991_vm0 = vweird.f32 %v6825_v60  ;;  %v8137_v53 = vadd.f32 1.0, %v1959_v19 }
 0x742   : > { %v2019_v46 = vadd.f32 %v6823_v61, %v2018_v23  ;;  %v2031_v59 = vmul.f32 %v6827_v12, %v8073_v16  ;;  %vm2036_vm1 = vweird.f32 %v6827_v12  ;;  %vm1992_vm6 = vmor %vm1990_vm14, %vm1991_vm0  ;;  %6828 = vrcp.f32 %v8133_v45 }
 0x743   : > { %v2008_v5 = vsel %vm2007_vm11, %v6821_v28, %v2004_v32  ;;  %v1987_v28 = vsub.f32 1.0, %v1986_v15  ;;  %v1997_v32 = vor.u32 1.1754944e-38, %v1996_v1  ;;  %6830 = vrcp.f32 %v8137_v53 }
 0x744   : > { %v8105_v50 = vsel %vm8085_vm7, %v2012_v51, %v2008_v5  ;;  %v2023_v56 = vsel %vm2022_vm12, %v6823_v61, %v2019_v46  ;;  %v2032_v41 = vsub.f32 1.0, %v2031_v59  ;;  %vm2037_vm7 = vmor %vm2035_vm5, %vm2036_vm1  ;;  %vm2466_vm5 = vcmp.ge.f32.partialorder %v8038_v40, 0.0  ;;  %v6568_v40 = vld [vmem:[%s10350_s8 + $0x20] sm:$0xff] }
 0x745   : > { %v2226_v7 = vmul.f32 1.0614054, %v8105_v50  ;;  %v8112_v21 = vsel %vm8089_vm10, %v2027_v54, %v2023_v56  ;;  %v1988_v63 = vmul.f32 %v6825_v60, %v1987_v28  ;;  %v2385_v28 = vmul.f32 %v2369_v8, %v8062_v35 }
 0x746   : > { %v2227_v26 = vmul.f32 1.0614054, %v8112_v21  ;;  %v2033_v37 = vmul.f32 %v6827_v12, %v2032_v41  ;;  %v2071_v35 = vand.u32 2147483648, %v8133_v45  ;;  %vm2065_vm10 = vweird.f32 %v8133_v45 }
 0x747   : > { %v2242_v61 = vadd.f32 -1.4531521, %v2226_v7  ;;  %v1989_v48 = vadd.f32 %v6825_v60, %v1988_v63 }
 0x748   : > { %v2243_v39 = vadd.f32 -1.4531521, %v2227_v26  ;;  %v2034_v51 = vadd.f32 %v6827_v12, %v2033_v37  ;;  %v6829_v41 = vpop.eup %6828  ;;  %v8159_v37 = vmul.f32 1.442695, %v2385_v28 }
 0x749   : > { %v2258_v47 = vmul.f32 %v2242_v61, %v8105_v50  ;;  %v1993_v46 = vsel %vm1992_vm6, %v6825_v60, %v1989_v48  ;;  %v2403_v60 = vmul.f32 1.442695, %v8069_v52  ;;  %v1840_v61 = vpop.f32.mrf.mxu3  ;;  %v2061_v27 = vmul.f32 %v6829_v41, %v8133_v45  ;;  %v6831_v25 = vpop.eup %6830 }
 0x74a   : > { %v2259_v43 = vmul.f32 %v2243_v39, %v8112_v21  ;;  %v8143_v16 = vsel %vm8117_vm15, %v1997_v32, %v1993_v46  ;;  %v2038_v56 = vsel %vm2037_vm7, %v6827_v12, %v2034_v51  ;;  %v8163_v24 = vadd.f32 %v1840_v61, %v8040_v10 }
 0x74b   : > { %v2274_v23 = vadd.f32 1.4214138, %v2258_v47  ;;  %v2225_v15 = vmul.f32 1.0614054, %v8143_v16  ;;  %v8147_v1 = vsel %vm2040_vm8, %v2042_v57, %v2038_v56  ;;  %6832 = vpow2.f32 %v2403_v60 }
 0x74c   : > { %v2275_v54 = vadd.f32 1.4214138, %v2259_v43  ;;  %v2228_v59 = vmul.f32 1.0614054, %v8147_v1  ;;  %6834 = vpow2.f32 %v2405_v17  ;;  %v2062_v19 = vsub.f32 1.0, %v2061_v27 }
 0x74d   : > { %v2290_v5 = vmul.f32 %v2274_v23, %v8105_v50  ;;  %v2241_v26 = vadd.f32 -1.4531521, %v2225_v15  ;;  %v2069_v23 = vand.u32 2147483647, %v8133_v45  ;;  %v2076_v32 = vmul.f32 %v6831_v25, %v8137_v53  ;;  %v6579_v45 = vld [vmem:[%s10350_s8 + $0x78] sm:$0xff] }
 0x74e   : > { %v2291_v2 = vmul.f32 %v2275_v54, %v8112_v21  ;;  %v2244_v12 = vadd.f32 -1.4531521, %v2228_v59  ;;  %v2063_v46 = vmul.f32 %v6829_v41, %v2062_v19  ;;  %vm2066_vm9 = vweird.f32 %v6829_v41  ;;  %2829 = vmatpush.bf16.msra.mxu0 %v6579_v45 }
 0x74f   : > { %v2306_v7 = vadd.f32 -0.28449672, %v2290_v5  ;;  %v2257_v39 = vmul.f32 %v2241_v26, %v8143_v16  ;;  %v2072_v57 = vor.u32 1.1754944e-38, %v2071_v35  ;;  %v2077_v5 = vsub.f32 1.0, %v2076_v32  ;;  %vm2067_vm11 = vmor %vm2065_vm10, %vm2066_vm9 }
 0x750   : > { %v2307_v58 = vadd.f32 -0.28449672, %v2291_v2  ;;  %v2260_v52 = vmul.f32 %v2244_v12, %v8147_v1  ;;  %v8174_v56 = vmul.f32 0.70710677, %v8163_v24  ;;  %v2084_v60 = vand.u32 2147483647, %v8137_v53 }
 0x751   : > { %v2322_v63 = vmul.f32 %v2306_v7, %v8105_v50  ;;  %v2273_v47 = vadd.f32 1.4214138, %v2257_v39  ;;  %v6833_v2 = vpop.eup %6832  ;;  %v2064_v7 = vadd.f32 %v6829_v41, %v2063_v46  ;;  %v2086_v59 = vand.u32 2147483648, %v8137_v53  ;;  %v6587_v12 = vld [vmem:[%s10350_s8 + $0xb8] sm:$0xff] }
 0x752   : > { %v2276_v8 = vadd.f32 1.4214138, %v2260_v52  ;;  %v2323_v43 = vmul.f32 %v2307_v58, %v8112_v21  ;;  %v2078_v28 = vmul.f32 %v6831_v25, %v2077_v5  ;;  %vm2081_vm12 = vweird.f32 %v6831_v25  ;;  %v6835_v4 = vpop.eup %6834  ;;  %2848 = vmatpush.bf16.msra.mxu1 %v6587_v12  ;;  %v6595_v5 = vld [vmem:[%s10350_s8 + $0xf8] sm:$0xff] }
 0x753   : > { %v2289_v48 = vmul.f32 %v2273_v47, %v8143_v16  ;;  %v2338_v51 = vadd.f32 0.2548296, %v2322_v63  ;;  %v8179_v17 = vand.u32 2147483647, %v8174_v56  ;;  %v2068_v39 = vsel %vm2067_vm11, %v6829_v41, %v2064_v7  ;;  %2867 = vmatpush.bf16.msra.mxu2 %v6595_v5 }
 0x754   : > { %v2292_v54 = vmul.f32 %v2276_v8, %v8147_v1  ;;  %v2339_v26 = vadd.f32 0.2548296, %v2323_v43  ;;  %vm2070_vm14 = vcmp.eq.f32.partialorder %v2069_v23, 8.507059e+37  ;;  %v2374_v52 = vsub.f32 0.0, %v8122_v6 }
 0x755   : > { %v2305_v15 = vadd.f32 -0.28449672, %v2289_v48  ;;  %v2354_v61 = vmul.f32 %v2338_v51, %v8105_v50  ;;  %v8188_v63 = vsel %vm2070_vm14, %v2072_v57, %v2068_v39  ;;  %v2079_v27 = vadd.f32 %v6831_v25, %v2078_v28  ;;  %v6586_v48 = vld [vmem:[%s10350_s8 + $0xb0] sm:$0xff]  ;;  %v6571_v57 = vld [vmem:[%s10350_s8 + $0x38] sm:$0xff]  ;;  %v6577_v28 = vld [vmem:[%s10350_s8 + $0x68] sm:$0xff] }
 0x756   : > { %v2308_v58 = vadd.f32 -0.28449672, %v2292_v54  ;;  %vm2080_vm15 = vweird.f32 %v8137_v53  ;;  %v2230_v35 = vmul.f32 1.0614054, %v8188_v63  ;;  %v2087_v8 = vor.u32 1.1754944e-38, %v2086_v59  ;;  %v6578_v53 = vld [vmem:[%s10350_s8 + $0x70] sm:$0xff]  ;;  %2849 = vmatpush.bf16.msra.mxu1 %v6586_v48  ;;  %2810 = vmatpush.bf16.msra.mxu3 %v6571_v57 }
 0x757   : > { %v2321_v47 = vmul.f32 %v2305_v15, %v8143_v16  ;;  %vm2082_vm0 = vmor %vm2080_vm15, %vm2081_vm12  ;;  %v1957_v50 = vmul.f32 0.3275911, %v8179_v17  ;;  %v2355_v41 = vmul.f32 %v2339_v26, %v8112_v21  ;;  %vm2085_vm1 = vcmp.eq.f32.partialorder %v2084_v60, 8.507059e+37  ;;  %v1897_v21 = vpop.f32.mrf.mxu2  ;;  %2830 = vmatpush.bf16.msra.mxu0 %v6578_v53  ;;  %v6584_v53 = vld [vmem:[%s10350_s8 + $0xa0] sm:$0xff] }
 0x758   : > { %v2083_v19 = vsel %vm2082_vm0, %v6831_v25, %v2079_v27  ;;  %v2375_v43 = vsub.f32 0.0, %v8126_v33  ;;  %v8204_v23 = vmul.f32 %v6833_v2, %v2354_v61  ;;  %v2324_v32 = vmul.f32 %v2308_v58, %v8147_v1 }
 0x759   : > { %v2246_v51 = vadd.f32 -1.4531521, %v2230_v35  ;;  %v8207_v54 = vsel %vm2085_vm1, %v2087_v8, %v2083_v19  ;;  %v8210_v46 = vadd.f32 1.0, %v1957_v50  ;;  %v2337_v2 = vadd.f32 0.2548296, %v2321_v47 }
 0x75a   : > { %v2231_v25 = vmul.f32 1.0614054, %v8207_v54  ;;  %6836 = vpow2.f32 %v8159_v37  ;;  %v2390_v7 = vmul.f32 %v2374_v52, %v8122_v6  ;;  %v2391_v59 = vmul.f32 %v2375_v43, %v8126_v33  ;;  %v6585_v37 = vld [vmem:[%s10350_s8 + $0xa8] sm:$0xff]  ;;  %v6570_v52 = vld [vmem:[%s10350_s8 + $0x30] sm:$0xff] }
 0x75b   : > { %v2262_v15 = vmul.f32 %v2246_v51, %v8188_v63  ;;  %6838 = vrcp.f32 %v8210_v46  ;;  %v8224_v26 = vadd.f32 %v1897_v21, %v8045_v29  ;;  %v2450_v6 = vsub.f32 1.0, %v8204_v23  ;;  %2831 = vmatpush.bf16.msra.mxu0 %v6577_v28  ;;  %2850 = vmatpush.bf16.msra.mxu1 %v6585_v37  ;;  %v6569_v21 = vld [vmem:[%s10350_s8 + $0x28] sm:$0xff] }
 0x75c   : > { %v2247_v60 = vadd.f32 -1.4531521, %v2231_v25  ;;  %v8233_v45 = vmul.f32 %v6835_v4, %v2355_v41  ;;  %v2340_v33 = vadd.f32 0.2548296, %v2324_v32  ;;  %v8236_v61 = vmul.f32 0.5, %v8032_v13  ;;  %v6594_v4 = vld [vmem:[%s10350_s8 + $0xf0] sm:$0xff]  ;;  %2811 = vmatpush.bf16.msra.mxu3 %v6570_v52 }
 0x75d   : > { %v2278_v12 = vadd.f32 1.4214138, %v2262_v15  ;;  %v8239_v58 = vmul.f32 0.5, %v8035_v36  ;;  %6840 = vpow2.f32 %v8165_v11  ;;  %v2353_v13 = vmul.f32 %v2337_v2, %v8143_v16  ;;  %2868 = vmatpush.bf16.msra.mxu2 %v6594_v4  ;;  %v6576_v16 = vld [vmem:[%s10350_s8 + $0x60] sm:$0xff]  ;;  %v6593_v25 = vld [vmem:[%s10350_s8 + $0xe8] sm:$0xff] }
 0x75e   : > { %v2263_v39 = vmul.f32 %v2247_v60, %v8207_v54  ;;  %v2411_v27 = vmul.f32 1.442695, %v2390_v7  ;;  %v2413_v47 = vmul.f32 1.442695, %v2391_v59  ;;  %v8253_v35 = vmul.f32 0.70710677, %v8224_v26 }
 0x75f   : > { %v2294_v36 = vmul.f32 %v2278_v12, %v8188_v63  ;;  %v2482_v50 = vsub.f32 0.0, %v2450_v6  ;;  %v2451_v41 = vsub.f32 1.0, %v8233_v45  ;;  %vm2467_vm6 = vcmp.ge.f32.partialorder %v8043_v0, 0.0  ;;  %2832 = vmatpush.bf16.msra.mxu0 %v6576_v16  ;;  %2851 = vmatpush.bf16.msra.mxu1 %v6584_v53  ;;  %v6583_v45 = vld [vmem:[%s10350_s8 + $0x98] sm:$0xff] }
 0x760   : > { %v2279_v11 = vadd.f32 1.4214138, %v2263_v39  ;;  %v6837_v8 = vpop.eup %6836  ;;  %v2356_v19 = vmul.f32 %v2340_v33, %v8147_v1  ;;  %v8267_v23 = vmul.f32 0.5, %v8050_v34  ;;  %v8270_v32 = vmul.f32 0.5, %v8053_v20  ;;  %2812 = vmatpush.bf16.msra.mxu3 %v6569_v21 }
 0x761   : > { %v2310_v43 = vadd.f32 -0.28449672, %v2294_v36  ;;  %v8264_v48 = vpop.eup %6838  ;;  %v8274_v1 = vand.u32 2147483647, %v8253_v35  ;;  %v8282_v57 = vmul.f32 %v6837_v8, %v2353_v13  ;;  %v8285_v34 = vmul.f32 0.5, %v8080_v44  ;;  %2869 = vmatpush.bf16.msra.mxu2 %v6593_v25  ;;  %v6575_v44 = vld [vmem:[%s10350_s8 + $0x58] sm:$0xff]  ;;  %v1881_v8 = vpop.f32.mrf.mxu1 }
 0x762   : > { %v2295_v51 = vmul.f32 %v2279_v11, %v8207_v54  ;;  %6842 = vpow2.f32 %v2411_v27  ;;  %v2046_v20 = vmul.f32 %v8264_v48, %v8210_v46  ;;  %v2498_v60 = vsel %vm2466_vm5, %v2450_v6, %v2482_v50  ;;  %v6592_v6 = vld [vmem:[%s10350_s8 + $0xe0] sm:$0xff]  ;;  %v6574_v50 = vld [vmem:[%s10350_s8 + $0x50] sm:$0xff] }
 0x763   : > { %v6841_v5 = vpop.eup %6840  ;;  %v2326_v2 = vmul.f32 %v2310_v43, %v8188_v63  ;;  %6844 = vpow2.f32 %v2413_v47  ;;  %v1960_v7 = vmul.f32 0.3275911, %v8274_v1  ;;  %v2483_v59 = vsub.f32 0.0, %v2451_v41  ;;  %2833 = vmatpush.bf16.msra.mxu0 %v6575_v44  ;;  %2852 = vmatpush.bf16.msra.mxu1 %v6583_v45  ;;  %v1862_v47 = vpop.f32.mrf.mxu0 }
 0x764   : > { %v2311_v15 = vadd.f32 -0.28449672, %v2295_v51  ;;  %v8296_v28 = vmul.f32 %v6841_v5, %v2356_v19  ;;  %v2047_v37 = vsub.f32 1.0, %v2046_v20  ;;  %vm2465_vm7 = vcmp.ge.f32.partialorder %v8056_v22, 0.0  ;;  %2813 = vmatpush.bf16.msra.mxu3 %v6568_v40  ;;  %v6582_v19 = vld [vmem:[%s10350_s8 + $0x90] sm:$0xff]  ;;  %v6572_v22 = vld [vmem:[%s10350_s8 + $0x40] sm:$0xff] }
 0x765   : > { %v2056_v12 = vand.u32 2147483648, %v8210_v46  ;;  %v2373_v39 = vsub.f32 0.0, %v8179_v17  ;;  %v8305_v52 = vadd.f32 1.0, %v1960_v7  ;;  %v2449_v4 = vsub.f32 1.0, %v8282_v57  ;;  %2870 = vmatpush.bf16.msra.mxu2 %v6592_v6  ;;  %v6590_v40 = vld [vmem:[%s10350_s8 + $0xd0] sm:$0xff] }
 0x766   : > { %v2327_v33 = vmul.f32 %v2311_v15, %v8207_v54  ;;  %v2048_v13 = vmul.f32 %v8264_v48, %v2047_v37  ;;  %vm2051_vm8 = vweird.f32 %v8264_v48  ;;  %v2054_v36 = vand.u32 2147483647, %v8210_v46 }
 0x767   : > { %vm2468_vm9 = vcmp.ge.f32.partialorder %v8059_v14, 0.0  ;;  %v2342_v27 = vadd.f32 0.2548296, %v2326_v2  ;;  %6846 = vrcp.f32 %v8305_v52  ;;  %v2514_v16 = vadd.f32 1.0, %v2498_v60  ;;  %v6567_v2 = vld [vmem:[%s10350_s8 + $0x18] sm:$0xff]  ;;  %2834 = vmatpush.bf16.msra.mxu0 %v6574_v50  ;;  %2853 = vmatpush.bf16.msra.mxu1 %v6582_v19  ;;  %v6565_v14 = vld [vmem:[%s10350_s8 + $0x8] sm:$0xff] }
 0x768   : > { %v2343_v11 = vadd.f32 0.2548296, %v2327_v33  ;;  %v6843_v43 = vpop.eup %6842  ;;  %v2452_v53 = vsub.f32 1.0, %v8296_v28  ;;  %v2049_v51 = vadd.f32 %v8264_v48, %v2048_v13  ;;  %vm2050_vm10 = vweird.f32 %v8210_v46  ;;  %v6591_v46 = vld [vmem:[%s10350_s8 + $0xd8] sm:$0xff]  ;;  %2814 = vmatpush.bf16.msra.mxu3 %v6567_v2 }
 0x769   : > { %v6845_v21 = vpop.eup %6844  ;;  %v2499_v25 = vsel %vm2467_vm6, %v2451_v41, %v2483_v59  ;;  %vm2052_vm11 = vmor %vm2050_vm10, %vm2051_vm8  ;;  %v2057_v57 = vor.u32 1.1754944e-38, %v2056_v12  ;;  %v8333_v20 = vadd.f32 %v1862_v47, %v8027_v9  ;;  %v8336_v5 = vadd.f32 %v1881_v8, %v8029_v38  ;;  %2871 = vmatpush.bf16.msra.mxu2 %v6591_v46 }
 0x76a   : > { %v2481_v0 = vsub.f32 0.0, %v2449_v4  ;;  %v2053_v41 = vsel %vm2052_vm11, %v8264_v48, %v2049_v51  ;;  %vm2055_vm12 = vcmp.eq.f32.partialorder %v2054_v36, 8.507059e+37  ;;  %v2389_v15 = vmul.f32 %v2373_v39, %v8179_v17  ;;  %v6573_v48 = vld [vmem:[%s10350_s8 + $0x48] sm:$0xff] }
 0x76b   : > { %v2358_v7 = vmul.f32 %v2342_v27, %v8188_v63  ;;  %v2359_v44 = vmul.f32 %v2343_v11, %v8207_v54  ;;  %v8348_v60 = vsel %vm2055_vm12, %v2057_v57, %v2053_v41  ;;  %v8351_v59 = vmul.f32 0.70710677, %v8333_v20  ;;  %v6581_v17 = vld [vmem:[%s10350_s8 + $0x88] sm:$0xff]  ;;  %2835 = vmatpush.bf16.msra.mxu0 %v6573_v48 }
 0x76c   : > { %v2484_v28 = vsub.f32 0.0, %v2452_v53  ;;  %v8360_v63 = vmul.f32 0.5, %v8083_v42  ;;  %v2229_v54 = vmul.f32 1.0614054, %v8348_v60  ;;  %v8364_v37 = vmul.f32 0.70710677, %v8336_v5  ;;  %2854 = vmatpush.bf16.msra.mxu1 %v6581_v17 }
 0x76d   : > { %v8366_v45 = vpop.eup %6846  ;;  %v8368_v33 = vadd.f32 1.0, %v2499_v25  ;;  %v8371_v12 = vmul.f32 0.5, %v8163_v24  ;;  %v8374_v39 = vand.u32 2147483647, %v8351_v59  ;;  %v6566_v42 = vld [vmem:[%s10350_s8 + $0x10] sm:$0xff]  ;;  %v8383_v6 = vmul.f32 %v2514_v16, %v8236_v61  ;;  %2872 = vmatpush.bf16.msra.mxu2 %v6590_v40  ;;  %v1900_v40 = vpop.f32.mrf.mxu2 }
 0x76e   : > { %v2497_v13 = vsel %vm2465_vm7, %v2449_v4, %v2481_v0  ;;  %v2245_v36 = vadd.f32 -1.4531521, %v2229_v54  ;;  %v2091_v24 = vmul.f32 %v8366_v45, %v8305_v52  ;;  %v8389_v27 = vmul.f32 %v6843_v43, %v2358_v7  ;;  %2815 = vmatpush.bf16.msra.mxu3 %v6566_v42  ;;  %v6580_v43 = vld [vmem:[%s10350_s8 + $0x80] sm:$0xff]  ;;  %v1843_v0 = vpop.f32.mrf.mxu3 }
 0x76f   : > { %v8391_v11 = vmul.f32 %v6845_v21, %v2359_v44  ;;  %v2409_v47 = vmul.f32 1.442695, %v2389_v15  ;;  %v1962_v8 = vmul.f32 0.3275911, %v8374_v39  ;;  %v2500_v61 = vsel %vm2468_vm9, %v2452_v53, %v2484_v28  ;;  %v6589_v53 = vld [vmem:[%s10350_s8 + $0xc8] sm:$0xff]  ;;  %2836 = vmatpush.bf16.msra.mxu0 %v6572_v22 }
 0x770   : > { %v2261_v4 = vmul.f32 %v2245_v36, %v8348_v60  ;;  %v2092_v50 = vsub.f32 1.0, %v2091_v24  ;;  %v8401_v19 = vand.u32 2147483647, %v8364_v37  ;;  %vm2096_vm14 = vweird.f32 %v8366_v45  ;;  %2855 = vmatpush.bf16.msra.mxu1 %v6580_v43  ;;  %v6588_v36 = vld [vmem:[%s10350_s8 + $0xc0] sm:$0xff] }
 0x771   : > { %v2099_v16 = vand.u32 2147483647, %v8305_v52  ;;  %v2101_v51 = vand.u32 2147483648, %v8305_v52  ;;  %v2376_v21 = vsub.f32 0.0, %v8274_v1  ;;  %vm2470_vm15 = vcmp.ge.f32.partialorder %v8096_v49, 0.0  ;;  %2873 = vmatpush.bf16.msra.mxu2 %v6589_v53 }
 0x772   : > { %vm2471_vm0 = vcmp.ge.f32.partialorder %v8101_v3, 0.0  ;;  %v2277_v25 = vadd.f32 1.4214138, %v2261_v4  ;;  %v2093_v57 = vmul.f32 %v8366_v45, %v2092_v50  ;;  %v8419_v2 = vadd.f32 1.0, %v1962_v8  ;;  %2816 = vmatpush.bf16.msra.mxu3 %v6565_v14 }
 0x773   : > { %v1963_v46 = vmul.f32 0.3275911, %v8401_v19  ;;  %v2513_v41 = vadd.f32 1.0, %v2497_v13  ;;  %v2516_v15 = vadd.f32 1.0, %v2500_v61  ;;  %v2454_v7 = vsub.f32 1.0, %v8389_v27  ;;  %v6564_v13 = vld [vmem:[%s10350_s8] sm:$0xff] }
 0x774   : > { %v2455_v44 = vsub.f32 1.0, %v8391_v11  ;;  %v2293_v48 = vmul.f32 %v2277_v25, %v8348_v60  ;;  %6848 = vpow2.f32 %v2409_v47  ;;  %v2094_v17 = vadd.f32 %v8366_v45, %v2093_v57 }
 0x775   : > { %vm2095_vm1 = vweird.f32 %v8305_v52  ;;  %vm2100_vm6 = vcmp.eq.f32.partialorder %v2099_v16, 8.507059e+37  ;;  %v2102_v28 = vor.u32 1.1754944e-38, %v2101_v51  ;;  %v2392_v54 = vmul.f32 %v2376_v21, %v8274_v1  ;;  %2874 = vmatpush.bf16.msra.mxu2 %v6588_v36 }
 0x776   : > { %vm2097_vm5 = vmor %vm2095_vm1, %vm2096_vm14  ;;  %v8431_v42 = vadd.f32 %v1843_v0, %v8040_v10  ;;  %v2309_v52 = vadd.f32 -0.28449672, %v2293_v48  ;;  %6850 = vrcp.f32 %v8419_v2  ;;  %v8441_v27 = vadd.f32 1.0, %v1963_v46  ;;  %2817 = vmatpush.bf16.msra.mxu3 %v6564_v13 }
 0x777   : > { %v2098_v24 = vsel %vm2097_vm5, %v8366_v45, %v2094_v17  ;;  %v2486_v1 = vsub.f32 0.0, %v2454_v7  ;;  %v2487_v11 = vsub.f32 0.0, %v2455_v44  ;;  %v2378_v8 = vsub.f32 0.0, %v8374_v39 }
 0x778   : > { %v8443_v47 = vsel %vm2100_vm6, %v2102_v28, %v2098_v24  ;;  %v2325_v22 = vmul.f32 %v2309_v52, %v8348_v60  ;;  %v8449_v4 = vmul.f32 0.70710677, %v8431_v42  ;;  %v8452_v45 = vadd.f32 %v1900_v40, %v8045_v29 }
 0x779   : > { %v2232_v61 = vmul.f32 1.0614054, %v8443_v47  ;;  %v8456_v50 = vmul.f32 %v8368_v33, %v8239_v58  ;;  %v8459_v43 = vmul.f32 0.5, %v8224_v26  ;;  %v2415_v16 = vmul.f32 1.442695, %v2392_v54 }
 0x77a   : > { %v2379_v51 = vsub.f32 0.0, %v8401_v19  ;;  %v6849_v21 = vpop.eup %6848  ;;  %v8463_v14 = vmul.f32 %v2513_v41, %v8267_v23  ;;  %v2341_v53 = vadd.f32 0.2548296, %v2325_v22  ;;  %6852 = vrcp.f32 %v8441_v27 }
 0x77b   : > { %v2248_v25 = vadd.f32 -1.4531521, %v2232_v61  ;;  %v8467_v57 = vmul.f32 %v2516_v15, %v8270_v32  ;;  %v2502_v58 = vsel %vm2470_vm15, %v2454_v7, %v2486_v1  ;;  %v2503_v26 = vsel %vm2471_vm0, %v2455_v44, %v2487_v11  ;;  %v1864_v32 = vpop.f32.mrf.mxu0 }
 0x77c   : > { %v1945_v33 = vand.u32 2147483647, %v8449_v4  ;;  %v8474_v46 = vpop.eup %6850  ;;  %v2357_v23 = vmul.f32 %v2341_v53, %v8348_v60  ;;  %v2394_v41 = vmul.f32 %v2378_v8, %v8374_v39  ;;  %v8480_v48 = vmul.f32 0.70710677, %v8452_v45 }
 0x77d   : > { %v2264_v0 = vmul.f32 %v2248_v25, %v8443_v47  ;;  %vm2469_vm7 = vcmp.ge.f32.partialorder %v8174_v56, 0.0  ;;  %6854 = vpow2.f32 %v2415_v16  ;;  %v8484_v49 = vmul.f32 0.5, %v8333_v20  ;;  %v1883_v20 = vpop.f32.mrf.mxu1 }
 0x77e   : > { %v2395_v3 = vmul.f32 %v2379_v51, %v8401_v19  ;;  %v1961_v15 = vmul.f32 0.3275911, %v1945_v33  ;;  %v2518_v7 = vadd.f32 1.0, %v2502_v58  ;;  %v2437_v44 = vmul.f32 %v6849_v21, %v2357_v23 }
 0x77f   : > { %v2280_v60 = vadd.f32 1.4214138, %v2264_v0  ;;  %v8488_v17 = vand.u32 2147483647, %v8480_v48  ;;  %v2519_v39 = vadd.f32 1.0, %v2503_v26  ;;  %v2121_v28 = vmul.f32 %v8474_v46, %v8419_v2 }
 0x780   : > { %v8492_v54 = vadd.f32 1.0, %v1961_v15  ;;  %v8495_v40 = vadd.f32 %v1864_v32, %v8027_v9  ;;  %v8497_v13 = vpop.eup %6852  ;;  %v2453_v19 = vsub.f32 1.0, %v2437_v44  ;;  %v2419_v52 = vmul.f32 1.442695, %v2394_v41 }
 0x781   : > { %v2296_v36 = vmul.f32 %v2280_v60, %v8443_v47  ;;  %v1964_v24 = vmul.f32 0.3275911, %v8488_v17  ;;  %v2131_v1 = vand.u32 2147483648, %v8419_v2  ;;  %v2146_v11 = vand.u32 2147483648, %v8441_v27 }
 0x782   : > { %v2421_v8 = vmul.f32 1.442695, %v2395_v3  ;;  %6856 = vrcp.f32 %v8492_v54  ;;  %v2485_v22 = vsub.f32 0.0, %v2453_v19  ;;  %v8507_v16 = vadd.f32 %v1883_v20, %v8029_v38 }
 0x783   : > { %v2312_v61 = vadd.f32 -0.28449672, %v2296_v36  ;;  %v8504_v9 = vadd.f32 1.0, %v1964_v24  ;;  %v6855_v51 = vpop.eup %6854  ;;  %v2122_v21 = vsub.f32 1.0, %v2121_v28  ;;  %v2136_v53 = vmul.f32 %v8497_v13, %v8441_v27 }
 0x784   : > { %v2377_v25 = vsub.f32 0.0, %v1945_v33  ;;  %v8512_v58 = vmul.f32 0.70710677, %v8495_v40  ;;  %v2534_v26 = vmul.f32 %v2518_v7, %v8285_v34  ;;  %6858 = vpow2.f32 %v2419_v52 }
 0x785   : > { %v2328_v23 = vmul.f32 %v2312_v61, %v8443_v47  ;;  %v8517_v0 = vmul.f32 0.5, %v8336_v5  ;;  %v2535_v38 = vmul.f32 %v2519_v39, %v8360_v63  ;;  %v8520_v41 = vor.u32 1.1754944e-38, %v2131_v1 }
 0x786   : > { %v8522_v32 = vor.u32 1.1754944e-38, %v2146_v11  ;;  %6860 = vrcp.f32 %v8504_v9  ;;  %v2501_v3 = vsel %vm2469_vm7, %v2453_v19, %v2485_v22  ;;  %v1950_v34 = vand.u32 2147483647, %v8512_v58  ;;  %v1845_v19 = vpop.f32.mrf.mxu3 }
 0x787   : > { %v2344_v15 = vadd.f32 0.2548296, %v2328_v23  ;;  %6862 = vpow2.f32 %v2421_v8  ;;  %vm2472_vm8 = vcmp.ge.f32.partialorder %v8253_v35, 0.0  ;;  %v8532_v5 = vmul.f32 %v8474_v46, %v2122_v21 }
 0x788   : > { %v8528_v7 = vpop.eup %6856  ;;  %v2137_v63 = vsub.f32 1.0, %v2136_v53  ;;  %v2393_v44 = vmul.f32 %v2377_v25, %v1945_v33  ;;  %v8535_v60 = vmul.f32 0.70710677, %v8507_v16  ;;  %v2116_v56 = vand.u32 2147483648, %v8492_v54 }
 0x789   : > { %v2360_v39 = vmul.f32 %v2344_v15, %v8443_v47  ;;  %v2380_v28 = vsub.f32 0.0, %v8488_v17  ;;  %v1966_v20 = vmul.f32 0.3275911, %v1950_v34  ;;  %v2517_v36 = vadd.f32 1.0, %v2501_v3  ;;  %v1902_v3 = vpop.f32.mrf.mxu2 }
 0x78a   : > { %v2382_v52 = vsub.f32 0.0, %v1950_v34  ;;  %v1951_v24 = vand.u32 2147483647, %v8535_v60  ;;  %v2546_v1 = vpack.c.bf16 %v2534_v26, %v8383_v6  ;;  %v8542_v11 = vpop.eup %6858  ;;  %v2106_v8 = vmul.f32 %v8528_v7, %v8492_v54 }
 0x78b   : > { %v2440_v33 = vmul.f32 %v6855_v51, %v2360_v39  ;;  %v8546_v22 = vadd.f32 1.0, %v1966_v20  ;;  %v2547_v47 = vpack.c.bf16 %v2535_v38, %v8456_v50  ;;  %v8552_v21 = vmul.f32 %v8497_v13, %v2137_v63 }
 0x78c   : > { %v8549_v61 = vpop.eup %6860  ;;  %v2417_v53 = vmul.f32 1.442695, %v2393_v44  ;;  %v1967_v25 = vmul.f32 0.3275911, %v1951_v24  ;;  %2837 = vmatmul.bf16.vlgmr.msra.gmra.mxu0 %v2546_v1  ;;  %v8555_v6 = vadd.f32 %v1845_v19, %v8040_v10  ;;  %vm2126_vm9 = vweird.f32 %v8474_v46 }
 0x78d   : > { %v8557_v26 = vpop.eup %6862  ;;  %v2456_v51 = vsub.f32 1.0, %v2440_v33  ;;  %v8560_v23 = vor.u32 1.1754944e-38, %v2116_v56  ;;  %v8563_v50 = vmul.f32 %v2380_v28, %v8488_v17  ;;  %v2398_v38 = vmul.f32 %v2382_v52, %v1950_v34  ;;  %2856 = vmatmul.bf16.vlgmr.msra.gmra.mxu1 %v2547_v47 }
 0x78e   : > { %v2533_v15 = vmul.f32 %v2517_v36, %v8371_v12  ;;  %v2161_v63 = vand.u32 2147483648, %v8504_v9  ;;  %6864 = vrcp.f32 %v8546_v22  ;;  %v2383_v10 = vsub.f32 0.0, %v1951_v24 }
 0x78f   : > { %v2488_v44 = vsub.f32 0.0, %v2456_v51  ;;  %vm2125_vm10 = vweird.f32 %v8419_v2  ;;  %v2107_v39 = vsub.f32 1.0, %v2106_v8  ;;  %v2151_v56 = vmul.f32 %v8549_v61, %v8504_v9 }
 0x790   : > { %v8571_v20 = vadd.f32 1.0, %v1967_v25  ;;  %6866 = vpow2.f32 %v2417_v53  ;;  %v8574_v17 = vmul.f32 0.5, %v8495_v40  ;;  %v8577_v12 = vmul.f32 0.70710677, %v8555_v6  ;;  %vm8625_vm15 = vmor %vm2125_vm10, %vm2126_vm9 }
 0x791   : > { %v8580_v34 = vadd.f32 %v1902_v3, %v8045_v29  ;;  %v2504_v28 = vsel %vm2472_vm8, %v2456_v51, %v2488_v44  ;;  %v2427_v19 = vmul.f32 1.442695, %v2398_v38  ;;  %v8585_v36 = vmul.f32 0.5, %v8507_v16 }
 0x792   : > { %6868 = vrcp.f32 %v8571_v20  ;;  %v2520_v52 = vadd.f32 1.0, %v2504_v28  ;;  %v8588_v1 = vor.u32 1.1754944e-38, %v2161_v63  ;;  %v2399_v40 = vmul.f32 %v2383_v10, %v1951_v24 }
 0x793   : > { %v1949_v33 = vand.u32 2147483647, %v8577_v12  ;;  %v8592_v8 = vmul.f32 %v8528_v7, %v2107_v39  ;;  %v2152_v29 = vsub.f32 1.0, %v2151_v56  ;;  %v8595_v47 = vmul.f32 0.70710677, %v8580_v34 }
 0x794   : > { %v2545_v35 = vpack.c.bf16 %v2533_v15, %v8463_v14  ;;  %v6865_v53 = vpop.eup %6864  ;;  %v2536_v16 = vmul.f32 %v2520_v52, %v8459_v43  ;;  %vm2141_vm11 = vweird.f32 %v8497_v13  ;;  %vm2185_vm12 = vweird.f32 %v8546_v22 }
 0x795   : > { %v2191_v24 = vand.u32 2147483648, %v8546_v22  ;;  %v1965_v25 = vmul.f32 0.3275911, %v1949_v33  ;;  %v2381_v51 = vsub.f32 0.0, %v1949_v33  ;;  %v2181_v38 = vmul.f32 %v6865_v53, %v8546_v22 }
 0x796   : > { %6870 = vpow2.f32 %v2427_v19  ;;  %v8604_v3 = vand.u32 2147483647, %v8595_v47  ;;  %2818 = vmatmul.bf16.vlgmr.msra.gmra.mxu3 %v2545_v35  ;;  %v2124_v14 = vadd.f32 %v8474_v46, %v8532_v5  ;;  %v8608_v15 = vpop.eup %6866  ;;  %vm2140_vm14 = vweird.f32 %v8441_v27 }
 0x797   : > { %v2429_v43 = vmul.f32 1.442695, %v2399_v40  ;;  %v8611_v63 = vadd.f32 1.0, %v1965_v25  ;;  %v2397_v10 = vmul.f32 %v2381_v51, %v1949_v33  ;;  %v2548_v44 = vpack.c.bf16 %v2536_v16, %v8467_v57  ;;  %vm8665_vm10 = vmor %vm2140_vm14, %vm2141_vm11 }
 0x798   : > { %v8614_v39 = vpop.eup %6868  ;;  %v8617_v56 = vmul.f32 %v8549_v61, %v2152_v29  ;;  %v2182_v28 = vsub.f32 1.0, %v2181_v38  ;;  %v1968_v19 = vmul.f32 0.3275911, %v8604_v3  ;;  %v2129_v5 = vand.u32 2147483647, %v8419_v2 }
 0x799   : > { %v2196_v57 = vmul.f32 %v8614_v39, %v8571_v20  ;;  %vm2200_vm0 = vweird.f32 %v8571_v20  ;;  %v2206_v40 = vand.u32 2147483648, %v8571_v20  ;;  %6872 = vrcp.f32 %v8611_v63  ;;  %2875 = vmatmul.bf16.vlgmr.msra.gmra.mxu2 %v2548_v44 }
 0x79a   : > { %vm2111_vm1 = vweird.f32 %v8528_v7  ;;  %v2183_v33 = vmul.f32 %v6865_v53, %v2182_v28  ;;  %v2425_v29 = vmul.f32 1.442695, %v2397_v10  ;;  %v8635_v35 = vadd.f32 1.0, %v1968_v19 }
 0x79b   : > { %v2128_v2 = vsel %vm8625_vm15, %v8474_v46, %v2124_v14  ;;  %v2197_v16 = vsub.f32 1.0, %v2196_v57  ;;  %6874 = vpow2.f32 %v2429_v43  ;;  %vm2186_vm5 = vweird.f32 %v6865_v53 }
 0x79c   : > { %v2189_v25 = vand.u32 2147483647, %v8546_v22  ;;  %v8641_v51 = vpop.eup %6870  ;;  %vm2110_vm6 = vweird.f32 %v8492_v54  ;;  %v2176_v38 = vand.u32 2147483648, %v8611_v63  ;;  %6876 = vpow2.f32 %v2425_v29  ;;  %vm2187_vm8 = vmor %vm2185_vm12, %vm2186_vm5 }
 0x79d   : > { %vm2130_vm7 = vcmp.eq.f32.partialorder %v2129_v5, 8.507059e+37  ;;  %v2198_v44 = vmul.f32 %v8614_v39, %v2197_v16  ;;  %6878 = vrcp.f32 %v8635_v35  ;;  %v2184_v14 = vadd.f32 %v6865_v53, %v2183_v33 }
 0x79e   : > { %v8649_v46 = vsel %vm2130_vm7, %v8520_v41, %v2128_v2  ;;  %v2221_v43 = vand.u32 2147483648, %v8635_v35  ;;  %vm2190_vm9 = vcmp.eq.f32.partialorder %v2189_v25, 8.507059e+37  ;;  %v2192_v28 = vor.u32 1.1754944e-38, %v2191_v24  ;;  %vm8710_vm7 = vmor %vm2110_vm6, %vm2111_vm1 }
 0x79f   : > { %v2234_v19 = vmul.f32 1.0614054, %v8649_v46  ;;  %v8655_v52 = vpop.eup %6872  ;;  %v2188_v5 = vsel %vm2187_vm8, %v6865_v53, %v2184_v14  ;;  %v2139_v57 = vadd.f32 %v8497_v13, %v8552_v21  ;;  %v2144_v29 = vand.u32 2147483647, %v8441_v27 }
 0x7a0   : > { %v2199_v41 = vadd.f32 %v8614_v39, %v2198_v44  ;;  %v2166_v24 = vmul.f32 %v8655_v52, %v8611_v63  ;;  %v8671_v33 = vsel %vm2190_vm9, %v2192_v28, %v2188_v5  ;;  %vm2201_vm12 = vweird.f32 %v8614_v39 }
 0x7a1   : > { %v2250_v53 = vadd.f32 -1.4531521, %v2234_v19  ;;  %v8674_v21 = vpop.eup %6874  ;;  %vm2170_vm15 = vweird.f32 %v8611_v63  ;;  %v2238_v2 = vmul.f32 1.0614054, %v8671_v33  ;;  %v2143_v27 = vsel %vm8665_vm10, %v8497_v13, %v2139_v57  ;;  %vm8683_vm14 = vmor %vm2200_vm0, %vm2201_vm12 }
 0x7a2   : > { %vm2145_vm11 = vcmp.eq.f32.partialorder %v2144_v29, 8.507059e+37  ;;  %v2204_v25 = vand.u32 2147483647, %v8571_v20  ;;  %v8688_v44 = vpop.eup %6876  ;;  %v2167_v14 = vsub.f32 1.0, %v2166_v24  ;;  %v2203_v13 = vsel %vm8683_vm14, %v8614_v39, %v2199_v41 }
 0x7a3   : > { %v2266_v28 = vmul.f32 %v2250_v53, %v8649_v46  ;;  %v8692_v19 = vsel %vm2145_vm11, %v8522_v32, %v2143_v27  ;;  %v8697_v5 = vpop.eup %6878  ;;  %vm2156_vm0 = vweird.f32 %v8549_v61  ;;  %v2254_v57 = vadd.f32 -1.4531521, %v2238_v2 }
 0x7a4   : > { %vm2205_vm5 = vcmp.eq.f32.partialorder %v2204_v25, 8.507059e+37  ;;  %v2207_v29 = vor.u32 1.1754944e-38, %v2206_v40  ;;  %v2235_v20 = vmul.f32 1.0614054, %v8692_v19  ;;  %v2168_v22 = vmul.f32 %v8655_v52, %v2167_v14 }
 0x7a5   : > { %v2211_v24 = vmul.f32 %v8697_v5, %v8635_v35  ;;  %v2282_v32 = vadd.f32 1.4214138, %v2266_v28  ;;  %v2109_v53 = vadd.f32 %v8528_v7, %v8592_v8  ;;  %vm2155_vm8 = vweird.f32 %v8504_v9 }
 0x7a6   : > { %v2270_v40 = vmul.f32 %v2254_v57, %v8671_v33  ;;  %v8716_v41 = vsel %vm2205_vm5, %v2207_v29, %v2203_v13  ;;  %v2251_v2 = vadd.f32 -1.4531521, %v2235_v20  ;;  %v2114_v27 = vand.u32 2147483647, %v8492_v54  ;;  %vm8754_vm11 = vmor %vm2155_vm8, %vm2156_vm0 }
 0x7a7   : > { %v2212_v16 = vsub.f32 1.0, %v2211_v24  ;;  %v2298_v8 = vmul.f32 %v2282_v32, %v8649_v46  ;;  %v2239_v25 = vmul.f32 1.0614054, %v8716_v41  ;;  %v2113_v14 = vsel %vm8710_vm7, %v8528_v7, %v2109_v53 }
 0x7a8   : > { %v2286_v28 = vadd.f32 1.4214138, %v2270_v40  ;;  %v2267_v10 = vmul.f32 %v2251_v2, %v8692_v19  ;;  %vm2115_vm1 = vcmp.eq.f32.partialorder %v2114_v27, 8.507059e+37  ;;  %v2169_v57 = vadd.f32 %v8655_v52, %v2168_v22 }
 0x7a9   : > { %v2213_v13 = vmul.f32 %v8697_v5, %v2212_v16  ;;  %v2314_v29 = vadd.f32 -0.28449672, %v2298_v8  ;;  %v2255_v20 = vadd.f32 -1.4531521, %v2239_v25  ;;  %v8728_v54 = vsel %vm2115_vm1, %v8560_v23, %v2113_v14 }
 0x7aa   : > { %v2302_v24 = vmul.f32 %v2286_v28, %v8671_v33  ;;  %v2283_v32 = vadd.f32 1.4214138, %v2267_v10  ;;  %vm2171_vm6 = vweird.f32 %v8655_v52  ;;  %v2174_v7 = vand.u32 2147483647, %v8611_v63 }
 0x7ab   : > { %v2330_v53 = vmul.f32 %v2314_v29, %v8649_v46  ;;  %v2271_v39 = vmul.f32 %v2255_v20, %v8716_v41  ;;  %vm2172_vm9 = vmor %vm2170_vm15, %vm2171_vm6  ;;  %v2177_v22 = vor.u32 1.1754944e-38, %v2176_v38  ;;  %v2233_v23 = vmul.f32 1.0614054, %v8728_v54 }
 0x7ac   : > { %vm2215_vm10 = vweird.f32 %v8635_v35  ;;  %v2318_v40 = vadd.f32 -0.28449672, %v2302_v24  ;;  %v2299_v10 = vmul.f32 %v2283_v32, %v8692_v19  ;;  %v2173_v2 = vsel %vm2172_vm9, %v8655_v52, %v2169_v57 }
 0x7ad   : > { %vm2175_vm12 = vcmp.eq.f32.partialorder %v2174_v7, 8.507059e+37  ;;  %v2346_v27 = vadd.f32 0.2548296, %v2330_v53  ;;  %v2287_v16 = vadd.f32 1.4214138, %v2271_v39  ;;  %vm2474_vm15 = vcmp.ge.f32.partialorder %v8351_v59, 0.0 }
 0x7ae   : > { %v8743_v8 = vsel %vm2175_vm12, %v2177_v22, %v2173_v2  ;;  %v2249_v25 = vadd.f32 -1.4531521, %v2233_v23  ;;  %v2334_v63 = vmul.f32 %v2318_v40, %v8671_v33  ;;  %v2315_v38 = vadd.f32 -0.28449672, %v2299_v10 }
 0x7af   : > { %v2237_v14 = vmul.f32 1.0614054, %v8743_v8  ;;  %v2154_v28 = vadd.f32 %v8549_v61, %v8617_v56  ;;  %v2362_v57 = vmul.f32 %v2346_v27, %v8649_v46  ;;  %v2303_v29 = vmul.f32 %v2287_v16, %v8716_v41 }
 0x7b0   : > { %v2265_v20 = vmul.f32 %v2249_v25, %v8728_v54  ;;  %v2159_v24 = vand.u32 2147483647, %v8504_v9  ;;  %v2350_v32 = vadd.f32 0.2548296, %v2334_v63  ;;  %v2331_v7 = vmul.f32 %v2315_v38, %v8692_v19 }
 0x7b1   : > { %v2253_v56 = vadd.f32 -1.4531521, %v2237_v14  ;;  %v2158_v53 = vsel %vm8754_vm11, %v8549_v61, %v2154_v28  ;;  %vm2478_vm14 = vcmp.ge.f32.partialorder %v8512_v58, 0.0  ;;  %v2442_v39 = vmul.f32 %v8542_v11, %v2362_v57 }
 0x7b2   : > { %v2319_v22 = vadd.f32 -0.28449672, %v2303_v29  ;;  %v2281_v46 = vadd.f32 1.4214138, %v2265_v20  ;;  %vm2160_vm0 = vcmp.eq.f32.partialorder %v2159_v24, 8.507059e+37  ;;  %v2366_v23 = vmul.f32 %v2350_v32, %v8671_v33 }
 0x7b3   : > { %v2347_v40 = vadd.f32 0.2548296, %v2331_v7  ;;  %v2269_v9 = vmul.f32 %v2253_v56, %v8743_v8  ;;  %v8771_v10 = vsel %vm2160_vm0, %v8588_v1, %v2158_v53  ;;  %vm2475_vm5 = vcmp.ge.f32.partialorder %v8364_v37, 0.0 }
 0x7b4   : > { %v2458_v2 = vsub.f32 1.0, %v2442_v39  ;;  %v2335_v61 = vmul.f32 %v2319_v22, %v8716_v41  ;;  %v2297_v27 = vmul.f32 %v2281_v46, %v8728_v54  ;;  %v2214_v11 = vadd.f32 %v8697_v5, %v2213_v13 }
 0x7b5   : > { %v2446_v16 = vmul.f32 %v8641_v51, %v2366_v23  ;;  %v2363_v25 = vmul.f32 %v2347_v40, %v8692_v19  ;;  %v2285_v33 = vadd.f32 1.4214138, %v2269_v9  ;;  %vm2216_vm7 = vweird.f32 %v8697_v5 }
 0x7b6   : > { %v2490_v63 = vsub.f32 0.0, %v2458_v2  ;;  %v2351_v38 = vadd.f32 0.2548296, %v2335_v61  ;;  %v2313_v1 = vadd.f32 -0.28449672, %v2297_v27  ;;  %vm8782_vm8 = vmor %vm2215_vm10, %vm2216_vm7  ;;  %v2222_v28 = vor.u32 1.1754944e-38, %v2221_v43 }
 0x7b7   : > { %v2462_v13 = vsub.f32 1.0, %v2446_v16  ;;  %v2443_v51 = vmul.f32 %v8557_v26, %v2363_v25  ;;  %v2301_v19 = vmul.f32 %v2285_v33, %v8743_v8  ;;  %v2218_v52 = vsel %vm8782_vm8, %v8697_v5, %v2214_v11 }
 0x7b8   : > { %v2506_v57 = vsel %vm2474_vm15, %v2458_v2, %v2490_v63  ;;  %v2367_v29 = vmul.f32 %v2351_v38, %v8716_v41  ;;  %v2329_v20 = vmul.f32 %v2313_v1, %v8728_v54  ;;  %v2219_v24 = vand.u32 2147483647, %v8635_v35 }
 0x7b9   : > { %v2494_v32 = vsub.f32 0.0, %v2462_v13  ;;  %v2522_v43 = vadd.f32 1.0, %v2506_v57  ;;  %v2459_v7 = vsub.f32 1.0, %v2443_v51  ;;  %v2317_v56 = vadd.f32 -0.28449672, %v2301_v19 }
 0x7ba   : > { %v2447_v26 = vmul.f32 %v8674_v21, %v2367_v29  ;;  %v2345_v53 = vadd.f32 0.2548296, %v2329_v20  ;;  %vm2220_vm1 = vcmp.eq.f32.partialorder %v2219_v24, 8.507059e+37  ;;  %v2236_v39 = vmul.f32 1.0614054, %v8771_v10 }
 0x7bb   : > { %v2510_v59 = vsel %vm2478_vm14, %v2462_v13, %v2494_v32  ;;  %v2538_v5 = vmul.f32 %v2522_v43, %v8484_v49  ;;  %v2491_v41 = vsub.f32 0.0, %v2459_v7  ;;  %v2333_v22 = vmul.f32 %v2317_v56, %v8743_v8 }
 0x7bc   : > { %v2526_v46 = vadd.f32 1.0, %v2510_v59  ;;  %v2463_v35 = vsub.f32 1.0, %v2447_v26  ;;  %v2361_v23 = vmul.f32 %v2345_v53, %v8728_v54  ;;  %v2223_v40 = vsel %vm2220_vm1, %v2222_v28, %v2218_v52 }
 0x7bd   : > { %v2507_v21 = vsel %vm2475_vm5, %v2459_v7, %v2491_v41  ;;  %v2349_v9 = vadd.f32 0.2548296, %v2333_v22  ;;  %v2240_v2 = vmul.f32 1.0614054, %v2223_v40  ;;  %v2252_v61 = vadd.f32 -1.4531521, %v2236_v39 }
 0x7be   : > { %v2542_v27 = vmul.f32 %v2526_v46, %v8574_v17  ;;  %v2495_v58 = vsub.f32 0.0, %v2463_v35  ;;  %v2523_v11 = vadd.f32 1.0, %v2507_v21  ;;  %v2441_v49 = vmul.f32 %v8608_v15, %v2361_v23 }
 0x7bf   : > { %vm2479_vm6 = vcmp.ge.f32.partialorder %v8535_v60, 0.0  ;;  %v2365_v16 = vmul.f32 %v2349_v9, %v8743_v8  ;;  %v2256_v25 = vadd.f32 -1.4531521, %v2240_v2  ;;  %v2268_v54 = vmul.f32 %v2252_v61, %v8771_v10 }
 0x7c0   : > { %v10388_v37 = vsub.f32 0.0, %v8604_v3  ;;  %v2550_v63 = vpack.c.bf16 %v2542_v27, %v2538_v5  ;;  %v2511_v38 = vsel %vm2479_vm6, %v2463_v35, %v2495_v58  ;;  %v2457_v1 = vsub.f32 1.0, %v2441_v49 }
 0x7c1   : > { %v2527_v14 = vadd.f32 1.0, %v2511_v38  ;;  %v2445_v17 = vmul.f32 %v8688_v44, %v2365_v16  ;;  %v2272_v28 = vmul.f32 %v2256_v25, %v2223_v40  ;;  %v2284_v13 = vadd.f32 1.4214138, %v2268_v54 }
 0x7c2   : > { %v2400_v33 = vmul.f32 %v10388_v37, %v8604_v3  ;;  %vm2473_vm9 = vcmp.ge.f32.partialorder %v8449_v4, 0.0  ;;  %v2423_v60 = vmul.f32 1.442695, %v8563_v50  ;;  %2842 = vmatmul.bf16.gmra.mxu0 %v2550_v63  ;;  %v2539_v15 = vmul.f32 %v2523_v11, %v8517_v0 }
 0x7c3   : > { %v2489_v8 = vsub.f32 0.0, %v2457_v1  ;;  %v2543_v51 = vmul.f32 %v2527_v14, %v8585_v36  ;;  %v2461_v19 = vsub.f32 1.0, %v2445_v17  ;;  %v2288_v3 = vadd.f32 1.4214138, %v2272_v28 }
 0x7c4   : > { %v2300_v52 = vmul.f32 %v2284_v13, %v8771_v10  ;;  %v2431_v57 = vmul.f32 1.442695, %v2400_v33  ;;  %vm2477_vm10 = vcmp.ge.f32.partialorder %v8577_v12, 0.0  ;;  %v1913_v50 = vmul.f32 0.5, %v8431_v42 }
 0x7c5   : > { %v2505_v29 = vsel %vm2473_vm9, %v2457_v1, %v2489_v8  ;;  %v2551_v20 = vpack.c.bf16 %v2543_v51, %v2539_v15  ;;  %v2493_v44 = vsub.f32 0.0, %v2461_v19  ;;  %v2304_v24 = vmul.f32 %v2288_v3, %v2223_v40  ;;  %v7034_v15 = vld [vmem:[%s7216_s28] sm:$0xff] }
 0x7c6   : > { %v2521_v4 = vadd.f32 1.0, %v2505_v29  ;;  %v2316_v32 = vadd.f32 -0.28449672, %v2300_v52  ;;  %6880 = vpow2.f32 %v2423_v60  ;;  %v1917_v36 = vmul.f32 0.5, %v8555_v6  ;;  %v7035_v29 = vld [vmem:[%s7216_s28 + $0x8] sm:$0xff] }
 0x7c7   : > { %2861 = vmatmul.bf16.gmra.mxu1 %v2551_v20  ;;  %v2509_v0 = vsel %vm2477_vm10, %v2461_v19, %v2493_v44  ;;  %v2320_v43 = vadd.f32 -0.28449672, %v2304_v24  ;;  %6882 = vpow2.f32 %v2431_v57  ;;  %vm2476_vm12 = vcmp.ge.f32.partialorder %v8480_v48, 0.0  ;;  %v7033_v48 = vld [vmem:[%s10344_s2] sm:$0x3f] }
 0x7c8   : > { %v2525_v7 = vadd.f32 1.0, %v2509_v0  ;;  %v2332_v56 = vmul.f32 %v2316_v32, %v8771_v10  ;;  %v2537_v53 = vmul.f32 %v2521_v4, %v1913_v50  ;;  %vm2480_vm15 = vcmp.ge.f32.partialorder %v8595_v47, 0.0 }
 0x7c9   : > { %v2336_v26 = vmul.f32 %v2320_v43, %v2223_v40  ;;  %v1916_v11 = vmul.f32 0.5, %v8452_v45  ;;  %v2617_v54 = vperm.slane %v7033_v48, 5  ;;  %v6618_v48 = vld [vmem:[%s10346_s4 + $0x170] sm:$0xf0] }
 0x7ca   : > { %v2541_v39 = vmul.f32 %v2525_v7, %v1917_v36  ;;  %v2348_v59 = vadd.f32 0.2548296, %v2332_v56 }
 0x7cb   : > { %v2352_v5 = vadd.f32 0.2548296, %v2336_v26 }
 0x7cc   : > { %v2549_v12 = vpack.c.bf16 %v2541_v39, %v2537_v53  ;;  %v2364_v41 = vmul.f32 %v2348_v59, %v8771_v10  ;;  %v6881_v22 = vpop.eup %6880  ;;  %v1920_v10 = vmul.f32 0.5, %v8580_v34  ;;  %v7036_v59 = vld [vmem:[%s7216_s28 + $0x10] sm:$0xff] }
 0x7cd   : > { %v2368_v42 = vmul.f32 %v2352_v5, %v2223_v40  ;;  %v6883_v46 = vpop.eup %6882 }
 0x7ce   : > { %2823 = vmatmul.bf16.gmra.mxu3 %v2549_v12  ;;  %v2444_v35 = vmul.f32 %v6881_v22, %v2364_v41 }
 0x7cf   : > { %v2448_v23 = vmul.f32 %v6883_v46, %v2368_v42  ;;  %v7037_v42 = vld [vmem:[%s7216_s28 + $0x18] sm:$0xff]  ;;  %s5462_s28 = sshll.u32 %s340_s26, 4  ;;  %s5463_s28 = int_to_ptr.vmem [resolvable:$true] %s5462_s28 }
 0x7d0   : > { %v2460_v21 = vsub.f32 1.0, %v2444_v35 }
 0x7d1   : > { %v2464_v6 = vsub.f32 1.0, %v2448_v23 }
 0x7d2   : > { %v2492_v9 = vsub.f32 0.0, %v2460_v21 }
 0x7d3   : > { %v2496_v2 = vsub.f32 0.0, %v2464_v6 }
 0x7d4   : > { %v2508_v61 = vsel %vm2476_vm12, %v2460_v21, %v2492_v9 }
 0x7d5   : > { %v2512_v27 = vsel %vm2480_vm15, %v2464_v6, %v2496_v2  ;;  %v2524_v58 = vadd.f32 1.0, %v2508_v61 }
 0x7d6   : > { %v2528_v40 = vadd.f32 1.0, %v2512_v27 }
 0x7d7   : > { %v2540_v49 = vmul.f32 %v2524_v58, %v1916_v11 }
 0x7d8   : > { %v2544_v16 = vmul.f32 %v2528_v40, %v1920_v10 }
 0x7da   : > { %v2552_v25 = vpack.c.bf16 %v2544_v16, %v2540_v49 }
 0x7dc   : > { %2880 = vmatmul.bf16.gmra.mxu2 %v2552_v25  ;;  %v6066_v25 = vld [vmem:[%s10346_s4 + $0x168] sm:$0xf] }
 0x809   : > { %v2838_v37 = vpop.f32.mrf.mxu0 }
 0x80a   : > { %v2857_v63 = vpop.f32.mrf.mxu1 }
 0x811   : > { %v2840_v13 = vpop.f32.mrf.mxu0 }
 0x812   : > { %v2859_v51 = vpop.f32.mrf.mxu1 }
 0x819   : > { %v2819_v47 = vpop.f32.mrf.mxu3 }
 0x81a   : > { %v2820_v33 = vadd.f32 %v2819_v47, %v2617_v54  ;;  %v6068_v47 = vld [vmem:[%s10346_s4 + $0x174] sm:$0xf0] }
 0x81c   : > { %v2839_v38 = vadd.f32 %v2838_v37, %v2820_v33  ;;  %v2876_v1 = vpop.f32.mrf.mxu2  ;;  %v6067_v37 = vor.u32 %v6618_v48, %v6066_v25  ;;  %v6074_v33 = vld [vmem:[%s10346_s4 + $0x170] sm:$0xf]  ;;  %v6008_v48 = vld [vmem:[%s10346_s4 + $0xfc] sm:$0xf0] }
 0x81e   : > { %v2858_v45 = vadd.f32 %v2857_v63, %v2839_v38  ;;  %v6619_v63 = vld [vmem:[%s10346_s4 + $0x178] sm:$0xf0]  ;;  %3147 = vmatpush.bf16.msrb.mxu3 %v6067_v37  ;;  %v6604_v37 = vld [vmem:[%s10346_s4 + $0x100] sm:$0xf0] }
 0x820   : > { %v2877_v34 = vadd.f32 %v2876_v1, %v2858_v45  ;;  %v6075_v1 = vor.u32 %v6619_v63, %v6074_v33  ;;  %v6054_v45 = vld [vmem:[%s10346_s4 + $0x150] sm:$0xf]  ;;  %v5994_v63 = vld [vmem:[%s10346_s4 + $0xd8] sm:$0xf] }
 0x821   : > { %v2821_v14 = vpop.f32.mrf.mxu3 }
 0x822   : > { %v2886_v17 = vadd.f32 %v2877_v34, %v7783_v55  ;;  %v2822_v28 = vadd.f32 %v2821_v14, %v2617_v54  ;;  %3185 = vmatpush.bf16.msrb.mxu1 %v6075_v1  ;;  %v6615_v34 = vld [vmem:[%s10346_s4 + $0x158] sm:$0xf0]  ;;  %v6614_v14 = vld [vmem:[%s10346_s4 + $0x154] sm:$0xf] }
 0x824   : > { %v2841_v60 = vadd.f32 %v2840_v13, %v2822_v28  ;;  %v8835_v8 = vadd.f32 %v7034_v15, %v2886_v17  ;;  %v2878_v3 = vpop.f32.mrf.mxu2  ;;  %v6055_v28 = vor.u32 %v6615_v34, %v6054_v45  ;;  %v6056_v13 = vld [vmem:[%s10346_s4 + $0x15c] sm:$0xf0]  ;;  %v6616_v15 = vld [vmem:[%s10346_s4 + $0x160] sm:$0xf0]  ;;  %v6599_v34 = vld [vmem:[%s10346_s4 + $0xdc] sm:$0xf] }
 0x825   : > { %v6600_v45 = vld [vmem:[%s10346_s4 + $0xe0] sm:$0xf0] }
 0x826   : > { %v2860_v19 = vadd.f32 %v2859_v51, %v2841_v60  ;;  %2894 = vadd.xlane.f32.xlu0 %v8835_v8  ;;  %v6062_v60 = vld [vmem:[%s10346_s4 + $0x158] sm:$0xf]  ;;  %3148 = vmatpush.bf16.msrb.mxu3 %v6055_v28  ;;  %v6002_v28 = vld [vmem:[%s10346_s4 + $0xe0] sm:$0xf] }
 0x828   : > { %v2879_v52 = vadd.f32 %v2878_v3, %v2860_v19  ;;  %v6059_v19 = vor.u32 %v6614_v14, %v6056_v13  ;;  %v6063_v3 = vor.u32 %v6616_v15, %v6062_v60  ;;  %v5996_v14 = vld [vmem:[%s10346_s4 + $0xe4] sm:$0xf0]  ;;  %v6601_v13 = vld [vmem:[%s10346_s4 + $0xe8] sm:$0xf0]  ;;  %v5995_v15 = vor.u32 %v6600_v45, %v5994_v63 }
 0x82a   : > { %v2887_v57 = vadd.f32 %v2879_v52, %v7787_v30  ;;  %v6042_v52 = vld [vmem:[%s10346_s4 + $0x138] sm:$0xf]  ;;  %3186 = vmatpush.bf16.msrb.mxu1 %v6063_v3  ;;  %v6003_v3 = vor.u32 %v6601_v13, %v6002_v28 }
 0x82c   : > { %v8840_v20 = vadd.f32 %v7035_v29, %v2887_v57  ;;  %v6612_v57 = vld [vmem:[%s10346_s4 + $0x140] sm:$0xf0]  ;;  %v6611_v29 = vld [vmem:[%s10346_s4 + $0x13c] sm:$0xf] }
 0x82e   : > { %2896 = vadd.xlane.f32.xlu1 %v8840_v20 }
 0x83f   : > { %v2843_v24 = vpop.f32.mrf.mxu0 }
 0x844   : > { %v2862_v32 = vpop.f32.mrf.mxu1 }
 0x847   : > { %v2845_v36 = vpop.f32.mrf.mxu0 }
 0x84c   : > { %v2864_v53 = vpop.f32.mrf.mxu1 }
 0x851   : > { %v2824_v55 = vpop.f32.mrf.mxu3 }
 0x852   : > { %v2825_v44 = vadd.f32 %v2824_v55, %v2617_v54  ;;  %v6043_v55 = vor.u32 %v6612_v57, %v6042_v52  ;;  %v5982_v52 = vld [vmem:[%s10346_s4 + $0xc0] sm:$0xf]  ;;  %v6597_v57 = vld [vmem:[%s10346_s4 + $0xc8] sm:$0xf0] }
 0x854   : > { %v2844_v4 = vadd.f32 %v2843_v24, %v2825_v44  ;;  %v6044_v44 = vld [vmem:[%s10346_s4 + $0x144] sm:$0xf0]  ;;  %v6050_v24 = vld [vmem:[%s10346_s4 + $0x140] sm:$0xf]  ;;  %3149 = vmatpush.bf16.msrb.mxu3 %v6043_v55 }
 0x856   : > { %v2863_v0 = vadd.f32 %v2862_v32, %v2844_v4  ;;  %v6613_v4 = vld [vmem:[%s10346_s4 + $0x148] sm:$0xf0] }
 0x859   : > { %v2826_v50 = vpop.f32.mrf.mxu3 }
 0x85a   : > { %v2827_v43 = vadd.f32 %v2826_v50, %v2617_v54  ;;  %v6617_v54 = vld [vmem:[%s10346_s4 + $0x16c] sm:$0xf]  ;;  %v6047_v50 = vor.u32 %v6611_v29, %v6044_v44  ;;  %v6596_v29 = vld [vmem:[%s10346_s4 + $0xc4] sm:$0xf] }
 0x85b   : > { %v6071_v38 = vor.u32 %v6617_v54, %v6068_v47  ;;  %v6014_v54 = vld [vmem:[%s10346_s4 + $0xf8] sm:$0xf] }
 0x85c   : > { %v2846_v26 = vadd.f32 %v2845_v36, %v2827_v43  ;;  %v6030_v43 = vld [vmem:[%s10346_s4 + $0x120] sm:$0xf]  ;;  %v6609_v36 = vld [vmem:[%s10346_s4 + $0x128] sm:$0xf0]  ;;  %v6015_v1 = vor.u32 %v6604_v37, %v6014_v54 }
 0x85d   : > { %3166 = vmatpush.bf16.msrb.mxu0 %v6071_v38 }
 0x85e   : > { %v2865_v39 = vadd.f32 %v2864_v53, %v2846_v26  ;;  %v6038_v26 = vld [vmem:[%s10346_s4 + $0x128] sm:$0xf]  ;;  %v6031_v53 = vor.u32 %v6609_v36, %v6030_v43  ;;  %v5983_v43 = vor.u32 %v6597_v57, %v5982_v52 }
 0x85f   : > { %v2881_v7 = vpop.f32.mrf.mxu2 }
 0x860   : > { %v2882_v56 = vadd.f32 %v2881_v7, %v2863_v0  ;;  %v6051_v0 = vor.u32 %v6613_v4, %v6050_v24  ;;  %v6608_v7 = vld [vmem:[%s10346_s4 + $0x124] sm:$0xf]  ;;  %3150 = vmatpush.bf16.msrb.mxu3 %v6031_v53  ;;  %v5984_v24 = vld [vmem:[%s10346_s4 + $0xcc] sm:$0xf0]  ;;  %v5990_v4 = vld [vmem:[%s10346_s4 + $0xc8] sm:$0xf] }
 0x861   : > { %3167 = vmatpush.bf16.msrb.mxu0 %v6059_v19  ;;  %v5999_v19 = vor.u32 %v6599_v34, %v5996_v14  ;;  %v5987_v36 = vor.u32 %v6596_v29, %v5984_v24 }
 0x862   : > { %v2888_v30 = vadd.f32 %v2882_v56, %v7791_v31  ;;  %v6032_v56 = vld [vmem:[%s10346_s4 + $0x12c] sm:$0xf0]  ;;  %3187 = vmatpush.bf16.msrb.mxu1 %v6051_v0 }
 0x864   : > { %v8845_v5 = vadd.f32 %v7036_v59, %v2888_v30  ;;  %v6610_v30 = vld [vmem:[%s10346_s4 + $0x130] sm:$0xf0] }
 0x865   : > { %3168 = vmatpush.bf16.msrb.mxu0 %v6047_v50  ;;  %v6039_v59 = vor.u32 %v6610_v30, %v6038_v26  ;;  %v6598_v50 = vld [vmem:[%s10346_s4 + $0xd0] sm:$0xf0]  ;;  %v361_v30 = vld [vmem:[%s10344_s2 + $0x8] sm:$0x3f] }
 0x866   : > { %2898 = vadd.xlane.f32.xlu2 %v8845_v5 }
 0x867   : > { %v2883_v12 = vpop.f32.mrf.mxu2  ;;  %3188 = vmatpush.bf16.msrb.mxu1 %v6039_v59 }
 0x868   : > { %v2884_v41 = vadd.f32 %v2883_v12, %v2865_v39  ;;  %v6035_v39 = vor.u32 %v6608_v7, %v6032_v56  ;;  %v6018_v12 = vld [vmem:[%s10346_s4 + $0x108] sm:$0xf]  ;;  %v5991_v7 = vor.u32 %v6598_v50, %v5990_v4 }
 0x86a   : > { %v2889_v22 = vadd.f32 %v2884_v41, %v7795_v62  ;;  %v6606_v41 = vld [vmem:[%s10346_s4 + $0x110] sm:$0xf0]  ;;  %3169 = vmatpush.bf16.msrb.mxu0 %v6035_v39 }
 0x86c   : > { %v8850_v46 = vadd.f32 %v7037_v42, %v2889_v22  ;;  %v6605_v22 = vld [vmem:[%s10346_s4 + $0x10c] sm:$0xf] }
 0x86e   : > { %2900 = vadd.xlane.f32.xlu0 %v8850_v46 }
 0x899   : > { %v2895_v35 = vpop.xlane.xlu0 %2894 }
 0x89a   : > { %v2902_v23 = vmul.f32 %v2895_v35, %v7234_v18  ;;  %v6020_v35 = vld [vmem:[%s10346_s4 + $0x114] sm:$0xf0] }
 0x89c   : > { %v8855_v31 = vsub.f32 %v8835_v8, %v2902_v23  ;;  %v6026_v23 = vld [vmem:[%s10346_s4 + $0x110] sm:$0xf] }
 0x89e   : > { %v2910_v21 = vmul.f32 %v8855_v31, %v8855_v31 }
 0x8a0   : > { %2914 = vadd.xlane.f32.xlu1 %v2910_v21  ;;  %v6607_v21 = vld [vmem:[%s10346_s4 + $0x118] sm:$0xf0] }
 0x8a1   : > { %v2897_v6 = vpop.xlane.xlu1 %2896 }
 0x8a2   : > { %v2903_v9 = vmul.f32 %v2897_v6, %v7234_v18 }
 0x8a4   : > { %v8861_v62 = vsub.f32 %v8840_v20, %v2903_v9  ;;  %v6019_v9 = vor.u32 %v6606_v41, %v6018_v12 }
 0x8a6   : > { %v2911_v2 = vmul.f32 %v8861_v62, %v8861_v62  ;;  %3151 = vmatpush.bf16.msrb.mxu3 %v6019_v9 }
 0x8a8   : > { %2916 = vadd.xlane.f32.xlu2 %v2911_v2  ;;  %v6006_v2 = vld [vmem:[%s10346_s4 + $0xf0] sm:$0xf] }
 0x8d9   : > { %v2899_v61 = vpop.xlane.xlu2 %2898 }
 0x8da   : > { %v2904_v27 = vmul.f32 %v2899_v61, %v7234_v18 }
 0x8dc   : > { %v8867_v58 = vsub.f32 %v8845_v5, %v2904_v27 }
 0x8de   : > { %v2912_v11 = vmul.f32 %v8867_v58, %v8867_v58 }
 0x8e0   : > { %2918 = vadd.xlane.f32.xlu0 %v2912_v11  ;;  %v6023_v11 = vor.u32 %v6605_v22, %v6020_v35 }
 0x8e1   : > { %v2901_v10 = vpop.xlane.xlu0 %2900 }
 0x8e2   : > { %v2905_v40 = vmul.f32 %v2901_v10, %v7234_v18  ;;  %v6027_v10 = vor.u32 %v6607_v21, %v6026_v23  ;;  %3170 = vmatpush.bf16.msrb.mxu0 %v6023_v11 }
 0x8e4   : > { %v8873_v49 = vsub.f32 %v8850_v46, %v2905_v40  ;;  %v6603_v40 = vld [vmem:[%s10346_s4 + $0xf8] sm:$0xf0]  ;;  %3189 = vmatpush.bf16.msrb.mxu1 %v6027_v10 }
 0x8e5   : > { %v6007_v33 = vor.u32 %v6603_v40, %v6006_v2 }
 0x8e6   : > { %v2913_v16 = vmul.f32 %v8873_v49, %v8873_v49 }
 0x8e7   : > { %3152 = vmatpush.bf16.msrb.mxu3 %v6007_v33 }
 0x8e8   : > { %2920 = vadd.xlane.f32.xlu1 %v2913_v16  ;;  %v6602_v16 = vld [vmem:[%s10346_s4 + $0xf4] sm:$0xf]  ;;  %3190 = vmatpush.bf16.msrb.mxu1 %v6015_v1 }
 0x8e9   : > { %v6011_v38 = vor.u32 %v6602_v16, %v6008_v48 }
 0x8eb   : > { %3171 = vmatpush.bf16.msrb.mxu0 %v6011_v38  ;;  %3153 = vmatpush.bf16.msrb.mxu3 %v5995_v15 }
 0x8ec   : > { %3191 = vmatpush.bf16.msrb.mxu1 %v6003_v3 }
 0x8ef   : > { %3172 = vmatpush.bf16.msrb.mxu0 %v5999_v19  ;;  %3154 = vmatpush.bf16.msrb.mxu3 %v5983_v43 }
 0x8f0   : > { %3192 = vmatpush.bf16.msrb.mxu1 %v5991_v7 }
 0x8f3   : > { %3173 = vmatpush.bf16.msrb.mxu0 %v5987_v36 }
 0x913   : > { %v2915_v17 = vpop.xlane.xlu1 %2914 }
 0x914   : > { %v2922_v51 = vmul.f32 %v2915_v17, %v7234_v18 }
 0x916   : > { %v8932_v32 = vadd.f32 1e-05, %v2922_v51 }
 0x918   : > { %6884 = vrsqrt.f32 %v8932_v32  ;;  %vm2936_vm14 = vweird.f32 %v8932_v32 }
 0x91b   : > { %v2917_v42 = vpop.xlane.xlu2 %2916 }
 0x91c   : > { %v2923_v6 = vmul.f32 %v2917_v42, %v7234_v18  ;;  %v2979_v42 = vperm.slane %v361_v30, 1 }
 0x91e   : > { %v6885_v61 = vpop.eup %6884  ;;  %v8975_v27 = vadd.f32 1e-05, %v2923_v6 }
 0x91f   : > { %v2931_v25 = vmul.f32 %v6885_v61, %v8932_v32  ;;  %vm2937_vm11 = vweird.f32 %v6885_v61  ;;  %v2974_v32 = vperm.slane %v361_v30, 0 }
 0x920   : > { %6886 = vrsqrt.f32 %v8975_v27  ;;  %vm2938_vm0 = vmor %vm2936_vm14, %vm2937_vm11  ;;  %vm2946_vm7 = vweird.f32 %v8975_v27 }
 0x921   : > { %v2932_v47 = vmul.f32 %v6885_v61, %v2931_v25 }
 0x923   : > { %v2933_v17 = vmul.f32 0.5, %v2932_v47 }
 0x925   : > { %v2934_v60 = vsub.f32 1.5, %v2933_v17 }
 0x926   : > { %v6887_v51 = vpop.eup %6886 }
 0x927   : > { %v2935_v55 = vmul.f32 %v6885_v61, %v2934_v60  ;;  %v2941_v44 = vmul.f32 %v6887_v51, %v8975_v27  ;;  %vm2947_vm5 = vweird.f32 %v6887_v51 }
 0x928   : > { %vm2948_vm8 = vmor %vm2946_vm7, %vm2947_vm5 }
 0x929   : > { %v2942_v0 = vmul.f32 %v6887_v51, %v2941_v44  ;;  %v2939_v56 = vsel %vm2938_vm0, %v6885_v61, %v2935_v55 }
 0x92a   : > { %v2970_v39 = vmul.f32 %v2939_v56, %v8855_v31 }
 0x92b   : > { %v2943_v26 = vmul.f32 0.5, %v2942_v0 }
 0x92c   : > { %v2975_v22 = vmul.f32 %v2974_v32, %v2970_v39 }
 0x92d   : > { %v2944_v53 = vsub.f32 1.5, %v2943_v26 }
 0x92e   : > { %v2980_v23 = vadd.f32 %v2979_v42, %v2975_v22 }
 0x92f   : > { %v2945_v59 = vmul.f32 %v6887_v51, %v2944_v53 }
 0x931   : > { %v2949_v12 = vsel %vm2948_vm8, %v6887_v51, %v2945_v59 }
 0x932   : > { %v2971_v41 = vmul.f32 %v2949_v12, %v8861_v62 }
 0x934   : > { %v2976_v35 = vmul.f32 %v2974_v32, %v2971_v41 }
 0x936   : > { %v2981_v21 = vadd.f32 %v2979_v42, %v2976_v35 }
 0x938   : > { %v2984_v6 = vpack.c.bf16 %v2981_v21, %v2980_v23 }
 0x93a   : > { %3155 = vmatmul.bf16.vlgmr.msrb.gmra.mxu3 %v2984_v6  ;;  %3174 = vmatmul.bf16.vlgmr.msrb.gmra.mxu0 %v2984_v6 }
 0x93b   : > { %3193 = vmatmul.bf16.vlgmr.msrb.gmra.mxu1 %v2984_v6 }
 0x953   : > { %v2919_v31 = vpop.xlane.xlu0 %2918 }
 0x954   : > { %v2924_v9 = vmul.f32 %v2919_v31, %v7234_v18 }
 0x956   : > { %v2928_v2 = vadd.f32 1e-05, %v2924_v9 }
 0x958   : > { %6888 = vrsqrt.f32 %v2928_v2  ;;  %vm2956_vm6 = vweird.f32 %v2928_v2 }
 0x95b   : > { %v2921_v61 = vpop.xlane.xlu1 %2920 }
 0x95c   : > { %v2925_v27 = vmul.f32 %v2921_v61, %v7234_v18 }
 0x95e   : > { %v6889_v11 = vpop.eup %6888  ;;  %v2929_v10 = vadd.f32 1e-05, %v2925_v27 }
 0x95f   : > { %v2951_v62 = vmul.f32 %v6889_v11, %v2928_v2  ;;  %vm2957_vm1 = vweird.f32 %v6889_v11 }
 0x960   : > { %6890 = vrsqrt.f32 %v2929_v10  ;;  %vm2958_vm9 = vmor %vm2956_vm6, %vm2957_vm1  ;;  %vm2966_vm12 = vweird.f32 %v2929_v10 }
 0x961   : > { %v2952_v40 = vmul.f32 %v6889_v11, %v2951_v62 }
 0x963   : > { %v2953_v16 = vmul.f32 0.5, %v2952_v40 }
 0x965   : > { %v2954_v25 = vsub.f32 1.5, %v2953_v16 }
 0x966   : > { %v6891_v48 = vpop.eup %6890 }
 0x967   : > { %v2955_v54 = vmul.f32 %v6889_v11, %v2954_v25  ;;  %v2961_v37 = vmul.f32 %v6891_v48, %v2929_v10  ;;  %vm2967_vm10 = vweird.f32 %v6891_v48 }
 0x968   : > { %vm2968_vm15 = vmor %vm2966_vm12, %vm2967_vm10 }
 0x969   : > { %v2962_v47 = vmul.f32 %v6891_v48, %v2961_v37  ;;  %v2959_v33 = vsel %vm2958_vm9, %v6889_v11, %v2955_v54 }
 0x96a   : > { %v2972_v1 = vmul.f32 %v2959_v33, %v8867_v58 }
 0x96b   : > { %v2963_v63 = vmul.f32 0.5, %v2962_v47 }
 0x96c   : > { %v2977_v17 = vmul.f32 %v2974_v32, %v2972_v1 }
 0x96d   : > { %v2964_v38 = vsub.f32 1.5, %v2963_v63 }
 0x96e   : > { %v2982_v13 = vadd.f32 %v2979_v42, %v2977_v17 }
 0x96f   : > { %v2965_v45 = vmul.f32 %v6891_v48, %v2964_v38 }
 0x971   : > { %v2969_v34 = vsel %vm2968_vm15, %v6891_v48, %v2965_v45 }
 0x972   : > { %v2973_v14 = vmul.f32 %v2969_v34, %v8873_v49 }
 0x974   : > { %v2978_v28 = vmul.f32 %v2974_v32, %v2973_v14 }
 0x976   : > { %v2983_v60 = vadd.f32 %v2979_v42, %v2978_v28 }
 0x978   : > { %v2985_v15 = vpack.c.bf16 %v2983_v60, %v2982_v13 }
 0x97a   : > { %3160 = vmatmul.bf16.gmra.mxu3 %v2985_v15  ;;  %3179 = vmatmul.bf16.gmra.mxu0 %v2985_v15 }
 0x97b   : > { %3198 = vmatmul.bf16.gmra.mxu1 %v2985_v15 }
 0x9b7   : > { %v3175_v51 = vpop.f32.mrf.mxu0 }
 0x9b8   : > { %v3194_v49 = vpop.f32.mrf.mxu1 }
 0x9bd   : > { %v3156_v19 = vpop.f32.mrf.mxu3 }
 0x9bf   : > { %v3177_v3 = vpop.f32.mrf.mxu0 }
 0x9c0   : > { %v3206_v52 = vpack.c.bf16 %v3177_v3, %v3175_v51  ;;  %v3196_v29 = vpop.f32.mrf.mxu1 }
 0x9c1   : > { %v9051_v7 = vpack.c.bf16 %v3196_v29, %v3194_v49 }
 0x9c2   : > { %3380 = vrot.lane.b32.xlu0 %v3206_v52, %s10389_s17  ;;  %v3217_v30 = vsel %vm689_vm13, %v3206_v52, 0 }
 0x9c5   : > { %v3158_v58 = vpop.f32.mrf.mxu3 }
 0x9c6   : > { %v3204_v57 = vpack.c.bf16 %v3158_v58, %v3156_v19 }
 0x9c8   : > { %3374 = vrot.lane.b32.xlu1 %v3204_v57, %s10389_s17 }
 0x9ca   : > { %3574 = vrot.lane.b32.xlu0 %v3206_v52, %s10390_s21 }
 0x9d2   : > { %3570 = vrot.lane.b32.xlu0 %v3204_v57, %s10390_s21 }
 0x9f7   : > { %v3180_v55 = vpop.f32.mrf.mxu0 }
 0x9f8   : > { %v3199_v44 = vpop.f32.mrf.mxu1 }
 0x9fd   : > { %v3161_v24 = vpop.f32.mrf.mxu3 }
 0x9ff   : > { %v3182_v4 = vpop.f32.mrf.mxu0 }
 0xa00   : > { %v3207_v50 = vpack.c.bf16 %v3182_v4, %v3180_v55  ;;  %v3201_v0 = vpop.f32.mrf.mxu1 }
 0xa01   : > { %v9046_v43 = vpack.c.bf16 %v3201_v0, %v3199_v44 }
 0xa02   : > { %3382 = vrot.lane.b32.xlu2 %v3207_v50, %s10389_s17  ;;  %v3220_v36 = vsel %vm689_vm13, %v3207_v50, 0 }
 0xa03   : > { %3355 = vmatpush.bf16.msra.mxu3 %v9046_v43  ;;  %3228 = vmatpush.bf16.xpose.msrb.mxu2 %v3220_v36 }
 0xa05   : > { %v3163_v56 = vpop.f32.mrf.mxu3 }
 0xa06   : > { %v3205_v26 = vpack.c.bf16 %v3163_v56, %v3161_v24 }
 0xa07   : > { %3356 = vmatpush.bf16.msra.mxu3 %v9051_v7 }
 0xa08   : > { %3572 = vrot.lane.b32.xlu0 %v3205_v26, %s10390_s21  ;;  %3376 = vrot.lane.b32.xlu1 %v3205_v26, %s10389_s17 }
 0xa0a   : > { %3576 = vrot.lane.b32.xlu2 %v3207_v50, %s10390_s21 }
 0xa0b   : > { %3229 = vmatpush.bf16.xpose.msrb.mxu2 %v3217_v30 }
 0xa10   : > { %3521 = vrot.lane.b32.xlu0 %v9046_v43, %s10389_s17  ;;  %3766 = vrot.lane.b32.xlu1 %v3206_v52, %s10391_s22 }
 0xa12   : > { %3768 = vrot.lane.b32.xlu2 %v3207_v50, %s10391_s22  ;;  %6076 = vmatmul.msk.bf16.vlgmr.msrb.gmra.mxu2 %vm689_vm13, %v3204_v57 }
 0xa18   : > { %3764 = vrot.lane.b32.xlu1 %v3205_v26, %s10391_s22 }
 0xa1a   : > { %3762 = vrot.lane.b32.xlu2 %v3204_v57, %s10391_s22 }
 0xa20   : > { %3519 = vrot.lane.b32.xlu1 %v9051_v7, %s10389_s17 }
 0xa22   : > { %3713 = vrot.lane.b32.xlu2 %v9046_v43, %s10390_s21  ;;  %6077 = vmatmul.msk.bf16.gmra.mxu2 %vm689_vm13, %v3205_v26 }
 0xa34   : > { %v3381_v32 = vpop.permute.xlu0 %3380 }
 0xa35   : > { %v3391_v12 = vsel %vm689_vm13, %v3381_v32, 0 }
 0xa3a   : > { %v3375_v42 = vpop.permute.xlu1 %3374 }
 0xa3c   : > { %v3575_v22 = vpop.permute.xlu0 %3574 }
 0xa3d   : > { %v3585_v23 = vsel %vm689_vm13, %v3575_v22, 0 }
 0xa44   : > { %v3571_v6 = vpop.permute.xlu0 %3570 }
 0xa5c   : > { %v3383_v53 = vpop.permute.xlu2 %3382 }
 0xa5d   : > { %v3394_v39 = vsel %vm689_vm13, %v3383_v53, 0 }
 0xa5e   : > { %3402 = vmatpush.bf16.xpose.msra.mxu0 %v3394_v39 }
 0xa64   : > { %v3577_v59 = vpop.permute.xlu2 %3576 }
 0xa65   : > { %v3588_v41 = vsel %vm689_vm13, %v3577_v59, 0 }
 0xa66   : > { %3403 = vmatpush.bf16.xpose.msra.mxu0 %v3391_v12  ;;  %3596 = vmatpush.bf16.xpose.msra.mxu2 %v3588_v41 }
 0xa6c   : > { %v3769_v35 = vpop.permute.xlu2 %3768 }
 0xa6d   : > { %v3780_v21 = vsel %vm689_vm13, %v3769_v35, 0  ;;  %6080 = vmatmul.msk.bf16.vlgmr.msra.gmra.mxu0 %vm689_vm13, %v3375_v42 }
 0xa6e   : > { %3597 = vmatpush.bf16.xpose.msra.mxu2 %v3585_v23  ;;  %3788 = vmatpush.bf16.xpose.msrb.mxu0 %v3780_v21 }
 0xa74   : > { %v3763_v31 = vpop.permute.xlu2 %3762 }
 0xa75   : > { %6084 = vmatmul.msk.bf16.vlgmr.msra.gmra.mxu2 %vm689_vm13, %v3571_v6 }
 0xa7a   : > { %v3573_v9 = vpop.permute.xlu0 %3572  ;;  %v3377_v2 = vpop.permute.xlu1 %3376 }
 0xa7c   : > { %v3714_v61 = vpop.permute.xlu2 %3713 }
 0xa7d   : > { %6081 = vmatmul.msk.bf16.gmra.mxu0 %vm689_vm13, %v3377_v2  ;;  %3729 = vmatpush.bf16.msrb.mxu3 %v3714_v61 }
 0xa82   : > { %v3522_v27 = vpop.permute.xlu0 %3521  ;;  %v3767_v11 = vpop.permute.xlu1 %3766 }
 0xa83   : > { %v3777_v10 = vsel %vm689_vm13, %v3767_v11, 0  ;;  %3537 = vmatpush.bf16.msra.mxu1 %v3522_v27 }
 0xa84   : > { %3789 = vmatpush.bf16.xpose.msrb.mxu0 %v3777_v10 }
 0xa85   : > { %6085 = vmatmul.msk.bf16.gmra.mxu2 %vm689_vm13, %v3573_v9 }
 0xa8a   : > { %v3765_v62 = vpop.permute.xlu1 %3764 }
 0xa8d   : > { %6088 = vmatmul.msk.bf16.vlgmr.msrb.gmra.mxu0 %vm689_vm13, %v3763_v31 }
 0xa92   : > { %v3520_v40 = vpop.permute.xlu1 %3519 }
 0xa93   : > { %3538 = vmatpush.bf16.msra.mxu1 %v3520_v40 }
 0xa95   : > { %v3231_v16 = vpop.f32.mrf.mxu2 }
 0xa96   : > { %v3241_v25 = vmul.f32 0.17677669, %v3231_v16 }
 0xa98   : > { %v3245_v48 = vsel %vm689_vm13, %v3241_v25, -inf }
 0xa99   : > { %3246 = vmax.xlane.f32.xlu2 %v3245_v48 }
 0xa9d   : > { %v3233_v54 = vpop.f32.mrf.mxu2  ;;  %6089 = vmatmul.msk.bf16.gmra.mxu0 %vm689_vm13, %v3765_v62 }
 0xa9e   : > { %v3242_v37 = vmul.f32 0.17677669, %v3233_v54 }
 0xaa0   : > { %v3248_v47 = vsel %vm689_vm13, %v3242_v37, -inf }
 0xaa1   : > { %3249 = vmax.xlane.f32.xlu0 %v3248_v47 }
 0xaa5   : > { %v3236_v33 = vpop.f32.mrf.mxu2 }
 0xaa6   : > { %v3243_v63 = vmul.f32 0.17677669, %v3236_v33 }
 0xaa8   : > { %v3251_v38 = vsel %vm689_vm13, %v3243_v63, -inf }
 0xaa9   : > { %3252 = vmax.xlane.f32.xlu0 %v3251_v38 }
 0xaad   : > { %v3238_v1 = vpop.f32.mrf.mxu2 }
 0xaae   : > { %v9085_v45 = vmul.f32 0.17677669, %v3238_v1 }
 0xab0   : > { %v3254_v34 = vsel %vm689_vm13, %v9085_v45, -inf }
 0xab1   : > { %3255 = vmax.xlane.f32.xlu1 %v3254_v34 }
 0xaea   : > { %v3405_v14 = vpop.f32.mrf.mxu0 }
 0xaeb   : > { %v9089_v17 = vmul.f32 0.17677669, %v3405_v14 }
 0xaed   : > { %v3419_v28 = vsel %vm689_vm13, %v9089_v17, -inf }
 0xaee   : > { %3420 = vmax.xlane.f32.xlu1 %v3419_v28 }
 0xaf2   : > { %v3407_v13 = vpop.f32.mrf.mxu0 }
 0xaf3   : > { %v9093_v60 = vmul.f32 0.17677669, %v3407_v13 }
 0xaf5   : > { %v3422_v15 = vsel %vm689_vm13, %v9093_v60, -inf }
 0xaf6   : > { %3423 = vmax.xlane.f32.xlu2 %v3422_v15 }
 0xaf8   : > { %v3599_v51 = vpop.f32.mrf.mxu2 }
 0xaf9   : > { %v9097_v19 = vmul.f32 0.17677669, %v3599_v51 }
 0xafa   : > { %v3410_v3 = vpop.f32.mrf.mxu0 }
 0xafb   : > { %v3613_v52 = vsel %vm689_vm13, %v9097_v19, -inf  ;;  %v9109_v24 = vmul.f32 0.17677669, %v3410_v3 }
 0xafc   : > { %3614 = vmax.xlane.f32.xlu1 %v3613_v52 }
 0xafd   : > { %v3425_v0 = vsel %vm689_vm13, %v9109_v24, -inf }
 0xb00   : > { %v3601_v58 = vpop.f32.mrf.mxu2 }
 0xb01   : > { %v9101_v57 = vmul.f32 0.17677669, %v3601_v58 }
 0xb02   : > { %v3412_v49 = vpop.f32.mrf.mxu0 }
 0xb03   : > { %v9103_v29 = vmul.f32 0.17677669, %v3412_v49  ;;  %v3616_v55 = vsel %vm689_vm13, %v9101_v57, -inf }
 0xb04   : > { %3617 = vmax.xlane.f32.xlu2 %v3616_v55 }
 0xb05   : > { %v3428_v44 = vsel %vm689_vm13, %v9103_v29, -inf }
 0xb06   : > { %3429 = vmax.xlane.f32.xlu0 %v3428_v44 }
 0xb08   : > { %v3604_v4 = vpop.f32.mrf.mxu2 }
 0xb09   : > { %v9113_v26 = vmul.f32 0.17677669, %v3604_v4 }
 0xb0a   : > { %v3791_v50 = vpop.f32.mrf.mxu0 }
 0xb0b   : > { %v3619_v59 = vsel %vm689_vm13, %v9113_v26, -inf  ;;  %v9123_v35 = vmul.f32 0.17677669, %v3791_v50 }
 0xb0c   : > { %v3247_v36 = vpop.xlane.xlu2 %3246  ;;  %3426 = vmax.xlane.f32.xlu2 %v3425_v0 }
 0xb0d   : > { %v3257_v56 = vsub.f32 %v3241_v25, %v3247_v36  ;;  %v3805_v6 = vsel %vm689_vm13, %v9123_v35, -inf }
 0xb0f   : > { %v3261_v30 = vmul.f32 1.442695, %v3257_v56 }
 0xb10   : > { %v3606_v53 = vpop.f32.mrf.mxu2 }
 0xb11   : > { %6892 = vpow2.f32 %v3261_v30  ;;  %v9115_v39 = vmul.f32 0.17677669, %v3606_v53 }
 0xb12   : > { %v3793_v32 = vpop.f32.mrf.mxu0 }
 0xb13   : > { %v3622_v12 = vsel %vm689_vm13, %v9115_v39, -inf }
 0xb14   : > { %v3250_v41 = vpop.xlane.xlu0 %3249  ;;  %3620 = vmax.xlane.f32.xlu2 %v3619_v59  ;;  %3623 = vmax.xlane.f32.xlu0 %v3622_v12 }
 0xb15   : > { %v3258_v22 = vsub.f32 %v3242_v37, %v3250_v41  ;;  %v9142_v37 = vmul.f32 0.17677669, %v3793_v32 }
 0xb17   : > { %v9121_v42 = vpop.eup %6892  ;;  %v3263_v23 = vmul.f32 1.442695, %v3258_v22  ;;  %v3808_v33 = vsel %vm689_vm13, %v9142_v37, -inf }
 0xb18   : > { %v3269_v21 = vsel %vm689_vm13, %v9121_v42, 0.0 }
 0xb19   : > { %6894 = vpow2.f32 %v3263_v23  ;;  %3270 = vadd.xlane.f32.xlu1 %v3269_v21 }
 0xb1a   : > { %v3796_v31 = vpop.f32.mrf.mxu0 }
 0xb1b   : > { %v9131_v27 = vmul.f32 0.17677669, %v3796_v31 }
 0xb1c   : > { %v3253_v9 = vpop.xlane.xlu0 %3252  ;;  %3806 = vmax.xlane.f32.xlu0 %v3805_v6 }
 0xb1d   : > { %v3259_v2 = vsub.f32 %v3243_v63, %v3253_v9  ;;  %v3811_v62 = vsel %vm689_vm13, %v9131_v27, -inf }
 0xb1f   : > { %v9129_v61 = vpop.eup %6894  ;;  %v3265_v11 = vmul.f32 1.442695, %v3259_v2 }
 0xb20   : > { %v3272_v10 = vsel %vm689_vm13, %v9129_v61, 0.0 }
 0xb21   : > { %6896 = vpow2.f32 %v3265_v11  ;;  %3273 = vadd.xlane.f32.xlu2 %v3272_v10 }
 0xb22   : > { %v3798_v38 = vpop.f32.mrf.mxu0 }
 0xb23   : > { %v9150_v1 = vmul.f32 0.17677669, %v3798_v38 }
 0xb24   : > { %3812 = vmax.xlane.f32.xlu0 %v3811_v62  ;;  %v3256_v40 = vpop.xlane.xlu1 %3255 }
 0xb25   : > { %v3260_v16 = vsub.f32 %v9085_v45, %v3256_v40  ;;  %v3814_v45 = vsel %vm689_vm13, %v9150_v1, -inf }
 0xb27   : > { %v9138_v25 = vpop.eup %6896  ;;  %v3267_v48 = vmul.f32 1.442695, %v3260_v16 }
 0xb28   : > { %v3275_v54 = vsel %vm689_vm13, %v9138_v25, 0.0 }
 0xb29   : > { %6898 = vpow2.f32 %v3267_v48  ;;  %3276 = vadd.xlane.f32.xlu1 %v3275_v54 }
 0xb2f   : > { %v9144_v47 = vpop.eup %6898 }
 0xb30   : > { %v3278_v63 = vsel %vm689_vm13, %v9144_v47, 0.0 }
 0xb31   : > { %3809 = vmax.xlane.f32.xlu1 %v3808_v33  ;;  %3279 = vadd.xlane.f32.xlu2 %v3278_v63 }
 0xb39   : > { %3815 = vmax.xlane.f32.xlu1 %v3814_v45 }
 0xb61   : > { %v3421_v34 = vpop.xlane.xlu1 %3420 }
 0xb62   : > { %v3431_v14 = vsub.f32 %v9089_v17, %v3421_v34 }
 0xb64   : > { %v3435_v28 = vmul.f32 1.442695, %v3431_v14 }
 0xb66   : > { %6900 = vpow2.f32 %v3435_v28 }
 0xb69   : > { %v3424_v13 = vpop.xlane.xlu2 %3423 }
 0xb6a   : > { %v3432_v15 = vsub.f32 %v9093_v60, %v3424_v13 }
 0xb6c   : > { %v9156_v51 = vpop.eup %6900  ;;  %v3437_v3 = vmul.f32 1.442695, %v3432_v15 }
 0xb6d   : > { %v3443_v52 = vsel %vm689_vm13, %v9156_v51, 0.0 }
 0xb6e   : > { %6902 = vpow2.f32 %v3437_v3  ;;  %3444 = vadd.xlane.f32.xlu2 %v3443_v52 }
 0xb6f   : > { %v3615_v58 = vpop.xlane.xlu1 %3614 }
 0xb70   : > { %v3625_v49 = vsub.f32 %v9097_v19, %v3615_v58 }
 0xb72   : > { %v3629_v55 = vmul.f32 1.442695, %v3625_v49 }
 0xb74   : > { %v9161_v44 = vpop.eup %6902  ;;  %6904 = vpow2.f32 %v3629_v55 }
 0xb75   : > { %v3446_v17 = vsel %vm689_vm13, %v9161_v44, 0.0 }
 0xb76   : > { %3447 = vadd.xlane.f32.xlu0 %v3446_v17 }
 0xb77   : > { %v3618_v60 = vpop.xlane.xlu2 %3617 }
 0xb78   : > { %v3626_v4 = vsub.f32 %v9101_v57, %v3618_v60 }
 0xb79   : > { %v3430_v50 = vpop.xlane.xlu0 %3429 }
 0xb7a   : > { %v9166_v0 = vpop.eup %6904  ;;  %v3631_v36 = vmul.f32 1.442695, %v3626_v4  ;;  %v3434_v56 = vsub.f32 %v9103_v29, %v3430_v50 }
 0xb7b   : > { %v3637_v19 = vsel %vm689_vm13, %v9166_v0, 0.0 }
 0xb7c   : > { %6906 = vpow2.f32 %v3631_v36  ;;  %v3441_v30 = vmul.f32 1.442695, %v3434_v56  ;;  %3638 = vadd.xlane.f32.xlu2 %v3637_v19 }
 0xb7e   : > { %6908 = vpow2.f32 %v3441_v30 }
 0xb7f   : > { %v3427_v53 = vpop.xlane.xlu2 %3426 }
 0xb80   : > { %v3433_v32 = vsub.f32 %v9109_v24, %v3427_v53 }
 0xb82   : > { %v9172_v59 = vpop.eup %6906  ;;  %v3439_v12 = vmul.f32 1.442695, %v3433_v32 }
 0xb83   : > { %v3640_v57 = vsel %vm689_vm13, %v9172_v59, 0.0 }
 0xb84   : > { %v9176_v41 = vpop.eup %6908  ;;  %6910 = vpow2.f32 %v3439_v12  ;;  %3641 = vadd.xlane.f32.xlu0 %v3640_v57 }
 0xb85   : > { %v3452_v29 = vsel %vm689_vm13, %v9176_v41, 0.0 }
 0xb86   : > { %3453 = vadd.xlane.f32.xlu2 %v3452_v29 }
 0xb87   : > { %v3621_v22 = vpop.xlane.xlu2 %3620  ;;  %v3624_v23 = vpop.xlane.xlu0 %3623 }
 0xb88   : > { %v3627_v21 = vsub.f32 %v9113_v26, %v3621_v22  ;;  %v3628_v24 = vsub.f32 %v9115_v39, %v3624_v23 }
 0xb8a   : > { %v9182_v6 = vpop.eup %6910  ;;  %v3633_v31 = vmul.f32 1.442695, %v3627_v21  ;;  %v3635_v9 = vmul.f32 1.442695, %v3628_v24 }
 0xb8b   : > { %v3449_v2 = vsel %vm689_vm13, %v9182_v6, 0.0 }
 0xb8c   : > { %6912 = vpow2.f32 %v3633_v31  ;;  %3450 = vadd.xlane.f32.xlu1 %v3449_v2  ;;  %v3271_v11 = vpop.xlane.xlu1 %3270 }
 0xb8d   : > { %6914 = vpow2.f32 %v3635_v9  ;;  %v3292_v3 = vand.u32 2147483648, %v3271_v11  ;;  %vm3286_vm14 = vweird.f32 %v3271_v11  ;;  %v3290_v52 = vand.u32 2147483647, %v3271_v11 }
 0xb8e   : > { %6916 = vrcp.f32 %v3271_v11 }
 0xb8f   : > { %v3807_v10 = vpop.xlane.xlu0 %3806  ;;  %v3293_v4 = vor.u32 1.1754944e-38, %v3292_v3  ;;  %vm3291_vm7 = vcmp.eq.f32.partialorder %v3290_v52, 8.507059e+37 }
 0xb90   : > { %v3817_v62 = vsub.f32 %v9123_v35, %v3807_v10 }
 0xb92   : > { %v9187_v40 = vpop.eup %6912  ;;  %v3821_v26 = vmul.f32 1.442695, %v3817_v62 }
 0xb93   : > { %v9189_v16 = vpop.eup %6914  ;;  %v3643_v39 = vsel %vm689_vm13, %v9187_v40, 0.0 }
 0xb94   : > { %v6917_v48 = vpop.eup %6916  ;;  %6918 = vpow2.f32 %v3821_v26  ;;  %v3274_v54 = vpop.xlane.xlu2 %3273  ;;  %v3646_v33 = vsel %vm689_vm13, %v9189_v16, 0.0  ;;  %3644 = vadd.xlane.f32.xlu1 %v3643_v39 }
 0xb95   : > { %v3282_v63 = vmul.f32 %v6917_v48, %v3271_v11  ;;  %6920 = vrcp.f32 %v3274_v54  ;;  %3647 = vadd.xlane.f32.xlu0 %v3646_v33  ;;  %vm3287_vm11 = vweird.f32 %v6917_v48  ;;  %v3307_v49 = vand.u32 2147483648, %v3274_v54 }
 0xb96   : > { %vm3288_vm0 = vmor %vm3286_vm14, %vm3287_vm11  ;;  %v3305_v60 = vand.u32 2147483647, %v3274_v54  ;;  %vm3301_vm8 = vweird.f32 %v3274_v54 }
 0xb97   : > { %v3283_v38 = vsub.f32 1.0, %v3282_v63  ;;  %v3308_v19 = vor.u32 1.1754944e-38, %v3307_v49 }
 0xb98   : > { %vm3306_vm6 = vcmp.eq.f32.partialorder %v3305_v60, 8.507059e+37 }
 0xb99   : > { %v3284_v35 = vmul.f32 %v6917_v48, %v3283_v38 }
 0xb9a   : > { %v9195_v45 = vpop.eup %6918 }
 0xb9b   : > { %v6921_v34 = vpop.eup %6920  ;;  %v3829_v14 = vsel %vm689_vm13, %v9195_v45, 0.0  ;;  %v3285_v28 = vadd.f32 %v6917_v48, %v3284_v35 }
 0xb9c   : > { %v3297_v13 = vmul.f32 %v6921_v34, %v3274_v54  ;;  %3830 = vadd.xlane.f32.xlu2 %v3829_v14  ;;  %v3277_v15 = vpop.xlane.xlu1 %3276  ;;  %vm3302_vm5 = vweird.f32 %v6921_v34 }
 0xb9d   : > { %6922 = vrcp.f32 %v3277_v15  ;;  %v3289_v55 = vsel %vm3288_vm0, %v6917_v48, %v3285_v28  ;;  %vm3303_vm1 = vmor %vm3301_vm8, %vm3302_vm5  ;;  %vm3316_vm10 = vweird.f32 %v3277_v15  ;;  %v3320_v26 = vand.u32 2147483647, %v3277_v15 }
 0xb9e   : > { %v3298_v58 = vsub.f32 1.0, %v3297_v13  ;;  %v3294_v56 = vsel %vm3291_vm7, %v3293_v4, %v3289_v55 }
 0xb9f   : > { %v3295_v29 = vmul.f32 %v9121_v42, %v3294_v56  ;;  %v3322_v42 = vand.u32 2147483648, %v3277_v15  ;;  %vm3321_vm11 = vcmp.eq.f32.partialorder %v3320_v26, 8.507059e+37 }
 0xba0   : > { %v3299_v17 = vmul.f32 %v6921_v34, %v3298_v58 }
 0xba1   : > { %v3323_v35 = vor.u32 1.1754944e-38, %v3322_v42 }
 0xba2   : > { %v3300_v50 = vadd.f32 %v6921_v34, %v3299_v17  ;;  %v3813_v17 = vpop.xlane.xlu0 %3812 }
 0xba3   : > { %v6923_v36 = vpop.eup %6922 }
 0xba4   : > { %v3304_v30 = vsel %vm3303_vm1, %v6921_v34, %v3300_v50  ;;  %v3312_v53 = vmul.f32 %v6923_v36, %v3277_v15  ;;  %v3280_v32 = vpop.xlane.xlu2 %3279  ;;  %v3810_v12 = vpop.xlane.xlu1 %3809  ;;  %vm3317_vm9 = vweird.f32 %v6923_v36 }
 0xba5   : > { %v3309_v57 = vsel %vm3306_vm6, %v3308_v19, %v3304_v30  ;;  %6924 = vrcp.f32 %v3280_v32  ;;  %v3818_v21 = vsub.f32 %v9142_v37, %v3810_v12  ;;  %vm9206_vm12 = vmor %vm3316_vm10, %vm3317_vm9  ;;  %v3337_v48 = vand.u32 2147483648, %v3280_v32 }
 0xba6   : > { %v3310_v22 = vmul.f32 %v9129_v61, %v3309_v57  ;;  %v3313_v23 = vsub.f32 1.0, %v3312_v53  ;;  %v3335_v38 = vand.u32 2147483647, %v3280_v32  ;;  %vm3331_vm14 = vweird.f32 %v3280_v32 }
 0xba7   : > { %v3823_v9 = vmul.f32 1.442695, %v3818_v21  ;;  %v3338_v14 = vor.u32 1.1754944e-38, %v3337_v48 }
 0xba8   : > { %v3341_v24 = vpack.c.bf16 %v3310_v22, %v3295_v29  ;;  %v3314_v31 = vmul.f32 %v6923_v36, %v3313_v23  ;;  %vm3336_vm5 = vcmp.eq.f32.partialorder %v3335_v38, 8.507059e+37 }
 0xba9   : > { %3905 = vrot.lane.b32.xlu0 %v9046_v43, %s10391_s22  ;;  %6926 = vpow2.f32 %v3823_v9 }
 0xbaa   : > { %6078 = vmatmul.msk.bf16.vlgmr.msra.gmra.mxu3 %vm689_vm13, %v3341_v24  ;;  %v3315_v11 = vadd.f32 %v6923_v36, %v3314_v31 }
 0xbab   : > { %v6925_v2 = vpop.eup %6924 }
 0xbac   : > { %v3327_v10 = vmul.f32 %v6925_v2, %v3280_v32  ;;  %v3816_v62 = vpop.xlane.xlu1 %3815  ;;  %v3319_v33 = vsel %vm9206_vm12, %v6923_v36, %v3315_v11  ;;  %vm3332_vm15 = vweird.f32 %v6925_v2 }
 0xbad   : > { %v3820_v61 = vsub.f32 %v9150_v1, %v3816_v62  ;;  %vm3333_vm0 = vmor %vm3331_vm14, %vm3332_vm15  ;;  %v3324_v28 = vsel %vm3321_vm11, %v3323_v35, %v3319_v33 }
 0xbae   : > { %v3328_v37 = vsub.f32 1.0, %v3327_v10  ;;  %v3325_v3 = vmul.f32 %v9138_v25, %v3324_v28  ;;  %v3819_v25 = vsub.f32 %v9131_v27, %v3813_v17 }
 0xbaf   : > { %v3827_v43 = vmul.f32 1.442695, %v3820_v61  ;;  %v9210_v54 = vpop.eup %6926 }
 0xbb0   : > { %v3329_v63 = vmul.f32 %v6925_v2, %v3328_v37  ;;  %v3832_v1 = vsel %vm689_vm13, %v9210_v54, 0.0 }
 0xbb1   : > { %6928 = vpow2.f32 %v3827_v43  ;;  %3833 = vadd.xlane.f32.xlu2 %v3832_v1 }
 0xbb2   : > { %v3330_v34 = vadd.f32 %v6925_v2, %v3329_v63 }
 0xbb4   : > { %v3334_v13 = vsel %vm3333_vm0, %v6925_v2, %v3330_v34 }
 0xbb5   : > { %v3339_v15 = vsel %vm3336_vm5, %v3338_v14, %v3334_v13 }
 0xbb6   : > { %v3340_v52 = vmul.f32 %v9144_v47, %v3339_v15  ;;  %v3825_v47 = vmul.f32 1.442695, %v3819_v25 }
 0xbb7   : > { %v9218_v58 = vpop.eup %6928 }
 0xbb8   : > { %v3838_v49 = vsel %vm689_vm13, %v9218_v58, 0.0  ;;  %v3342_v55 = vpack.c.bf16 %v3340_v52, %v3325_v3 }
 0xbb9   : > { %3839 = vadd.xlane.f32.xlu1 %v3838_v49 }
 0xbba   : > { %6079 = vmatmul.msk.bf16.gmra.mxu3 %vm689_vm13, %v3342_v55 }
 0xbc9   : > { %3711 = vrot.lane.b32.xlu2 %v9051_v7, %s10390_s21 }
 0xbd2   : > { %3903 = vrot.lane.b32.xlu1 %v9051_v7, %s10391_s22 }
 0xbe1   : > { %v3445_v60 = vpop.xlane.xlu2 %3444 }
 0xbe2   : > { %6930 = vrcp.f32 %v3445_v60  ;;  %v3466_v57 = vand.u32 2147483648, %v3445_v60  ;;  %vm3460_vm8 = vweird.f32 %v3445_v60  ;;  %v3464_v29 = vand.u32 2147483647, %v3445_v60 }
 0xbe3   : > { %6932 = vpow2.f32 %v3825_v47 }
 0xbe4   : > { %v3467_v9 = vor.u32 1.1754944e-38, %v3466_v57  ;;  %vm3465_vm9 = vcmp.eq.f32.partialorder %v3464_v29, 8.507059e+37 }
 0xbe8   : > { %v6931_v4 = vpop.eup %6930 }
 0xbe9   : > { %v3456_v50 = vmul.f32 %v6931_v4, %v3445_v60  ;;  %v3448_v36 = vpop.xlane.xlu0 %3447  ;;  %v9228_v30 = vpop.eup %6932  ;;  %vm3461_vm7 = vweird.f32 %v6931_v4 }
 0xbea   : > { %6934 = vrcp.f32 %v3448_v36  ;;  %v3835_v27 = vsel %vm689_vm13, %v9228_v30, 0.0  ;;  %vm3462_vm1 = vmor %vm3460_vm8, %vm3461_vm7  ;;  %v3481_v23 = vand.u32 2147483648, %v3448_v36  ;;  %v3479_v31 = vand.u32 2147483647, %v3448_v36 }
 0xbeb   : > { %v3457_v56 = vsub.f32 1.0, %v3456_v50  ;;  %vm3475_vm10 = vweird.f32 %v3448_v36 }
 0xbec   : > { %v3482_v10 = vor.u32 1.1754944e-38, %v3481_v23  ;;  %vm3480_vm15 = vcmp.eq.f32.partialorder %v3479_v31, 8.507059e+37 }
 0xbed   : > { %v3458_v19 = vmul.f32 %v6931_v4, %v3457_v56 }
 0xbef   : > { %v3459_v32 = vadd.f32 %v6931_v4, %v3458_v19  ;;  %v9230_v7 = vpop.xlane.xlu2 %3638 }
 0xbf0   : > { %v6935_v53 = vpop.eup %6934 }
 0xbf1   : > { %v3471_v12 = vmul.f32 %v6935_v53, %v3448_v36  ;;  %v3463_v21 = vsel %vm3462_vm1, %v6931_v4, %v3459_v32  ;;  %vm3476_vm6 = vweird.f32 %v6935_v53 }
 0xbf2   : > { %3836 = vadd.xlane.f32.xlu2 %v3835_v27  ;;  %v3468_v11 = vsel %vm3465_vm9, %v3467_v9, %v3463_v21  ;;  %vm3477_vm12 = vmor %vm3475_vm10, %vm3476_vm6 }
 0xbf3   : > { %v3472_v22 = vsub.f32 1.0, %v3471_v12  ;;  %v3469_v26 = vmul.f32 %v9156_v51, %v3468_v11 }
 0xbf5   : > { %v3473_v24 = vmul.f32 %v6935_v53, %v3472_v22 }
 0xbf7   : > { %v3474_v2 = vadd.f32 %v6935_v53, %v3473_v24  ;;  %v9237_v14 = vpop.xlane.xlu0 %3641 }
 0xbf9   : > { %v3478_v62 = vsel %vm3477_vm12, %v6935_v53, %v3474_v2  ;;  %v3454_v42 = vpop.xlane.xlu2 %3453  ;;  %v3675_v2 = vand.u32 2147483648, %v9237_v14  ;;  %vm3669_vm12 = vweird.f32 %v9237_v14 }
 0xbfa   : > { %v3483_v61 = vsel %vm3480_vm15, %v3482_v10, %v3478_v62  ;;  %6936 = vrcp.f32 %v3454_v42  ;;  %v3511_v28 = vand.u32 2147483648, %v3454_v42  ;;  %vm3505_vm14 = vweird.f32 %v3454_v42 }
 0xbfb   : > { %v3484_v37 = vmul.f32 %v9161_v44, %v3483_v61  ;;  %v3509_v51 = vand.u32 2147483647, %v3454_v42  ;;  %v3673_v10 = vand.u32 2147483647, %v9237_v14  ;;  %vm3654_vm15 = vweird.f32 %v9230_v7 }
 0xbfc   : > { %v3512_v55 = vor.u32 1.1754944e-38, %v3511_v28  ;;  %v3658_v62 = vand.u32 2147483647, %v9230_v7 }
 0xbfd   : > { %v3515_v39 = vpack.c.bf16 %v3484_v37, %v3469_v26  ;;  %vm3510_vm8 = vcmp.eq.f32.partialorder %v3509_v51, 8.507059e+37 }
 0xbff   : > { %6082 = vmatmul.msk.bf16.vlgmr.msra.gmra.mxu1 %vm689_vm13, %v3515_v39  ;;  %v3451_v48 = vpop.xlane.xlu1 %3450 }
 0xc00   : > { %v6937_v43 = vpop.eup %6936  ;;  %6938 = vrcp.f32 %v3451_v48  ;;  %v3496_v3 = vand.u32 2147483648, %v3451_v48  ;;  %v3494_v49 = vand.u32 2147483647, %v3451_v48  ;;  %vm3490_vm7 = vweird.f32 %v3451_v48 }
 0xc01   : > { %v3501_v33 = vmul.f32 %v6937_v43, %v3454_v42  ;;  %vm3506_vm11 = vweird.f32 %v6937_v43  ;;  %6940 = vrcp.f32 %v9237_v14  ;;  %v3660_v42 = vand.u32 2147483648, %v9230_v7 }
 0xc02   : > { %vm9239_vm0 = vmor %vm3505_vm14, %vm3506_vm11  ;;  %6942 = vrcp.f32 %v9230_v7  ;;  %v3497_v60 = vor.u32 1.1754944e-38, %v3496_v3  ;;  %vm3495_vm6 = vcmp.eq.f32.partialorder %v3494_v49, 8.507059e+37 }
 0xc03   : > { %v3502_v63 = vsub.f32 1.0, %v3501_v33  ;;  %v3661_v33 = vor.u32 1.1754944e-38, %v3660_v42 }
 0xc05   : > { %v3503_v38 = vmul.f32 %v6937_v43, %v3502_v63 }
 0xc06   : > { %v6939_v35 = vpop.eup %6938 }
 0xc07   : > { %v3486_v1 = vmul.f32 %v6939_v35, %v3451_v48  ;;  %v3504_v34 = vadd.f32 %v6937_v43, %v3503_v38  ;;  %vm3491_vm5 = vweird.f32 %v6939_v35  ;;  %v6941_v50 = vpop.eup %6940  ;;  %v9254_v27 = vpop.xlane.xlu1 %3644  ;;  %v3676_v48 = vor.u32 1.1754944e-38, %v3675_v2 }
 0xc08   : > { %vm3492_vm1 = vmor %vm3490_vm7, %vm3491_vm5  ;;  %v9249_v19 = vpop.xlane.xlu0 %3647  ;;  %v6943_v53 = vpop.eup %6942  ;;  %v3665_v12 = vmul.f32 %v6941_v50, %v9237_v14  ;;  %6944 = vrcp.f32 %v9254_v27  ;;  %vm3670_vm9 = vweird.f32 %v6941_v50  ;;  %vm3659_vm5 = vcmp.eq.f32.partialorder %v3658_v62, 8.507059e+37 }
 0xc09   : > { %v3487_v13 = vsub.f32 1.0, %v3486_v1  ;;  %v3508_v52 = vsel %vm9239_vm0, %v6937_v43, %v3504_v34  ;;  %v3650_v57 = vmul.f32 %v6943_v53, %v9230_v7  ;;  %6946 = vrcp.f32 %v9249_v19  ;;  %vm3671_vm11 = vmor %vm3669_vm12, %vm3670_vm9 }
 0xc0a   : > { %v3513_v47 = vsel %vm3510_vm8, %v3512_v55, %v3508_v52  ;;  %v3666_v29 = vsub.f32 1.0, %v3665_v12  ;;  %vm3655_vm10 = vweird.f32 %v6943_v53  ;;  %vm3674_vm0 = vcmp.eq.f32.partialorder %v3673_v10, 8.507059e+37 }
 0xc0b   : > { %v3488_v15 = vmul.f32 %v6939_v35, %v3487_v13  ;;  %v3514_v56 = vmul.f32 %v9176_v41, %v3513_v47  ;;  %v3651_v22 = vsub.f32 1.0, %v3650_v57  ;;  %vm3656_vm14 = vmor %vm3654_vm15, %vm3655_vm10  ;;  %v3703_v47 = vand.u32 2147483647, %v9249_v19 }
 0xc0c   : > { %v3667_v41 = vmul.f32 %v6941_v50, %v3666_v29 }
 0xc0d   : > { %v3489_v17 = vadd.f32 %v6939_v35, %v3488_v15  ;;  %v3652_v21 = vmul.f32 %v6943_v53, %v3651_v22  ;;  %vm3704_vm12 = vcmp.eq.f32.partialorder %v3703_v47, 8.507059e+37 }
 0xc0e   : > { %v9260_v24 = vpop.eup %6944  ;;  %v3668_v31 = vadd.f32 %v6941_v50, %v3667_v41 }
 0xc0f   : > { %v3493_v25 = vsel %vm3492_vm1, %v6939_v35, %v3489_v17  ;;  %v9262_v9 = vpop.eup %6946  ;;  %v3653_v11 = vadd.f32 %v6943_v53, %v3652_v21  ;;  %v3680_v37 = vmul.f32 %v9260_v24, %v9254_v27  ;;  %vm3685_vm7 = vweird.f32 %v9260_v24 }
 0xc10   : > { %v3498_v4 = vsel %vm3495_vm6, %v3497_v60, %v3493_v25  ;;  %v3672_v61 = vsel %vm3671_vm11, %v6941_v50, %v3668_v31  ;;  %v3695_v26 = vmul.f32 %v9262_v9, %v9249_v19  ;;  %vm3700_vm8 = vweird.f32 %v9262_v9 }
 0xc11   : > { %v3499_v36 = vmul.f32 %v9182_v6, %v3498_v4  ;;  %v9258_v6 = vpop.xlane.xlu2 %3830  ;;  %v3657_v43 = vsel %vm3656_vm14, %v6943_v53, %v3653_v11  ;;  %v3677_v7 = vsel %vm3674_vm0, %v3676_v48, %v3672_v61  ;;  %v3681_v38 = vsub.f32 1.0, %v3680_v37 }
 0xc12   : > { %6948 = vrcp.f32 %v9258_v6  ;;  %v3696_v63 = vsub.f32 1.0, %v3695_v26  ;;  %v3662_v35 = vsel %vm3659_vm5, %v3661_v33, %v3657_v43  ;;  %v3678_v34 = vmul.f32 %v9172_v59, %v3677_v7 }
 0xc13   : > { %v3516_v32 = vpack.c.bf16 %v3514_v56, %v3499_v36  ;;  %v3663_v28 = vmul.f32 %v9166_v0, %v3662_v35  ;;  %v3682_v51 = vmul.f32 %v9260_v24, %v3681_v38  ;;  %v3705_v17 = vand.u32 2147483648, %v9249_v19 }
 0xc14   : > { %v3697_v13 = vmul.f32 %v9262_v9, %v3696_v63  ;;  %vm3684_vm1 = vweird.f32 %v9254_v27  ;;  %v3690_v25 = vand.u32 2147483648, %v9254_v27  ;;  %vm3699_vm6 = vweird.f32 %v9249_v19 }
 0xc15   : > { %6083 = vmatmul.msk.bf16.gmra.mxu1 %vm689_vm13, %v3516_v32  ;;  %v3709_v49 = vpack.c.bf16 %v3678_v34, %v3663_v28  ;;  %v3683_v55 = vadd.f32 %v9260_v24, %v3682_v51  ;;  %vm9298_vm9 = vmor %vm3684_vm1, %vm3685_vm7  ;;  %v3688_v50 = vand.u32 2147483647, %v9254_v27  ;;  %v3706_v12 = vor.u32 1.1754944e-38, %v3705_v17 }
 0xc16   : > { %v3698_v0 = vadd.f32 %v9262_v9, %v3697_v13  ;;  %vm3701_vm10 = vmor %vm3699_vm6, %vm3700_vm8  ;;  %v3691_v57 = vor.u32 1.1754944e-38, %v3690_v25  ;;  %vm3846_vm7 = vweird.f32 %v9258_v6  ;;  %v3850_v2 = vand.u32 2147483647, %v9258_v6 }
 0xc17   : > { %v3687_v53 = vsel %vm9298_vm9, %v9260_v24, %v3683_v55  ;;  %vm3689_vm15 = vcmp.eq.f32.partialorder %v3688_v50, 8.507059e+37  ;;  %v3852_v24 = vand.u32 2147483648, %v9258_v6 }
 0xc18   : > { %v9278_v1 = vpop.eup %6948  ;;  %v3702_v56 = vsel %vm3701_vm10, %v9262_v9, %v3698_v0  ;;  %v3692_v27 = vsel %vm3689_vm15, %v3691_v57, %v3687_v53  ;;  %vm3851_vm6 = vcmp.eq.f32.partialorder %v3850_v2, 8.507059e+37  ;;  %v6622_v2 = vld [vmem:[%s10347_s5 + $0x50] sm:$0xff] }
 0xc19   : > { %v3842_v52 = vmul.f32 %v9278_v1, %v9258_v6  ;;  %v3707_v22 = vsel %vm3704_vm12, %v3706_v12, %v3702_v56  ;;  %vm3847_vm14 = vweird.f32 %v9278_v1  ;;  %v3693_v31 = vmul.f32 %v9187_v40, %v3692_v27 }
 0xc1a   : > { %v3708_v9 = vmul.f32 %v9189_v16, %v3707_v22  ;;  %vm3848_vm8 = vmor %vm3846_vm7, %vm3847_vm14  ;;  %v3853_v26 = vor.u32 1.1754944e-38, %v3852_v24  ;;  %v6624_v24 = vld [vmem:[%s10347_s5 + $0x60] sm:$0xff] }
 0xc1b   : > { %v3906_v23 = vpop.permute.xlu0 %3905  ;;  %v3843_v60 = vsub.f32 1.0, %v3842_v52 }
 0xc1c   : > { %3921 = vmatpush.bf16.msrb.mxu1 %v3906_v23 }
 0xc1d   : > { %v3844_v29 = vmul.f32 %v9278_v1, %v3843_v60 }
 0xc1f   : > { %v3845_v41 = vadd.f32 %v9278_v1, %v3844_v29 }
 0xc21   : > { %v3849_v61 = vsel %vm3848_vm8, %v9278_v1, %v3845_v41  ;;  %v6626_v41 = vld [vmem:[%s10347_s5 + $0x70] sm:$0xff] }
 0xc22   : > { %v3854_v40 = vsel %vm3851_vm6, %v3853_v26, %v3849_v61 }
 0xc23   : > { %v3855_v6 = vmul.f32 %v9195_v45, %v3854_v40 }
 0xc24   : > { %v9275_v39 = vpop.xlane.xlu2 %3833 }
 0xc25   : > { %6950 = vrcp.f32 %v9275_v39  ;;  %v3867_v23 = vand.u32 2147483648, %v9275_v39  ;;  %vm3861_vm0 = vweird.f32 %v9275_v39  ;;  %v3865_v21 = vand.u32 2147483647, %v9275_v39 }
 0xc27   : > { %v3868_v62 = vor.u32 1.1754944e-38, %v3867_v23  ;;  %vm3866_vm1 = vcmp.eq.f32.partialorder %v3865_v21, 8.507059e+37  ;;  %v6627_v23 = vld [vmem:[%s10347_s5 + $0x78] sm:$0xff]  ;;  %v6625_v21 = vld [vmem:[%s10347_s5 + $0x68] sm:$0xff] }
 0xc28   : > { %4025 = vmatpush.bf16.msrb.mxu2 %v6627_v23  ;;  %v6657_v23 = vld [vmem:[%s10348_s6 + $0x1ec] sm:$0xf] }
 0xc2b   : > { %v6951_v14 = vpop.eup %6950 }
 0xc2c   : > { %v3857_v44 = vmul.f32 %v6951_v14, %v9275_v39  ;;  %v3712_v15 = vpop.permute.xlu2 %3711  ;;  %vm3862_vm11 = vweird.f32 %v6951_v14  ;;  %v3840_v10 = vpop.xlane.xlu1 %3839  ;;  %v3710_v39 = vpack.c.bf16 %v3708_v9, %v3693_v31  ;;  %4026 = vmatpush.bf16.msrb.mxu2 %v6626_v41  ;;  %v6623_v9 = vld [vmem:[%s10347_s5 + $0x58] sm:$0xff] }
 0xc2d   : > { %v3358_v3 = vpop.f32.mrf.mxu3  ;;  %3730 = vmatpush.bf16.msrb.mxu3 %v3712_v15  ;;  %vm3863_vm5 = vmor %vm3861_vm0, %vm3862_vm11  ;;  %6952 = vrcp.f32 %v3840_v10  ;;  %v3897_v45 = vand.u32 2147483648, %v3840_v10  ;;  %vm3891_vm10 = vweird.f32 %v3840_v10  ;;  %v3895_v28 = vand.u32 2147483647, %v3840_v10  ;;  %v6297_v41 = vld [vmem:[%s10348_s6 + $0x1f8] sm:$0xf0] }
 0xc2e   : > { %3368 = vst.msk [vmem:[#allocation2] sm:$0xff] %vm689_vm13, %v3358_v3  ;;  %v3858_v59 = vsub.f32 1.0, %v3857_v44 }
 0xc2f   : > { %v3898_v52 = vor.u32 1.1754944e-38, %v3897_v45  ;;  %vm3896_vm11 = vcmp.eq.f32.partialorder %v3895_v28, 8.507059e+37 }
 0xc30   : > { %6086 = vmatmul.msk.bf16.vlgmr.msrb.gmra.mxu3 %vm689_vm13, %v3709_v49  ;;  %v3859_v36 = vmul.f32 %v6951_v14, %v3858_v59  ;;  %4027 = vmatpush.bf16.msrb.mxu2 %v6625_v21  ;;  %v6300_v21 = vor.u32 %v6657_v23, %v6297_v41  ;;  %v6638_v23 = vld [vmem:[%s10348_s6 + $0x14c] sm:$0xf0]  ;;  %v6636_v41 = vld [vmem:[%s10348_s6 + $0x144] sm:$0xf] }
 0xc32   : > { %v3860_v19 = vadd.f32 %v6951_v14, %v3859_v36 }
 0xc33   : > { %v6953_v7 = vpop.eup %6952 }
 0xc34   : > { %v3864_v11 = vsel %vm3863_vm5, %v6951_v14, %v3860_v19  ;;  %v3887_v63 = vmul.f32 %v6953_v7, %v3840_v10  ;;  %vm3892_vm9 = vweird.f32 %v6953_v7  ;;  %4028 = vmatpush.bf16.msrb.mxu2 %v6624_v24  ;;  %v6620_v10 = vld [vmem:[%s10347_s5 + $0x40] sm:$0xff] }
 0xc35   : > { %v3360_v32 = vpop.f32.mrf.mxu3  ;;  %v3869_v37 = vsel %vm3866_vm1, %v3868_v62, %v3864_v11  ;;  %vm3893_vm12 = vmor %vm3891_vm10, %vm3892_vm9  ;;  %v6621_v11 = vld [vmem:[%s10347_s5 + $0x48] sm:$0xff]  ;;  %v6271_v24 = vld [vmem:[%s10348_s6 + $0x1c0] sm:$0xf] }
 0xc36   : > { %3369 = vst.msk [vmem:[#allocation2 + $0x8] sm:$0xff] %vm689_vm13, %v3360_v32  ;;  %v3870_v16 = vmul.f32 %v9210_v54, %v3869_v37  ;;  %v3888_v38 = vsub.f32 1.0, %v3887_v63 }
 0xc38   : > { %v3901_v33 = vpack.c.bf16 %v3870_v16, %v3855_v6  ;;  %v3889_v1 = vmul.f32 %v6953_v7, %v3888_v38  ;;  %4029 = vmatpush.bf16.msrb.mxu2 %v6623_v9  ;;  %v6652_v9 = vld [vmem:[%s10348_s6 + $0x1c4] sm:$0xf] }
 0xc3a   : > { %v3890_v14 = vadd.f32 %v6953_v7, %v3889_v1 }
 0xc3c   : > { %v3894_v44 = vsel %vm3893_vm12, %v6953_v7, %v3890_v14  ;;  %4030 = vmatpush.bf16.msrb.mxu2 %v6622_v2 }
 0xc3d   : > { %v3363_v42 = vpop.f32.mrf.mxu3  ;;  %v3899_v0 = vsel %vm3896_vm11, %v3898_v52, %v3894_v44 }
 0xc3e   : > { %3370 = vst.msk [vmem:[#allocation2 + $0x10] sm:$0xff] %vm689_vm13, %v3363_v42  ;;  %v3900_v60 = vmul.f32 %v9218_v58, %v3899_v0 }
 0xc40   : > { %6087 = vmatmul.msk.bf16.gmra.mxu3 %vm689_vm13, %v3710_v39  ;;  %4031 = vmatpush.bf16.msrb.mxu2 %v6621_v11  ;;  %v6273_v11 = vld [vmem:[%s10348_s6 + $0x1d0] sm:$0xf0] }
 0xc44   : > { %v3904_v48 = vpop.permute.xlu1 %3903  ;;  %4032 = vmatpush.bf16.msrb.mxu2 %v6620_v10  ;;  %v6279_v10 = vld [vmem:[%s10348_s6 + $0x1c8] sm:$0xf] }
 0xc45   : > { %v3365_v43 = vpop.f32.mrf.mxu3  ;;  %3922 = vmatpush.bf16.msrb.mxu1 %v3904_v48 }
 0xc46   : > { %3371 = vst.msk [vmem:[#allocation2 + $0x18] sm:$0xff] %vm689_vm13, %v3365_v43 }
 0xc48   : > { %6090 = vmatmul.msk.bf16.vlgmr.msrb.gmra.mxu1 %vm689_vm13, %v3901_v33  ;;  %4406 = vmatpush.bf16.msra.mxu2 %v6300_v21  ;;  %v6209_v21 = vld [vmem:[%s10348_s6 + $0x150] sm:$0xf0] }
 0xc65   : > { %v3837_v35 = vpop.xlane.xlu2 %3836 }
 0xc66   : > { %6954 = vrcp.f32 %v3837_v35  ;;  %v3882_v51 = vand.u32 2147483648, %v3837_v35  ;;  %v3880_v3 = vand.u32 2147483647, %v3837_v35  ;;  %vm3876_vm14 = vweird.f32 %v3837_v35 }
 0xc68   : > { %v3883_v59 = vor.u32 1.1754944e-38, %v3882_v51  ;;  %vm3881_vm5 = vcmp.eq.f32.partialorder %v3880_v3, 8.507059e+37 }
 0xc6c   : > { %v6955_v34 = vpop.eup %6954 }
 0xc6d   : > { %v3872_v54 = vmul.f32 %v6955_v34, %v3837_v35  ;;  %vm3877_vm15 = vweird.f32 %v6955_v34  ;;  %v9380_v35 = vld [vmem:[%s10344_s2 + $0x8] sm:$0x3f] }
 0xc6e   : > { %vm3878_vm0 = vmor %vm3876_vm14, %vm3877_vm15  ;;  %v4048_v1 = vperm.slane %v9380_v35, 4 }
 0xc6f   : > { %v3873_v13 = vsub.f32 1.0, %v3872_v54 }
 0xc71   : > { %v3874_v15 = vmul.f32 %v6955_v34, %v3873_v13 }
 0xc73   : > { %v3875_v49 = vadd.f32 %v6955_v34, %v3874_v15 }
 0xc75   : > { %v3879_v55 = vsel %vm3878_vm0, %v6955_v34, %v3875_v49 }
 0xc76   : > { %v3884_v17 = vsel %vm3881_vm5, %v3883_v59, %v3879_v55 }
 0xc77   : > { %v3885_v25 = vmul.f32 %v9228_v30, %v3884_v17 }
 0xc79   : > { %v3902_v47 = vpack.c.bf16 %v3900_v60, %v3885_v25 }
 0xc7b   : > { %6091 = vmatmul.msk.bf16.gmra.mxu1 %vm689_vm13, %v3902_v47 }
 0xc7c   : > { %v3540_v4 = vpop.f32.mrf.mxu1 }
 0xc7d   : > { %3554 = vrot.lane.b32.xlu0 %v3540_v4, %s10391_s22 }
 0xc84   : > { %v3542_v50 = vpop.f32.mrf.mxu1 }
 0xc85   : > { %3556 = vrot.lane.b32.xlu0 %v3542_v50, %s10391_s22 }
 0xc92   : > { %v3545_v36 = vpop.f32.mrf.mxu1 }
 0xc9a   : > { %v3547_v32 = vpop.f32.mrf.mxu1 }
 0xcb3   : > { %v3732_v56 = vpop.f32.mrf.mxu3 }
 0xcb4   : > { %3746 = vrot.lane.b32.xlu0 %v3732_v56, %s10390_s21 }
 0xcbb   : > { %v3734_v53 = vpop.f32.mrf.mxu3 }
 0xcbc   : > { %3748 = vrot.lane.b32.xlu2 %v3734_v53, %s10390_s21  ;;  %3558 = vrot.lane.b32.xlu0 %v3545_v36, %s10391_s22 }
 0xcc3   : > { %v3737_v30 = vpop.f32.mrf.mxu3 }
 0xcc5   : > { %v3924_v58 = vpop.f32.mrf.mxu1 }
 0xcc6   : > { %3938 = vrot.lane.b32.xlu0 %v3924_v58, %s10389_s17  ;;  %v6658_v58 = vld [vmem:[%s10348_s6 + $0x1ec] sm:$0xf0] }
 0xccb   : > { %v3739_v57 = vpop.f32.mrf.mxu3 }
 0xccd   : > { %v3926_v12 = vpop.f32.mrf.mxu1 }
 0xcce   : > { %3750 = vrot.lane.b32.xlu0 %v3737_v30, %s10390_s21  ;;  %3940 = vrot.lane.b32.xlu1 %v3926_v12, %s10389_s17  ;;  %v6656_v30 = vld [vmem:[%s10348_s6 + $0x1e4] sm:$0xf] }
 0xcd6   : > { %3560 = vrot.lane.b32.xlu1 %v3547_v32, %s10391_s22  ;;  %v6287_v32 = vld [vmem:[%s10348_s6 + $0x1e0] sm:$0xf] }
 0xcd7   : > { %v6288_v12 = vor.u32 %v6658_v58, %v6287_v32  ;;  %v6231_v32 = vld [vmem:[%s10348_s6 + $0x168] sm:$0xf]  ;;  %v6643_v58 = vld [vmem:[%s10348_s6 + $0x174] sm:$0xf0] }
 0xcd9   : > { %4349 = vmatpush.bf16.msra.mxu3 %v6288_v12  ;;  %v6232_v12 = vor.u32 %v6643_v58, %v6231_v32 }
 0xcde   : > { %3752 = vrot.lane.b32.xlu1 %v3739_v57, %s10390_s21  ;;  %v6289_v57 = vld [vmem:[%s10348_s6 + $0x1f0] sm:$0xf0] }
 0xcef   : > { %v3555_v29 = vpop.permute.xlu0 %3554 }
 0xcf0   : > { %3566 = vst.msk [vmem:[#allocation2] sm:$0xff] %vm1046_vm2, %v3555_v29  ;;  %v6295_v29 = vld [vmem:[%s10348_s6 + $0x1e8] sm:$0xf] }
 0xcf7   : > { %v3557_v19 = vpop.permute.xlu0 %3556 }
 0xcf8   : > { %3567 = vst.msk [vmem:[#allocation2 + $0x8] sm:$0xff] %vm1046_vm2, %v3557_v19  ;;  %v3929_v27 = vpop.f32.mrf.mxu1  ;;  %v6659_v19 = vld [vmem:[%s10348_s6 + $0x1f4] sm:$0xf0] }
 0xcf9   : > { %3942 = vrot.lane.b32.xlu2 %v3929_v27, %s10389_s17  ;;  %v6292_v27 = vor.u32 %v6656_v30, %v6289_v57  ;;  %v6641_v57 = vld [vmem:[%s10348_s6 + $0x16c] sm:$0xf] }
 0xcfb   : > { %4368 = vmatpush.bf16.msra.mxu0 %v6292_v27 }
 0xd00   : > { %v3931_v22 = vpop.f32.mrf.mxu1 }
 0xd01   : > { %3944 = vrot.lane.b32.xlu0 %v3931_v22, %s10389_s17  ;;  %v6296_v22 = vor.u32 %v6659_v19, %v6295_v29  ;;  %v6233_v29 = vld [vmem:[%s10348_s6 + $0x178] sm:$0xf0]  ;;  %v6207_v19 = vld [vmem:[%s10348_s6 + $0x140] sm:$0xf]  ;;  %s7054_s17 = sshra.s32 %s5465_s16, 4  ;;  %s7055_s17 = int_to_ptr.hbm [resolvable:$true] %s7054_s17 }
 0xd02   : > { %s7056_s21 = scalar_lea.hbm %s7055_s17, 16  ;;  %p7061_p0 = scmp.lt.s32.totalorder %s7055_s17, %s10351_s9 }
 0xd03   : > { %4387 = vmatpush.bf16.msra.mxu1 %v6296_v22  ;;  %v6236_v22 = vor.u32 %v6641_v57, %v6233_v29  ;;  %p7057_p11 = scmp.ne.s32.totalorder %s7055_s17, %s7056_s21  ;;  %p7062_p1 = scmp.lt.s32.totalorder %s7060_s25, %s7056_s21 }
 0xd05   : > { %p7058_p12 = pnand %p7057_p11, %p7198_p5  ;;  %p7063_p2 = por %p7062_p1, %p7061_p0 }
 0xd07   : > { %p7059_p13 = pneg %p7058_p12 }
 0xd09   : > { %p7064_p3 = pnand %p7063_p2, %p7059_p13 }
 0xd16   : > { %v3749_v31 = vpop.permute.xlu2 %3748 }
 0xd17   : > { %3759 = vst.msk [vmem:[#allocation2 + $0x8] sm:$0xff] %vm1239_vm3, %v3749_v31  ;;  %v6654_v31 = vld [vmem:[%s10348_s6 + $0x1cc] sm:$0xf0] }
 0xd18   : > { %v6272_v2 = vor.u32 %v6654_v31, %v6271_v24  ;;  %v6208_v31 = vor.u32 %v6638_v23, %v6207_v19 }
 0xd1a   : > { %4350 = vmatpush.bf16.msra.mxu3 %v6272_v2  ;;  %v6639_v2 = vld [vmem:[%s10348_s6 + $0x154] sm:$0xf0] }
 0xd26   : > { %v3747_v62 = vpop.permute.xlu0 %3746 }
 0xd27   : > { %3758 = vst.msk [vmem:[#allocation2] sm:$0xff] %vm1239_vm3, %v3747_v62  ;;  %v6655_v62 = vld [vmem:[%s10348_s6 + $0x1d4] sm:$0xf0] }
 0xd2e   : > { %v3559_v42 = vpop.permute.xlu0 %3558 }
 0xd2f   : > { %3568 = vst.msk [vmem:[#allocation2 + $0x10] sm:$0xff] %vm1046_vm2, %v3559_v42  ;;  %v6276_v42 = vor.u32 %v6652_v9, %v6273_v11  ;;  %v6215_v9 = vld [vmem:[%s10348_s6 + $0x148] sm:$0xf]  ;;  %v6637_v11 = vld [vmem:[%s10348_s6 + $0x14c] sm:$0xf] }
 0xd31   : > { %4369 = vmatpush.bf16.msra.mxu0 %v6276_v42  ;;  %v6191_v42 = vld [vmem:[%s10348_s6 + $0x120] sm:$0xf] }
 0xd38   : > { %v3939_v61 = vpop.permute.xlu0 %3938 }
 0xd39   : > { %3950 = vst.msk [vmem:[#allocation2] sm:$0xff] %vm1432_vm4, %v3939_v61  ;;  %v6280_v61 = vor.u32 %v6655_v62, %v6279_v10  ;;  %v6212_v10 = vor.u32 %v6636_v41, %v6209_v21  ;;  %v6217_v62 = vld [vmem:[%s10348_s6 + $0x158] sm:$0xf0] }
 0xd3b   : > { %4388 = vmatpush.bf16.msra.mxu1 %v6280_v61  ;;  %v6634_v61 = vld [vmem:[%s10348_s6 + $0x12c] sm:$0xf0] }
 0xd40   : > { %v3751_v26 = vpop.permute.xlu0 %3750  ;;  %v3941_v37 = vpop.permute.xlu1 %3940  ;;  %v3954_v40 = vld [vmem:[#allocation2] sm:$0xff] }
 0xd41   : > { %3760 = vst.msk [vmem:[#allocation2 + $0x10] sm:$0xff] %vm1239_vm3, %v3751_v26  ;;  %v6653_v26 = vld [vmem:[%s10348_s6 + $0x1cc] sm:$0xf] }
 0xd42   : > { %3951 = vst.msk [vmem:[#allocation2 + $0x8] sm:$0xff] %vm1432_vm4, %v3941_v37  ;;  %v6281_v37 = vld [vmem:[%s10348_s6 + $0x1d8] sm:$0xf0] }
 0xd48   : > { %v3561_v39 = vpop.permute.xlu1 %3560 }
 0xd49   : > { %3569 = vst.msk [vmem:[#allocation2 + $0x18] sm:$0xff] %vm1046_vm2, %v3561_v39  ;;  %v3955_v16 = vld [vmem:[#allocation2 + $0x8] sm:$0xff]  ;;  %v6284_v39 = vor.u32 %v6653_v26, %v6281_v37 }
 0xd4a   : > { %v3958_v6 = vpack.c.bf16 %v3955_v16, %v3954_v40  ;;  %v6255_v40 = vld [vmem:[%s10348_s6 + $0x1a0] sm:$0xf]  ;;  %v6650_v16 = vld [vmem:[%s10348_s6 + $0x1ac] sm:$0xf0] }
 0xd4b   : > { %4407 = vmatpush.bf16.msra.mxu2 %v6284_v39  ;;  %v6216_v39 = vor.u32 %v6639_v2, %v6215_v9 }
 0xd4c   : > { %4033 = vmatmul.bf16.vlgmr.msrb.gmra.mxu2 %v3958_v6  ;;  %v6648_v6 = vld [vmem:[%s10348_s6 + $0x1a4] sm:$0xf] }
 0xd50   : > { %v3753_v48 = vpop.permute.xlu1 %3752 }
 0xd51   : > { %3761 = vst.msk [vmem:[#allocation2 + $0x18] sm:$0xff] %vm1239_vm3, %v3753_v48  ;;  %v6256_v48 = vor.u32 %v6650_v16, %v6255_v40  ;;  %v6220_v40 = vor.u32 %v6637_v11, %v6217_v62  ;;  %v6632_v16 = vld [vmem:[%s10348_s6 + $0x124] sm:$0xf] }
 0xd53   : > { %v3943_v43 = vpop.permute.xlu2 %3942  ;;  %4351 = vmatpush.bf16.msra.mxu3 %v6256_v48 }
 0xd54   : > { %3952 = vst.msk [vmem:[#allocation2 + $0x10] sm:$0xff] %vm1432_vm4, %v3943_v43  ;;  %v6257_v43 = vld [vmem:[%s10348_s6 + $0x1b0] sm:$0xf0] }
 0xd5b   : > { %v3956_v7 = vld [vmem:[#allocation2 + $0x10] sm:$0xff] }
 0xd73   : > { %v3945_v33 = vpop.permute.xlu0 %3944 }
 0xd74   : > { %3953 = vst.msk [vmem:[#allocation2 + $0x18] sm:$0xff] %vm1432_vm4, %v3945_v33  ;;  %v6263_v33 = vld [vmem:[%s10348_s6 + $0x1a8] sm:$0xf] }
 0xd7b   : > { %v3957_v63 = vld [vmem:[#allocation2 + $0x18] sm:$0xff] }
 0xd7c   : > { %v3959_v38 = vpack.c.bf16 %v3957_v63, %v3956_v7  ;;  %v6651_v7 = vld [vmem:[%s10348_s6 + $0x1b4] sm:$0xf0] }
 0xd7e   : > { %4038 = vmatmul.bf16.gmra.mxu2 %v3959_v38  ;;  %v6260_v38 = vor.u32 %v6648_v6, %v6257_v43  ;;  %v6193_v6 = vld [vmem:[%s10348_s6 + $0x130] sm:$0xf0]  ;;  %v6199_v43 = vld [vmem:[%s10348_s6 + $0x128] sm:$0xf] }
 0xd80   : > { %4370 = vmatpush.bf16.msra.mxu0 %v6260_v38  ;;  %v6201_v38 = vld [vmem:[%s10348_s6 + $0x138] sm:$0xf0] }
 0xdcf   : > { %v4034_v34 = vpop.f32.mrf.mxu2 }
 0xdd0   : > { %v4044_v14 = vadd.f32 %v4034_v34, %v8835_v8  ;;  %v6649_v34 = vld [vmem:[%s10348_s6 + $0x1ac] sm:$0xf] }
 0xdd2   : > { %v4049_v54 = vadd.f32 %v4048_v1, %v4044_v14  ;;  %v6265_v14 = vld [vmem:[%s10348_s6 + $0x1b8] sm:$0xf0] }
 0xdd4   : > { %4053 = vadd.xlane.f32.xlu1 %v4049_v54 }
 0xdd7   : > { %v4036_v45 = vpop.f32.mrf.mxu2 }
 0xdd8   : > { %v4045_v28 = vadd.f32 %v4036_v45, %v8840_v20  ;;  %v6268_v45 = vor.u32 %v6649_v34, %v6265_v14  ;;  %v6196_v34 = vor.u32 %v6632_v16, %v6193_v6  ;;  %v6175_v14 = vld [vmem:[%s10348_s6 + $0x100] sm:$0xf] }
 0xdda   : > { %v4050_v13 = vadd.f32 %v4048_v1, %v4045_v28  ;;  %v6239_v28 = vld [vmem:[%s10348_s6 + $0x180] sm:$0xf]  ;;  %4408 = vmatpush.bf16.msra.mxu2 %v6268_v45  ;;  %v6628_v45 = vld [vmem:[%s10348_s6 + $0x104] sm:$0xf] }
 0xddc   : > { %4055 = vadd.xlane.f32.xlu2 %v4050_v13 }
 0xe01   : > { %v4039_v51 = vpop.f32.mrf.mxu2 }
 0xe02   : > { %v4046_v44 = vadd.f32 %v4039_v51, %v8845_v5  ;;  %v6644_v51 = vld [vmem:[%s10348_s6 + $0x184] sm:$0xf] }
 0xe04   : > { %v9386_v15 = vadd.f32 %v4048_v1, %v4046_v44 }
 0xe06   : > { %4057 = vadd.xlane.f32.xlu0 %v9386_v15 }
 0xe09   : > { %v4041_v3 = vpop.f32.mrf.mxu2 }
 0xe0a   : > { %v4047_v52 = vadd.f32 %v4041_v3, %v8850_v46 }
 0xe0c   : > { %v9390_v49 = vadd.f32 %v4048_v1, %v4047_v52  ;;  %v6264_v1 = vor.u32 %v6651_v7, %v6263_v33  ;;  %v6241_v52 = vld [vmem:[%s10348_s6 + $0x190] sm:$0xf0]  ;;  %v6635_v33 = vld [vmem:[%s10348_s6 + $0x134] sm:$0xf0]  ;;  %v6633_v7 = vld [vmem:[%s10348_s6 + $0x12c] sm:$0xf] }
 0xe0e   : > { %4059 = vadd.xlane.f32.xlu1 %v9390_v49  ;;  %4389 = vmatpush.bf16.msra.mxu1 %v6264_v1 }
 0xe47   : > { %v4054_v8 = vpop.xlane.xlu1 %4053 }
 0xe48   : > { %v4061_v59 = vmul.f32 %v4054_v8, %v7234_v18  ;;  %v6247_v8 = vld [vmem:[%s10348_s6 + $0x188] sm:$0xf] }
 0xe4a   : > { %v9394_v20 = vsub.f32 %v4049_v54, %v4061_v59  ;;  %v6244_v59 = vor.u32 %v6644_v51, %v6241_v52  ;;  %v6177_v51 = vld [vmem:[%s10348_s6 + $0x110] sm:$0xf0]  ;;  %v6631_v52 = vld [vmem:[%s10348_s6 + $0x114] sm:$0xf0] }
 0xe4c   : > { %v4069_v0 = vmul.f32 %v9394_v20, %v9394_v20  ;;  %4371 = vmatpush.bf16.msra.mxu0 %v6244_v59  ;;  %v6629_v59 = vld [vmem:[%s10348_s6 + $0x10c] sm:$0xf] }
 0xe4e   : > { %4073 = vadd.xlane.f32.xlu2 %v4069_v0  ;;  %v6647_v0 = vld [vmem:[%s10348_s6 + $0x194] sm:$0xf0] }
 0xe4f   : > { %v4056_v5 = vpop.xlane.xlu2 %4055 }
 0xe50   : > { %v4062_v55 = vmul.f32 %v4056_v5, %v7234_v18  ;;  %v6645_v5 = vld [vmem:[%s10348_s6 + $0x18c] sm:$0xf] }
 0xe52   : > { %v9399_v17 = vsub.f32 %v4050_v13, %v4062_v55  ;;  %v6646_v13 = vld [vmem:[%s10348_s6 + $0x18c] sm:$0xf0]  ;;  %v6249_v55 = vld [vmem:[%s10348_s6 + $0x198] sm:$0xf0] }
 0xe53   : > { %v6240_v3 = vor.u32 %v6646_v13, %v6239_v28  ;;  %v6200_v28 = vor.u32 %v6635_v33, %v6199_v43  ;;  %v6204_v13 = vor.u32 %v6633_v7, %v6201_v38 }
 0xe54   : > { %v4070_v46 = vmul.f32 %v9399_v17, %v9399_v17 }
 0xe55   : > { %4352 = vmatpush.bf16.msra.mxu3 %v6240_v3  ;;  %v6183_v3 = vld [vmem:[%s10348_s6 + $0x108] sm:$0xf] }
 0xe56   : > { %4075 = vadd.xlane.f32.xlu0 %v4070_v46  ;;  %v6248_v46 = vor.u32 %v6647_v0, %v6247_v8  ;;  %v6185_v0 = vld [vmem:[%s10348_s6 + $0x118] sm:$0xf0] }
 0xe58   : > { %4390 = vmatpush.bf16.msra.mxu1 %v6248_v46  ;;  %v6180_v46 = vor.u32 %v6628_v45, %v6177_v51  ;;  %v6172_v45 = vld [vmem:[%s10349_s7 + $0x4] sm:$0xf] }
 0xe5c   : > { %4391 = vmatpush.bf16.msra.mxu1 %v6232_v12  ;;  %v4133_v12 = vperm.slane %v9380_v35, 2 }
 0xe60   : > { %4392 = vmatpush.bf16.msra.mxu1 %v6216_v39 }
 0xe64   : > { %4393 = vmatpush.bf16.msra.mxu1 %v6200_v28  ;;  %v9627_v28 = vperm.slane %v6172_v45, 2 }
 0xe79   : > { %v4058_v25 = vpop.xlane.xlu0 %4057 }
 0xe7a   : > { %v4063_v60 = vmul.f32 %v4058_v25, %v7234_v18  ;;  %v6252_v25 = vor.u32 %v6645_v5, %v6249_v55 }
 0xe7c   : > { %v9405_v47 = vsub.f32 %v9386_v15, %v4063_v60  ;;  %v6223_v60 = vld [vmem:[%s10348_s6 + $0x160] sm:$0xf]  ;;  %4409 = vmatpush.bf16.msra.mxu2 %v6252_v25 }
 0xe7e   : > { %v4071_v4 = vmul.f32 %v9405_v47, %v9405_v47 }
 0xe80   : > { %4077 = vadd.xlane.f32.xlu1 %v4071_v4  ;;  %v6642_v4 = vld [vmem:[%s10348_s6 + $0x16c] sm:$0xf0]  ;;  %4410 = vmatpush.bf16.msra.mxu2 %v6236_v22 }
 0xe81   : > { %v4060_v50 = vpop.xlane.xlu1 %4059 }
 0xe82   : > { %v4064_v36 = vmul.f32 %v4060_v50, %v7234_v18  ;;  %v6640_v50 = vld [vmem:[%s10348_s6 + $0x164] sm:$0xf] }
 0xe84   : > { %v9411_v56 = vsub.f32 %v9390_v49, %v4064_v36  ;;  %v6224_v36 = vor.u32 %v6642_v4, %v6223_v60  ;;  %4411 = vmatpush.bf16.msra.mxu2 %v6220_v40  ;;  %v6184_v60 = vor.u32 %v6631_v52, %v6183_v3  ;;  %v6188_v4 = vor.u32 %v6629_v59, %v6185_v0 }
 0xe85   : > { %v9643_v0 = vperm.slane %v6172_v45, 3 }
 0xe86   : > { %v4072_v53 = vmul.f32 %v9411_v56, %v9411_v56  ;;  %4353 = vmatpush.bf16.msra.mxu3 %v6224_v36  ;;  %4394 = vmatpush.bf16.msra.mxu1 %v6184_v60 }
 0xe88   : > { %4079 = vadd.xlane.f32.xlu2 %v4072_v53  ;;  %v6225_v53 = vld [vmem:[%s10348_s6 + $0x170] sm:$0xf0]  ;;  %4412 = vmatpush.bf16.msra.mxu2 %v6204_v13 }
 0xe89   : > { %v6228_v30 = vor.u32 %v6640_v50, %v6225_v53 }
 0xe8a   : > { %4354 = vmatpush.bf16.msra.mxu3 %v6208_v31 }
 0xe8b   : > { %4372 = vmatpush.bf16.msra.mxu0 %v6228_v30 }
 0xe8c   : > { %4413 = vmatpush.bf16.msra.mxu2 %v6188_v4 }
 0xe8f   : > { %4373 = vmatpush.bf16.msra.mxu0 %v6212_v10 }
 0xe93   : > { %4374 = vmatpush.bf16.msra.mxu0 %v6196_v34 }
 0xe97   : > { %4375 = vmatpush.bf16.msra.mxu0 %v6180_v46 }
 0xec1   : > { %v4074_v63 = vpop.xlane.xlu2 %4073 }
 0xec2   : > { %v4081_v54 = vmul.f32 %v4074_v63, %v7234_v18  ;;  %v6192_v63 = vor.u32 %v6634_v61, %v6191_v42 }
 0xec4   : > { %v9497_v44 = vadd.f32 1e-05, %v4081_v54  ;;  %v6630_v54 = vld [vmem:[%s10348_s6 + $0x10c] sm:$0xf0]  ;;  %4355 = vmatpush.bf16.msra.mxu3 %v6192_v63 }
 0xec5   : > { %v6176_v5 = vor.u32 %v6630_v54, %v6175_v14 }
 0xec6   : > { %6956 = vrsqrt.f32 %v9497_v44  ;;  %vm4095_vm2 = vweird.f32 %v9497_v44 }
 0xec8   : > { %4356 = vmatpush.bf16.msra.mxu3 %v6176_v5 }
 0xec9   : > { %v4076_v27 = vpop.xlane.xlu0 %4075 }
 0xeca   : > { %v4082_v24 = vmul.f32 %v4076_v27, %v7234_v18  ;;  %v4138_v27 = vperm.slane %v9380_v35, 3 }
 0xecc   : > { %v6957_v26 = vpop.eup %6956  ;;  %v4086_v37 = vadd.f32 1e-05, %v4082_v24 }
 0xecd   : > { %v4090_v48 = vmul.f32 %v6957_v26, %v9497_v44  ;;  %vm4096_vm13 = vweird.f32 %v6957_v26 }
 0xece   : > { %6958 = vrsqrt.f32 %v4086_v37  ;;  %vm4097_vm3 = vmor %vm4095_vm2, %vm4096_vm13  ;;  %vm4105_vm7 = vweird.f32 %v4086_v37 }
 0xecf   : > { %v4091_v1 = vmul.f32 %v6957_v26, %v4090_v48 }
 0xed1   : > { %v4092_v8 = vmul.f32 0.5, %v4091_v1 }
 0xed3   : > { %v4093_v55 = vsub.f32 1.5, %v4092_v8  ;;  %v9638_v8 = vperm.slane %v6172_v45, 0 }
 0xed4   : > { %v6959_v25 = vpop.eup %6958 }
 0xed5   : > { %v4094_v50 = vmul.f32 %v6957_v26, %v4093_v55  ;;  %v4100_v36 = vmul.f32 %v6959_v25, %v4086_v37  ;;  %vm4106_vm4 = vweird.f32 %v6959_v25 }
 0xed6   : > { %vm4107_vm8 = vmor %vm4105_vm7, %vm4106_vm4 }
 0xed7   : > { %v4101_v53 = vmul.f32 %v6959_v25, %v4100_v36  ;;  %v4098_v32 = vsel %vm4097_vm3, %v6957_v26, %v4094_v50 }
 0xed8   : > { %v4129_v57 = vmul.f32 %v4098_v32, %v9394_v20 }
 0xed9   : > { %v4102_v58 = vmul.f32 0.5, %v4101_v53 }
 0xeda   : > { %v4134_v44 = vmul.f32 %v4133_v12, %v4129_v57 }
 0xedb   : > { %v4103_v30 = vsub.f32 1.5, %v4102_v58 }
 0xedc   : > { %v4139_v41 = vadd.f32 %v4138_v27, %v4134_v44 }
 0xedd   : > { %v4104_v29 = vmul.f32 %v6959_v25, %v4103_v30 }
 0xedf   : > { %v4108_v19 = vsel %vm4107_vm8, %v6959_v25, %v4104_v29 }
 0xee0   : > { %v4130_v22 = vmul.f32 %v4108_v19, %v9399_v17 }
 0xee2   : > { %v4135_v23 = vmul.f32 %v4133_v12, %v4130_v22 }
 0xee4   : > { %v4140_v21 = vadd.f32 %v4138_v27, %v4135_v23 }
 0xee6   : > { %v4143_v24 = vpack.c.bf16 %v4140_v21, %v4139_v41 }
 0xee8   : > { %4357 = vmatmul.bf16.vlgmr.msra.gmra.mxu3 %v4143_v24  ;;  %4376 = vmatmul.bf16.vlgmr.msra.gmra.mxu0 %v4143_v24 }
 0xee9   : > { %4395 = vmatmul.bf16.vlgmr.msra.gmra.mxu1 %v4143_v24  ;;  %4414 = vmatmul.bf16.vlgmr.msra.gmra.mxu2 %v4143_v24 }
 0xef3   : > { %v4078_v31 = vpop.xlane.xlu1 %4077 }
 0xef4   : > { %v4083_v20 = vmul.f32 %v4078_v31, %v7234_v18 }
 0xef6   : > { %v4087_v9 = vadd.f32 1e-05, %v4083_v20 }
 0xef8   : > { %6960 = vrsqrt.f32 %v4087_v9  ;;  %vm4115_vm6 = vweird.f32 %v4087_v9 }
 0xefb   : > { %v4080_v2 = vpop.xlane.xlu2 %4079 }
 0xefc   : > { %v4084_v11 = vmul.f32 %v4080_v2, %v7234_v18 }
 0xefe   : > { %v6961_v35 = vpop.eup %6960  ;;  %v4088_v10 = vadd.f32 1e-05, %v4084_v11 }
 0xeff   : > { %v4110_v62 = vmul.f32 %v6961_v35, %v4087_v9  ;;  %vm4116_vm1 = vweird.f32 %v6961_v35 }
 0xf00   : > { %6962 = vrsqrt.f32 %v4088_v10  ;;  %vm4117_vm9 = vmor %vm4115_vm6, %vm4116_vm1  ;;  %vm4125_vm12 = vweird.f32 %v4088_v10 }
 0xf01   : > { %v4111_v17 = vmul.f32 %v6961_v35, %v4110_v62 }
 0xf03   : > { %v4112_v42 = vmul.f32 0.5, %v4111_v17 }
 0xf05   : > { %v4113_v61 = vsub.f32 1.5, %v4112_v42 }
 0xf06   : > { %v6963_v26 = vpop.eup %6962 }
 0xf07   : > { %v4114_v37 = vmul.f32 %v6961_v35, %v4113_v61  ;;  %v4120_v39 = vmul.f32 %v6963_v26, %v4088_v10  ;;  %vm4126_vm10 = vweird.f32 %v6963_v26 }
 0xf08   : > { %vm4127_vm15 = vmor %vm4125_vm12, %vm4126_vm10 }
 0xf09   : > { %v4121_v40 = vmul.f32 %v6963_v26, %v4120_v39  ;;  %v4118_v16 = vsel %vm4117_vm9, %v6961_v35, %v4114_v37 }
 0xf0a   : > { %v4131_v43 = vmul.f32 %v4118_v16, %v9405_v47  ;;  %v9625_v47 = vperm.slane %v6172_v45, 1 }
 0xf0b   : > { %v4122_v6 = vmul.f32 0.5, %v4121_v40 }
 0xf0c   : > { %v4136_v38 = vmul.f32 %v4133_v12, %v4131_v43 }
 0xf0d   : > { %v4123_v48 = vsub.f32 1.5, %v4122_v6 }
 0xf0e   : > { %v4141_v34 = vadd.f32 %v4138_v27, %v4136_v38 }
 0xf0f   : > { %v4124_v33 = vmul.f32 %v6963_v26, %v4123_v48 }
 0xf11   : > { %v4128_v7 = vsel %vm4127_vm15, %v6963_v26, %v4124_v33 }
 0xf12   : > { %v4132_v63 = vmul.f32 %v4128_v7, %v9411_v56 }
 0xf14   : > { %v4137_v1 = vmul.f32 %v4133_v12, %v4132_v63 }
 0xf16   : > { %v4142_v14 = vadd.f32 %v4138_v27, %v4137_v1 }
 0xf18   : > { %v4144_v54 = vpack.c.bf16 %v4142_v14, %v4141_v34 }
 0xf1a   : > { %4362 = vmatmul.bf16.gmra.mxu3 %v4144_v54  ;;  %4381 = vmatmul.bf16.gmra.mxu0 %v4144_v54 }
 0xf1b   : > { %4400 = vmatmul.bf16.gmra.mxu1 %v4144_v54  ;;  %4419 = vmatmul.bf16.gmra.mxu2 %v4144_v54 }
 0xf65   : > { %v4377_v13 = vpop.f32.mrf.mxu0 }
 0xf66   : > { %v9630_v56 = vadd.f32 %v4377_v13, %v9625_v47  ;;  %v4396_v51 = vpop.f32.mrf.mxu1 }
 0xf67   : > { %v9633_v3 = vadd.f32 %v4396_v51, %v9627_v28 }
 0xf68   : > { %v9636_v52 = vmul.f32 0.70710677, %v9630_v56 }
 0xf69   : > { %v9641_v59 = vmul.f32 0.70710677, %v9633_v3 }
 0xf6a   : > { %v4458_v5 = vand.u32 2147483647, %v9636_v52 }
 0xf6b   : > { %v9647_v55 = vand.u32 2147483647, %v9641_v59  ;;  %v4358_v46 = vpop.f32.mrf.mxu3 }
 0xf6c   : > { %v4474_v25 = vmul.f32 0.3275911, %v4458_v5  ;;  %v9650_v60 = vadd.f32 %v4358_v46, %v9638_v8  ;;  %v4415_v4 = vpop.f32.mrf.mxu2  ;;  %v4890_v37 = vsub.f32 0.0, %v4458_v5 }
 0xf6d   : > { %v4475_v50 = vmul.f32 0.3275911, %v9647_v55  ;;  %v9654_v36 = vadd.f32 %v4415_v4, %v9643_v0  ;;  %v4379_v41 = vpop.f32.mrf.mxu0  ;;  %v4891_v39 = vsub.f32 0.0, %v9647_v55 }
 0xf6e   : > { %v4490_v53 = vadd.f32 1.0, %v4474_v25  ;;  %v9657_v58 = vmul.f32 0.70710677, %v9650_v60  ;;  %v4398_v31 = vpop.f32.mrf.mxu1  ;;  %v9677_v35 = vadd.f32 %v4379_v41, %v9625_v47  ;;  %v4906_v54 = vmul.f32 %v4890_v37, %v4458_v5 }
 0xf6f   : > { %v4491_v32 = vadd.f32 1.0, %v4475_v50  ;;  %v9660_v30 = vmul.f32 0.70710677, %v9654_v36  ;;  %v9680_v17 = vadd.f32 %v4398_v31, %v9627_v28  ;;  %v4907_v46 = vmul.f32 %v4891_v39, %v9647_v55 }
 0xf70   : > { %6964 = vrcp.f32 %v4490_v53  ;;  %v9663_v12 = vand.u32 2147483647, %v9657_v58  ;;  %v4529_v9 = vand.u32 2147483647, %v4490_v53  ;;  %v4531_v2 = vand.u32 2147483648, %v4490_v53 }
 0xf71   : > { %6966 = vrcp.f32 %v4491_v32  ;;  %v9666_v57 = vand.u32 2147483647, %v9660_v30  ;;  %v4546_v62 = vand.u32 2147483648, %v4491_v32  ;;  %v4544_v61 = vand.u32 2147483647, %v4491_v32 }
 0xf72   : > { %v4473_v29 = vmul.f32 0.3275911, %v9663_v12  ;;  %vm4525_vm0 = vweird.f32 %v4490_v53  ;;  %v4532_v40 = vor.u32 1.1754944e-38, %v4531_v2  ;;  %vm4540_vm13 = vweird.f32 %v4491_v32 }
 0xf73   : > { %v4476_v27 = vmul.f32 0.3275911, %v9666_v57  ;;  %v9684_v6 = vmul.f32 0.70710677, %v9677_v35  ;;  %vm4530_vm2 = vcmp.eq.f32.partialorder %v4529_v9, 8.507059e+37  ;;  %v4547_v33 = vor.u32 1.1754944e-38, %v4546_v62 }
 0xf74   : > { %v9670_v23 = vadd.f32 1.0, %v4473_v29  ;;  %v9687_v7 = vmul.f32 0.70710677, %v9680_v17  ;;  %vm4545_vm4 = vcmp.eq.f32.partialorder %v4544_v61, 8.507059e+37  ;;  %v4923_v39 = vmul.f32 1.442695, %v4906_v54 }
 0xf75   : > { %v9672_v24 = vadd.f32 1.0, %v4476_v27  ;;  %v9699_v4 = vand.u32 2147483647, %v9684_v6 }
 0xf76   : > { %v6965_v19 = vpop.eup %6964  ;;  %6968 = vrcp.f32 %v9670_v23  ;;  %vm4510_vm7 = vweird.f32 %v9670_v23  ;;  %v4516_v55 = vand.u32 2147483648, %v9670_v23  ;;  %v4514_v31 = vand.u32 2147483647, %v9670_v23 }
 0xf77   : > { %v6967_v44 = vpop.eup %6966  ;;  %v4521_v22 = vmul.f32 %v6965_v19, %v4490_v53  ;;  %6970 = vrcp.f32 %v9672_v24  ;;  %vm4526_vm11 = vweird.f32 %v6965_v19  ;;  %v4561_v61 = vand.u32 2147483648, %v9672_v24 }
 0xf78   : > { %v4536_v21 = vmul.f32 %v6967_v44, %v4491_v32  ;;  %vm4541_vm14 = vweird.f32 %v6967_v44  ;;  %vm4527_vm5 = vmor %vm4525_vm0, %vm4526_vm11  ;;  %v9703_v32 = vand.u32 2147483647, %v9687_v7  ;;  %vm4555_vm9 = vweird.f32 %v9672_v24 }
 0xf79   : > { %v4522_v20 = vsub.f32 1.0, %v4521_v22  ;;  %vm4542_vm3 = vmor %vm4540_vm13, %vm4541_vm14  ;;  %vm4515_vm10 = vcmp.eq.f32.partialorder %v4514_v31, 8.507059e+37 }
 0xf7a   : > { %v4537_v11 = vsub.f32 1.0, %v4536_v21  ;;  %v4479_v22 = vmul.f32 0.3275911, %v9703_v32 }
 0xf7b   : > { %v4523_v10 = vmul.f32 %v6965_v19, %v4522_v20 }
 0xf7c   : > { %v4538_v42 = vmul.f32 %v6967_v44, %v4537_v11  ;;  %v6969_v48 = vpop.eup %6968 }
 0xf7d   : > { %v4524_v26 = vadd.f32 %v6965_v19, %v4523_v10  ;;  %v6971_v63 = vpop.eup %6970  ;;  %v4506_v34 = vmul.f32 %v6969_v48, %v9670_v23  ;;  %vm4511_vm8 = vweird.f32 %v6969_v48  ;;  %v9719_v10 = vadd.f32 1.0, %v4479_v22 }
 0xf7e   : > { %v4539_v16 = vadd.f32 %v6967_v44, %v4538_v42  ;;  %v4551_v13 = vmul.f32 %v6971_v63, %v9672_v24  ;;  %vm9715_vm1 = vmor %vm4510_vm7, %vm4511_vm8  ;;  %vm4556_vm6 = vweird.f32 %v6971_v63  ;;  %v4559_v23 = vand.u32 2147483647, %v9672_v24 }
 0xf7f   : > { %v4528_v43 = vsel %vm4527_vm5, %v6965_v19, %v4524_v26  ;;  %v4507_v25 = vsub.f32 1.0, %v4506_v34  ;;  %v4478_v19 = vmul.f32 0.3275911, %v9699_v4  ;;  %v4517_v26 = vor.u32 1.1754944e-38, %v4516_v55  ;;  %vm4557_vm12 = vmor %vm4555_vm9, %vm4556_vm6 }
 0xf80   : > { %v9689_v38 = vsel %vm4530_vm2, %v4532_v40, %v4528_v43  ;;  %v4543_v1 = vsel %vm4542_vm3, %v6967_v44, %v4539_v16  ;;  %v4552_v53 = vsub.f32 1.0, %v4551_v13  ;;  %vm4560_vm15 = vcmp.eq.f32.partialorder %v4559_v23, 8.507059e+37 }
 0xf81   : > { %v4746_v14 = vmul.f32 1.0614054, %v9689_v38  ;;  %v9693_v45 = vsel %vm4545_vm4, %v4547_v33, %v4543_v1  ;;  %v4508_v29 = vmul.f32 %v6969_v48, %v4507_v25  ;;  %v9711_v20 = vadd.f32 1.0, %v4478_v19  ;;  %v4360_v1 = vpop.f32.mrf.mxu3 }
 0xf82   : > { %v4747_v51 = vmul.f32 1.0614054, %v9693_v45  ;;  %v4553_v44 = vmul.f32 %v6971_v63, %v4552_v53  ;;  %v4562_v33 = vor.u32 1.1754944e-38, %v4561_v61  ;;  %v9737_v25 = vmul.f32 0.5, %v9630_v56 }
 0xf83   : > { %v4762_v50 = vadd.f32 -1.4531521, %v4746_v14  ;;  %v4509_v21 = vadd.f32 %v6969_v48, %v4508_v29  ;;  %6972 = vrcp.f32 %v9711_v20  ;;  %v4889_v53 = vsub.f32 0.0, %v9663_v12 }
 0xf84   : > { %v4763_v5 = vadd.f32 -1.4531521, %v4747_v51  ;;  %v4554_v11 = vadd.f32 %v6971_v63, %v4553_v44  ;;  %6974 = vrcp.f32 %v9719_v10  ;;  %v4892_v29 = vsub.f32 0.0, %v9666_v57 }
 0xf85   : > { %v4778_v27 = vmul.f32 %v4762_v50, %v9689_v38  ;;  %v4513_v42 = vsel %vm9715_vm1, %v6969_v48, %v4509_v21  ;;  %v4925_v48 = vmul.f32 1.442695, %v4907_v46  ;;  %6976 = vpow2.f32 %v4923_v39 }
 0xf86   : > { %v4779_v41 = vmul.f32 %v4763_v5, %v9693_v45  ;;  %v9729_v16 = vsel %vm4515_vm10, %v4517_v26, %v4513_v42  ;;  %v4558_v43 = vsel %vm4557_vm12, %v6971_v63, %v4554_v11  ;;  %v4591_v63 = vand.u32 2147483648, %v9711_v20 }
 0xf87   : > { %v4794_v9 = vadd.f32 1.4214138, %v4778_v27  ;;  %v4745_v14 = vmul.f32 1.0614054, %v9729_v16  ;;  %v9733_v24 = vsel %vm4560_vm15, %v4562_v33, %v4558_v43  ;;  %6978 = vpow2.f32 %v4925_v48  ;;  %v6683_v43 = vld [vmem:[%s10350_s8 + $0x1b8] sm:$0xff] }
 0xf88   : > { %v4795_v62 = vadd.f32 1.4214138, %v4779_v41  ;;  %v9741_v46 = vadd.f32 %v4360_v1, %v9638_v8  ;;  %v4748_v5 = vmul.f32 1.0614054, %v9733_v24  ;;  %v4589_v55 = vand.u32 2147483647, %v9711_v20  ;;  %5365 = vmatpush.bf16.msrb.mxu1 %v6683_v43 }
 0xf89   : > { %v4810_v37 = vmul.f32 %v4794_v9, %v9689_v38  ;;  %v6973_v34 = vpop.eup %6972  ;;  %v4761_v27 = vadd.f32 -1.4531521, %v4745_v14  ;;  %v4894_v56 = vsub.f32 0.0, %v9699_v4  ;;  %vm4585_vm14 = vweird.f32 %v9711_v20 }
 0xf8a   : > { %v4811_v40 = vmul.f32 %v4795_v62, %v9693_v45  ;;  %v4581_v51 = vmul.f32 %v6973_v34, %v9711_v20  ;;  %v6975_v50 = vpop.eup %6974  ;;  %vm4586_vm11 = vweird.f32 %v6973_v34  ;;  %v4592_v31 = vor.u32 1.1754944e-38, %v4591_v63 }
 0xf8b   : > { %v4826_v13 = vadd.f32 -0.28449672, %v4810_v37  ;;  %v4596_v44 = vmul.f32 %v6975_v50, %v9719_v10  ;;  %v9753_v2 = vmul.f32 0.70710677, %v9741_v46  ;;  %v6977_v11 = vpop.eup %6976  ;;  %v4764_v62 = vadd.f32 -1.4531521, %v4748_v5  ;;  %vm4587_vm0 = vmor %vm4585_vm14, %vm4586_vm11 }
 0xf8c   : > { %v4827_v54 = vadd.f32 -0.28449672, %v4811_v40  ;;  %v4582_v19 = vsub.f32 1.0, %v4581_v51  ;;  %v4604_v61 = vand.u32 2147483647, %v9719_v10  ;;  %v4606_v26 = vand.u32 2147483648, %v9719_v10 }
 0xf8d   : > { %v4842_v22 = vmul.f32 %v4826_v13, %v9689_v38  ;;  %v4597_v9 = vsub.f32 1.0, %v4596_v44  ;;  %v6979_v23 = vpop.eup %6978  ;;  %v4777_v37 = vmul.f32 %v4761_v27, %v9729_v16  ;;  %vm4601_vm5 = vweird.f32 %v6975_v50  ;;  %v6675_v40 = vld [vmem:[%s10350_s8 + $0x178] sm:$0xff]  ;;  %v6682_v44 = vld [vmem:[%s10350_s8 + $0x1b0] sm:$0xff] }
 0xf8e   : > { %v4843_v41 = vmul.f32 %v4827_v54, %v9693_v45  ;;  %v4583_v21 = vmul.f32 %v6973_v34, %v4582_v19  ;;  %v9759_v20 = vand.u32 2147483647, %v9753_v2  ;;  %vm4590_vm13 = vcmp.eq.f32.partialorder %v4589_v55, 8.507059e+37  ;;  %5348 = vmatpush.bf16.msrb.mxu0 %v6675_v40  ;;  %5366 = vmatpush.bf16.msrb.mxu1 %v6682_v44  ;;  %v6680_v44 = vld [vmem:[%s10350_s8 + $0x1a0] sm:$0xff] }
 0xf8f   : > { %v4598_v39 = vmul.f32 %v6975_v50, %v4597_v9  ;;  %v4858_v48 = vadd.f32 0.2548296, %v4842_v22  ;;  %vm4600_vm2 = vweird.f32 %v9719_v10  ;;  %v4895_v54 = vsub.f32 0.0, %v9703_v32  ;;  %v6674_v10 = vld [vmem:[%s10350_s8 + $0x170] sm:$0xff]  ;;  %v4417_v9 = vpop.f32.mrf.mxu2 }
 0xf90   : > { %v4584_v42 = vadd.f32 %v6973_v34, %v4583_v21  ;;  %v4859_v33 = vadd.f32 0.2548296, %v4843_v41  ;;  %v4780_v51 = vmul.f32 %v4764_v62, %v9733_v24  ;;  %vm4602_vm3 = vmor %vm4600_vm2, %vm4601_vm5  ;;  %v4607_v5 = vor.u32 1.1754944e-38, %v4606_v26 }
 0xf91   : > { %v4599_v13 = vadd.f32 %v6975_v50, %v4598_v39  ;;  %v4477_v19 = vmul.f32 0.3275911, %v9759_v20  ;;  %v4905_v27 = vmul.f32 %v4889_v53, %v9663_v12  ;;  %vm4605_vm4 = vcmp.eq.f32.partialorder %v4604_v61, 8.507059e+37 }
 0xf92   : > { %v4588_v1 = vsel %vm4587_vm0, %v6973_v34, %v4584_v42  ;;  %v4793_v34 = vadd.f32 1.4214138, %v4777_v37  ;;  %v4874_v22 = vmul.f32 %v4858_v48, %v9689_v38  ;;  %v4875_v41 = vmul.f32 %v4859_v33, %v9693_v45  ;;  %5349 = vmatpush.bf16.msrb.mxu0 %v6674_v10  ;;  %v6667_v38 = vld [vmem:[%s10350_s8 + $0x138] sm:$0xff]  ;;  %v6681_v37 = vld [vmem:[%s10350_s8 + $0x1a8] sm:$0xff] }
 0xf93   : > { %v9767_v14 = vsel %vm4590_vm13, %v4592_v31, %v4588_v1  ;;  %v4603_v55 = vsel %vm4602_vm3, %v6975_v50, %v4599_v13  ;;  %v4908_v12 = vmul.f32 %v4892_v29, %v9666_v57  ;;  %v4910_v50 = vmul.f32 %v4894_v56, %v9699_v4  ;;  %v6691_v45 = vld [vmem:[%s10350_s8 + $0x1f8] sm:$0xff]  ;;  %5331 = vmatpush.bf16.msrb.mxu3 %v6667_v38  ;;  %v6666_v13 = vld [vmem:[%s10350_s8 + $0x130] sm:$0xff] }
 0xf94   : > { %v4750_v63 = vmul.f32 1.0614054, %v9767_v14  ;;  %v9784_v31 = vsel %vm4605_vm4, %v4607_v5, %v4603_v55  ;;  %v9789_v62 = vadd.f32 1.0, %v4477_v19  ;;  %v9798_v42 = vmul.f32 0.5, %v9633_v3  ;;  %5382 = vmatpush.bf16.msrb.mxu2 %v6691_v45  ;;  %v6673_v3 = vld [vmem:[%s10350_s8 + $0x168] sm:$0xff]  ;;  %5367 = vmatpush.bf16.msrb.mxu1 %v6681_v37 }
 0xf95   : > { %v4751_v53 = vmul.f32 1.0614054, %v9784_v31  ;;  %v4796_v57 = vadd.f32 1.4214138, %v4780_v51  ;;  %v4911_v29 = vmul.f32 %v4895_v54, %v9703_v32  ;;  %v4809_v56 = vmul.f32 %v4793_v34, %v9729_v16  ;;  %v6690_v54 = vld [vmem:[%s10350_s8 + $0x1f0] sm:$0xff] }
 0xf96   : > { %v4766_v21 = vadd.f32 -1.4531521, %v4750_v63  ;;  %6980 = vrcp.f32 %v9789_v62  ;;  %v9805_v26 = vadd.f32 %v4417_v9, %v9643_v0  ;;  %v9813_v39 = vmul.f32 %v6977_v11, %v4874_v22  ;;  %5350 = vmatpush.bf16.msrb.mxu0 %v6673_v3 }
 0xf97   : > { %v4767_v61 = vadd.f32 -1.4531521, %v4751_v53  ;;  %v9815_v32 = vmul.f32 %v6979_v23, %v4875_v41  ;;  %v4921_v40 = vmul.f32 1.442695, %v4905_v27  ;;  %v4927_v48 = vmul.f32 1.442695, %v4908_v12  ;;  %5332 = vmatpush.bf16.msrb.mxu3 %v6666_v13 }
 0xf98   : > { %v4782_v4 = vmul.f32 %v4766_v21, %v9767_v14  ;;  %v4931_v33 = vmul.f32 1.442695, %v4910_v50  ;;  %v4812_v11 = vmul.f32 %v4796_v57, %v9733_v24  ;;  %v9826_v23 = vmul.f32 0.5, %v9677_v35  ;;  %5383 = vmatpush.bf16.msrb.mxu2 %v6690_v54  ;;  %v6672_v35 = vld [vmem:[%s10350_s8 + $0x160] sm:$0xff]  ;;  %v6665_v12 = vld [vmem:[%s10350_s8 + $0x128] sm:$0xff]  ;;  %5368 = vmatpush.bf16.msrb.mxu1 %v6680_v44  ;;  %v4401_v54 = vpop.f32.mrf.mxu1 }
 0xf99   : > { %v4783_v1 = vmul.f32 %v4767_v61, %v9784_v31  ;;  %v4933_v63 = vmul.f32 1.442695, %v4911_v29  ;;  %v4825_v5 = vadd.f32 -0.28449672, %v4809_v56  ;;  %v9830_v34 = vmul.f32 0.70710677, %v9805_v26 }
 0xf9a   : > { %v4798_v43 = vadd.f32 1.4214138, %v4782_v4  ;;  %v4970_v27 = vsub.f32 1.0, %v9813_v39  ;;  %v4971_v55 = vsub.f32 1.0, %v9815_v32  ;;  %6982 = vpow2.f32 %v4921_v40  ;;  %v6689_v50 = vld [vmem:[%s10350_s8 + $0x1e8] sm:$0xff]  ;;  %5351 = vmatpush.bf16.msrb.mxu0 %v6672_v35  ;;  %v6671_v29 = vld [vmem:[%s10350_s8 + $0x158] sm:$0xff]  ;;  %v4382_v40 = vpop.f32.mrf.mxu0 }
 0xf9b   : > { %v4799_v19 = vadd.f32 1.4214138, %v4783_v1  ;;  %vm4986_vm7 = vcmp.ge.f32.partialorder %v9636_v52, 0.0  ;;  %6984 = vpow2.f32 %v4931_v33  ;;  %v9844_v41 = vmul.f32 0.5, %v9680_v17  ;;  %5333 = vmatpush.bf16.msrb.mxu3 %v6665_v12 }
 0xf9c   : > { %v4814_v51 = vmul.f32 %v4798_v43, %v9767_v14  ;;  %v9840_v22 = vpop.eup %6980  ;;  %v9848_v9 = vand.u32 2147483647, %v9830_v34  ;;  %v4828_v53 = vadd.f32 -0.28449672, %v4812_v11  ;;  %6986 = vpow2.f32 %v4927_v48  ;;  %5384 = vmatpush.bf16.msrb.mxu2 %v6689_v50  ;;  %v6679_v43 = vld [vmem:[%s10350_s8 + $0x198] sm:$0xff]  ;;  %v6664_v11 = vld [vmem:[%s10350_s8 + $0x120] sm:$0xff] }
 0xf9d   : > { %v4815_v21 = vmul.f32 %v4799_v19, %v9784_v31  ;;  %v4566_v17 = vmul.f32 %v9840_v22, %v9789_v62  ;;  %vm4987_vm8 = vcmp.ge.f32.partialorder %v9641_v59, 0.0  ;;  %v4841_v45 = vmul.f32 %v4825_v5, %v9729_v16  ;;  %5369 = vmatpush.bf16.msrb.mxu1 %v6679_v43  ;;  %v6678_v50 = vld [vmem:[%s10350_s8 + $0x190] sm:$0xff] }
 0xf9e   : > { %v4830_v10 = vadd.f32 -0.28449672, %v4814_v51  ;;  %6988 = vpow2.f32 %v4933_v63  ;;  %v4480_v4 = vmul.f32 0.3275911, %v9848_v9  ;;  %v5002_v56 = vsub.f32 0.0, %v4970_v27  ;;  %v6688_v51 = vld [vmem:[%s10350_s8 + $0x1e0] sm:$0xff]  ;;  %5352 = vmatpush.bf16.msrb.mxu0 %v6671_v29 }
 0xf9f   : > { %v4831_v57 = vadd.f32 -0.28449672, %v4815_v21  ;;  %v5003_v61 = vsub.f32 0.0, %v4971_v55  ;;  %v4567_v37 = vsub.f32 1.0, %v4566_v17  ;;  %v4576_v33 = vand.u32 2147483648, %v9789_v62  ;;  %5334 = vmatpush.bf16.msrb.mxu3 %v6664_v11 }
 0xfa0   : > { %v4846_v38 = vmul.f32 %v4830_v10, %v9767_v14  ;;  %v9874_v1 = vadd.f32 1.0, %v4480_v4  ;;  %v9877_v13 = vadd.f32 %v4382_v40, %v9625_v47  ;;  %v9885_v63 = vpop.eup %6982  ;;  %vm4571_vm1 = vweird.f32 %v9840_v22  ;;  %5385 = vmatpush.bf16.msrb.mxu2 %v6688_v51  ;;  %v6663_v40 = vld [vmem:[%s10350_s8 + $0x118] sm:$0xff] }
 0xfa1   : > { %v4847_v48 = vmul.f32 %v4831_v57, %v9784_v31  ;;  %v4568_v19 = vmul.f32 %v9840_v22, %v4567_v37  ;;  %v4574_v10 = vand.u32 2147483647, %v9789_v62  ;;  %v6985_v35 = vpop.eup %6984  ;;  %v4857_v44 = vadd.f32 0.2548296, %v4841_v45  ;;  %5370 = vmatpush.bf16.msrb.mxu1 %v6678_v50 }
 0xfa2   : > { %v4862_v3 = vadd.f32 0.2548296, %v4846_v38  ;;  %v4844_v21 = vmul.f32 %v4828_v53, %v9733_v24  ;;  %vm4990_vm6 = vcmp.ge.f32.partialorder %v9684_v6, 0.0  ;;  %6990 = vrcp.f32 %v9874_v1  ;;  %v9900_v38 = vpop.eup %6986  ;;  %v4363_v6 = vpop.f32.mrf.mxu3 }
 0xfa3   : > { %v4863_v12 = vadd.f32 0.2548296, %v4847_v48  ;;  %v4569_v53 = vadd.f32 %v9840_v22, %v4568_v19  ;;  %vm4570_vm9 = vweird.f32 %v9789_v62  ;;  %v9905_v45 = vadd.f32 %v4401_v54, %v9627_v28  ;;  %v6687_v62 = vld [vmem:[%s10350_s8 + $0x1d8] sm:$0xff]  ;;  %5335 = vmatpush.bf16.msrb.mxu3 %v6663_v40 }
 0xfa4   : > { %v4878_v5 = vmul.f32 %v4862_v3, %v9767_v14  ;;  %v6670_v14 = vld [vmem:[%s10350_s8 + $0x150] sm:$0xff]  ;;  %v6989_v57 = vpop.eup %6988  ;;  %vm4572_vm10 = vmor %vm4570_vm9, %vm4571_vm1  ;;  %v4577_v29 = vor.u32 1.1754944e-38, %v4576_v33  ;;  %v4893_v3 = vsub.f32 0.0, %v9759_v20  ;;  %v9912_v37 = vmul.f32 0.70710677, %v9877_v13  ;;  %5386 = vmatpush.bf16.msrb.mxu2 %v6687_v62 }
 0xfa5   : > { %v4879_v4 = vmul.f32 %v4863_v12, %v9784_v31  ;;  %v5018_v31 = vsel %vm4986_vm7, %v4970_v27, %v5002_v56  ;;  %v4573_v48 = vsel %vm4572_vm10, %v9840_v22, %v4569_v53  ;;  %vm4575_vm12 = vcmp.eq.f32.partialorder %v4574_v10, 8.507059e+37  ;;  %5353 = vmatpush.bf16.msrb.mxu0 %v6670_v14 }
 0xfa6   : > { %v4958_v17 = vmul.f32 %v6985_v35, %v4878_v5  ;;  %v4860_v33 = vadd.f32 0.2548296, %v4844_v21  ;;  %v9925_v11 = vsel %vm4575_vm12, %v4577_v29, %v4573_v48  ;;  %v9928_v51 = vand.u32 2147483647, %v9912_v37 }
 0xfa7   : > { %v4959_v54 = vmul.f32 %v6989_v57, %v4879_v4  ;;  %v5019_v52 = vsel %vm4987_vm8, %v4971_v55, %v5003_v61  ;;  %v4749_v27 = vmul.f32 1.0614054, %v9925_v11  ;;  %v9936_v22 = vmul.f32 0.70710677, %v9905_v45 }
 0xfa8   : > { %v4974_v43 = vsub.f32 1.0, %v4958_v17  ;;  %v6991_v56 = vpop.eup %6990  ;;  %vm4991_vm15 = vcmp.ge.f32.partialorder %v9687_v7, 0.0  ;;  %v4909_v19 = vmul.f32 %v4893_v3, %v9759_v20  ;;  %v4482_v10 = vmul.f32 0.3275911, %v9928_v51 }
 0xfa9   : > { %v4975_v5 = vsub.f32 1.0, %v4959_v54  ;;  %v5034_v35 = vadd.f32 1.0, %v5018_v31  ;;  %v4873_v32 = vmul.f32 %v4857_v44, %v9729_v16  ;;  %v4765_v21 = vadd.f32 -1.4531521, %v4749_v27 }
 0xfaa   : > { %v5006_v39 = vsub.f32 0.0, %v4974_v43  ;;  %v4611_v59 = vmul.f32 %v6991_v56, %v9874_v1  ;;  %v5035_v55 = vadd.f32 1.0, %v5019_v52  ;;  %v4876_v61 = vmul.f32 %v4860_v33, %v9733_v24 }
 0xfab   : > { %v5007_v12 = vsub.f32 0.0, %v4975_v5  ;;  %v9944_v14 = vadd.f32 1.0, %v4482_v10  ;;  %v4781_v17 = vmul.f32 %v4765_v21, %v9925_v11  ;;  %v9950_v53 = vand.u32 2147483647, %v9936_v22  ;;  %v4420_v10 = vpop.f32.mrf.mxu2 }
 0xfac   : > { %v5022_v50 = vsel %vm4990_vm6, %v4974_v43, %v5006_v39  ;;  %v4612_v20 = vsub.f32 1.0, %v4611_v59  ;;  %v4929_v57 = vmul.f32 1.442695, %v4909_v19  ;;  %v4619_v16 = vand.u32 2147483647, %v9874_v1 }
 0xfad   : > { %v4621_v44 = vand.u32 2147483648, %v9874_v1  ;;  %6992 = vrcp.f32 %v9944_v14  ;;  %v5023_v24 = vsel %vm4991_vm15, %v4975_v5, %v5007_v12  ;;  %v4797_v4 = vadd.f32 1.4214138, %v4781_v17 }
 0xfae   : > { %v4613_v29 = vmul.f32 %v6991_v56, %v4612_v20  ;;  %vm4616_vm11 = vweird.f32 %v6991_v56  ;;  %v9958_v3 = vmul.f32 %v5034_v35, %v9737_v25  ;;  %v9961_v40 = vmul.f32 %v9885_v63, %v4873_v32  ;;  %v6669_v35 = vld [vmem:[%s10350_s8 + $0x148] sm:$0xff] }
 0xfaf   : > { %v5038_v62 = vadd.f32 1.0, %v5022_v50  ;;  %v4483_v31 = vmul.f32 0.3275911, %v9950_v53  ;;  %v4813_v43 = vmul.f32 %v4797_v4, %v9925_v11  ;;  %vm4615_vm14 = vweird.f32 %v9874_v1  ;;  %5354 = vmatpush.bf16.msrb.mxu0 %v6669_v35 }
 0xfb0   : > { %v4614_v48 = vadd.f32 %v6991_v56, %v4613_v29  ;;  %v4896_v7 = vsub.f32 0.0, %v9848_v9  ;;  %v5039_v33 = vadd.f32 1.0, %v5023_v24  ;;  %vm4617_vm0 = vmor %vm4615_vm14, %vm4616_vm11  ;;  %v4622_v54 = vor.u32 1.1754944e-38, %v4621_v44 }
 0xfb1   : > { %v9967_v52 = vadd.f32 1.0, %v4483_v31  ;;  %v9970_v25 = vadd.f32 %v4363_v6, %v9638_v8  ;;  %v4829_v63 = vadd.f32 -0.28449672, %v4813_v43  ;;  %6994 = vpow2.f32 %v4929_v57 }
 0xfb2   : > { %v4618_v39 = vsel %vm4617_vm0, %v6991_v56, %v4614_v48  ;;  %vm4620_vm5 = vcmp.eq.f32.partialorder %v4619_v16, 8.507059e+37  ;;  %v5051_v5 = vmul.f32 %v5035_v55, %v9798_v42  ;;  %v5054_v1 = vmul.f32 %v5038_v62, %v9826_v23  ;;  %v6677_v56 = vld [vmem:[%s10350_s8 + $0x188] sm:$0xff]  ;;  %v6676_v62 = vld [vmem:[%s10350_s8 + $0x180] sm:$0xff] }
 0xfb3   : > { %v9972_v27 = vpop.eup %6992  ;;  %v9976_v19 = vsel %vm4620_vm5, %v4622_v54, %v4618_v39  ;;  %6996 = vrcp.f32 %v9967_v52  ;;  %v9986_v32 = vmul.f32 %v9900_v38, %v4876_v61  ;;  %v4845_v42 = vmul.f32 %v4829_v63, %v9925_v11  ;;  %5371 = vmatpush.bf16.msrb.mxu1 %v6677_v56  ;;  %v6662_v38 = vld [vmem:[%s10350_s8 + $0x110] sm:$0xff] }
 0xfb4   : > { %v4752_v23 = vmul.f32 1.0614054, %v9976_v19  ;;  %v4641_v21 = vmul.f32 %v9972_v27, %v9944_v14  ;;  %v4969_v59 = vsub.f32 1.0, %v9961_v40  ;;  %v5055_v55 = vmul.f32 %v5039_v33, %v9844_v41  ;;  %v6686_v61 = vld [vmem:[%s10350_s8 + $0x1d0] sm:$0xff]  ;;  %5336 = vmatpush.bf16.msrb.mxu3 %v6662_v38 }
 0xfb5   : > { %v4912_v12 = vmul.f32 %v4896_v7, %v9848_v9  ;;  %v9996_v50 = vmul.f32 0.70710677, %v9970_v25  ;;  %v4861_v17 = vadd.f32 0.2548296, %v4845_v42  ;;  %v10005_v41 = vadd.f32 %v4420_v10, %v9643_v0  ;;  %5387 = vmatpush.bf16.msrb.mxu2 %v6686_v61 }
 0xfb6   : > { %v4768_v20 = vadd.f32 -1.4531521, %v4752_v23  ;;  %v4642_v57 = vsub.f32 1.0, %v4641_v21  ;;  %v5066_v9 = vpack.c.bf16 %v5054_v1, %v9958_v3  ;;  %vm4645_vm13 = vweird.f32 %v9944_v14  ;;  %v6668_v3 = vld [vmem:[%s10350_s8 + $0x140] sm:$0xff] }
 0xfb7   : > { %v4649_v16 = vand.u32 2147483647, %v9944_v14  ;;  %v10011_v44 = vand.u32 2147483647, %v9996_v50  ;;  %v6995_v24 = vpop.eup %6994  ;;  %vm4985_vm2 = vcmp.ge.f32.partialorder %v9657_v58, 0.0  ;;  %v4877_v4 = vmul.f32 %v4861_v17, %v9925_v11  ;;  %5355 = vmatpush.bf16.msrb.mxu0 %v6668_v3  ;;  %5372 = vmatpush.bf16.msrb.mxu1 %v6676_v62 }
 0xfb8   : > { %v4784_v29 = vmul.f32 %v4768_v20, %v9976_v19  ;;  %v4643_v6 = vmul.f32 %v9972_v27, %v4642_v57  ;;  %vm4646_vm3 = vweird.f32 %v9972_v27  ;;  %v5067_v43 = vpack.c.bf16 %v5055_v55, %v5051_v5 }
 0xfb9   : > { %v10024_v31 = vpop.eup %6996  ;;  %v4651_v48 = vand.u32 2147483648, %v9944_v14  ;;  %v4481_v11 = vmul.f32 0.3275911, %v10011_v44  ;;  %v10029_v7 = vmul.f32 0.70710677, %v10005_v41  ;;  %v4957_v33 = vmul.f32 %v6995_v24, %v4877_v4  ;;  %vm10039_vm4 = vmor %vm4645_vm13, %vm4646_vm3 }
 0xfba   : > { %v4800_v54 = vadd.f32 1.4214138, %v4784_v29  ;;  %v4644_v63 = vadd.f32 %v9972_v27, %v4643_v6  ;;  %v4656_v39 = vmul.f32 %v10024_v31, %v9967_v52  ;;  %v4972_v1 = vsub.f32 1.0, %v9986_v32  ;;  %5356 = vmatmul.bf16.vlgmr.msrb.gmra.mxu0 %v5066_v9  ;;  %5373 = vmatmul.bf16.vlgmr.msrb.gmra.mxu1 %v5067_v43 }
 0xfbb   : > { %v4935_v10 = vmul.f32 1.442695, %v4912_v12  ;;  %v10043_v35 = vadd.f32 1.0, %v4481_v11  ;;  %v10046_v56 = vand.u32 2147483647, %v10029_v7  ;;  %v4973_v42 = vsub.f32 1.0, %v4957_v33 }
 0xfbc   : > { %v4816_v23 = vmul.f32 %v4800_v54, %v9976_v19  ;;  %v4648_v32 = vsel %vm10039_vm4, %v9972_v27, %v4644_v63  ;;  %v4657_v21 = vsub.f32 1.0, %v4656_v39  ;;  %v5001_v14 = vsub.f32 0.0, %v4969_v59  ;;  %v6661_v63 = vld [vmem:[%s10350_s8 + $0x108] sm:$0xff] }
 0xfbd   : > { %vm4989_vm7 = vcmp.ge.f32.partialorder %v9753_v2, 0.0  ;;  %v4652_v55 = vor.u32 1.1754944e-38, %v4651_v48  ;;  %6998 = vrcp.f32 %v10043_v35  ;;  %v5005_v12 = vsub.f32 0.0, %v4973_v42  ;;  %5337 = vmatpush.bf16.msrb.mxu3 %v6661_v63 }
 0xfbe   : > { %v4832_v38 = vadd.f32 -0.28449672, %v4816_v23  ;;  %vm4650_vm8 = vcmp.eq.f32.partialorder %v4649_v16, 8.507059e+37  ;;  %v4658_v61 = vmul.f32 %v10024_v31, %v4657_v21  ;;  %v5004_v17 = vsub.f32 0.0, %v4972_v1 }
 0xfbf   : > { %7000 = vpow2.f32 %v4935_v10  ;;  %v10057_v20 = vsel %vm4650_vm8, %v4652_v55, %v4648_v32  ;;  %v4484_v27 = vmul.f32 0.3275911, %v10046_v56  ;;  %v5021_v57 = vsel %vm4989_vm7, %v4973_v42, %v5005_v12  ;;  %v4384_v42 = vpop.f32.mrf.mxu0 }
 0xfc0   : > { %v4848_v24 = vmul.f32 %v4832_v38, %v9976_v19  ;;  %v4659_v2 = vadd.f32 %v10024_v31, %v4658_v61  ;;  %vm4661_vm1 = vweird.f32 %v10024_v31  ;;  %v5017_v9 = vsel %vm4985_vm2, %v4969_v59, %v5001_v14  ;;  %v4403_v38 = vpop.f32.mrf.mxu1  ;;  %v6660_v61 = vld [vmem:[%s10350_s8 + $0x100] sm:$0xff] }
 0xfc1   : > { %v4664_v16 = vand.u32 2147483647, %v9967_v52  ;;  %v4666_v4 = vand.u32 2147483648, %v9967_v52  ;;  %v10069_v29 = vadd.f32 1.0, %v4484_v27  ;;  %v5037_v6 = vadd.f32 1.0, %v5021_v57  ;;  %5338 = vmatpush.bf16.msrb.mxu3 %v6660_v61 }
 0xfc2   : > { %v4864_v3 = vadd.f32 0.2548296, %v4848_v24  ;;  %v4754_v62 = vmul.f32 1.0614054, %v10057_v20  ;;  %vm4660_vm6 = vweird.f32 %v9967_v52  ;;  %vm4988_vm9 = vcmp.ge.f32.partialorder %v9660_v30, 0.0 }
 0xfc3   : > { %v10073_v43 = vpop.eup %6998  ;;  %v4429_v40 = vmul.f32 0.5, %v9741_v46  ;;  %vm10077_vm10 = vmor %vm4660_vm6, %vm4661_vm1  ;;  %7002 = vrcp.f32 %v10069_v29  ;;  %v5033_v59 = vadd.f32 1.0, %v5017_v9  ;;  %v4425_v30 = vmul.f32 0.5, %v9650_v60 }
 0xfc4   : > { %v4880_v48 = vmul.f32 %v4864_v3, %v9976_v19  ;;  %v4663_v11 = vsel %vm10077_vm10, %v10024_v31, %v4659_v2  ;;  %v4626_v52 = vmul.f32 %v10073_v43, %v10043_v35  ;;  %v5020_v46 = vsel %vm4988_vm9, %v4972_v1, %v5004_v17  ;;  %v6685_v19 = vld [vmem:[%s10350_s8 + $0x1c8] sm:$0xff]  ;;  %v6684_v17 = vld [vmem:[%s10350_s8 + $0x1c0] sm:$0xff] }
 0xfc5   : > { %v7001_v33 = vpop.eup %7000  ;;  %vm4665_vm12 = vcmp.eq.f32.partialorder %v4664_v16, 8.507059e+37  ;;  %v4667_v54 = vor.u32 1.1754944e-38, %v4666_v4  ;;  %v5053_v39 = vmul.f32 %v5037_v6, %v4429_v40  ;;  %v4770_v31 = vadd.f32 -1.4531521, %v4754_v62  ;;  %5388 = vmatpush.bf16.msrb.mxu2 %v6685_v19 }
 0xfc6   : > { %v4960_v10 = vmul.f32 %v7001_v33, %v4880_v48  ;;  %v4627_v5 = vsub.f32 1.0, %v4626_v52  ;;  %v5049_v60 = vmul.f32 %v5033_v59, %v4425_v30  ;;  %v4428_v14 = vmul.f32 0.5, %v9654_v36 }
 0xfc7   : > { %v10095_v23 = vsel %vm4665_vm12, %v4667_v54, %v4663_v11  ;;  %v5036_v55 = vadd.f32 1.0, %v5020_v46  ;;  %v10102_v12 = vadd.f32 %v4384_v42, %v9625_v47  ;;  %v4786_v24 = vmul.f32 %v4770_v31, %v10057_v20 }
 0xfc8   : > { %v4976_v1 = vsub.f32 1.0, %v4960_v10  ;;  %v4628_v32 = vmul.f32 %v10073_v43, %v4627_v5  ;;  %v5065_v27 = vpack.c.bf16 %v5053_v39, %v5049_v60  ;;  %v4755_v2 = vmul.f32 1.0614054, %v10095_v23  ;;  %v4365_v5 = vpop.f32.mrf.mxu3 }
 0xfc9   : > { %v10098_v21 = vpop.eup %7002  ;;  %vm4992_vm15 = vcmp.ge.f32.partialorder %v9830_v34, 0.0  ;;  %vm4631_vm11 = vweird.f32 %v10073_v43  ;;  %5389 = vmatpush.bf16.msrb.mxu2 %v6684_v17  ;;  %v4432_v9 = vmul.f32 0.5, %v9805_v26  ;;  %v4636_v4 = vand.u32 2147483648, %v10043_v35 }
 0xfca   : > { %v5008_v57 = vsub.f32 0.0, %v4976_v1  ;;  %v4629_v47 = vadd.f32 %v10073_v43, %v4628_v32  ;;  %v4671_v36 = vmul.f32 %v10098_v21, %v10069_v29  ;;  %v10120_v6 = vadd.f32 %v4403_v38, %v9627_v28  ;;  %5339 = vmatmul.bf16.vlgmr.msrb.gmra.mxu3 %v5065_v27 }
 0xfcb   : > { %vm4630_vm14 = vweird.f32 %v10043_v35  ;;  %v4634_v34 = vand.u32 2147483647, %v10043_v35  ;;  %v10125_v62 = vmul.f32 0.70710677, %v10102_v12  ;;  %v5052_v40 = vmul.f32 %v5036_v55, %v4428_v14 }
 0xfcc   : > { %v5024_v16 = vsel %vm4992_vm15, %v4976_v1, %v5008_v57  ;;  %v4802_v58 = vadd.f32 1.4214138, %v4786_v24  ;;  %v4771_v59 = vadd.f32 -1.4531521, %v4755_v2  ;;  %vm4632_vm0 = vmor %vm4630_vm14, %vm4631_vm11  ;;  %v4672_v28 = vsub.f32 1.0, %v4671_v36 }
 0xfcd   : > { %v5040_v3 = vadd.f32 1.0, %v5024_v16  ;;  %v4633_v48 = vsel %vm4632_vm0, %v10073_v43, %v4629_v47  ;;  %v10131_v11 = vand.u32 2147483647, %v10125_v62  ;;  %v4637_v52 = vor.u32 1.1754944e-38, %v4636_v4 }
 0xfce   : > { %v10134_v35 = vmul.f32 0.70710677, %v10120_v6  ;;  %vm4635_vm5 = vcmp.eq.f32.partialorder %v4634_v34, 8.507059e+37  ;;  %v4818_v46 = vmul.f32 %v4802_v58, %v10057_v20  ;;  %v4898_v54 = vsub.f32 0.0, %v9928_v51 }
 0xfcf   : > { %v5056_v26 = vmul.f32 %v5040_v3, %v4432_v9  ;;  %v4486_v30 = vmul.f32 0.3275911, %v10131_v11  ;;  %v10139_v63 = vsel %vm4635_vm5, %v4637_v52, %v4633_v48  ;;  %v4787_v43 = vmul.f32 %v4771_v59, %v10095_v23  ;;  %v4422_v59 = vpop.f32.mrf.mxu2 }
 0xfd0   : > { %v4673_v19 = vmul.f32 %v10098_v21, %v4672_v28  ;;  %v4899_v10 = vsub.f32 0.0, %v9950_v53  ;;  %v10147_v31 = vand.u32 2147483647, %v10134_v35  ;;  %v4753_v42 = vmul.f32 1.0614054, %v10139_v63 }
 0xfd1   : > { %v5068_v33 = vpack.c.bf16 %v5056_v26, %v5052_v40  ;;  %v10143_v39 = vadd.f32 1.0, %v4486_v30  ;;  %v4897_v60 = vsub.f32 0.0, %v10011_v44  ;;  %v4834_v1 = vadd.f32 -0.28449672, %v4818_v46 }
 0xfd2   : > { %v4914_v32 = vmul.f32 %v4898_v54, %v9928_v51  ;;  %v4803_v14 = vadd.f32 1.4214138, %v4787_v43  ;;  %v4674_v55 = vadd.f32 %v10098_v21, %v4673_v19  ;;  %vm4676_vm13 = vweird.f32 %v10098_v21 }
 0xfd3   : > { %5390 = vmatmul.bf16.vlgmr.msrb.gmra.mxu2 %v5068_v33  ;;  %7004 = vrcp.f32 %v10143_v39  ;;  %v10156_v38 = vadd.f32 %v4365_v5, %v9638_v8  ;;  %v4915_v61 = vmul.f32 %v4899_v10, %v9950_v53  ;;  %v4681_v17 = vand.u32 2147483648, %v10069_v29 }
 0xfd4   : > { %v4487_v27 = vmul.f32 0.3275911, %v10147_v31  ;;  %v4769_v57 = vadd.f32 -1.4531521, %v4753_v42  ;;  %v4913_v24 = vmul.f32 %v4897_v60, %v10011_v44  ;;  %vm4675_vm2 = vweird.f32 %v10069_v29 }
 0xfd5   : > { %v4679_v51 = vand.u32 2147483647, %v10069_v29  ;;  %v4850_v2 = vmul.f32 %v4834_v1, %v10057_v20  ;;  %vm10165_vm3 = vmor %vm4675_vm2, %vm4676_vm13  ;;  %v4900_v8 = vsub.f32 0.0, %v10046_v56  ;;  %v4939_v9 = vmul.f32 1.442695, %v4914_v32 }
 0xfd6   : > { %v10170_v53 = vadd.f32 1.0, %v4487_v27  ;;  %v4819_v16 = vmul.f32 %v4803_v14, %v10095_v23  ;;  %v4678_v44 = vsel %vm10165_vm3, %v10098_v21, %v4674_v55  ;;  %v10177_v29 = vmul.f32 0.70710677, %v10156_v38 }
 0xfd7   : > { %v4941_v4 = vmul.f32 1.442695, %v4915_v61  ;;  %v4682_v3 = vor.u32 1.1754944e-38, %v4681_v17  ;;  %v4785_v40 = vmul.f32 %v4769_v57, %v10139_v63  ;;  %v4937_v58 = vmul.f32 1.442695, %v4913_v24 }
 0xfd8   : > { %vm4680_vm4 = vcmp.eq.f32.partialorder %v4679_v51, 8.507059e+37  ;;  %7006 = vrcp.f32 %v10170_v53  ;;  %v4866_v26 = vadd.f32 0.2548296, %v4850_v2  ;;  %v4916_v28 = vmul.f32 %v4900_v8, %v10046_v56 }
 0xfd9   : > { %v7005_v36 = vpop.eup %7004  ;;  %v10182_v48 = vsel %vm4680_vm4, %v4682_v3, %v4678_v44  ;;  %7008 = vpow2.f32 %v4939_v9  ;;  %v4835_v52 = vadd.f32 -0.28449672, %v4819_v16  ;;  %v4711_v33 = vand.u32 2147483648, %v10143_v39 }
 0xfda   : > { %v4701_v34 = vmul.f32 %v7005_v36, %v10143_v39  ;;  %v10187_v30 = vand.u32 2147483647, %v10177_v29  ;;  %vm4706_vm7 = vweird.f32 %v7005_v36  ;;  %v4709_v54 = vand.u32 2147483647, %v10143_v39 }
 0xfdb   : > { %v10191_v43 = vadd.f32 %v4422_v59, %v9643_v0  ;;  %7010 = vpow2.f32 %v4941_v4  ;;  %v4801_v19 = vadd.f32 1.4214138, %v4785_v40  ;;  %v4756_v10 = vmul.f32 1.0614054, %v10182_v48 }
 0xfdc   : > { %v4702_v21 = vsub.f32 1.0, %v4701_v34  ;;  %v4485_v56 = vmul.f32 0.3275911, %v10187_v30  ;;  %v4882_v5 = vmul.f32 %v4866_v26, %v10057_v20  ;;  %v4943_v42 = vmul.f32 1.442695, %v4916_v28 }
 0xfdd   : > { %vm4705_vm8 = vweird.f32 %v10143_v39  ;;  %v4851_v32 = vmul.f32 %v4835_v52, %v10095_v23  ;;  %v4712_v14 = vor.u32 1.1754944e-38, %v4711_v33  ;;  %v4902_v0 = vsub.f32 0.0, %v10131_v11 }
 0xfde   : > { %v4703_v46 = vmul.f32 %v7005_v36, %v4702_v21  ;;  %v7007_v1 = vpop.eup %7006  ;;  %vm4707_vm1 = vmor %vm4705_vm8, %vm4706_vm7  ;;  %v10199_v55 = vadd.f32 1.0, %v4485_v56  ;;  %vm4710_vm6 = vcmp.eq.f32.partialorder %v4709_v54, 8.507059e+37  ;;  %v10203_v27 = vmul.f32 0.70710677, %v10191_v43 }
 0xfdf   : > { %v4716_v17 = vmul.f32 %v7007_v1, %v10170_v53  ;;  %v7009_v20 = vpop.eup %7008  ;;  %v4817_v57 = vmul.f32 %v4801_v19, %v10139_v63  ;;  %v4772_v39 = vadd.f32 -1.4531521, %v4756_v10  ;;  %v10210_v51 = vmul.f32 0.5, %v9877_v13 }
 0xfe0   : > { %v4704_v60 = vadd.f32 %v7005_v36, %v4703_v46  ;;  %7012 = vrcp.f32 %v10199_v55  ;;  %v4867_v9 = vadd.f32 0.2548296, %v4851_v32  ;;  %v4724_v16 = vand.u32 2147483647, %v10170_v53 }
 0xfe1   : > { %7014 = vpow2.f32 %v4937_v58  ;;  %v4717_v47 = vsub.f32 1.0, %v4716_v17  ;;  %v7011_v8 = vpop.eup %7010  ;;  %v4726_v44 = vand.u32 2147483648, %v10170_v53  ;;  %vm4721_vm9 = vweird.f32 %v7007_v1 }
 0xfe2   : > { %v4708_v61 = vsel %vm4707_vm1, %v7005_v36, %v4704_v60  ;;  %v10213_v36 = vmul.f32 %v7009_v20, %v4882_v5  ;;  %v10218_v34 = vand.u32 2147483647, %v10203_v27  ;;  %v4833_v13 = vadd.f32 -0.28449672, %v4817_v57 }
 0xfe3   : > { %v10206_v24 = vsel %vm4710_vm6, %v4712_v14, %v4708_v61  ;;  %v4718_v3 = vmul.f32 %v7007_v1, %v4717_v47  ;;  %v4788_v40 = vmul.f32 %v4772_v39, %v10182_v48  ;;  %7016 = vpow2.f32 %v4943_v42 }
 0xfe4   : > { %v4758_v2 = vmul.f32 1.0614054, %v10206_v24  ;;  %v4918_v58 = vmul.f32 %v4902_v0, %v10131_v11  ;;  %vm4720_vm10 = vweird.f32 %v10170_v53  ;;  %v4488_v28 = vmul.f32 0.3275911, %v10218_v34 }
 0xfe5   : > { %v4719_v26 = vadd.f32 %v7007_v1, %v4718_v3  ;;  %v4978_v52 = vsub.f32 1.0, %v10213_v36  ;;  %v4883_v33 = vmul.f32 %v4867_v9, %v10095_v23  ;;  %vm4722_vm12 = vmor %vm4720_vm10, %vm4721_vm9  ;;  %v4727_v46 = vor.u32 1.1754944e-38, %v4726_v44 }
 0xfe6   : > { %v4774_v4 = vadd.f32 -1.4531521, %v4758_v2  ;;  %v7013_v21 = vpop.eup %7012  ;;  %v4903_v54 = vsub.f32 0.0, %v10147_v31  ;;  %vm4725_vm15 = vcmp.eq.f32.partialorder %v4724_v16, 8.507059e+37  ;;  %v4849_v53 = vmul.f32 %v4833_v13, %v10139_v63 }
 0xfe7   : > { %v10228_v19 = vpop.eup %7014  ;;  %v4723_v11 = vsel %vm4722_vm12, %v7007_v1, %v4719_v26  ;;  %v4686_v56 = vmul.f32 %v7013_v21, %v10199_v55  ;;  %v4947_v5 = vmul.f32 1.442695, %v4918_v58  ;;  %v10234_v60 = vadd.f32 1.0, %v4488_v28 }
 0xfe8   : > { %v4790_v59 = vmul.f32 %v4774_v4, %v10206_v24  ;;  %v10232_v42 = vsel %vm4725_vm15, %v4727_v46, %v4723_v11  ;;  %v4804_v32 = vadd.f32 1.4214138, %v4788_v40  ;;  %v4919_v1 = vmul.f32 %v4903_v54, %v10147_v31 }
 0xfe9   : > { %v4759_v14 = vmul.f32 1.0614054, %v10232_v42  ;;  %v4687_v0 = vsub.f32 1.0, %v4686_v56  ;;  %v10238_v61 = vpop.eup %7016  ;;  %v4694_v17 = vand.u32 2147483647, %v10199_v55  ;;  %v4696_v20 = vand.u32 2147483648, %v10199_v55 }
 0xfea   : > { %v4806_v10 = vadd.f32 1.4214138, %v4790_v59  ;;  %7018 = vrcp.f32 %v10234_v60  ;;  %vm4691_vm11 = vweird.f32 %v7013_v21  ;;  %vm4994_vm14 = vcmp.ge.f32.partialorder %v9912_v37, 0.0 }
 0xfeb   : > { %v4775_v39 = vadd.f32 -1.4531521, %v4759_v14  ;;  %v4688_v2 = vmul.f32 %v7013_v21, %v4687_v0  ;;  %v5010_v47 = vsub.f32 0.0, %v4978_v52  ;;  %v10245_v36 = vmul.f32 %v7011_v8, %v4883_v33 }
 0xfec   : > { %v4822_v23 = vmul.f32 %v4806_v10, %v10206_v24  ;;  %7020 = vpow2.f32 %v4947_v5  ;;  %vm4690_vm0 = vweird.f32 %v10199_v55  ;;  %v4865_v44 = vadd.f32 0.2548296, %v4849_v53 }
 0xfed   : > { %v4791_v31 = vmul.f32 %v4775_v39, %v10232_v42  ;;  %v4689_v16 = vadd.f32 %v7013_v21, %v4688_v2  ;;  %v4820_v4 = vmul.f32 %v4804_v32, %v10182_v48  ;;  %v4949_v3 = vmul.f32 1.442695, %v4919_v1  ;;  %vm4692_vm5 = vmor %vm4690_vm0, %vm4691_vm11 }
 0xfee   : > { %v4838_v57 = vadd.f32 -0.28449672, %v4822_v23  ;;  %v4697_v13 = vor.u32 1.1754944e-38, %v4696_v20  ;;  %vm4695_vm13 = vcmp.eq.f32.partialorder %v4694_v17, 8.507059e+37  ;;  %v5026_v26 = vsel %vm4994_vm14, %v4978_v52, %v5010_v47 }
 0xfef   : > { %v4807_v58 = vadd.f32 1.4214138, %v4791_v31  ;;  %v4693_v59 = vsel %vm4692_vm5, %v7013_v21, %v4689_v16  ;;  %vm4998_vm2 = vcmp.ge.f32.partialorder %v10125_v62, 0.0  ;;  %v4901_v55 = vsub.f32 0.0, %v10187_v30 }
 0xff0   : > { %v4854_v9 = vmul.f32 %v4838_v57, %v10206_v24  ;;  %v7019_v8 = vpop.eup %7018  ;;  %v10254_v28 = vsel %vm4695_vm13, %v4697_v13, %v4693_v59  ;;  %v4979_v11 = vsub.f32 1.0, %v10245_v36  ;;  %v4881_v37 = vmul.f32 %v4865_v44, %v10139_v63 }
 0xff1   : > { %v4823_v46 = vmul.f32 %v4807_v58, %v10232_v42  ;;  %v4757_v54 = vmul.f32 1.0614054, %v10254_v28  ;;  %v4731_v10 = vmul.f32 %v7019_v8, %v10234_v60  ;;  %v4836_v52 = vadd.f32 -0.28449672, %v4820_v4 }
 0xff2   : > { %v4870_v40 = vadd.f32 0.2548296, %v4854_v9  ;;  %v7021_v21 = vpop.eup %7020  ;;  %7022 = vpow2.f32 %v4949_v3  ;;  %vm4995_vm3 = vcmp.ge.f32.partialorder %v9936_v22, 0.0  ;;  %vm4736_vm4 = vweird.f32 %v7019_v8 }
 0xff3   : > { %v4839_v53 = vadd.f32 -0.28449672, %v4823_v46  ;;  %v4773_v5 = vadd.f32 -1.4531521, %v4757_v54  ;;  %v4732_v32 = vsub.f32 1.0, %v4731_v10  ;;  %v4741_v14 = vand.u32 2147483648, %v10234_v60 }
 0xff4   : > { %v4886_v33 = vmul.f32 %v4870_v40, %v10206_v24  ;;  %v4917_v24 = vmul.f32 %v4901_v55, %v10187_v30  ;;  %v4739_v23 = vand.u32 2147483647, %v10234_v60  ;;  %v5042_v20 = vadd.f32 1.0, %v5026_v26 }
 0xff5   : > { %v4855_v1 = vmul.f32 %v4839_v53, %v10232_v42  ;;  %v4789_v63 = vmul.f32 %v4773_v5, %v10254_v28  ;;  %v4733_v17 = vmul.f32 %v7019_v8, %v4732_v32  ;;  %v5011_v57 = vsub.f32 0.0, %v4979_v11 }
 0xff6   : > { %v4966_v56 = vmul.f32 %v7021_v21, %v4886_v33  ;;  %v4852_v39 = vmul.f32 %v4836_v52, %v10182_v48  ;;  %vm4735_vm7 = vweird.f32 %v10234_v60  ;;  %v4961_v31 = vmul.f32 %v10228_v19, %v4881_v37 }
 0xff7   : > { %v4871_v47 = vadd.f32 0.2548296, %v4855_v1  ;;  %v4805_v30 = vadd.f32 1.4214138, %v4789_v63  ;;  %v4734_v36 = vadd.f32 %v7019_v8, %v4733_v17  ;;  %v4945_v16 = vmul.f32 1.442695, %v4917_v24  ;;  %vm4737_vm8 = vmor %vm4735_vm7, %vm4736_vm4 }
 0xff8   : > { %v4982_v0 = vsub.f32 1.0, %v4966_v56  ;;  %v7023_v9 = vpop.eup %7022  ;;  %vm4740_vm1 = vcmp.eq.f32.partialorder %v4739_v23, 8.507059e+37  ;;  %v4742_v44 = vor.u32 1.1754944e-38, %v4741_v14  ;;  %v4438_v40 = vmul.f32 0.5, %v10102_v12 }
 0xff9   : > { %v4887_v3 = vmul.f32 %v4871_v47, %v10232_v42  ;;  %v4821_v13 = vmul.f32 %v4805_v30, %v10254_v28  ;;  %v4738_v60 = vsel %vm4737_vm8, %v7019_v8, %v4734_v36  ;;  %v4904_v26 = vsub.f32 0.0, %v10218_v34 }
 0xffa   : > { %v5014_v2 = vsub.f32 0.0, %v4982_v0  ;;  %v4743_v59 = vsel %vm4740_vm1, %v4742_v44, %v4738_v60  ;;  %v4868_v19 = vadd.f32 0.2548296, %v4852_v39  ;;  %v5058_v54 = vmul.f32 %v5042_v20, %v10210_v51 }
 0xffb   : > { %v4967_v55 = vmul.f32 %v7023_v9, %v4887_v3  ;;  %v4837_v33 = vadd.f32 -0.28449672, %v4821_v13  ;;  %v4760_v46 = vmul.f32 1.0614054, %v4743_v59  ;;  %v5027_v62 = vsel %vm4995_vm3, %v4979_v11, %v5011_v57 }
 0xffc   : > { %v5030_v4 = vsel %vm4998_vm2, %v4982_v0, %v5014_v2  ;;  %7024 = vpow2.f32 %v4945_v16  ;;  %v4977_v42 = vsub.f32 1.0, %v4961_v31  ;;  %v4920_v37 = vmul.f32 %v4904_v26, %v10218_v34 }
 0xffd   : > { %v5046_v58 = vadd.f32 1.0, %v5030_v4  ;;  %v4983_v21 = vsub.f32 1.0, %v4967_v55  ;;  %v4853_v8 = vmul.f32 %v4837_v33, %v10254_v28  ;;  %v4776_v12 = vadd.f32 -1.4531521, %v4760_v46 }
 0xffe   : > { %v4884_v56 = vmul.f32 %v4868_v19, %v10182_v48  ;;  %v5043_v24 = vadd.f32 1.0, %v5027_v62  ;;  %vm4999_vm6 = vcmp.ge.f32.partialorder %v10134_v35, 0.0  ;;  %v5009_v22 = vsub.f32 0.0, %v4977_v42 }
 0xfff   : > { %v5062_v10 = vmul.f32 %v5046_v58, %v4438_v40  ;;  %v5015_v53 = vsub.f32 0.0, %v4983_v21  ;;  %v4869_v5 = vadd.f32 0.2548296, %v4853_v8  ;;  %v4792_v32 = vmul.f32 %v4776_v12, %v4743_v59 }
0x1000   : > { %v4435_v0 = vmul.f32 0.5, %v9905_v45  ;;  %v4439_v34 = vmul.f32 0.5, %v10120_v6  ;;  %v4951_v63 = vmul.f32 1.442695, %v4920_v37  ;;  %v4964_v48 = vmul.f32 %v10238_v61, %v4884_v56 }
0x1001   : > { %v5070_v52 = vpack.c.bf16 %v5062_v10, %v5058_v54  ;;  %v5031_v51 = vsel %vm4999_vm6, %v4983_v21, %v5015_v53  ;;  %v4885_v11 = vmul.f32 %v4869_v5, %v10254_v28  ;;  %v4808_v23 = vadd.f32 1.4214138, %v4792_v32 }
0x1002   : > { %v7025_v14 = vpop.eup %7024  ;;  %v5047_v1 = vadd.f32 1.0, %v5031_v51  ;;  %v5059_v57 = vmul.f32 %v5043_v24, %v4435_v0  ;;  %vm4993_vm9 = vcmp.ge.f32.partialorder %v9996_v50, 0.0  ;;  %7026 = vpow2.f32 %v4951_v63 }
0x1003   : > { %5359 = vmatmul.bf16.gmra.mxu0 %v5070_v52  ;;  %v4965_v17 = vmul.f32 %v7025_v14, %v4885_v11  ;;  %v4824_v20 = vmul.f32 %v4808_v23, %v4743_v59  ;;  %v5025_v39 = vsel %vm4993_vm9, %v4977_v42, %v5009_v22  ;;  %v4980_v30 = vsub.f32 1.0, %v4964_v48 }
0x1004   : > { %v5063_v35 = vmul.f32 %v5047_v1, %v4439_v34  ;;  %v5041_v9 = vadd.f32 1.0, %v5025_v39  ;;  %vm4997_vm10 = vcmp.ge.f32.partialorder %v10177_v29, 0.0  ;;  %v4433_v31 = vmul.f32 0.5, %v9970_v25 }
0x1005   : > { %v4981_v2 = vsub.f32 1.0, %v4965_v17  ;;  %v4840_v47 = vadd.f32 -0.28449672, %v4824_v20  ;;  %v4437_v16 = vmul.f32 0.5, %v10156_v38  ;;  %v5012_v44 = vsub.f32 0.0, %v4980_v30 }
0x1006   : > { %v5071_v28 = vpack.c.bf16 %v5063_v35, %v5059_v57  ;;  %v5057_v13 = vmul.f32 %v5041_v9, %v4433_v31  ;;  %vm4996_vm12 = vcmp.ge.f32.partialorder %v10029_v7, 0.0  ;;  %vm5000_vm15 = vcmp.ge.f32.partialorder %v10203_v27, 0.0  ;;  %v7039_v27 = vld [vmem:[%s10344_s2 + $0x8] sm:$0x3f] }
0x1007   : > { %v5013_v36 = vsub.f32 0.0, %v4981_v2  ;;  %v4856_v45 = vmul.f32 %v4840_v47, %v4743_v59  ;;  %v5028_v26 = vsel %vm4996_vm12, %v4980_v30, %v5012_v44  ;;  %v4436_v38 = vmul.f32 0.5, %v10005_v41 }
0x1008   : > { %5376 = vmatmul.bf16.gmra.mxu1 %v5071_v28  ;;  %v7027_v3 = vpop.eup %7026  ;;  %v5044_v55 = vadd.f32 1.0, %v5028_v26  ;;  %v4440_v33 = vmul.f32 0.5, %v10191_v43  ;;  %v5138_v41 = vperm.slane %v7039_v27, 5 }
0x1009   : > { %v5029_v6 = vsel %vm4997_vm10, %v4981_v2, %v5013_v36  ;;  %v4872_v61 = vadd.f32 0.2548296, %v4856_v45 }
0x100a   : > { %v5045_v50 = vadd.f32 1.0, %v5029_v6  ;;  %v5060_v46 = vmul.f32 %v5044_v55, %v4436_v38 }
0x100b   : > { %v4888_v4 = vmul.f32 %v4872_v61, %v4743_v59 }
0x100c   : > { %v5061_v60 = vmul.f32 %v5045_v50, %v4437_v16 }
0x100d   : > { %v4968_v40 = vmul.f32 %v7027_v3, %v4888_v4  ;;  %v362_v4 = vld [vmem:[%s10345_s3] sm:$0x3] }
0x100e   : > { %v5069_v58 = vpack.c.bf16 %v5061_v60, %v5057_v13 }
0x100f   : > { %v4984_v19 = vsub.f32 1.0, %v4968_v40 }
0x1010   : > { %5342 = vmatmul.bf16.gmra.mxu3 %v5069_v58  ;;  %v5441_v58 = vperm.slane %v362_v4, 0 }
0x1011   : > { %v5016_v29 = vsub.f32 0.0, %v4984_v19 }
0x1013   : > { %v5032_v25 = vsel %vm5000_vm15, %v4984_v19, %v5016_v29  ;;  %v5444_v29 = vperm.slane %v362_v4, 1 }
0x1014   : > { %v5048_v59 = vadd.f32 1.0, %v5032_v25 }
0x1016   : > { %v5064_v54 = vmul.f32 %v5048_v59, %v4440_v33 }
0x1018   : > { %v5072_v62 = vpack.c.bf16 %v5064_v54, %v5060_v46 }
0x101a   : > { %5393 = vmatmul.bf16.gmra.mxu2 %v5072_v62 }
0x1037   : > { %v5357_v10 = vpop.f32.mrf.mxu0  ;;  %v5374_v7 = vpop.f32.mrf.mxu1 }
0x103f   : > { %v5358_v42 = vpop.f32.mrf.mxu0  ;;  %v5375_v21 = vpop.f32.mrf.mxu1 }
0x104d   : > { %v5340_v8 = vpop.f32.mrf.mxu3 }
0x1055   : > { %v5341_v37 = vpop.f32.mrf.mxu3 }
0x1056   : > { %v5391_v12 = vpop.f32.mrf.mxu2 }
0x105e   : > { %v5392_v52 = vpop.f32.mrf.mxu2 }
0x1080   : > { %v5360_v56 = vpop.f32.mrf.mxu0 }
0x1085   : > { %v5377_v32 = vpop.f32.mrf.mxu1 }
0x1088   : > { %v5362_v11 = vpop.f32.mrf.mxu0 }
0x108d   : > { %v5379_v1 = vpop.f32.mrf.mxu1 }
0x1093   : > { %v5343_v43 = vpop.f32.mrf.mxu3 }
0x1094   : > { %v5344_v53 = vadd.f32 %v5343_v43, %v5138_v41 }
0x1096   : > { %v5361_v5 = vadd.f32 %v5360_v56, %v5344_v53 }
0x1098   : > { %v5378_v24 = vadd.f32 %v5377_v32, %v5361_v5 }
0x109b   : > { %v5345_v22 = vpop.f32.mrf.mxu3 }
0x109c   : > { %v5346_v51 = vadd.f32 %v5345_v22, %v5138_v41 }
0x109d   : > { %v5394_v23 = vpop.f32.mrf.mxu2 }
0x109e   : > { %v5395_v14 = vadd.f32 %v5394_v23, %v5378_v24  ;;  %v5363_v0 = vadd.f32 %v5362_v11, %v5346_v51 }
0x10a0   : > { %v5399_v34 = vadd.f32 %v5395_v14, %v9386_v15  ;;  %v5380_v63 = vadd.f32 %v5379_v1, %v5363_v0 }
0x10a2   : > { %5401 = vadd.xlane.f32.xlu0 %v5399_v34 }
0x10a5   : > { %v5396_v48 = vpop.f32.mrf.mxu2 }
0x10a6   : > { %v5397_v17 = vadd.f32 %v5396_v48, %v5380_v63 }
0x10a8   : > { %v5400_v20 = vadd.f32 %v5397_v17, %v9390_v49 }
0x10aa   : > { %5403 = vadd.xlane.f32.xlu1 %v5400_v20 }
0x1115   : > { %v5402_v57 = vpop.xlane.xlu0 %5401 }
0x1116   : > { %v5405_v35 = vmul.f32 %v5402_v57, %v7234_v18 }
0x1118   : > { %v5407_v39 = vsub.f32 %v5399_v34, %v5405_v35 }
0x111a   : > { %v5409_v2 = vmul.f32 %v5407_v39, %v5407_v39 }
0x111c   : > { %5411 = vadd.xlane.f32.xlu2 %v5409_v2 }
0x111d   : > { %v5404_v47 = vpop.xlane.xlu1 %5403 }
0x111e   : > { %v5406_v28 = vmul.f32 %v5404_v47, %v7234_v18 }
0x1120   : > { %v5408_v30 = vsub.f32 %v5400_v20, %v5406_v28 }
0x1122   : > { %v5410_v36 = vmul.f32 %v5408_v30, %v5408_v30 }
0x1124   : > { %5413 = vadd.xlane.f32.xlu0 %v5410_v36 }
0x118f   : > { %v5412_v15 = vpop.xlane.xlu2 %5411 }
0x1190   : > { %v5415_v45 = vmul.f32 %v5412_v15, %v7234_v18 }
0x1192   : > { %v5417_v9 = vadd.f32 1e-05, %v5415_v45 }
0x1194   : > { %7028 = vrsqrt.f32 %v5417_v9  ;;  %vm5425_vm14 = vweird.f32 %v5417_v9 }
0x1197   : > { %v5414_v49 = vpop.xlane.xlu0 %5413 }
0x1198   : > { %v5416_v6 = vmul.f32 %v5414_v49, %v7234_v18 }
0x119a   : > { %v7029_v61 = vpop.eup %7028  ;;  %v5418_v31 = vadd.f32 1e-05, %v5416_v6 }
0x119b   : > { %v5420_v16 = vmul.f32 %v7029_v61, %v5417_v9  ;;  %vm5426_vm11 = vweird.f32 %v7029_v61 }
0x119c   : > { %7030 = vrsqrt.f32 %v5418_v31  ;;  %vm5427_vm0 = vmor %vm5425_vm14, %vm5426_vm11  ;;  %vm5435_vm13 = vweird.f32 %v5418_v31 }
0x119d   : > { %v5421_v50 = vmul.f32 %v7029_v61, %v5420_v16 }
0x119f   : > { %v5422_v44 = vmul.f32 0.5, %v5421_v50 }
0x11a1   : > { %v5423_v3 = vsub.f32 1.5, %v5422_v44 }
0x11a2   : > { %v7031_v13 = vpop.eup %7030 }
0x11a3   : > { %v5424_v60 = vmul.f32 %v7029_v61, %v5423_v3  ;;  %v5430_v40 = vmul.f32 %v7031_v13, %v5418_v31  ;;  %vm5436_vm5 = vweird.f32 %v7031_v13 }
0x11a4   : > { %vm5437_vm2 = vmor %vm5435_vm13, %vm5436_vm5 }
0x11a5   : > { %v5428_v18 = vsel %vm5427_vm0, %v7029_v61, %v5424_v60  ;;  %v5431_v26 = vmul.f32 %v7031_v13, %v5430_v40 }
0x11a6   : > { %v5439_v19 = vmul.f32 %v5428_v18, %v5407_v39 }
0x11a7   : > { %v5432_v55 = vmul.f32 0.5, %v5431_v26 }
0x11a8   : > { %v5442_v25 = vmul.f32 %v5441_v58, %v5439_v19 }
0x11a9   : > { %v5433_v38 = vsub.f32 1.5, %v5432_v55 }
0x11aa   : > { %v5445_v33 = vadd.f32 %v5444_v29, %v5442_v25 }
0x11ab   : > { %v5434_v59 = vmul.f32 %v7031_v13, %v5433_v38 }
0x11ac   : > { %5447 = vst [vmem:[%s340_s26] sm:$0xff] %v5445_v33 }
0x11ad   : > { %v5438_v46 = vsel %vm5437_vm2, %v7031_v13, %v5434_v59 }
0x11ae   : > { %v5440_v54 = vmul.f32 %v5438_v46, %v5408_v30 }
0x11b0   : > { %v5443_v62 = vmul.f32 %v5441_v58, %v5440_v54 }
0x11b2   : > { %v5446_v10 = vadd.f32 %v5444_v29, %v5443_v62 }
0x11b4   : > { %5448 = vst [vmem:[%s340_s26 + $0x8] sm:$0xff] %v5446_v10 }
0x11b5   : > { %7067 = shalt.err (!%p7064_p3)
}
0x11b6   : > { %s7108_s23 = smov 128   ;;  %s7109_s27 = smov 8  }
0x11b7   : > { %6693 = dma.vmem_to_hbm [thread:$0]  (%p7198_p5), %s5463_s28, 256, %s5465_s16, %s5450_s13, %s7108_s23, %s7108_s23, %s7109_s27  }
0x11b8 PF: > { %p6699_p4 = scmp.ge.s32.totalorder %s7102_s12, 2  ;;  %s5479_s26 = sand.u32 1, %s7090_s30  }
0x11b9   : > { %s5480_s22 = scalar_lea.sflag [#allocation4], %s5479_s26 }
0x11ba   : > { %p6696_p7 = pnand %p6699_p4, %p7202_p6 }
0x11bc   : > { %p6697_p8 = pneg %p6696_p7 }
0x11be   : > { %7085 = dma.done.wait (%p6697_p8), %s5480_s22, 256  }
0x11bf   : > { %7087 = vsyncadd (%p6697_p8), %s5480_s22, 4294967040  ;;  %p19_p9 = scmp.ge.s32.totalorder %s7185_s15, 4   ;;  %s10406_s30 = smov %s7094_s10 }
0x11c0   : > { %s10407_s10 = smov %s7098_s11  ;;  %s10408_s11 = smov %s7196_s18 }
0x11c1   : > { %s10409_s12 = smov %s7185_s15  ;;  %21 = sbr.rel (!%p19_p9) target bundleno = 3 (0x3), region = 99 }
0x11c6   :  { %5486 = vsyncpa [#allocation4], 1 }
0x11c7   :  { %5488 = vsyncpa [#allocation4 + $0x1], 1 }

</bundles_post_ra>
